<compile_context>
chip_gen: v7x
topology: tpu7x:2x2x1
jax: 0.10.0
libtpu: 0.0.40
codegen_flags: <defaults>
</compile_context>

<pallas_src>
import functools

import jax
import jax.numpy as jnp
import numpy as np
from jax.experimental import pallas as pl
from jax.experimental.pallas import tpu as pltpu


# ----------------------------------------------------------------------------
# Static geometry shared by wrapper and kernel (n_img = 2 images per pair).
# ----------------------------------------------------------------------------
def _level_dims(h, w, n_img=2):
    d = {}
    d["hp1"], d["wp1"] = h + 2, w + 2
    d["h2"], d["w2"] = h // 2, w // 2
    d["hp2"], d["wp2"] = d["h2"] + 2, d["w2"] + 2
    d["h3"], d["w3"] = d["h2"] // 2, d["w2"] // 2
    d["hp3"], d["wp3"] = d["h3"] + 2, d["w3"] + 2
    d["r1"] = n_img * d["hp1"] * d["wp1"]
    d["r2"] = n_img * d["hp2"] * d["wp2"]
    d["r3"] = n_img * d["hp3"] * d["wp3"]
    d["m1"] = d["r1"] - 2 * d["wp1"] - 2
    d["m2"] = d["r2"] - 2 * d["wp2"] - 2
    d["m3"] = d["r3"] - 2 * d["wp3"] - 2
    # Rows of the 2x2-max scratch hbuf: hbuf[j] = max of src rows
    # {2j, 2j+1, 2j+wp, 2j+wp+1}; lh covers the last needed pooled position.
    d["lh1"] = ((n_img - 1) * d["hp1"] * d["wp1"]
                + (2 * d["h2"] - 2) * d["wp1"] + 2 * d["w2"] - 2) // 2 + 1
    d["lh2"] = ((n_img - 1) * d["hp2"] * d["wp2"]
                + (2 * d["h3"] - 2) * d["wp2"] + 2 * d["w3"] - 2) // 2 + 1
    return d


# ----------------------------------------------------------------------------
# In-kernel helpers (operate on flat row-major padded buffers,
# row = n*Hp*Wp + y*Wp + x, channels on lanes).
# ----------------------------------------------------------------------------
def _conv_im2col(x_ref, w_ref, b_ref, out_ref, *, m, chunk):
    """conv1: (chunk, 9) x (9, Cout) MXU matmuls on a pre-built im2col LHS."""
    bias = b_ref[...]                               # (1, Cout) f32, hoisted
    for c0 in range(0, m, chunk):
        csz = min(chunk, m - c0)
        lhs = x_ref[pl.ds(c0, csz), :]              # (csz, 9) bf16
        acc = jnp.dot(lhs, w_ref[...], preferred_element_type=jnp.float32)
        out_ref[pl.ds(c0, csz), :] = jnp.maximum(acc + bias, 0.0).astype(
            out_ref.dtype)


def _conv3x3(src_ref, w_ref, b_ref, out_ref, *, pitch, m, chunk,
             out_offset=0, mask_ref=None):
    """3x3 'same' conv + bias + ReLU as 9 shifted whole-chunk MXU matmuls.

    src_ref : (R, Cin) bf16 zero-padded buffer (pitch = Wp of this level)
    w_ref   : (9, Cin, Cout) bf16, tap k = dy*3 + dx
    out_ref : (*, Cout); conv-output row r is stored at row r + out_offset
    mask_ref: optional (m, 1) f32 {0,1}; zeroes rows whose 3x3 window
              straddles images/padding (garbage rows).
    """
    bias = b_ref[...]                               # hoisted
    for c0 in range(0, m, chunk):
        csz = min(chunk, m - c0)
        acc = None
        for k in range(9):
            dy, dx = divmod(k, 3)
            lhs = src_ref[pl.ds(c0 + dy * pitch + dx, csz), :]   # bf16
            t = jnp.dot(lhs, w_ref[k], preferred_element_type=jnp.float32)
            acc = t if acc is None else acc + t
        val = jnp.maximum(acc + bias, 0.0)
        if mask_ref is not None:
            val = val * mask_ref[pl.ds(c0, csz), :]
        out_ref[pl.ds(c0 + out_offset, csz), :] = val.astype(out_ref.dtype)


def _maxpool2x2(src_ref, hbuf, dst_ref, *, n_img, hp_src, wp_src,
                h_out, w_out, hp_dst, wp_dst, lh):
    """2x2/2 maxpool: one whole-slab 4-way strided max into hbuf, then one
    contiguous (w_out, C) copy per pooled row into the interior of the next
    level's zeroed padded buffer."""
    hbuf[pl.ds(0, lh), :] = jnp.maximum(
        jnp.maximum(src_ref[pl.ds(0, lh, 2), :],
                    src_ref[pl.ds(1, lh, 2), :]),
        jnp.maximum(src_ref[pl.ds(wp_src, lh, 2), :],
                    src_ref[pl.ds(wp_src + 1, lh, 2), :])).astype(hbuf.dtype)
    half_img = hp_src * wp_src // 2
    for n in range(n_img):
        for ho in range(h_out):
            src = n * half_img + ho * wp_src
            dst = (n * hp_dst + 1 + ho) * wp_dst + 1
            dst_ref[pl.ds(dst, w_out), :] = hbuf[pl.ds(src, w_out), :]


# ----------------------------------------------------------------------------
# Fused VGG11-features[:10] + MSE-partial kernel (one output/target pair).
# ----------------------------------------------------------------------------
def _perceptual_kernel(x_ref, mask_ref, w1_ref, b1_ref, w2_ref, b2_ref,
                       w3_ref, b3_ref, w4_ref, b4_ref, o_ref,
                       a1, hb1, p1, a2, hb2, p2, p3, a4, *, h, w):
    n_img = 2
    dd = _level_dims(h, w, n_img)
    wp1, wp2, wp3 = dd["wp1"], dd["wp2"], dd["wp3"]
    hp1, hp2, hp3 = dd["hp1"], dd["hp2"], dd["hp3"]
    h2, w2, h3, w3 = dd["h2"], dd["w2"], dd["h3"], dd["w3"]
    m1, m2, m3, r3 = dd["m1"], dd["m2"], dd["m3"], dd["r3"]

    # Zero the padded pooled-activation buffers (borders = conv zero padding).
    p1[...] = jnp.zeros(p1.shape, p1.dtype)
    p2[...] = jnp.zeros(p2.shape, p2.dtype)

    # conv1 (im2col MXU matmul, 3 identical channels folded into w1), pool1.
    _conv_im2col(x_ref, w1_ref, b1_ref, a1, m=m1, chunk=256)
    _maxpool2x2(a1, hb1, p1, n_img=n_img, hp_src=hp1, wp_src=wp1,
                h_out=h2, w_out=w2, hp_dst=hp2, wp_dst=wp2, lh=dd["lh1"])

    # conv2 + pool2.
    _conv3x3(p1, w2_ref, b2_ref, a2, pitch=wp2, m=m2, chunk=128)
    _maxpool2x2(a2, hb2, p2, n_img=n_img, hp_src=hp2, wp_src=wp2,
                h_out=h3, w_out=w3, hp_dst=hp3, wp_dst=wp3, lh=dd["lh2"])

    # conv3 writes (masked) straight into the interior of padded p3
    # (row offset wp3+1); only the head/tail frame rows need explicit zeros.
    p3[pl.ds(0, wp3 + 1), :] = jnp.zeros((wp3 + 1, p3.shape[1]), p3.dtype)
    p3[pl.ds(m3 + wp3 + 1, wp3 + 1), :] = jnp.zeros((wp3 + 1, p3.shape[1]),
                                                    p3.dtype)
    _conv3x3(p2, w3_ref, b3_ref, p3, pitch=wp3, m=m3, chunk=64,
             out_offset=wp3 + 1, mask_ref=mask_ref)

    # conv4 (masked so garbage rows are exactly zero in both batch halves),
    # plus zero the never-written tail rows of a4.
    a4[pl.ds(m3, r3 - m3), :] = jnp.zeros((r3 - m3, a4.shape[1]), a4.dtype)
    _conv3x3(p3, w4_ref, b4_ref, a4, pitch=wp3, m=m3, chunk=64,
             mask_ref=mask_ref)

    # MSE partial for this pair: whole-block subtract / square / sum.
    # Garbage + padding rows are zero in both halves -> contribute 0.
    half_rows = hp3 * wp3
    d = a4[pl.ds(0, half_rows), :] - a4[pl.ds(half_rows, half_rows), :]
    o_ref[...] = jnp.sum(d * d, keepdims=True)


# ----------------------------------------------------------------------------
# Host-side wrappers.
# ----------------------------------------------------------------------------
def _vmem_padded_bytes(shape, dtype):
    dt = jnp.dtype(dtype)
    sub = 8 if dt.itemsize >= 4 else 16
    rows, lanes = shape[-2], shape[-1]
    lead = 1
    for s in shape[:-2]:
        lead *= s
    rows_p = -(-rows // sub) * sub
    lanes_p = -(-lanes // 128) * 128
    return lead * rows_p * lanes_p * dt.itemsize


def _build_pair_im2col(output_chan1, target_chan1):
    """(B,1,H,W) x2 -> (B, m1, 9) bf16 im2col over [output_i, target_i] pairs,
    flattened row-major over the zero-padded pair (row = img*Hp*Wp + y*Wp + x);
    column k = dy*3 + dx reads the flat buffer shifted by dy*Wp + dx."""
    b, _, h, w = output_chan1.shape
    hp, wp = h + 2, w + 2
    m1 = 2 * hp * wp - 2 * wp - 2
    x = jnp.stack([output_chan1[:, 0], target_chan1[:, 0]], axis=1)  # (B,2,H,W)
    xp = jnp.pad(x.astype(jnp.float32), ((0, 0), (0, 0), (1, 1), (1, 1)))
    flat = xp.reshape(b, 2 * hp * wp)
    cols = [flat[:, dy * wp + dx: dy * wp + dx + m1]
            for dy in range(3) for dx in range(3)]
    return jnp.stack(cols, axis=-1).astype(jnp.bfloat16)            # (B,m1,9)


def _valid_row_mask(dd):
    """(m3, 1) f32 mask: 1 where the level-3 conv-output row is a real (h<h3,
    w<w3) position, 0 where its 3x3 window straddles images/padding."""
    r = np.arange(dd["m3"])
    rr = r % (dd["hp3"] * dd["wp3"])
    hh = rr // dd["wp3"]
    ww = rr % dd["wp3"]
    mask = ((hh < dd["h3"]) & (ww < dd["w3"])).astype(np.float32)
    return jnp.asarray(mask.reshape(dd["m3"], 1))


@jax.jit
def perceptual_loss(output_chan1, target_chan1, params):
    b, c, h, w = output_chan1.shape
    assert c == 1 and h % 4 == 0 and w % 4 == 0
    dd = _level_dims(h, w, n_img=2)

    c1 = params["w1"].shape[-1]   # 64
    c2 = params["w2"].shape[-1]   # 128
    c3 = params["w3"].shape[-1]   # 256
    c4 = params["w4"].shape[-1]   # 256

    x_pairs = _build_pair_im2col(output_chan1, target_chan1)  # (B, m1, 9)
    mask3 = _valid_row_mask(dd)                               # (m3, 1) f32

    args = (x_pairs, mask3,
            params["w1"], params["b1"], params["w2"], params["b2"],
            params["w3"], params["b3"], params["w4"], params["b4"])

    def const_spec(a):
        zeros = (0,) * a.ndim
        return pl.BlockSpec(a.shape, lambda i, _z=zeros: _z)

    in_specs = [pl.BlockSpec((None, dd["m1"], 9), lambda i: (i, 0, 0))]
    in_specs += [const_spec(a) for a in args[1:]]

    scratch_defs = [
        ((dd["m1"], c1), jnp.float32),    # a1: conv1 output
        ((dd["lh1"], c1), jnp.bfloat16),  # hb1: pool1 2x2 maxes
        ((dd["r2"], c1), jnp.bfloat16),   # p1: padded pool1 output
        ((dd["m2"], c2), jnp.float32),    # a2: conv2 output
        ((dd["lh2"], c2), jnp.bfloat16),  # hb2: pool2 2x2 maxes
        ((dd["r3"], c2), jnp.bfloat16),   # p2: padded pool2 output
        ((dd["r3"], c3), jnp.bfloat16),   # p3: padded conv3 output
        ((dd["r3"], c4), jnp.float32),    # a4: conv4 output (features)
    ]
    scratch_shapes = [pltpu.VMEM(s, dt) for s, dt in scratch_defs]

    # Raise the scoped-VMEM budget when needed (v5e default is 16 MiB); stay
    # well under v7x's 64 MiB physical VMEM.
    need = sum(_vmem_padded_bytes(s, dt) for s, dt in scratch_defs)
    need += sum(2 * _vmem_padded_bytes(a.shape, a.dtype) for a in args)
    vmem_limit = int(min(max(need * 3 // 2 + (8 << 20), 32 << 20), 48 << 20))

    kernel = functools.partial(_perceptual_kernel, h=h, w=w)
    partials = pl.pallas_call(
        kernel,
        out_shape=jax.ShapeDtypeStruct((b, 1, 1), jnp.float32),
        grid=(b,),
        in_specs=in_specs,
        out_specs=pl.BlockSpec((None, 1, 1), lambda i: (i, 0, 0)),
        scratch_shapes=scratch_shapes,
        compiler_params=pltpu.CompilerParams(
            dimension_semantics=("parallel",),
            vmem_limit_bytes=vmem_limit,
        ),
    )(*args)

    denom = float(b * dd["h3"] * dd["w3"] * c4)
    return jnp.sum(partials) / denom


# ----------------------------------------------------------------------------
# Deterministic synthetic VGG11 parameters (torchvision vgg11 conv shapes:
# 3->64, 64->128, 128->256, 256->256, all 3x3).
# TODO(synk): real pretrained-weight loading (torch.load) is outside the
# kernel's scope; synthetic weights keep the forward semantics identical.
# ----------------------------------------------------------------------------
def init_params(key):
    def conv_init(k, cin, cout):
        kw, kb = jax.random.split(k)
        wgt = jax.random.normal(kw, (3, 3, cin, cout), jnp.float32) * 0.05
        bia = jax.random.normal(kb, (cout,), jnp.float32) * 0.01
        return wgt, bia

    k1, k2, k3, k4 = jax.random.split(key, 4)
    w1, b1 = conv_init(k1, 3, 64)
    w2, b2 = conv_init(k2, 64, 128)
    w3, b3 = conv_init(k3, 128, 256)
    w4, b4 = conv_init(k4, 256, 256)
    return dict(w1=w1, b1=b1, w2=w2, b2=b2, w3=w3, b3=b3, w4=w4, b4=b4)


def prepare_params(raw):
    """Kernel-format params: tap-major (9, Cin, Cout) bf16 weights (tap
    k = dy*3 + dx); conv1 folded over its 3 identical input channels
    (cat(x,x,x) => sum of per-channel filters) to (9, 64); biases f32 (1, C)."""
    def taps(wt):  # (3, 3, Cin, Cout) -> (9, Cin, Cout)
        return wt.reshape(9, wt.shape[2], wt.shape[3])

    return dict(
        w1=taps(raw["w1"]).sum(axis=1).astype(jnp.bfloat16),       # (9, 64)
        b1=raw["b1"].reshape(1, -1).astype(jnp.float32),
        w2=taps(raw["w2"]).astype(jnp.bfloat16),
        b2=raw["b2"].reshape(1, -1).astype(jnp.float32),
        w3=taps(raw["w3"]).astype(jnp.bfloat16),
        b3=raw["b3"].reshape(1, -1).astype(jnp.float32),
        w4=taps(raw["w4"]).astype(jnp.bfloat16),
        b4=raw["b4"].reshape(1, -1).astype(jnp.float32),
    )


if __name__ == "__main__":
    key = jax.random.PRNGKey(0)
    k_params, k_out, k_tgt = jax.random.split(key, 3)

    params = prepare_params(init_params(k_params))

    # Small shapes consistent with the module: batch=2, 1 channel, 16x16.
    output_chan1 = jax.random.normal(k_out, (2, 1, 16, 16), jnp.float32)
    target_chan1 = jax.random.normal(k_tgt, (2, 1, 16, 16), jnp.float32)

    loss = perceptual_loss(output_chan1, target_chan1, params)
    jax.block_until_ready(loss)
    print("KERNEL_OK")
</pallas_src>

<mosaic_0001>
module attributes {stable_mosaic.version = 11 : i64} {
  func.func @_perceptual_kernel(%arg0: i32, %arg1: memref<1x610x9xbf16, #tpu.memory_space<vmem>>, %arg2: memref<58x1xf32, #tpu.memory_space<vmem>>, %arg3: memref<9x64xbf16, #tpu.memory_space<vmem>>, %arg4: memref<1x64xf32, #tpu.memory_space<vmem>>, %arg5: memref<9x64x128xbf16, #tpu.memory_space<vmem>>, %arg6: memref<1x128xf32, #tpu.memory_space<vmem>>, %arg7: memref<9x128x256xbf16, #tpu.memory_space<vmem>>, %arg8: memref<1x256xf32, #tpu.memory_space<vmem>>, %arg9: memref<9x256x256xbf16, #tpu.memory_space<vmem>>, %arg10: memref<1x256xf32, #tpu.memory_space<vmem>>, %arg11: memref<1x1x1xf32, #tpu.memory_space<vmem>>, %arg12: memref<610x64xf32, #tpu.memory_space<vmem>>, %arg13: memref<296x64xbf16, #tpu.memory_space<vmem>>, %arg14: memref<200x64xbf16, #tpu.memory_space<vmem>>, %arg15: memref<178x128xf32, #tpu.memory_space<vmem>>, %arg16: memref<84x128xbf16, #tpu.memory_space<vmem>>, %arg17: memref<72x128xbf16, #tpu.memory_space<vmem>>, %arg18: memref<72x256xbf16, #tpu.memory_space<vmem>>, %arg19: memref<72x256xf32, #tpu.memory_space<vmem>>) attributes {dimension_semantics = [#tpu.dimension_semantics<parallel>], iteration_bounds = array<i64: 2>, scalar_prefetch = 0 : i64, scratch_operands = 8 : i64, tpu.core_type = #tpu.core_type<tc>, window_params = [{transform_indices = @transform_0, window_bounds = array<i64: 1, 610, 9>}, {pipeline_mode = #tpu.pipeline_mode<synchronous>, transform_indices = @transform_1, window_bounds = array<i64: 58, 1>}, {pipeline_mode = #tpu.pipeline_mode<synchronous>, transform_indices = @transform_2, window_bounds = array<i64: 9, 64>}, {pipeline_mode = #tpu.pipeline_mode<synchronous>, transform_indices = @transform_3, window_bounds = array<i64: 1, 64>}, {pipeline_mode = #tpu.pipeline_mode<synchronous>, transform_indices = @transform_4, window_bounds = array<i64: 9, 64, 128>}, {pipeline_mode = #tpu.pipeline_mode<synchronous>, transform_indices = @transform_5, window_bounds = array<i64: 1, 128>}, {pipeline_mode = #tpu.pipeline_mode<synchronous>, transform_indices = @transform_6, window_bounds = array<i64: 9, 128, 256>}, {pipeline_mode = #tpu.pipeline_mode<synchronous>, transform_indices = @transform_7, window_bounds = array<i64: 1, 256>}, {pipeline_mode = #tpu.pipeline_mode<synchronous>, transform_indices = @transform_8, window_bounds = array<i64: 9, 256, 256>}, {pipeline_mode = #tpu.pipeline_mode<synchronous>, transform_indices = @transform_9, window_bounds = array<i64: 1, 256>}, {transform_indices = @transform_10, window_bounds = array<i64: 1, 1, 1>}]} {
    %cst = arith.constant 0.000000e+00 : bf16
    %0 = vector.broadcast %cst : bf16 to vector<200x64xbf16>
    %c0 = arith.constant 0 : index
    %c0_0 = arith.constant 0 : index
    %1 = vector.load %arg14[%c0, %c0_0] : memref<200x64xbf16, #tpu.memory_space<vmem>>, vector<200x64xbf16>
    tpu.vector_store %arg14[%c0, %c0_0], %0 {strides = array<i32>} : memref<200x64xbf16, #tpu.memory_space<vmem>>, vector<200x64xbf16>,
    %cst_1 = arith.constant 0.000000e+00 : bf16
    %2 = vector.broadcast %cst_1 : bf16 to vector<72x128xbf16>
    %c0_2 = arith.constant 0 : index
    %c0_3 = arith.constant 0 : index
    %3 = vector.load %arg17[%c0_2, %c0_3] : memref<72x128xbf16, #tpu.memory_space<vmem>>, vector<72x128xbf16>
    tpu.vector_store %arg17[%c0_2, %c0_3], %2 {strides = array<i32>} : memref<72x128xbf16, #tpu.memory_space<vmem>>, vector<72x128xbf16>,
    %c0_4 = arith.constant 0 : index
    %c0_5 = arith.constant 0 : index
    %4 = vector.load %arg4[%c0_4, %c0_5] : memref<1x64xf32, #tpu.memory_space<vmem>>, vector<1x64xf32>
    %c0_6 = arith.constant 0 : index
    %c0_7 = arith.constant 0 : index
    %c0_8 = arith.constant 0 : index
    %5 = vector.load %arg1[%c0_6, %c0_7, %c0_8] : memref<1x610x9xbf16, #tpu.memory_space<vmem>>, vector<1x256x9xbf16>
    %6 = vector.shape_cast %5 : vector<1x256x9xbf16> to vector<256x9xbf16>
    %c0_9 = arith.constant 0 : index
    %c0_10 = arith.constant 0 : index
    %7 = vector.load %arg3[%c0_9, %c0_10] : memref<9x64xbf16, #tpu.memory_space<vmem>>, vector<9x64xbf16>
    %cst_11 = arith.constant dense<0.000000e+00> : vector<256x64xf32>
    %8 = tpu.matmul %6, %7, %cst_11 {dimension_numbers = #tpu.dot_dimension_numbers<[1], [0], [0], [1], [0, 0, 1, 1], [], []>} : vector<256x9xbf16>, vector<9x64xbf16>, vector<256x64xf32> -> vector<256x64xf32>
    %9 = vector.broadcast %4 : vector<1x64xf32> to vector<256x64xf32>
    %10 = arith.addf %8, %9 : vector<256x64xf32>
    %cst_12 = arith.constant 0.000000e+00 : f32
    %11 = vector.broadcast %cst_12 : f32 to vector<256x64xf32>
    %12 = arith.maximumf %10, %11 : vector<256x64xf32>
    %c0_13 = arith.constant 0 : index
    %c0_14 = arith.constant 0 : index
    %13 = vector.load %arg12[%c0_13, %c0_14] : memref<610x64xf32, #tpu.memory_space<vmem>>, vector<256x64xf32>
    tpu.vector_store %arg12[%c0_13, %c0_14], %12 {strides = array<i32>} : memref<610x64xf32, #tpu.memory_space<vmem>>, vector<256x64xf32>,
    %c0_15 = arith.constant 0 : index
    %c256 = arith.constant 256 : index
    %c0_16 = arith.constant 0 : index
    %14 = vector.load %arg1[%c0_15, %c256, %c0_16] : memref<1x610x9xbf16, #tpu.memory_space<vmem>>, vector<1x256x9xbf16>
    %15 = vector.shape_cast %14 : vector<1x256x9xbf16> to vector<256x9xbf16>
    %c0_17 = arith.constant 0 : index
    %c0_18 = arith.constant 0 : index
    %16 = vector.load %arg3[%c0_17, %c0_18] : memref<9x64xbf16, #tpu.memory_space<vmem>>, vector<9x64xbf16>
    %cst_19 = arith.constant dense<0.000000e+00> : vector<256x64xf32>
    %17 = tpu.matmul %15, %16, %cst_19 {dimension_numbers = #tpu.dot_dimension_numbers<[1], [0], [0], [1], [0, 0, 1, 1], [], []>} : vector<256x9xbf16>, vector<9x64xbf16>, vector<256x64xf32> -> vector<256x64xf32>
    %18 = vector.broadcast %4 : vector<1x64xf32> to vector<256x64xf32>
    %19 = arith.addf %17, %18 : vector<256x64xf32>
    %cst_20 = arith.constant 0.000000e+00 : f32
    %20 = vector.broadcast %cst_20 : f32 to vector<256x64xf32>
    %21 = arith.maximumf %19, %20 : vector<256x64xf32>
    %c256_21 = arith.constant 256 : index
    %c0_22 = arith.constant 0 : index
    %22 = vector.load %arg12[%c256_21, %c0_22] : memref<610x64xf32, #tpu.memory_space<vmem>>, vector<256x64xf32>
    tpu.vector_store %arg12[%c256_21, %c0_22], %21 {strides = array<i32>} : memref<610x64xf32, #tpu.memory_space<vmem>>, vector<256x64xf32>,
    %c0_23 = arith.constant 0 : index
    %c512 = arith.constant 512 : index
    %c0_24 = arith.constant 0 : index
    %23 = vector.load %arg1[%c0_23, %c512, %c0_24] : memref<1x610x9xbf16, #tpu.memory_space<vmem>>, vector<1x98x9xbf16>
    %24 = vector.shape_cast %23 : vector<1x98x9xbf16> to vector<98x9xbf16>
    %c0_25 = arith.constant 0 : index
    %c0_26 = arith.constant 0 : index
    %25 = vector.load %arg3[%c0_25, %c0_26] : memref<9x64xbf16, #tpu.memory_space<vmem>>, vector<9x64xbf16>
    %cst_27 = arith.constant dense<0.000000e+00> : vector<98x64xf32>
    %26 = tpu.matmul %24, %25, %cst_27 {dimension_numbers = #tpu.dot_dimension_numbers<[1], [0], [0], [1], [0, 0, 1, 1], [], []>} : vector<98x9xbf16>, vector<9x64xbf16>, vector<98x64xf32> -> vector<98x64xf32>
    %27 = vector.broadcast %4 : vector<1x64xf32> to vector<98x64xf32>
    %28 = arith.addf %26, %27 : vector<98x64xf32>
    %cst_28 = arith.constant 0.000000e+00 : f32
    %29 = vector.broadcast %cst_28 : f32 to vector<98x64xf32>
    %30 = arith.maximumf %28, %29 : vector<98x64xf32>
    %c512_29 = arith.constant 512 : index
    %c0_30 = arith.constant 0 : index
    %31 = vector.load %arg12[%c512_29, %c0_30] : memref<610x64xf32, #tpu.memory_space<vmem>>, vector<98x64xf32>
    tpu.vector_store %arg12[%c512_29, %c0_30], %30 {strides = array<i32>} : memref<610x64xf32, #tpu.memory_space<vmem>>, vector<98x64xf32>,
    %c0_31 = arith.constant 0 : index
    %c0_32 = arith.constant 0 : index
    %32 = tpu.strided_load %arg12[%c0_31, %c0_32] {strides = array<i32: 2, 1>} : memref<610x64xf32, #tpu.memory_space<vmem>>, vector<296x64xf32>
    %c1 = arith.constant 1 : index
    %c0_33 = arith.constant 0 : index
    %33 = tpu.strided_load %arg12[%c1, %c0_33] {strides = array<i32: 2, 1>} : memref<610x64xf32, #tpu.memory_space<vmem>>, vector<296x64xf32>
    %34 = arith.maximumf %32, %33 : vector<296x64xf32>
    %c18 = arith.constant 18 : index
    %c0_34 = arith.constant 0 : index
    %35 = tpu.strided_load %arg12[%c18, %c0_34] {strides = array<i32: 2, 1>} : memref<610x64xf32, #tpu.memory_space<vmem>>, vector<296x64xf32>
    %c19 = arith.constant 19 : index
    %c0_35 = arith.constant 0 : index
    %36 = tpu.strided_load %arg12[%c19, %c0_35] {strides = array<i32: 2, 1>} : memref<610x64xf32, #tpu.memory_space<vmem>>, vector<296x64xf32>
    %37 = arith.maximumf %35, %36 : vector<296x64xf32>
    %38 = arith.maximumf %34, %37 : vector<296x64xf32>
    %39 = arith.truncf %38 : vector<296x64xf32> to vector<296x64xbf16>
    %c0_36 = arith.constant 0 : index
    %c0_37 = arith.constant 0 : index
    %40 = vector.load %arg13[%c0_36, %c0_37] : memref<296x64xbf16, #tpu.memory_space<vmem>>, vector<296x64xbf16>
    tpu.vector_store %arg13[%c0_36, %c0_37], %39 {strides = array<i32>} : memref<296x64xbf16, #tpu.memory_space<vmem>>, vector<296x64xbf16>,
    %c0_38 = arith.constant 0 : index
    %c0_39 = arith.constant 0 : index
    %41 = vector.load %arg13[%c0_38, %c0_39] : memref<296x64xbf16, #tpu.memory_space<vmem>>, vector<8x64xbf16>
    %c11 = arith.constant 11 : index
    %c0_40 = arith.constant 0 : index
    %42 = vector.load %arg14[%c11, %c0_40] : memref<200x64xbf16, #tpu.memory_space<vmem>>, vector<8x64xbf16>
    tpu.vector_store %arg14[%c11, %c0_40], %41 {strides = array<i32>} : memref<200x64xbf16, #tpu.memory_space<vmem>>, vector<8x64xbf16>,
    %c18_41 = arith.constant 18 : index
    %c0_42 = arith.constant 0 : index
    %43 = vector.load %arg13[%c18_41, %c0_42] : memref<296x64xbf16, #tpu.memory_space<vmem>>, vector<8x64xbf16>
    %c21 = arith.constant 21 : index
    %c0_43 = arith.constant 0 : index
    %44 = vector.load %arg14[%c21, %c0_43] : memref<200x64xbf16, #tpu.memory_space<vmem>>, vector<8x64xbf16>
    tpu.vector_store %arg14[%c21, %c0_43], %43 {strides = array<i32>} : memref<200x64xbf16, #tpu.memory_space<vmem>>, vector<8x64xbf16>,
    %c36 = arith.constant 36 : index
    %c0_44 = arith.constant 0 : index
    %45 = vector.load %arg13[%c36, %c0_44] : memref<296x64xbf16, #tpu.memory_space<vmem>>, vector<8x64xbf16>
    %c31 = arith.constant 31 : index
    %c0_45 = arith.constant 0 : index
    %46 = vector.load %arg14[%c31, %c0_45] : memref<200x64xbf16, #tpu.memory_space<vmem>>, vector<8x64xbf16>
    tpu.vector_store %arg14[%c31, %c0_45], %45 {strides = array<i32>} : memref<200x64xbf16, #tpu.memory_space<vmem>>, vector<8x64xbf16>,
    %c54 = arith.constant 54 : index
    %c0_46 = arith.constant 0 : index
    %47 = vector.load %arg13[%c54, %c0_46] : memref<296x64xbf16, #tpu.memory_space<vmem>>, vector<8x64xbf16>
    %c41 = arith.constant 41 : index
    %c0_47 = arith.constant 0 : index
    %48 = vector.load %arg14[%c41, %c0_47] : memref<200x64xbf16, #tpu.memory_space<vmem>>, vector<8x64xbf16>
    tpu.vector_store %arg14[%c41, %c0_47], %47 {strides = array<i32>} : memref<200x64xbf16, #tpu.memory_space<vmem>>, vector<8x64xbf16>,
    %c72 = arith.constant 72 : index
    %c0_48 = arith.constant 0 : index
    %49 = vector.load %arg13[%c72, %c0_48] : memref<296x64xbf16, #tpu.memory_space<vmem>>, vector<8x64xbf16>
    %c51 = arith.constant 51 : index
    %c0_49 = arith.constant 0 : index
    %50 = vector.load %arg14[%c51, %c0_49] : memref<200x64xbf16, #tpu.memory_space<vmem>>, vector<8x64xbf16>
    tpu.vector_store %arg14[%c51, %c0_49], %49 {strides = array<i32>} : memref<200x64xbf16, #tpu.memory_space<vmem>>, vector<8x64xbf16>,
    %c90 = arith.constant 90 : index
    %c0_50 = arith.constant 0 : index
    %51 = vector.load %arg13[%c90, %c0_50] : memref<296x64xbf16, #tpu.memory_space<vmem>>, vector<8x64xbf16>
    %c61 = arith.constant 61 : index
    %c0_51 = arith.constant 0 : index
    %52 = vector.load %arg14[%c61, %c0_51] : memref<200x64xbf16, #tpu.memory_space<vmem>>, vector<8x64xbf16>
    tpu.vector_store %arg14[%c61, %c0_51], %51 {strides = array<i32>} : memref<200x64xbf16, #tpu.memory_space<vmem>>, vector<8x64xbf16>,
    %c108 = arith.constant 108 : index
    %c0_52 = arith.constant 0 : index
    %53 = vector.load %arg13[%c108, %c0_52] : memref<296x64xbf16, #tpu.memory_space<vmem>>, vector<8x64xbf16>
    %c71 = arith.constant 71 : index
    %c0_53 = arith.constant 0 : index
    %54 = vector.load %arg14[%c71, %c0_53] : memref<200x64xbf16, #tpu.memory_space<vmem>>, vector<8x64xbf16>
    tpu.vector_store %arg14[%c71, %c0_53], %53 {strides = array<i32>} : memref<200x64xbf16, #tpu.memory_space<vmem>>, vector<8x64xbf16>,
    %c126 = arith.constant 126 : index
    %c0_54 = arith.constant 0 : index
    %55 = vector.load %arg13[%c126, %c0_54] : memref<296x64xbf16, #tpu.memory_space<vmem>>, vector<8x64xbf16>
    %c81 = arith.constant 81 : index
    %c0_55 = arith.constant 0 : index
    %56 = vector.load %arg14[%c81, %c0_55] : memref<200x64xbf16, #tpu.memory_space<vmem>>, vector<8x64xbf16>
    tpu.vector_store %arg14[%c81, %c0_55], %55 {strides = array<i32>} : memref<200x64xbf16, #tpu.memory_space<vmem>>, vector<8x64xbf16>,
    %c162 = arith.constant 162 : index
    %c0_56 = arith.constant 0 : index
    %57 = vector.load %arg13[%c162, %c0_56] : memref<296x64xbf16, #tpu.memory_space<vmem>>, vector<8x64xbf16>
    %c111 = arith.constant 111 : index
    %c0_57 = arith.constant 0 : index
    %58 = vector.load %arg14[%c111, %c0_57] : memref<200x64xbf16, #tpu.memory_space<vmem>>, vector<8x64xbf16>
    tpu.vector_store %arg14[%c111, %c0_57], %57 {strides = array<i32>} : memref<200x64xbf16, #tpu.memory_space<vmem>>, vector<8x64xbf16>,
    %c180 = arith.constant 180 : index
    %c0_58 = arith.constant 0 : index
    %59 = vector.load %arg13[%c180, %c0_58] : memref<296x64xbf16, #tpu.memory_space<vmem>>, vector<8x64xbf16>
    %c121 = arith.constant 121 : index
    %c0_59 = arith.constant 0 : index
    %60 = vector.load %arg14[%c121, %c0_59] : memref<200x64xbf16, #tpu.memory_space<vmem>>, vector<8x64xbf16>
    tpu.vector_store %arg14[%c121, %c0_59], %59 {strides = array<i32>} : memref<200x64xbf16, #tpu.memory_space<vmem>>, vector<8x64xbf16>,
    %c198 = arith.constant 198 : index
    %c0_60 = arith.constant 0 : index
    %61 = vector.load %arg13[%c198, %c0_60] : memref<296x64xbf16, #tpu.memory_space<vmem>>, vector<8x64xbf16>
    %c131 = arith.constant 131 : index
    %c0_61 = arith.constant 0 : index
    %62 = vector.load %arg14[%c131, %c0_61] : memref<200x64xbf16, #tpu.memory_space<vmem>>, vector<8x64xbf16>
    tpu.vector_store %arg14[%c131, %c0_61], %61 {strides = array<i32>} : memref<200x64xbf16, #tpu.memory_space<vmem>>, vector<8x64xbf16>,
    %c216 = arith.constant 216 : index
    %c0_62 = arith.constant 0 : index
    %63 = vector.load %arg13[%c216, %c0_62] : memref<296x64xbf16, #tpu.memory_space<vmem>>, vector<8x64xbf16>
    %c141 = arith.constant 141 : index
    %c0_63 = arith.constant 0 : index
    %64 = vector.load %arg14[%c141, %c0_63] : memref<200x64xbf16, #tpu.memory_space<vmem>>, vector<8x64xbf16>
    tpu.vector_store %arg14[%c141, %c0_63], %63 {strides = array<i32>} : memref<200x64xbf16, #tpu.memory_space<vmem>>, vector<8x64xbf16>,
    %c234 = arith.constant 234 : index
    %c0_64 = arith.constant 0 : index
    %65 = vector.load %arg13[%c234, %c0_64] : memref<296x64xbf16, #tpu.memory_space<vmem>>, vector<8x64xbf16>
    %c151 = arith.constant 151 : index
    %c0_65 = arith.constant 0 : index
    %66 = vector.load %arg14[%c151, %c0_65] : memref<200x64xbf16, #tpu.memory_space<vmem>>, vector<8x64xbf16>
    tpu.vector_store %arg14[%c151, %c0_65], %65 {strides = array<i32>} : memref<200x64xbf16, #tpu.memory_space<vmem>>, vector<8x64xbf16>,
    %c252 = arith.constant 252 : index
    %c0_66 = arith.constant 0 : index
    %67 = vector.load %arg13[%c252, %c0_66] : memref<296x64xbf16, #tpu.memory_space<vmem>>, vector<8x64xbf16>
    %c161 = arith.constant 161 : index
    %c0_67 = arith.constant 0 : index
    %68 = vector.load %arg14[%c161, %c0_67] : memref<200x64xbf16, #tpu.memory_space<vmem>>, vector<8x64xbf16>
    tpu.vector_store %arg14[%c161, %c0_67], %67 {strides = array<i32>} : memref<200x64xbf16, #tpu.memory_space<vmem>>, vector<8x64xbf16>,
    %c270 = arith.constant 270 : index
    %c0_68 = arith.constant 0 : index
    %69 = vector.load %arg13[%c270, %c0_68] : memref<296x64xbf16, #tpu.memory_space<vmem>>, vector<8x64xbf16>
    %c171 = arith.constant 171 : index
    %c0_69 = arith.constant 0 : index
    %70 = vector.load %arg14[%c171, %c0_69] : memref<200x64xbf16, #tpu.memory_space<vmem>>, vector<8x64xbf16>
    tpu.vector_store %arg14[%c171, %c0_69], %69 {strides = array<i32>} : memref<200x64xbf16, #tpu.memory_space<vmem>>, vector<8x64xbf16>,
    %c288 = arith.constant 288 : index
    %c0_70 = arith.constant 0 : index
    %71 = vector.load %arg13[%c288, %c0_70] : memref<296x64xbf16, #tpu.memory_space<vmem>>, vector<8x64xbf16>
    %c181 = arith.constant 181 : index
    %c0_71 = arith.constant 0 : index
    %72 = vector.load %arg14[%c181, %c0_71] : memref<200x64xbf16, #tpu.memory_space<vmem>>, vector<8x64xbf16>
    tpu.vector_store %arg14[%c181, %c0_71], %71 {strides = array<i32>} : memref<200x64xbf16, #tpu.memory_space<vmem>>, vector<8x64xbf16>,
    %c0_72 = arith.constant 0 : index
    %c0_73 = arith.constant 0 : index
    %73 = vector.load %arg6[%c0_72, %c0_73] : memref<1x128xf32, #tpu.memory_space<vmem>>, vector<1x128xf32>
    %c0_74 = arith.constant 0 : index
    %c0_75 = arith.constant 0 : index
    %74 = vector.load %arg14[%c0_74, %c0_75] : memref<200x64xbf16, #tpu.memory_space<vmem>>, vector<128x64xbf16>
    %c0_76 = arith.constant 0 : index
    %c0_77 = arith.constant 0 : index
    %c0_78 = arith.constant 0 : index
    %75 = vector.load %arg5[%c0_76, %c0_77, %c0_78] : memref<9x64x128xbf16, #tpu.memory_space<vmem>>, vector<1x64x128xbf16>
    %76 = vector.shape_cast %75 : vector<1x64x128xbf16> to vector<64x128xbf16>
    %cst_79 = arith.constant dense<0.000000e+00> : vector<128x128xf32>
    %77 = tpu.matmul %74, %76, %cst_79 {dimension_numbers = #tpu.dot_dimension_numbers<[1], [0], [0], [1], [0, 0, 1, 1], [], []>} : vector<128x64xbf16>, vector<64x128xbf16>, vector<128x128xf32> -> vector<128x128xf32>
    %c1_80 = arith.constant 1 : index
    %c0_81 = arith.constant 0 : index
    %78 = vector.load %arg14[%c1_80, %c0_81] : memref<200x64xbf16, #tpu.memory_space<vmem>>, vector<128x64xbf16>
    %c1_82 = arith.constant 1 : index
    %c0_83 = arith.constant 0 : index
    %c0_84 = arith.constant 0 : index
    %79 = vector.load %arg5[%c1_82, %c0_83, %c0_84] : memref<9x64x128xbf16, #tpu.memory_space<vmem>>, vector<1x64x128xbf16>
    %80 = vector.shape_cast %79 : vector<1x64x128xbf16> to vector<64x128xbf16>
    %cst_85 = arith.constant dense<0.000000e+00> : vector<128x128xf32>
    %81 = tpu.matmul %78, %80, %cst_85 {dimension_numbers = #tpu.dot_dimension_numbers<[1], [0], [0], [1], [0, 0, 1, 1], [], []>} : vector<128x64xbf16>, vector<64x128xbf16>, vector<128x128xf32> -> vector<128x128xf32>
    %82 = arith.addf %77, %81 : vector<128x128xf32>
    %c2 = arith.constant 2 : index
    %c0_86 = arith.constant 0 : index
    %83 = vector.load %arg14[%c2, %c0_86] : memref<200x64xbf16, #tpu.memory_space<vmem>>, vector<128x64xbf16>
    %c2_87 = arith.constant 2 : index
    %c0_88 = arith.constant 0 : index
    %c0_89 = arith.constant 0 : index
    %84 = vector.load %arg5[%c2_87, %c0_88, %c0_89] : memref<9x64x128xbf16, #tpu.memory_space<vmem>>, vector<1x64x128xbf16>
    %85 = vector.shape_cast %84 : vector<1x64x128xbf16> to vector<64x128xbf16>
    %cst_90 = arith.constant dense<0.000000e+00> : vector<128x128xf32>
    %86 = tpu.matmul %83, %85, %cst_90 {dimension_numbers = #tpu.dot_dimension_numbers<[1], [0], [0], [1], [0, 0, 1, 1], [], []>} : vector<128x64xbf16>, vector<64x128xbf16>, vector<128x128xf32> -> vector<128x128xf32>
    %87 = arith.addf %82, %86 : vector<128x128xf32>
    %c10 = arith.constant 10 : index
    %c0_91 = arith.constant 0 : index
    %88 = vector.load %arg14[%c10, %c0_91] : memref<200x64xbf16, #tpu.memory_space<vmem>>, vector<128x64xbf16>
    %c3 = arith.constant 3 : index
    %c0_92 = arith.constant 0 : index
    %c0_93 = arith.constant 0 : index
    %89 = vector.load %arg5[%c3, %c0_92, %c0_93] : memref<9x64x128xbf16, #tpu.memory_space<vmem>>, vector<1x64x128xbf16>
    %90 = vector.shape_cast %89 : vector<1x64x128xbf16> to vector<64x128xbf16>
    %cst_94 = arith.constant dense<0.000000e+00> : vector<128x128xf32>
    %91 = tpu.matmul %88, %90, %cst_94 {dimension_numbers = #tpu.dot_dimension_numbers<[1], [0], [0], [1], [0, 0, 1, 1], [], []>} : vector<128x64xbf16>, vector<64x128xbf16>, vector<128x128xf32> -> vector<128x128xf32>
    %92 = arith.addf %87, %91 : vector<128x128xf32>
    %c11_95 = arith.constant 11 : index
    %c0_96 = arith.constant 0 : index
    %93 = vector.load %arg14[%c11_95, %c0_96] : memref<200x64xbf16, #tpu.memory_space<vmem>>, vector<128x64xbf16>
    %c4 = arith.constant 4 : index
    %c0_97 = arith.constant 0 : index
    %c0_98 = arith.constant 0 : index
    %94 = vector.load %arg5[%c4, %c0_97, %c0_98] : memref<9x64x128xbf16, #tpu.memory_space<vmem>>, vector<1x64x128xbf16>
    %95 = vector.shape_cast %94 : vector<1x64x128xbf16> to vector<64x128xbf16>
    %cst_99 = arith.constant dense<0.000000e+00> : vector<128x128xf32>
    %96 = tpu.matmul %93, %95, %cst_99 {dimension_numbers = #tpu.dot_dimension_numbers<[1], [0], [0], [1], [0, 0, 1, 1], [], []>} : vector<128x64xbf16>, vector<64x128xbf16>, vector<128x128xf32> -> vector<128x128xf32>
    %97 = arith.addf %92, %96 : vector<128x128xf32>
    %c12 = arith.constant 12 : index
    %c0_100 = arith.constant 0 : index
    %98 = vector.load %arg14[%c12, %c0_100] : memref<200x64xbf16, #tpu.memory_space<vmem>>, vector<128x64xbf16>
    %c5 = arith.constant 5 : index
    %c0_101 = arith.constant 0 : index
    %c0_102 = arith.constant 0 : index
    %99 = vector.load %arg5[%c5, %c0_101, %c0_102] : memref<9x64x128xbf16, #tpu.memory_space<vmem>>, vector<1x64x128xbf16>
    %100 = vector.shape_cast %99 : vector<1x64x128xbf16> to vector<64x128xbf16>
    %cst_103 = arith.constant dense<0.000000e+00> : vector<128x128xf32>
    %101 = tpu.matmul %98, %100, %cst_103 {dimension_numbers = #tpu.dot_dimension_numbers<[1], [0], [0], [1], [0, 0, 1, 1], [], []>} : vector<128x64xbf16>, vector<64x128xbf16>, vector<128x128xf32> -> vector<128x128xf32>
    %102 = arith.addf %97, %101 : vector<128x128xf32>
    %c20 = arith.constant 20 : index
    %c0_104 = arith.constant 0 : index
    %103 = vector.load %arg14[%c20, %c0_104] : memref<200x64xbf16, #tpu.memory_space<vmem>>, vector<128x64xbf16>
    %c6 = arith.constant 6 : index
    %c0_105 = arith.constant 0 : index
    %c0_106 = arith.constant 0 : index
    %104 = vector.load %arg5[%c6, %c0_105, %c0_106] : memref<9x64x128xbf16, #tpu.memory_space<vmem>>, vector<1x64x128xbf16>
    %105 = vector.shape_cast %104 : vector<1x64x128xbf16> to vector<64x128xbf16>
    %cst_107 = arith.constant dense<0.000000e+00> : vector<128x128xf32>
    %106 = tpu.matmul %103, %105, %cst_107 {dimension_numbers = #tpu.dot_dimension_numbers<[1], [0], [0], [1], [0, 0, 1, 1], [], []>} : vector<128x64xbf16>, vector<64x128xbf16>, vector<128x128xf32> -> vector<128x128xf32>
    %107 = arith.addf %102, %106 : vector<128x128xf32>
    %c21_108 = arith.constant 21 : index
    %c0_109 = arith.constant 0 : index
    %108 = vector.load %arg14[%c21_108, %c0_109] : memref<200x64xbf16, #tpu.memory_space<vmem>>, vector<128x64xbf16>
    %c7 = arith.constant 7 : index
    %c0_110 = arith.constant 0 : index
    %c0_111 = arith.constant 0 : index
    %109 = vector.load %arg5[%c7, %c0_110, %c0_111] : memref<9x64x128xbf16, #tpu.memory_space<vmem>>, vector<1x64x128xbf16>
    %110 = vector.shape_cast %109 : vector<1x64x128xbf16> to vector<64x128xbf16>
    %cst_112 = arith.constant dense<0.000000e+00> : vector<128x128xf32>
    %111 = tpu.matmul %108, %110, %cst_112 {dimension_numbers = #tpu.dot_dimension_numbers<[1], [0], [0], [1], [0, 0, 1, 1], [], []>} : vector<128x64xbf16>, vector<64x128xbf16>, vector<128x128xf32> -> vector<128x128xf32>
    %112 = arith.addf %107, %111 : vector<128x128xf32>
    %c22 = arith.constant 22 : index
    %c0_113 = arith.constant 0 : index
    %113 = vector.load %arg14[%c22, %c0_113] : memref<200x64xbf16, #tpu.memory_space<vmem>>, vector<128x64xbf16>
    %c8 = arith.constant 8 : index
    %c0_114 = arith.constant 0 : index
    %c0_115 = arith.constant 0 : index
    %114 = vector.load %arg5[%c8, %c0_114, %c0_115] : memref<9x64x128xbf16, #tpu.memory_space<vmem>>, vector<1x64x128xbf16>
    %115 = vector.shape_cast %114 : vector<1x64x128xbf16> to vector<64x128xbf16>
    %cst_116 = arith.constant dense<0.000000e+00> : vector<128x128xf32>
    %116 = tpu.matmul %113, %115, %cst_116 {dimension_numbers = #tpu.dot_dimension_numbers<[1], [0], [0], [1], [0, 0, 1, 1], [], []>} : vector<128x64xbf16>, vector<64x128xbf16>, vector<128x128xf32> -> vector<128x128xf32>
    %117 = arith.addf %112, %116 : vector<128x128xf32>
    %118 = vector.broadcast %73 : vector<1x128xf32> to vector<128x128xf32>
    %119 = arith.addf %117, %118 : vector<128x128xf32>
    %cst_117 = arith.constant 0.000000e+00 : f32
    %120 = vector.broadcast %cst_117 : f32 to vector<128x128xf32>
    %121 = arith.maximumf %119, %120 : vector<128x128xf32>
    %c0_118 = arith.constant 0 : index
    %c0_119 = arith.constant 0 : index
    %122 = vector.load %arg15[%c0_118, %c0_119] : memref<178x128xf32, #tpu.memory_space<vmem>>, vector<128x128xf32>
    tpu.vector_store %arg15[%c0_118, %c0_119], %121 {strides = array<i32>} : memref<178x128xf32, #tpu.memory_space<vmem>>, vector<128x128xf32>,
    %c128 = arith.constant 128 : index
    %c0_120 = arith.constant 0 : index
    %123 = vector.load %arg14[%c128, %c0_120] : memref<200x64xbf16, #tpu.memory_space<vmem>>, vector<50x64xbf16>
    %c0_121 = arith.constant 0 : index
    %c0_122 = arith.constant 0 : index
    %c0_123 = arith.constant 0 : index
    %124 = vector.load %arg5[%c0_121, %c0_122, %c0_123] : memref<9x64x128xbf16, #tpu.memory_space<vmem>>, vector<1x64x128xbf16>
    %125 = vector.shape_cast %124 : vector<1x64x128xbf16> to vector<64x128xbf16>
    %cst_124 = arith.constant dense<0.000000e+00> : vector<50x128xf32>
    %126 = tpu.matmul %123, %125, %cst_124 {dimension_numbers = #tpu.dot_dimension_numbers<[1], [0], [0], [1], [0, 0, 1, 1], [], []>} : vector<50x64xbf16>, vector<64x128xbf16>, vector<50x128xf32> -> vector<50x128xf32>
    %c129 = arith.constant 129 : index
    %c0_125 = arith.constant 0 : index
    %127 = vector.load %arg14[%c129, %c0_125] : memref<200x64xbf16, #tpu.memory_space<vmem>>, vector<50x64xbf16>
    %c1_126 = arith.constant 1 : index
    %c0_127 = arith.constant 0 : index
    %c0_128 = arith.constant 0 : index
    %128 = vector.load %arg5[%c1_126, %c0_127, %c0_128] : memref<9x64x128xbf16, #tpu.memory_space<vmem>>, vector<1x64x128xbf16>
    %129 = vector.shape_cast %128 : vector<1x64x128xbf16> to vector<64x128xbf16>
    %cst_129 = arith.constant dense<0.000000e+00> : vector<50x128xf32>
    %130 = tpu.matmul %127, %129, %cst_129 {dimension_numbers = #tpu.dot_dimension_numbers<[1], [0], [0], [1], [0, 0, 1, 1], [], []>} : vector<50x64xbf16>, vector<64x128xbf16>, vector<50x128xf32> -> vector<50x128xf32>
    %131 = arith.addf %126, %130 : vector<50x128xf32>
    %c130 = arith.constant 130 : index
    %c0_130 = arith.constant 0 : index
    %132 = vector.load %arg14[%c130, %c0_130] : memref<200x64xbf16, #tpu.memory_space<vmem>>, vector<50x64xbf16>
    %c2_131 = arith.constant 2 : index
    %c0_132 = arith.constant 0 : index
    %c0_133 = arith.constant 0 : index
    %133 = vector.load %arg5[%c2_131, %c0_132, %c0_133] : memref<9x64x128xbf16, #tpu.memory_space<vmem>>, vector<1x64x128xbf16>
    %134 = vector.shape_cast %133 : vector<1x64x128xbf16> to vector<64x128xbf16>
    %cst_134 = arith.constant dense<0.000000e+00> : vector<50x128xf32>
    %135 = tpu.matmul %132, %134, %cst_134 {dimension_numbers = #tpu.dot_dimension_numbers<[1], [0], [0], [1], [0, 0, 1, 1], [], []>} : vector<50x64xbf16>, vector<64x128xbf16>, vector<50x128xf32> -> vector<50x128xf32>
    %136 = arith.addf %131, %135 : vector<50x128xf32>
    %c138 = arith.constant 138 : index
    %c0_135 = arith.constant 0 : index
    %137 = vector.load %arg14[%c138, %c0_135] : memref<200x64xbf16, #tpu.memory_space<vmem>>, vector<50x64xbf16>
    %c3_136 = arith.constant 3 : index
    %c0_137 = arith.constant 0 : index
    %c0_138 = arith.constant 0 : index
    %138 = vector.load %arg5[%c3_136, %c0_137, %c0_138] : memref<9x64x128xbf16, #tpu.memory_space<vmem>>, vector<1x64x128xbf16>
    %139 = vector.shape_cast %138 : vector<1x64x128xbf16> to vector<64x128xbf16>
    %cst_139 = arith.constant dense<0.000000e+00> : vector<50x128xf32>
    %140 = tpu.matmul %137, %139, %cst_139 {dimension_numbers = #tpu.dot_dimension_numbers<[1], [0], [0], [1], [0, 0, 1, 1], [], []>} : vector<50x64xbf16>, vector<64x128xbf16>, vector<50x128xf32> -> vector<50x128xf32>
    %141 = arith.addf %136, %140 : vector<50x128xf32>
    %c139 = arith.constant 139 : index
    %c0_140 = arith.constant 0 : index
    %142 = vector.load %arg14[%c139, %c0_140] : memref<200x64xbf16, #tpu.memory_space<vmem>>, vector<50x64xbf16>
    %c4_141 = arith.constant 4 : index
    %c0_142 = arith.constant 0 : index
    %c0_143 = arith.constant 0 : index
    %143 = vector.load %arg5[%c4_141, %c0_142, %c0_143] : memref<9x64x128xbf16, #tpu.memory_space<vmem>>, vector<1x64x128xbf16>
    %144 = vector.shape_cast %143 : vector<1x64x128xbf16> to vector<64x128xbf16>
    %cst_144 = arith.constant dense<0.000000e+00> : vector<50x128xf32>
    %145 = tpu.matmul %142, %144, %cst_144 {dimension_numbers = #tpu.dot_dimension_numbers<[1], [0], [0], [1], [0, 0, 1, 1], [], []>} : vector<50x64xbf16>, vector<64x128xbf16>, vector<50x128xf32> -> vector<50x128xf32>
    %146 = arith.addf %141, %145 : vector<50x128xf32>
    %c140 = arith.constant 140 : index
    %c0_145 = arith.constant 0 : index
    %147 = vector.load %arg14[%c140, %c0_145] : memref<200x64xbf16, #tpu.memory_space<vmem>>, vector<50x64xbf16>
    %c5_146 = arith.constant 5 : index
    %c0_147 = arith.constant 0 : index
    %c0_148 = arith.constant 0 : index
    %148 = vector.load %arg5[%c5_146, %c0_147, %c0_148] : memref<9x64x128xbf16, #tpu.memory_space<vmem>>, vector<1x64x128xbf16>
    %149 = vector.shape_cast %148 : vector<1x64x128xbf16> to vector<64x128xbf16>
    %cst_149 = arith.constant dense<0.000000e+00> : vector<50x128xf32>
    %150 = tpu.matmul %147, %149, %cst_149 {dimension_numbers = #tpu.dot_dimension_numbers<[1], [0], [0], [1], [0, 0, 1, 1], [], []>} : vector<50x64xbf16>, vector<64x128xbf16>, vector<50x128xf32> -> vector<50x128xf32>
    %151 = arith.addf %146, %150 : vector<50x128xf32>
    %c148 = arith.constant 148 : index
    %c0_150 = arith.constant 0 : index
    %152 = vector.load %arg14[%c148, %c0_150] : memref<200x64xbf16, #tpu.memory_space<vmem>>, vector<50x64xbf16>
    %c6_151 = arith.constant 6 : index
    %c0_152 = arith.constant 0 : index
    %c0_153 = arith.constant 0 : index
    %153 = vector.load %arg5[%c6_151, %c0_152, %c0_153] : memref<9x64x128xbf16, #tpu.memory_space<vmem>>, vector<1x64x128xbf16>
    %154 = vector.shape_cast %153 : vector<1x64x128xbf16> to vector<64x128xbf16>
    %cst_154 = arith.constant dense<0.000000e+00> : vector<50x128xf32>
    %155 = tpu.matmul %152, %154, %cst_154 {dimension_numbers = #tpu.dot_dimension_numbers<[1], [0], [0], [1], [0, 0, 1, 1], [], []>} : vector<50x64xbf16>, vector<64x128xbf16>, vector<50x128xf32> -> vector<50x128xf32>
    %156 = arith.addf %151, %155 : vector<50x128xf32>
    %c149 = arith.constant 149 : index
    %c0_155 = arith.constant 0 : index
    %157 = vector.load %arg14[%c149, %c0_155] : memref<200x64xbf16, #tpu.memory_space<vmem>>, vector<50x64xbf16>
    %c7_156 = arith.constant 7 : index
    %c0_157 = arith.constant 0 : index
    %c0_158 = arith.constant 0 : index
    %158 = vector.load %arg5[%c7_156, %c0_157, %c0_158] : memref<9x64x128xbf16, #tpu.memory_space<vmem>>, vector<1x64x128xbf16>
    %159 = vector.shape_cast %158 : vector<1x64x128xbf16> to vector<64x128xbf16>
    %cst_159 = arith.constant dense<0.000000e+00> : vector<50x128xf32>
    %160 = tpu.matmul %157, %159, %cst_159 {dimension_numbers = #tpu.dot_dimension_numbers<[1], [0], [0], [1], [0, 0, 1, 1], [], []>} : vector<50x64xbf16>, vector<64x128xbf16>, vector<50x128xf32> -> vector<50x128xf32>
    %161 = arith.addf %156, %160 : vector<50x128xf32>
    %c150 = arith.constant 150 : index
    %c0_160 = arith.constant 0 : index
    %162 = vector.load %arg14[%c150, %c0_160] : memref<200x64xbf16, #tpu.memory_space<vmem>>, vector<50x64xbf16>
    %c8_161 = arith.constant 8 : index
    %c0_162 = arith.constant 0 : index
    %c0_163 = arith.constant 0 : index
    %163 = vector.load %arg5[%c8_161, %c0_162, %c0_163] : memref<9x64x128xbf16, #tpu.memory_space<vmem>>, vector<1x64x128xbf16>
    %164 = vector.shape_cast %163 : vector<1x64x128xbf16> to vector<64x128xbf16>
    %cst_164 = arith.constant dense<0.000000e+00> : vector<50x128xf32>
    %165 = tpu.matmul %162, %164, %cst_164 {dimension_numbers = #tpu.dot_dimension_numbers<[1], [0], [0], [1], [0, 0, 1, 1], [], []>} : vector<50x64xbf16>, vector<64x128xbf16>, vector<50x128xf32> -> vector<50x128xf32>
    %166 = arith.addf %161, %165 : vector<50x128xf32>
    %167 = vector.broadcast %73 : vector<1x128xf32> to vector<50x128xf32>
    %168 = arith.addf %166, %167 : vector<50x128xf32>
    %cst_165 = arith.constant 0.000000e+00 : f32
    %169 = vector.broadcast %cst_165 : f32 to vector<50x128xf32>
    %170 = arith.maximumf %168, %169 : vector<50x128xf32>
    %c128_166 = arith.constant 128 : index
    %c0_167 = arith.constant 0 : index
    %171 = vector.load %arg15[%c128_166, %c0_167] : memref<178x128xf32, #tpu.memory_space<vmem>>, vector<50x128xf32>
    tpu.vector_store %arg15[%c128_166, %c0_167], %170 {strides = array<i32>} : memref<178x128xf32, #tpu.memory_space<vmem>>, vector<50x128xf32>,
    %c0_168 = arith.constant 0 : index
    %c0_169 = arith.constant 0 : index
    %172 = tpu.strided_load %arg15[%c0_168, %c0_169] {strides = array<i32: 2, 1>} : memref<178x128xf32, #tpu.memory_space<vmem>>, vector<84x128xf32>
    %c1_170 = arith.constant 1 : index
    %c0_171 = arith.constant 0 : index
    %173 = tpu.strided_load %arg15[%c1_170, %c0_171] {strides = array<i32: 2, 1>} : memref<178x128xf32, #tpu.memory_space<vmem>>, vector<84x128xf32>
    %174 = arith.maximumf %172, %173 : vector<84x128xf32>
    %c10_172 = arith.constant 10 : index
    %c0_173 = arith.constant 0 : index
    %175 = tpu.strided_load %arg15[%c10_172, %c0_173] {strides = array<i32: 2, 1>} : memref<178x128xf32, #tpu.memory_space<vmem>>, vector<84x128xf32>
    %c11_174 = arith.constant 11 : index
    %c0_175 = arith.constant 0 : index
    %176 = tpu.strided_load %arg15[%c11_174, %c0_175] {strides = array<i32: 2, 1>} : memref<178x128xf32, #tpu.memory_space<vmem>>, vector<84x128xf32>
    %177 = arith.maximumf %175, %176 : vector<84x128xf32>
    %178 = arith.maximumf %174, %177 : vector<84x128xf32>
    %179 = arith.truncf %178 : vector<84x128xf32> to vector<84x128xbf16>
    %c0_176 = arith.constant 0 : index
    %c0_177 = arith.constant 0 : index
    %180 = vector.load %arg16[%c0_176, %c0_177] : memref<84x128xbf16, #tpu.memory_space<vmem>>, vector<84x128xbf16>
    tpu.vector_store %arg16[%c0_176, %c0_177], %179 {strides = array<i32>} : memref<84x128xbf16, #tpu.memory_space<vmem>>, vector<84x128xbf16>,
    %c0_178 = arith.constant 0 : index
    %c0_179 = arith.constant 0 : index
    %181 = vector.load %arg16[%c0_178, %c0_179] : memref<84x128xbf16, #tpu.memory_space<vmem>>, vector<4x128xbf16>
    %c7_180 = arith.constant 7 : index
    %c0_181 = arith.constant 0 : index
    %182 = vector.load %arg17[%c7_180, %c0_181] : memref<72x128xbf16, #tpu.memory_space<vmem>>, vector<4x128xbf16>
    tpu.vector_store %arg17[%c7_180, %c0_181], %181 {strides = array<i32>} : memref<72x128xbf16, #tpu.memory_space<vmem>>, vector<4x128xbf16>,
    %c10_182 = arith.constant 10 : index
    %c0_183 = arith.constant 0 : index
    %183 = vector.load %arg16[%c10_182, %c0_183] : memref<84x128xbf16, #tpu.memory_space<vmem>>, vector<4x128xbf16>
    %c13 = arith.constant 13 : index
    %c0_184 = arith.constant 0 : index
    %184 = vector.load %arg17[%c13, %c0_184] : memref<72x128xbf16, #tpu.memory_space<vmem>>, vector<4x128xbf16>
    tpu.vector_store %arg17[%c13, %c0_184], %183 {strides = array<i32>} : memref<72x128xbf16, #tpu.memory_space<vmem>>, vector<4x128xbf16>,
    %c20_185 = arith.constant 20 : index
    %c0_186 = arith.constant 0 : index
    %185 = vector.load %arg16[%c20_185, %c0_186] : memref<84x128xbf16, #tpu.memory_space<vmem>>, vector<4x128xbf16>
    %c19_187 = arith.constant 19 : index
    %c0_188 = arith.constant 0 : index
    %186 = vector.load %arg17[%c19_187, %c0_188] : memref<72x128xbf16, #tpu.memory_space<vmem>>, vector<4x128xbf16>
    tpu.vector_store %arg17[%c19_187, %c0_188], %185 {strides = array<i32>} : memref<72x128xbf16, #tpu.memory_space<vmem>>, vector<4x128xbf16>,
    %c30 = arith.constant 30 : index
    %c0_189 = arith.constant 0 : index
    %187 = vector.load %arg16[%c30, %c0_189] : memref<84x128xbf16, #tpu.memory_space<vmem>>, vector<4x128xbf16>
    %c25 = arith.constant 25 : index
    %c0_190 = arith.constant 0 : index
    %188 = vector.load %arg17[%c25, %c0_190] : memref<72x128xbf16, #tpu.memory_space<vmem>>, vector<4x128xbf16>
    tpu.vector_store %arg17[%c25, %c0_190], %187 {strides = array<i32>} : memref<72x128xbf16, #tpu.memory_space<vmem>>, vector<4x128xbf16>,
    %c50 = arith.constant 50 : index
    %c0_191 = arith.constant 0 : index
    %189 = vector.load %arg16[%c50, %c0_191] : memref<84x128xbf16, #tpu.memory_space<vmem>>, vector<4x128xbf16>
    %c43 = arith.constant 43 : index
    %c0_192 = arith.constant 0 : index
    %190 = vector.load %arg17[%c43, %c0_192] : memref<72x128xbf16, #tpu.memory_space<vmem>>, vector<4x128xbf16>
    tpu.vector_store %arg17[%c43, %c0_192], %189 {strides = array<i32>} : memref<72x128xbf16, #tpu.memory_space<vmem>>, vector<4x128xbf16>,
    %c60 = arith.constant 60 : index
    %c0_193 = arith.constant 0 : index
    %191 = vector.load %arg16[%c60, %c0_193] : memref<84x128xbf16, #tpu.memory_space<vmem>>, vector<4x128xbf16>
    %c49 = arith.constant 49 : index
    %c0_194 = arith.constant 0 : index
    %192 = vector.load %arg17[%c49, %c0_194] : memref<72x128xbf16, #tpu.memory_space<vmem>>, vector<4x128xbf16>
    tpu.vector_store %arg17[%c49, %c0_194], %191 {strides = array<i32>} : memref<72x128xbf16, #tpu.memory_space<vmem>>, vector<4x128xbf16>,
    %c70 = arith.constant 70 : index
    %c0_195 = arith.constant 0 : index
    %193 = vector.load %arg16[%c70, %c0_195] : memref<84x128xbf16, #tpu.memory_space<vmem>>, vector<4x128xbf16>
    %c55 = arith.constant 55 : index
    %c0_196 = arith.constant 0 : index
    %194 = vector.load %arg17[%c55, %c0_196] : memref<72x128xbf16, #tpu.memory_space<vmem>>, vector<4x128xbf16>
    tpu.vector_store %arg17[%c55, %c0_196], %193 {strides = array<i32>} : memref<72x128xbf16, #tpu.memory_space<vmem>>, vector<4x128xbf16>,
    %c80 = arith.constant 80 : index
    %c0_197 = arith.constant 0 : index
    %195 = vector.load %arg16[%c80, %c0_197] : memref<84x128xbf16, #tpu.memory_space<vmem>>, vector<4x128xbf16>
    %c61_198 = arith.constant 61 : index
    %c0_199 = arith.constant 0 : index
    %196 = vector.load %arg17[%c61_198, %c0_199] : memref<72x128xbf16, #tpu.memory_space<vmem>>, vector<4x128xbf16>
    tpu.vector_store %arg17[%c61_198, %c0_199], %195 {strides = array<i32>} : memref<72x128xbf16, #tpu.memory_space<vmem>>, vector<4x128xbf16>,
    %cst_200 = arith.constant 0.000000e+00 : bf16
    %197 = vector.broadcast %cst_200 : bf16 to vector<7x256xbf16>
    %c0_201 = arith.constant 0 : index
    %c0_202 = arith.constant 0 : index
    %198 = vector.load %arg18[%c0_201, %c0_202] : memref<72x256xbf16, #tpu.memory_space<vmem>>, vector<7x256xbf16>
    tpu.vector_store %arg18[%c0_201, %c0_202], %197 {strides = array<i32>} : memref<72x256xbf16, #tpu.memory_space<vmem>>, vector<7x256xbf16>,
    %cst_203 = arith.constant 0.000000e+00 : bf16
    %199 = vector.broadcast %cst_203 : bf16 to vector<7x256xbf16>
    %c65 = arith.constant 65 : index
    %c0_204 = arith.constant 0 : index
    %200 = vector.load %arg18[%c65, %c0_204] : memref<72x256xbf16, #tpu.memory_space<vmem>>, vector<7x256xbf16>
    tpu.vector_store %arg18[%c65, %c0_204], %199 {strides = array<i32>} : memref<72x256xbf16, #tpu.memory_space<vmem>>, vector<7x256xbf16>,
    %c0_205 = arith.constant 0 : index
    %c0_206 = arith.constant 0 : index
    %201 = vector.load %arg8[%c0_205, %c0_206] : memref<1x256xf32, #tpu.memory_space<vmem>>, vector<1x256xf32>
    %c0_207 = arith.constant 0 : index
    %c0_208 = arith.constant 0 : index
    %202 = vector.load %arg17[%c0_207, %c0_208] : memref<72x128xbf16, #tpu.memory_space<vmem>>, vector<58x128xbf16>
    %c0_209 = arith.constant 0 : index
    %c0_210 = arith.constant 0 : index
    %c0_211 = arith.constant 0 : index
    %203 = vector.load %arg7[%c0_209, %c0_210, %c0_211] : memref<9x128x256xbf16, #tpu.memory_space<vmem>>, vector<1x128x256xbf16>
    %204 = vector.shape_cast %203 : vector<1x128x256xbf16> to vector<128x256xbf16>
    %cst_212 = arith.constant dense<0.000000e+00> : vector<58x256xf32>
    %205 = tpu.matmul %202, %204, %cst_212 {dimension_numbers = #tpu.dot_dimension_numbers<[1], [0], [0], [1], [0, 0, 1, 1], [], []>} : vector<58x128xbf16>, vector<128x256xbf16>, vector<58x256xf32> -> vector<58x256xf32>
    %c1_213 = arith.constant 1 : index
    %c0_214 = arith.constant 0 : index
    %206 = vector.load %arg17[%c1_213, %c0_214] : memref<72x128xbf16, #tpu.memory_space<vmem>>, vector<58x128xbf16>
    %c1_215 = arith.constant 1 : index
    %c0_216 = arith.constant 0 : index
    %c0_217 = arith.constant 0 : index
    %207 = vector.load %arg7[%c1_215, %c0_216, %c0_217] : memref<9x128x256xbf16, #tpu.memory_space<vmem>>, vector<1x128x256xbf16>
    %208 = vector.shape_cast %207 : vector<1x128x256xbf16> to vector<128x256xbf16>
    %cst_218 = arith.constant dense<0.000000e+00> : vector<58x256xf32>
    %209 = tpu.matmul %206, %208, %cst_218 {dimension_numbers = #tpu.dot_dimension_numbers<[1], [0], [0], [1], [0, 0, 1, 1], [], []>} : vector<58x128xbf16>, vector<128x256xbf16>, vector<58x256xf32> -> vector<58x256xf32>
    %210 = arith.addf %205, %209 : vector<58x256xf32>
    %c2_219 = arith.constant 2 : index
    %c0_220 = arith.constant 0 : index
    %211 = vector.load %arg17[%c2_219, %c0_220] : memref<72x128xbf16, #tpu.memory_space<vmem>>, vector<58x128xbf16>
    %c2_221 = arith.constant 2 : index
    %c0_222 = arith.constant 0 : index
    %c0_223 = arith.constant 0 : index
    %212 = vector.load %arg7[%c2_221, %c0_222, %c0_223] : memref<9x128x256xbf16, #tpu.memory_space<vmem>>, vector<1x128x256xbf16>
    %213 = vector.shape_cast %212 : vector<1x128x256xbf16> to vector<128x256xbf16>
    %cst_224 = arith.constant dense<0.000000e+00> : vector<58x256xf32>
    %214 = tpu.matmul %211, %213, %cst_224 {dimension_numbers = #tpu.dot_dimension_numbers<[1], [0], [0], [1], [0, 0, 1, 1], [], []>} : vector<58x128xbf16>, vector<128x256xbf16>, vector<58x256xf32> -> vector<58x256xf32>
    %215 = arith.addf %210, %214 : vector<58x256xf32>
    %c6_225 = arith.constant 6 : index
    %c0_226 = arith.constant 0 : index
    %216 = vector.load %arg17[%c6_225, %c0_226] : memref<72x128xbf16, #tpu.memory_space<vmem>>, vector<58x128xbf16>
    %c3_227 = arith.constant 3 : index
    %c0_228 = arith.constant 0 : index
    %c0_229 = arith.constant 0 : index
    %217 = vector.load %arg7[%c3_227, %c0_228, %c0_229] : memref<9x128x256xbf16, #tpu.memory_space<vmem>>, vector<1x128x256xbf16>
    %218 = vector.shape_cast %217 : vector<1x128x256xbf16> to vector<128x256xbf16>
    %cst_230 = arith.constant dense<0.000000e+00> : vector<58x256xf32>
    %219 = tpu.matmul %216, %218, %cst_230 {dimension_numbers = #tpu.dot_dimension_numbers<[1], [0], [0], [1], [0, 0, 1, 1], [], []>} : vector<58x128xbf16>, vector<128x256xbf16>, vector<58x256xf32> -> vector<58x256xf32>
    %220 = arith.addf %215, %219 : vector<58x256xf32>
    %c7_231 = arith.constant 7 : index
    %c0_232 = arith.constant 0 : index
    %221 = vector.load %arg17[%c7_231, %c0_232] : memref<72x128xbf16, #tpu.memory_space<vmem>>, vector<58x128xbf16>
    %c4_233 = arith.constant 4 : index
    %c0_234 = arith.constant 0 : index
    %c0_235 = arith.constant 0 : index
    %222 = vector.load %arg7[%c4_233, %c0_234, %c0_235] : memref<9x128x256xbf16, #tpu.memory_space<vmem>>, vector<1x128x256xbf16>
    %223 = vector.shape_cast %222 : vector<1x128x256xbf16> to vector<128x256xbf16>
    %cst_236 = arith.constant dense<0.000000e+00> : vector<58x256xf32>
    %224 = tpu.matmul %221, %223, %cst_236 {dimension_numbers = #tpu.dot_dimension_numbers<[1], [0], [0], [1], [0, 0, 1, 1], [], []>} : vector<58x128xbf16>, vector<128x256xbf16>, vector<58x256xf32> -> vector<58x256xf32>
    %225 = arith.addf %220, %224 : vector<58x256xf32>
    %c8_237 = arith.constant 8 : index
    %c0_238 = arith.constant 0 : index
    %226 = vector.load %arg17[%c8_237, %c0_238] : memref<72x128xbf16, #tpu.memory_space<vmem>>, vector<58x128xbf16>
    %c5_239 = arith.constant 5 : index
    %c0_240 = arith.constant 0 : index
    %c0_241 = arith.constant 0 : index
    %227 = vector.load %arg7[%c5_239, %c0_240, %c0_241] : memref<9x128x256xbf16, #tpu.memory_space<vmem>>, vector<1x128x256xbf16>
    %228 = vector.shape_cast %227 : vector<1x128x256xbf16> to vector<128x256xbf16>
    %cst_242 = arith.constant dense<0.000000e+00> : vector<58x256xf32>
    %229 = tpu.matmul %226, %228, %cst_242 {dimension_numbers = #tpu.dot_dimension_numbers<[1], [0], [0], [1], [0, 0, 1, 1], [], []>} : vector<58x128xbf16>, vector<128x256xbf16>, vector<58x256xf32> -> vector<58x256xf32>
    %230 = arith.addf %225, %229 : vector<58x256xf32>
    %c12_243 = arith.constant 12 : index
    %c0_244 = arith.constant 0 : index
    %231 = vector.load %arg17[%c12_243, %c0_244] : memref<72x128xbf16, #tpu.memory_space<vmem>>, vector<58x128xbf16>
    %c6_245 = arith.constant 6 : index
    %c0_246 = arith.constant 0 : index
    %c0_247 = arith.constant 0 : index
    %232 = vector.load %arg7[%c6_245, %c0_246, %c0_247] : memref<9x128x256xbf16, #tpu.memory_space<vmem>>, vector<1x128x256xbf16>
    %233 = vector.shape_cast %232 : vector<1x128x256xbf16> to vector<128x256xbf16>
    %cst_248 = arith.constant dense<0.000000e+00> : vector<58x256xf32>
    %234 = tpu.matmul %231, %233, %cst_248 {dimension_numbers = #tpu.dot_dimension_numbers<[1], [0], [0], [1], [0, 0, 1, 1], [], []>} : vector<58x128xbf16>, vector<128x256xbf16>, vector<58x256xf32> -> vector<58x256xf32>
    %235 = arith.addf %230, %234 : vector<58x256xf32>
    %c13_249 = arith.constant 13 : index
    %c0_250 = arith.constant 0 : index
    %236 = vector.load %arg17[%c13_249, %c0_250] : memref<72x128xbf16, #tpu.memory_space<vmem>>, vector<58x128xbf16>
    %c7_251 = arith.constant 7 : index
    %c0_252 = arith.constant 0 : index
    %c0_253 = arith.constant 0 : index
    %237 = vector.load %arg7[%c7_251, %c0_252, %c0_253] : memref<9x128x256xbf16, #tpu.memory_space<vmem>>, vector<1x128x256xbf16>
    %238 = vector.shape_cast %237 : vector<1x128x256xbf16> to vector<128x256xbf16>
    %cst_254 = arith.constant dense<0.000000e+00> : vector<58x256xf32>
    %239 = tpu.matmul %236, %238, %cst_254 {dimension_numbers = #tpu.dot_dimension_numbers<[1], [0], [0], [1], [0, 0, 1, 1], [], []>} : vector<58x128xbf16>, vector<128x256xbf16>, vector<58x256xf32> -> vector<58x256xf32>
    %240 = arith.addf %235, %239 : vector<58x256xf32>
    %c14 = arith.constant 14 : index
    %c0_255 = arith.constant 0 : index
    %241 = vector.load %arg17[%c14, %c0_255] : memref<72x128xbf16, #tpu.memory_space<vmem>>, vector<58x128xbf16>
    %c8_256 = arith.constant 8 : index
    %c0_257 = arith.constant 0 : index
    %c0_258 = arith.constant 0 : index
    %242 = vector.load %arg7[%c8_256, %c0_257, %c0_258] : memref<9x128x256xbf16, #tpu.memory_space<vmem>>, vector<1x128x256xbf16>
    %243 = vector.shape_cast %242 : vector<1x128x256xbf16> to vector<128x256xbf16>
    %cst_259 = arith.constant dense<0.000000e+00> : vector<58x256xf32>
    %244 = tpu.matmul %241, %243, %cst_259 {dimension_numbers = #tpu.dot_dimension_numbers<[1], [0], [0], [1], [0, 0, 1, 1], [], []>} : vector<58x128xbf16>, vector<128x256xbf16>, vector<58x256xf32> -> vector<58x256xf32>
    %245 = arith.addf %240, %244 : vector<58x256xf32>
    %246 = vector.broadcast %201 : vector<1x256xf32> to vector<58x256xf32>
    %247 = arith.addf %245, %246 : vector<58x256xf32>
    %cst_260 = arith.constant 0.000000e+00 : f32
    %248 = vector.broadcast %cst_260 : f32 to vector<58x256xf32>
    %249 = arith.maximumf %247, %248 : vector<58x256xf32>
    %c0_261 = arith.constant 0 : index
    %c0_262 = arith.constant 0 : index
    %250 = vector.load %arg2[%c0_261, %c0_262] : memref<58x1xf32, #tpu.memory_space<vmem>>, vector<58x1xf32>
    %251 = vector.broadcast %250 : vector<58x1xf32> to vector<58x256xf32>
    %252 = arith.mulf %249, %251 : vector<58x256xf32>
    %253 = arith.truncf %252 : vector<58x256xf32> to vector<58x256xbf16>
    %c7_263 = arith.constant 7 : index
    %c0_264 = arith.constant 0 : index
    %254 = vector.load %arg18[%c7_263, %c0_264] : memref<72x256xbf16, #tpu.memory_space<vmem>>, vector<58x256xbf16>
    tpu.vector_store %arg18[%c7_263, %c0_264], %253 {strides = array<i32>} : memref<72x256xbf16, #tpu.memory_space<vmem>>, vector<58x256xbf16>,
    %cst_265 = arith.constant 0.000000e+00 : f32
    %255 = vector.broadcast %cst_265 : f32 to vector<14x256xf32>
    %c58 = arith.constant 58 : index
    %c0_266 = arith.constant 0 : index
    %256 = vector.load %arg19[%c58, %c0_266] : memref<72x256xf32, #tpu.memory_space<vmem>>, vector<14x256xf32>
    tpu.vector_store %arg19[%c58, %c0_266], %255 {strides = array<i32>} : memref<72x256xf32, #tpu.memory_space<vmem>>, vector<14x256xf32>,
    %c0_267 = arith.constant 0 : index
    %c0_268 = arith.constant 0 : index
    %257 = vector.load %arg10[%c0_267, %c0_268] : memref<1x256xf32, #tpu.memory_space<vmem>>, vector<1x256xf32>
    %c0_269 = arith.constant 0 : index
    %c0_270 = arith.constant 0 : index
    %258 = vector.load %arg18[%c0_269, %c0_270] : memref<72x256xbf16, #tpu.memory_space<vmem>>, vector<58x256xbf16>
    %c0_271 = arith.constant 0 : index
    %c0_272 = arith.constant 0 : index
    %c0_273 = arith.constant 0 : index
    %259 = vector.load %arg9[%c0_271, %c0_272, %c0_273] : memref<9x256x256xbf16, #tpu.memory_space<vmem>>, vector<1x256x256xbf16>
    %260 = vector.shape_cast %259 : vector<1x256x256xbf16> to vector<256x256xbf16>
    %cst_274 = arith.constant dense<0.000000e+00> : vector<58x256xf32>
    %261 = tpu.matmul %258, %260, %cst_274 {dimension_numbers = #tpu.dot_dimension_numbers<[1], [0], [0], [1], [0, 0, 1, 1], [], []>} : vector<58x256xbf16>, vector<256x256xbf16>, vector<58x256xf32> -> vector<58x256xf32>
    %c1_275 = arith.constant 1 : index
    %c0_276 = arith.constant 0 : index
    %262 = vector.load %arg18[%c1_275, %c0_276] : memref<72x256xbf16, #tpu.memory_space<vmem>>, vector<58x256xbf16>
    %c1_277 = arith.constant 1 : index
    %c0_278 = arith.constant 0 : index
    %c0_279 = arith.constant 0 : index
    %263 = vector.load %arg9[%c1_277, %c0_278, %c0_279] : memref<9x256x256xbf16, #tpu.memory_space<vmem>>, vector<1x256x256xbf16>
    %264 = vector.shape_cast %263 : vector<1x256x256xbf16> to vector<256x256xbf16>
    %cst_280 = arith.constant dense<0.000000e+00> : vector<58x256xf32>
    %265 = tpu.matmul %262, %264, %cst_280 {dimension_numbers = #tpu.dot_dimension_numbers<[1], [0], [0], [1], [0, 0, 1, 1], [], []>} : vector<58x256xbf16>, vector<256x256xbf16>, vector<58x256xf32> -> vector<58x256xf32>
    %266 = arith.addf %261, %265 : vector<58x256xf32>
    %c2_281 = arith.constant 2 : index
    %c0_282 = arith.constant 0 : index
    %267 = vector.load %arg18[%c2_281, %c0_282] : memref<72x256xbf16, #tpu.memory_space<vmem>>, vector<58x256xbf16>
    %c2_283 = arith.constant 2 : index
    %c0_284 = arith.constant 0 : index
    %c0_285 = arith.constant 0 : index
    %268 = vector.load %arg9[%c2_283, %c0_284, %c0_285] : memref<9x256x256xbf16, #tpu.memory_space<vmem>>, vector<1x256x256xbf16>
    %269 = vector.shape_cast %268 : vector<1x256x256xbf16> to vector<256x256xbf16>
    %cst_286 = arith.constant dense<0.000000e+00> : vector<58x256xf32>
    %270 = tpu.matmul %267, %269, %cst_286 {dimension_numbers = #tpu.dot_dimension_numbers<[1], [0], [0], [1], [0, 0, 1, 1], [], []>} : vector<58x256xbf16>, vector<256x256xbf16>, vector<58x256xf32> -> vector<58x256xf32>
    %271 = arith.addf %266, %270 : vector<58x256xf32>
    %c6_287 = arith.constant 6 : index
    %c0_288 = arith.constant 0 : index
    %272 = vector.load %arg18[%c6_287, %c0_288] : memref<72x256xbf16, #tpu.memory_space<vmem>>, vector<58x256xbf16>
    %c3_289 = arith.constant 3 : index
    %c0_290 = arith.constant 0 : index
    %c0_291 = arith.constant 0 : index
    %273 = vector.load %arg9[%c3_289, %c0_290, %c0_291] : memref<9x256x256xbf16, #tpu.memory_space<vmem>>, vector<1x256x256xbf16>
    %274 = vector.shape_cast %273 : vector<1x256x256xbf16> to vector<256x256xbf16>
    %cst_292 = arith.constant dense<0.000000e+00> : vector<58x256xf32>
    %275 = tpu.matmul %272, %274, %cst_292 {dimension_numbers = #tpu.dot_dimension_numbers<[1], [0], [0], [1], [0, 0, 1, 1], [], []>} : vector<58x256xbf16>, vector<256x256xbf16>, vector<58x256xf32> -> vector<58x256xf32>
    %276 = arith.addf %271, %275 : vector<58x256xf32>
    %c7_293 = arith.constant 7 : index
    %c0_294 = arith.constant 0 : index
    %277 = vector.load %arg18[%c7_293, %c0_294] : memref<72x256xbf16, #tpu.memory_space<vmem>>, vector<58x256xbf16>
    %c4_295 = arith.constant 4 : index
    %c0_296 = arith.constant 0 : index
    %c0_297 = arith.constant 0 : index
    %278 = vector.load %arg9[%c4_295, %c0_296, %c0_297] : memref<9x256x256xbf16, #tpu.memory_space<vmem>>, vector<1x256x256xbf16>
    %279 = vector.shape_cast %278 : vector<1x256x256xbf16> to vector<256x256xbf16>
    %cst_298 = arith.constant dense<0.000000e+00> : vector<58x256xf32>
    %280 = tpu.matmul %277, %279, %cst_298 {dimension_numbers = #tpu.dot_dimension_numbers<[1], [0], [0], [1], [0, 0, 1, 1], [], []>} : vector<58x256xbf16>, vector<256x256xbf16>, vector<58x256xf32> -> vector<58x256xf32>
    %281 = arith.addf %276, %280 : vector<58x256xf32>
    %c8_299 = arith.constant 8 : index
    %c0_300 = arith.constant 0 : index
    %282 = vector.load %arg18[%c8_299, %c0_300] : memref<72x256xbf16, #tpu.memory_space<vmem>>, vector<58x256xbf16>
    %c5_301 = arith.constant 5 : index
    %c0_302 = arith.constant 0 : index
    %c0_303 = arith.constant 0 : index
    %283 = vector.load %arg9[%c5_301, %c0_302, %c0_303] : memref<9x256x256xbf16, #tpu.memory_space<vmem>>, vector<1x256x256xbf16>
    %284 = vector.shape_cast %283 : vector<1x256x256xbf16> to vector<256x256xbf16>
    %cst_304 = arith.constant dense<0.000000e+00> : vector<58x256xf32>
    %285 = tpu.matmul %282, %284, %cst_304 {dimension_numbers = #tpu.dot_dimension_numbers<[1], [0], [0], [1], [0, 0, 1, 1], [], []>} : vector<58x256xbf16>, vector<256x256xbf16>, vector<58x256xf32> -> vector<58x256xf32>
    %286 = arith.addf %281, %285 : vector<58x256xf32>
    %c12_305 = arith.constant 12 : index
    %c0_306 = arith.constant 0 : index
    %287 = vector.load %arg18[%c12_305, %c0_306] : memref<72x256xbf16, #tpu.memory_space<vmem>>, vector<58x256xbf16>
    %c6_307 = arith.constant 6 : index
    %c0_308 = arith.constant 0 : index
    %c0_309 = arith.constant 0 : index
    %288 = vector.load %arg9[%c6_307, %c0_308, %c0_309] : memref<9x256x256xbf16, #tpu.memory_space<vmem>>, vector<1x256x256xbf16>
    %289 = vector.shape_cast %288 : vector<1x256x256xbf16> to vector<256x256xbf16>
    %cst_310 = arith.constant dense<0.000000e+00> : vector<58x256xf32>
    %290 = tpu.matmul %287, %289, %cst_310 {dimension_numbers = #tpu.dot_dimension_numbers<[1], [0], [0], [1], [0, 0, 1, 1], [], []>} : vector<58x256xbf16>, vector<256x256xbf16>, vector<58x256xf32> -> vector<58x256xf32>
    %291 = arith.addf %286, %290 : vector<58x256xf32>
    %c13_311 = arith.constant 13 : index
    %c0_312 = arith.constant 0 : index
    %292 = vector.load %arg18[%c13_311, %c0_312] : memref<72x256xbf16, #tpu.memory_space<vmem>>, vector<58x256xbf16>
    %c7_313 = arith.constant 7 : index
    %c0_314 = arith.constant 0 : index
    %c0_315 = arith.constant 0 : index
    %293 = vector.load %arg9[%c7_313, %c0_314, %c0_315] : memref<9x256x256xbf16, #tpu.memory_space<vmem>>, vector<1x256x256xbf16>
    %294 = vector.shape_cast %293 : vector<1x256x256xbf16> to vector<256x256xbf16>
    %cst_316 = arith.constant dense<0.000000e+00> : vector<58x256xf32>
    %295 = tpu.matmul %292, %294, %cst_316 {dimension_numbers = #tpu.dot_dimension_numbers<[1], [0], [0], [1], [0, 0, 1, 1], [], []>} : vector<58x256xbf16>, vector<256x256xbf16>, vector<58x256xf32> -> vector<58x256xf32>
    %296 = arith.addf %291, %295 : vector<58x256xf32>
    %c14_317 = arith.constant 14 : index
    %c0_318 = arith.constant 0 : index
    %297 = vector.load %arg18[%c14_317, %c0_318] : memref<72x256xbf16, #tpu.memory_space<vmem>>, vector<58x256xbf16>
    %c8_319 = arith.constant 8 : index
    %c0_320 = arith.constant 0 : index
    %c0_321 = arith.constant 0 : index
    %298 = vector.load %arg9[%c8_319, %c0_320, %c0_321] : memref<9x256x256xbf16, #tpu.memory_space<vmem>>, vector<1x256x256xbf16>
    %299 = vector.shape_cast %298 : vector<1x256x256xbf16> to vector<256x256xbf16>
    %cst_322 = arith.constant dense<0.000000e+00> : vector<58x256xf32>
    %300 = tpu.matmul %297, %299, %cst_322 {dimension_numbers = #tpu.dot_dimension_numbers<[1], [0], [0], [1], [0, 0, 1, 1], [], []>} : vector<58x256xbf16>, vector<256x256xbf16>, vector<58x256xf32> -> vector<58x256xf32>
    %301 = arith.addf %296, %300 : vector<58x256xf32>
    %302 = vector.broadcast %257 : vector<1x256xf32> to vector<58x256xf32>
    %303 = arith.addf %301, %302 : vector<58x256xf32>
    %cst_323 = arith.constant 0.000000e+00 : f32
    %304 = vector.broadcast %cst_323 : f32 to vector<58x256xf32>
    %305 = arith.maximumf %303, %304 : vector<58x256xf32>
    %c0_324 = arith.constant 0 : index
    %c0_325 = arith.constant 0 : index
    %306 = vector.load %arg2[%c0_324, %c0_325] : memref<58x1xf32, #tpu.memory_space<vmem>>, vector<58x1xf32>
    %307 = vector.broadcast %306 : vector<58x1xf32> to vector<58x256xf32>
    %308 = arith.mulf %305, %307 : vector<58x256xf32>
    %c0_326 = arith.constant 0 : index
    %c0_327 = arith.constant 0 : index
    %309 = vector.load %arg19[%c0_326, %c0_327] : memref<72x256xf32, #tpu.memory_space<vmem>>, vector<58x256xf32>
    tpu.vector_store %arg19[%c0_326, %c0_327], %308 {strides = array<i32>} : memref<72x256xf32, #tpu.memory_space<vmem>>, vector<58x256xf32>,
    %c0_328 = arith.constant 0 : index
    %c0_329 = arith.constant 0 : index
    %310 = vector.load %arg19[%c0_328, %c0_329] : memref<72x256xf32, #tpu.memory_space<vmem>>, vector<36x256xf32>
    %c36_330 = arith.constant 36 : index
    %c0_331 = arith.constant 0 : index
    %311 = vector.load %arg19[%c36_330, %c0_331] : memref<72x256xf32, #tpu.memory_space<vmem>>, vector<36x256xf32>
    %312 = arith.subf %310, %311 : vector<36x256xf32>
    %313 = arith.mulf %312, %312 : vector<36x256xf32>
    %314 = vector.shape_cast %313 : vector<36x256xf32> to vector<1x36x256xf32>
    %cst_332 = arith.constant dense<0.000000e+00> : vector<1xf32>
    %315 = vector.multi_reduction <add>, %314, %cst_332 [1, 2] : vector<1x36x256xf32> to vector<1xf32>
    %316 = vector.shape_cast %315 : vector<1xf32> to vector<1x1x1xf32>
    %317 = vector.extract %316[0, 0, 0] : f32 from vector<1x1x1xf32>
    %318 = vector.broadcast %317 : f32 to vector<1x1xf32>
    %c0_333 = arith.constant 0 : index
    %c0_334 = arith.constant 0 : index
    %c0_335 = arith.constant 0 : index
    %319 = vector.load %arg11[%c0_333, %c0_334, %c0_335] : memref<1x1x1xf32, #tpu.memory_space<vmem>>, vector<1x1x1xf32>
    %320 = vector.shape_cast %319 : vector<1x1x1xf32> to vector<1x1xf32>
    %321 = vector.shape_cast %318 : vector<1x1xf32> to vector<1x1x1xf32>
    tpu.vector_store %arg11[%c0_333, %c0_334, %c0_335], %321 {strides = array<i32>} : memref<1x1x1xf32, #tpu.memory_space<vmem>>, vector<1x1x1xf32>,
    return
  }
  func.func @transform_0(%arg0: i32) -> (i32, i32, i32) {
    %c0_i32 = arith.constant 0 : i32
    %c0_i32_0 = arith.constant 0 : i32
    %c0_i32_1 = arith.constant 0 : i32
    return %arg0, %c0_i32, %c0_i32_0 : i32, i32, i32
  }
  func.func @transform_1(%arg0: i32) -> (i32, i32) {
    %c0_i32 = arith.constant 0 : i32
    %c0_i32_0 = arith.constant 0 : i32
    %c0_i32_1 = arith.constant 0 : i32
    return %c0_i32, %c0_i32_0 : i32, i32
  }
  func.func @transform_2(%arg0: i32) -> (i32, i32) {
    %c0_i32 = arith.constant 0 : i32
    %c0_i32_0 = arith.constant 0 : i32
    %c0_i32_1 = arith.constant 0 : i32
    return %c0_i32, %c0_i32_0 : i32, i32
  }
  func.func @transform_3(%arg0: i32) -> (i32, i32) {
    %c0_i32 = arith.constant 0 : i32
    %c0_i32_0 = arith.constant 0 : i32
    %c0_i32_1 = arith.constant 0 : i32
    return %c0_i32, %c0_i32_0 : i32, i32
  }
  func.func @transform_4(%arg0: i32) -> (i32, i32, i32) {
    %c0_i32 = arith.constant 0 : i32
    %c0_i32_0 = arith.constant 0 : i32
    %c0_i32_1 = arith.constant 0 : i32
    %c0_i32_2 = arith.constant 0 : i32
    return %c0_i32, %c0_i32_0, %c0_i32_1 : i32, i32, i32
  }
  func.func @transform_5(%arg0: i32) -> (i32, i32) {
    %c0_i32 = arith.constant 0 : i32
    %c0_i32_0 = arith.constant 0 : i32
    %c0_i32_1 = arith.constant 0 : i32
    return %c0_i32, %c0_i32_0 : i32, i32
  }
  func.func @transform_6(%arg0: i32) -> (i32, i32, i32) {
    %c0_i32 = arith.constant 0 : i32
    %c0_i32_0 = arith.constant 0 : i32
    %c0_i32_1 = arith.constant 0 : i32
    %c0_i32_2 = arith.constant 0 : i32
    return %c0_i32, %c0_i32_0, %c0_i32_1 : i32, i32, i32
  }
  func.func @transform_7(%arg0: i32) -> (i32, i32) {
    %c0_i32 = arith.constant 0 : i32
    %c0_i32_0 = arith.constant 0 : i32
    %c0_i32_1 = arith.constant 0 : i32
    return %c0_i32, %c0_i32_0 : i32, i32
  }
  func.func @transform_8(%arg0: i32) -> (i32, i32, i32) {
    %c0_i32 = arith.constant 0 : i32
    %c0_i32_0 = arith.constant 0 : i32
    %c0_i32_1 = arith.constant 0 : i32
    %c0_i32_2 = arith.constant 0 : i32
    return %c0_i32, %c0_i32_0, %c0_i32_1 : i32, i32, i32
  }
  func.func @transform_9(%arg0: i32) -> (i32, i32) {
    %c0_i32 = arith.constant 0 : i32
    %c0_i32_0 = arith.constant 0 : i32
    %c0_i32_1 = arith.constant 0 : i32
    return %c0_i32, %c0_i32_0 : i32, i32
  }
  func.func @transform_10(%arg0: i32) -> (i32, i32, i32) {
    %c0_i32 = arith.constant 0 : i32
    %c0_i32_0 = arith.constant 0 : i32
    %c0_i32_1 = arith.constant 0 : i32
    return %arg0, %c0_i32, %c0_i32_0 : i32, i32, i32
  }
}

</mosaic_0001>

<bundles_post_ra>
// kernel: perceptual_loss.1
= control target key start
LH: loop header
LB: loop body
LE: loop exit
PB: predicated region body
PF: predicated region fallthrough
CT: control target
= control target key end

     0   :  { %15 = vsyncpa [#allocation11], 0  ;;  %s17210_s0 = inlined_call_operand.vmem [shape: bf16[2,610,9], index: 0, kind: input, shape index: {}]   ;;  %s17211_s1 = inlined_call_operand.hbm [shape: f32[58,1], index: 1, kind: input, shape index: {}]   ;;  %s17212_s2 = inlined_call_operand.hbm [shape: bf16[9,64], index: 2, kind: input, shape index: {}]   ;;  %s17213_s3 = inlined_call_operand.hbm [shape: f32[1,64], index: 3, kind: input, shape index: {}]   ;;  %s17214_s4 = inlined_call_operand.hbm [shape: bf16[9,64,128], index: 4, kind: input, shape index: {}]   ;;  %s17215_s5 = inlined_call_operand.hbm [shape: f32[1,128], index: 5, kind: input, shape index: {}]   ;;  %s17216_s6 = inlined_call_operand.hbm [shape: bf16[9,128,256], index: 6, kind: input, shape index: {}]   ;;  %s17217_s7 = inlined_call_operand.hbm [shape: f32[1,256], index: 7, kind: input, shape index: {}]   ;;  %s17218_s8 = inlined_call_operand.hbm [shape: bf16[9,256,256], index: 8, kind: input, shape index: {}]   ;;  %s17219_s9 = inlined_call_operand.hbm [shape: f32[1,256], index: 9, kind: input, shape index: {}]   ;;  %s17220_s10 = inlined_call_operand.vmem [shape: f32[2,1,1], index: 10, kind: output, shape index: {}]  }
   0x1   :  { %16 = vsyncpa [#allocation13], 0 }
   0x2   :  { %17 = vsyncpa [#allocation16], 0 }
   0x3   :  { %18 = vsyncpa [#allocation19], 0 }
   0x4   :  { %19 = vsyncpa [#allocation22], 0  ;;  %s15149_s13 = smov 0  }
   0x5 LB: > { %s15077_s14 = smov [#allocation12]   ;;  %s15155_s16 = sadd.s32 4294967295, %s15075_s13   ;;  %s15075_s13 = sphi %s15149_s13, %s25_s13  }
   0x6   : > { %s296_s15 = sshll.u32 %s15077_s14, 4  ;;  %p11748_p0 = scmp.ge.s32.totalorder %s15075_s13, 1  ;;  %s15160_s15 = int_to_ptr.vmem [resolvable:$true] %s296_s15 }
   0x7   : > { %p271_p1 = scmp.lt.s32.totalorder %s15075_s13, 3  ;;  %p17221_p2 = scmp.eq.s32.totalorder %s15155_s16, 0 }
   0x8   : > { %s15078_s18 = smov [#allocation15]   ;;  %s15079_s21 = smov [#allocation18]  }
   0x9   : > { %p15162_p3 = pnand %p11748_p0, %p271_p1  ;;  %s320_s19 = sshll.u32 %s15078_s18, 4  ;;  %s15168_s19 = int_to_ptr.vmem [resolvable:$true] %s320_s19 }
   0xa   : > { %s15176_s22 = sshll.u32 %s15079_s21, 4  ;;  %s14797_s25 = scalar_lea.hbm %s17212_s2, 128  ;;  %s345_s22 = int_to_ptr.vmem [resolvable:$true] %s15176_s22 }
   0xb   : > { %s17232_s17 = scalar_select %p15162_p3, 1, 0 }
   0xc   : > { %p13860_p4 = pneg %p15162_p3  ;;  %p14798_p6 = scmp.ne.s32.totalorder %s17212_s2, %s14797_s25 }
   0xd   : > { %p14804_p10 = scmp.lt.u32.totalorder %s14797_s25, %s17212_s2 }
   0xe   : > { %p15172_p5 = pnand %p17221_p2, %p13860_p4 }
  0x10   : > { %p15186_p7 = pneg %p15172_p5 }
  0x12   : > { %p14800_p8 = pnand %p15186_p7, %p14798_p6 }
  0x14   : > { %p14801_p9 = pneg %p14800_p8 }
  0x16   : > { %p14806_p11 = pnand %p14804_p10, %p14801_p9 }
  0x18   : > { %14809 = shalt.err (!%p14806_p11)
}
  0x19   : > { %s14810_s11 = scalar_lea.vmem %s15160_s15, 128  ;;  %p14818_p1 = scmp.lt.s32.totalorder %s15160_s15, %s15160_s15 }
  0x1a   : > { %p14811_p12 = scmp.ne.s32.totalorder %s15160_s15, %s14810_s11  ;;  %p14819_p4 = scmp.lt.s32.totalorder %s14810_s11, %s14810_s11 }
  0x1c   : > { %p14813_p13 = pnand %p14811_p12, %p15186_p7  ;;  %p14820_p6 = por %p14819_p4, %p14818_p1 }
  0x1e   : > { %p14814_p0 = pneg %p14813_p13 }
  0x20   : > { %p14821_p8 = pnand %p14820_p6, %p14814_p0 }
  0x22   : > { %14824 = shalt.err (!%p14821_p8)
}
  0x23   : > { %s15080_s12 = smov 64   ;;  %s15081_s14 = smov 4  }
  0x24   : > { %13866 = dma.hbm_to_vmem [thread:$0]  (!%p15172_p5), %s17212_s2, 128, %s15160_s15, [#allocation13], %s15080_s12, %s15080_s12, %s15081_s14  }
  0x25   : > { %s14825_s25 = scalar_lea.hbm %s17214_s4, 4608 }
  0x26   : > { %p14826_p9 = scmp.ne.s32.totalorder %s17214_s4, %s14825_s25  ;;  %p14832_p12 = scmp.lt.u32.totalorder %s14825_s25, %s17214_s4 }
  0x28   : > { %p14828_p10 = pnand %p14826_p9, %p15186_p7 }
  0x2a   : > { %p14829_p11 = pneg %p14828_p10 }
  0x2c   : > { %p14834_p13 = pnand %p14832_p12, %p14829_p11 }
  0x2e   : > { %14837 = shalt.err (!%p14834_p13)
}
  0x2f   : > { %s14838_s15 = scalar_lea.vmem %s15168_s19, 4608  ;;  %p14846_p6 = scmp.lt.s32.totalorder %s15168_s19, %s15168_s19 }
  0x30   : > { %p14839_p0 = scmp.ne.s32.totalorder %s15168_s19, %s14838_s15  ;;  %p14847_p8 = scmp.lt.s32.totalorder %s14838_s15, %s14838_s15 }
  0x32   : > { %p14841_p1 = pnand %p14839_p0, %p15186_p7  ;;  %p14848_p9 = por %p14847_p8, %p14846_p6 }
  0x34   : > { %p14842_p4 = pneg %p14841_p1 }
  0x36   : > { %p14849_p10 = pnand %p14848_p9, %p14842_p4 }
  0x38   : > { %14852 = shalt.err (!%p14849_p10)
}
  0x39   : > { %13872 = dma.hbm_to_vmem [thread:$0]  (!%p15172_p5), %s17214_s4, 4608, %s15168_s19, [#allocation16], %s15080_s12, %s15080_s12, %s15081_s14  }
  0x3a   : > { %s15082_s21 = smov [#allocation21]   ;;  %s14853_s26 = scalar_lea.hbm %s17216_s6, 18432 }
  0x3b   : > { %s368_s23 = sshll.u32 %s15082_s21, 4  ;;  %p14854_p11 = scmp.ne.s32.totalorder %s17216_s6, %s14853_s26  ;;  %s369_s23 = int_to_ptr.vmem [resolvable:$true] %s368_s23 }
  0x3c   : > { %p14860_p0 = scmp.lt.u32.totalorder %s14853_s26, %s17216_s6 }
  0x3d   : > { %p14856_p12 = pnand %p14854_p11, %p15186_p7 }
  0x3f   : > { %p14857_p13 = pneg %p14856_p12 }
  0x41   : > { %p14862_p1 = pnand %p14860_p0, %p14857_p13 }
  0x43   : > { %14865 = shalt.err (!%p14862_p1)
}
  0x44   : > { %s14866_s19 = scalar_lea.vmem %s345_s22, 18432  ;;  %p14874_p9 = scmp.lt.s32.totalorder %s345_s22, %s345_s22 }
  0x45   : > { %p14867_p4 = scmp.ne.s32.totalorder %s345_s22, %s14866_s19  ;;  %p14875_p10 = scmp.lt.s32.totalorder %s14866_s19, %s14866_s19 }
  0x47   : > { %p14869_p6 = pnand %p14867_p4, %p15186_p7  ;;  %p14876_p2 = por %p14875_p10, %p14874_p9 }
  0x49   : > { %p14870_p8 = pneg %p14869_p6 }
  0x4b   : > { %p14877_p3 = pnand %p14876_p2, %p14870_p8 }
  0x4d   : > { %14880 = shalt.err (!%p14877_p3)
}
  0x4e   : > { %s15083_s12 = smov 128   ;;  %s15084_s14 = smov 8  }
  0x4f   : > { %13878 = dma.hbm_to_vmem [thread:$0]  (!%p15172_p5), %s17216_s6, 18432, %s345_s22, [#allocation19], %s15083_s12, %s15083_s12, %s15084_s14  }
  0x50   : > { %s14881_s25 = scalar_lea.hbm %s17218_s8, 36864 }
  0x51   : > { %p14882_p2 = scmp.ne.s32.totalorder %s17218_s8, %s14881_s25  ;;  %p14888_p12 = scmp.lt.u32.totalorder %s14881_s25, %s17218_s8 }
  0x53   : > { %p14884_p3 = pnand %p14882_p2, %p15186_p7 }
  0x55   : > { %p14885_p11 = pneg %p14884_p3 }
  0x57   : > { %p14890_p13 = pnand %p14888_p12, %p14885_p11 }
  0x59   : > { %14893 = shalt.err (!%p14890_p13)
}
  0x5a   : > { %s14894_s15 = scalar_lea.vmem %s369_s23, 36864  ;;  %p14902_p6 = scmp.lt.s32.totalorder %s369_s23, %s369_s23 }
  0x5b   : > { %p14895_p0 = scmp.ne.s32.totalorder %s369_s23, %s14894_s15  ;;  %p14903_p8 = scmp.lt.s32.totalorder %s14894_s15, %s14894_s15 }
  0x5d   : > { %p14897_p1 = pnand %p14895_p0, %p15186_p7  ;;  %p14904_p9 = por %p14903_p8, %p14902_p6 }
  0x5f   : > { %p14898_p4 = pneg %p14897_p1 }
  0x61   : > { %p14905_p10 = pnand %p14904_p9, %p14898_p4 }
  0x63   : > { %14908 = shalt.err (!%p14905_p10)
}
  0x64   : > { %13884 = dma.hbm_to_vmem [thread:$0]  (!%p15172_p5), %s17218_s8, 36864, %s369_s23, [#allocation22], %s15083_s12, %s15083_s12, %s15084_s14  }
  0x65   : > { %s15085_s11 = smov [#allocation10]   ;;  %s15086_s21 = smov [#allocation14]  }
  0x66   : > { %s283_s18 = sshll.u32 %s15085_s11, 4  ;;  %s310_s24 = sshll.u32 %s15086_s21, 4  ;;  %s284_s18 = int_to_ptr.vmem [resolvable:$true] %s283_s18  ;;  %s311_s24 = int_to_ptr.vmem [resolvable:$true] %s310_s24 }
  0x67   : > { %s14909_s27 = scalar_lea.hbm %s17211_s1, 1024 }
  0x68   : > { %p14910_p2 = scmp.ne.s32.totalorder %s17211_s1, %s14909_s27  ;;  %p14916_p12 = scmp.lt.u32.totalorder %s14909_s27, %s17211_s1 }
  0x6a   : > { %p14912_p3 = pnand %p14910_p2, %p15186_p7 }
  0x6c   : > { %p14913_p11 = pneg %p14912_p3 }
  0x6e   : > { %p14918_p13 = pnand %p14916_p12, %p14913_p11 }
  0x70   : > { %14921 = shalt.err (!%p14918_p13)
}
  0x71   : > { %s14922_s23 = scalar_lea.vmem %s284_s18, 1024  ;;  %p14930_p6 = scmp.lt.s32.totalorder %s284_s18, %s284_s18 }
  0x72   : > { %p14923_p0 = scmp.ne.s32.totalorder %s284_s18, %s14922_s23  ;;  %p14931_p8 = scmp.lt.s32.totalorder %s14922_s23, %s14922_s23 }
  0x74   : > { %p14925_p1 = pnand %p14923_p0, %p15186_p7  ;;  %p14932_p9 = por %p14931_p8, %p14930_p6 }
  0x76   : > { %p14926_p4 = pneg %p14925_p1 }
  0x78   : > { %p14933_p10 = pnand %p14932_p9, %p14926_p4 }
  0x7a   : > { %14936 = shalt.err (!%p14933_p10)
}
  0x7b   : > { %13863 = dma.hbm_to_vmem [thread:$0]  (!%p15172_p5), %s17211_s1, 1024, %s284_s18, [#allocation11], %s15083_s12, %s15083_s12, %s15084_s14  }
  0x7c   : > { %s14937_s26 = scalar_lea.hbm %s17213_s3, 16 }
  0x7d   : > { %p14938_p2 = scmp.ne.s32.totalorder %s17213_s3, %s14937_s26  ;;  %p14944_p12 = scmp.lt.u32.totalorder %s14937_s26, %s17213_s3 }
  0x7f   : > { %p14940_p3 = pnand %p14938_p2, %p15186_p7 }
  0x81   : > { %p14941_p11 = pneg %p14940_p3 }
  0x83   : > { %p14946_p13 = pnand %p14944_p12, %p14941_p11 }
  0x85   : > { %14949 = shalt.err (!%p14946_p13)
}
  0x86   : > { %s14950_s22 = scalar_lea.vmem %s311_s24, 16  ;;  %s14957_s12 = scalar_lea.vmem %s311_s24, 32 }
  0x87   : > { %p14951_p0 = scmp.ne.s32.totalorder %s311_s24, %s14950_s22  ;;  %p14958_p6 = scmp.lt.s32.totalorder %s311_s24, %s311_s24 }
  0x88   : > { %p14959_p8 = scmp.lt.s32.totalorder %s14957_s12, %s14950_s22 }
  0x89   : > { %p14953_p1 = pnand %p14951_p0, %p15186_p7 }
  0x8a   : > { %p14960_p9 = por %p14959_p8, %p14958_p6 }
  0x8b   : > { %p14954_p4 = pneg %p14953_p1 }
  0x8d   : > { %p14961_p10 = pnand %p14960_p9, %p14954_p4 }
  0x8f   : > { %14964 = shalt.err (!%p14961_p10)
}
  0x90   : > { %13869 = dma.hbm_to_vmem [thread:$0]  (!%p15172_p5), %s17213_s3, 16, %s311_s24, [#allocation13]  }
  0x91   : > { %s15087_s23 = smov [#allocation17]   ;;  %s15088_s11 = smov [#allocation20]  }
  0x92   : > { %s334_s19 = sshll.u32 %s15087_s23, 4  ;;  %s358_s21 = sshll.u32 %s15088_s11, 4  ;;  %s335_s19 = int_to_ptr.vmem [resolvable:$true] %s334_s19  ;;  %s359_s21 = int_to_ptr.vmem [resolvable:$true] %s358_s21 }
  0x93   : > { %s14965_s27 = scalar_lea.hbm %s17215_s5, 16 }
  0x94   : > { %p14966_p2 = scmp.ne.s32.totalorder %s17215_s5, %s14965_s27  ;;  %p14972_p12 = scmp.lt.u32.totalorder %s14965_s27, %s17215_s5 }
  0x96   : > { %p14968_p3 = pnand %p14966_p2, %p15186_p7 }
  0x98   : > { %p14969_p11 = pneg %p14968_p3 }
  0x9a   : > { %p14974_p13 = pnand %p14972_p12, %p14969_p11 }
  0x9c   : > { %14977 = shalt.err (!%p14974_p13)
}
  0x9d   : > { %s14978_s24 = scalar_lea.vmem %s335_s19, 16  ;;  %s14985_s12 = scalar_lea.vmem %s335_s19, 32 }
  0x9e   : > { %p14979_p0 = scmp.ne.s32.totalorder %s335_s19, %s14978_s24  ;;  %p14986_p6 = scmp.lt.s32.totalorder %s335_s19, %s335_s19 }
  0x9f   : > { %p14987_p8 = scmp.lt.s32.totalorder %s14985_s12, %s14978_s24 }
  0xa0   : > { %p14981_p1 = pnand %p14979_p0, %p15186_p7 }
  0xa1   : > { %p14988_p9 = por %p14987_p8, %p14986_p6 }
  0xa2   : > { %p14982_p4 = pneg %p14981_p1 }
  0xa4   : > { %p14989_p10 = pnand %p14988_p9, %p14982_p4 }
  0xa6   : > { %14992 = shalt.err (!%p14989_p10)
}
  0xa7   : > { %13875 = dma.hbm_to_vmem [thread:$0]  (!%p15172_p5), %s17215_s5, 16, %s335_s19, [#allocation16]  }
  0xa8   : > { %s14993_s25 = scalar_lea.hbm %s17217_s7, 32 }
  0xa9   : > { %p14994_p2 = scmp.ne.s32.totalorder %s17217_s7, %s14993_s25  ;;  %p15000_p12 = scmp.lt.u32.totalorder %s14993_s25, %s17217_s7 }
  0xab   : > { %p14996_p3 = pnand %p14994_p2, %p15186_p7 }
  0xad   : > { %p14997_p11 = pneg %p14996_p3 }
  0xaf   : > { %p15002_p13 = pnand %p15000_p12, %p14997_p11 }
  0xb1   : > { %15005 = shalt.err (!%p15002_p13)
}
  0xb2   : > { %s15006_s15 = scalar_lea.vmem %s359_s21, 32  ;;  %p15014_p6 = scmp.lt.s32.totalorder %s359_s21, %s359_s21 }
  0xb3   : > { %p15007_p0 = scmp.ne.s32.totalorder %s359_s21, %s15006_s15  ;;  %p15015_p8 = scmp.lt.s32.totalorder %s15006_s15, %s15006_s15 }
  0xb5   : > { %p15009_p1 = pnand %p15007_p0, %p15186_p7  ;;  %p15016_p9 = por %p15015_p8, %p15014_p6 }
  0xb7   : > { %p15010_p4 = pneg %p15009_p1 }
  0xb9   : > { %p15017_p10 = pnand %p15016_p9, %p15010_p4 }
  0xbb   : > { %15020 = shalt.err (!%p15017_p10)
}
  0xbc   : > { %13881 = dma.hbm_to_vmem [thread:$0]  (!%p15172_p5), %s17217_s7, 32, %s359_s21, [#allocation19]  }
  0xbd   : > { %s15089_s24 = smov [#allocation23]   ;;  %s15021_s23 = scalar_lea.hbm %s17219_s9, 32 }
  0xbe   : > { %s382_s12 = sshll.u32 %s15089_s24, 4  ;;  %p15022_p2 = scmp.ne.s32.totalorder %s17219_s9, %s15021_s23  ;;  %s383_s12 = int_to_ptr.vmem [resolvable:$true] %s382_s12 }
  0xbf   : > { %p15028_p12 = scmp.lt.u32.totalorder %s15021_s23, %s17219_s9 }
  0xc0   : > { %p15024_p3 = pnand %p15022_p2, %p15186_p7 }
  0xc2   : > { %p15025_p11 = pneg %p15024_p3 }
  0xc4   : > { %p15030_p13 = pnand %p15028_p12, %p15025_p11 }
  0xc6   : > { %15033 = shalt.err (!%p15030_p13)
}
  0xc7   : > { %s15034_s21 = scalar_lea.vmem %s383_s12, 32  ;;  %p15042_p6 = scmp.lt.s32.totalorder %s383_s12, %s383_s12 }
  0xc8   : > { %p15035_p0 = scmp.ne.s32.totalorder %s383_s12, %s15034_s21  ;;  %p15043_p8 = scmp.lt.s32.totalorder %s15034_s21, %s15034_s21 }
  0xca   : > { %p15037_p1 = pnand %p15035_p0, %p15186_p7  ;;  %p15044_p9 = por %p15043_p8, %p15042_p6 }
  0xcc   : > { %p15038_p4 = pneg %p15037_p1 }
  0xce   : > { %p15045_p10 = pnand %p15044_p9, %p15038_p4 }
  0xd0   : > { %15048 = shalt.err (!%p15045_p10)
}
  0xd1   : > { %13887 = dma.hbm_to_vmem [thread:$0]  (!%p15172_p5), %s17219_s9, 32, %s383_s12, [#allocation22]  }
  0xd2   : > { %p17235_p2 = scmp.ne.s32.totalorder %s17232_s17, 0 }
  0xd3   : > { %p17236_p3 = scmp.eq.s32.totalorder (!%p17235_p2), %s15155_s16, 0 }
  0xd4   : > { %403 = sbr.rel (%p17235_p2) target bundleno = 2501 (0x9c5), region = 60 }
  0xdb   : > { %15054 = dma.done.wait (%p17236_p3), [#allocation11], 1024   ;;  %p17237_p7 = pmov %p17236_p3 }
  0xdc   : > { %p17238_p11 = pmov %p17236_p3 }
  0xdd   : > { %15056 = vsyncadd (%p17237_p7), [#allocation11], 4294966272 }
  0xde   : > { %15058 = dma.done.wait (%p17238_p11), [#allocation13], 144   ;;  %p17239_p12 = pmov %p17236_p3 }
  0xdf   : > { %p17240_p13 = pmov %p17236_p3 }
  0xe0   : > { %15060 = vsyncadd (%p17239_p12), [#allocation13], 4294967152 }
  0xe1   : > { %15062 = dma.done.wait (%p17240_p13), [#allocation16], 4624   ;;  %p17241_p5 = pmov %p17236_p3 }
  0xe2   : > { %p17242_p0 = pmov %p17236_p3 }
  0xe3   : > { %15064 = vsyncadd (%p17241_p5), [#allocation16], 4294962672 }
  0xe4   : > { %15066 = dma.done.wait (%p17242_p0), [#allocation19], 18464   ;;  %p17243_p1 = pmov %p17242_p0 }
  0xe5   : > { %p17244_p4 = pmov %p17242_p0 }
  0xe6   : > { %15068 = vsyncadd (%p17243_p1), [#allocation19], 4294948832 }
  0xe7   : > { %15070 = dma.done.wait (%p17244_p4), [#allocation22], 36896   ;;  %p17245_p6 = pmov %p17242_p0 }
  0xe8   : > { %vm17223_vm0 = vcmask 1043456   ;;  %p471_p8 = scmp.lt.s32.totalorder %s15155_s16, 1  ;;  %v15090_v0 = vmov 0.0   ;;  %vm17228_vm1 = vcmask 1044480   ;;  %v15091_v1 = vmov 65535   ;;  %v13975_v50 = vld [vmem:[#allocation15 + $0x20] sm:$0xff]  }
  0xe9   : > { %15072 = vsyncadd (%p17245_p6), [#allocation22], 4294930400  ;;  %8395 = vst [vmem:[#allocation9 + $0x70] sm:$0xfc] %v15090_v0  ;;  %v692_v2 = vsel %vm17223_vm0, 4294967295, %v15091_v1  ;;  %vm641_vm2 = vcmask 72704  }
  0xea   : > { %s17330_s16 = smov (!%p471_p8, %s15155_s16), 1  ;;  %8396 = vst [vmem:[#allocation9 + $0x78] sm:$0xfc] %v15090_v0  ;;  %8397 = vst [vmem:[#allocation9 + $0x80] sm:$0xff] %v15090_v0  ;;  %v693_v3 = vsel %vm17228_vm1, %v692_v2, 0  ;;  %vm15092_vm3 = vmmov 0  }
  0xeb   : > { %s13821_s17 = smul.u32 308, %s17330_s16  ;;  %v13933_v4 = vld [vmem:[#allocation12] sm:$0x1f]   ;;  %vm480_vm4 = vcmask 519168   ;;  %v17230_v44 = vmov 0   ;;  %v13978_v52 = vld [vmem:[#allocation15 + $0x28] sm:$0xff]   ;;  %s478_s24 = scalar_lea.vmem %s17220_s10, %s17330_s16 }
  0xec   : > { %v13934_v5 = vld [vmem:[#allocation12] sm:$0x1f]   ;;  %v695_v6 = vand.u32 %v13933_v4, %v693_v3  ;;  %481 = vst.msk [vmem:[#allocation4] sm:$0xf] %vm480_vm4, %v17230_v44  ;;  %482 = vst.msk [vmem:[#allocation4 + $0x4] sm:$0xf] %vm480_vm4, %v17230_v44  ;;  %13931 = vset.pattern.permute.xlu0 %v17230_v44  ;;  %13932 = vset.pattern.permute.xlu1 %v17230_v44 }
  0xed   : > { %s15401_s15 = scalar_lea.vmem %s17210_s0, %s13821_s17  ;;  %v1091_v7 = vand.u32 %v13934_v5, %v693_v3  ;;  %v13935_v29 = vld [vmem:[#allocation12] sm:$0x1f]   ;;  %483 = vst.msk [vmem:[#allocation4 + $0x8] sm:$0xf] %vm480_vm4, %v17230_v44  ;;  %484 = vst.msk [vmem:[#allocation4 + $0xc] sm:$0xf] %vm480_vm4, %v17230_v44 }
  0xee   : > { %v13936_v8 = vld [vmem:[%s15401_s15] sm:$0xff]   ;;  %12945 = vmatprep.subr.bf16.mxu0 %v695_v6  ;;  %v13937_v9 = vld [vmem:[%s15401_s15 + $0x8] sm:$0xff]   ;;  %v13938_v10 = vld [vmem:[%s15401_s15 + $0x10] sm:$0xff]   ;;  %v1393_v32 = vand.u32 %v13935_v29, %v693_v3  ;;  %485 = vst.msk [vmem:[#allocation4 + $0x10] sm:$0xf] %vm480_vm4, %v17230_v44  ;;  %vm890_vm5 = vcmask 523264  }
  0xef   : > { %12946 = vmatpush3.bf16.msra.mxu0 %v695_v6  ;;  %12947 = vmatprep.mubr.msk.bf16.mxu0 %vm641_vm2, %v13936_v8  ;;  %v13939_v11 = vld [vmem:[%s15401_s15 + $0x18] sm:$0xff]   ;;  %v13940_v12 = vld [vmem:[%s15401_s15 + $0x20] sm:$0xff]   ;;  %v13941_v13 = vld [vmem:[%s15401_s15 + $0x28] sm:$0xff]   ;;  %486 = vst.msk [vmem:[#allocation4 + $0x14] sm:$0xf] %vm480_vm4, %v17230_v44  ;;  %vm2114_vm6 = vcmask 519169  }
  0xf0   : > { %12979 = vmatprep.subr.bf16.mxu0 %v1091_v7  ;;  %13403 = vmatprep.subr.bf16.mxu1 %v1091_v7  ;;  %v13942_v14 = vld [vmem:[%s15401_s15 + $0x30] sm:$0xff]   ;;  %v13943_v15 = vld [vmem:[%s15401_s15 + $0x38] sm:$0xff]   ;;  %v13944_v16 = vld [vmem:[%s15401_s15 + $0x40] sm:$0xff]   ;;  %487 = vst.msk [vmem:[#allocation4 + $0x18] sm:$0xf] %vm480_vm4, %v17230_v44  ;;  %vm17229_vm8 = vcmask 517120  }
  0xf1   : > { %13404 = vmatpush3.bf16.msra.mxu1 %v1091_v7  ;;  %v13962_v17 = vld [vmem:[%s15401_s15 + $0xe0] sm:$0xff]   ;;  %v13963_v18 = vld [vmem:[%s15401_s15 + $0xe8] sm:$0xff]   ;;  %v13966_v19 = vld [vmem:[%s15401_s15 + $0xf0] sm:$0xff]   ;;  %488 = vst.msk [vmem:[#allocation4 + $0x1c] sm:$0xf] %vm480_vm4, %v17230_v44  ;;  %vm2150_vm10 = vcmask 519170  }
  0xf2   : > { %12948 = vmatmul.mubr.msk.bf16.vlgmr.msra.gmra.mrb[0].mxu0 %vm641_vm2, %v13937_v9  ;;  %13005 = vmatprep.mubr.msk.bf16.mxu1 %vm641_vm2, %v13962_v17  ;;  %v13945_v20 = vld [vmem:[%s15401_s15 + $0x48] sm:$0xff]   ;;  %v13967_v21 = vld [vmem:[%s15401_s15 + $0xf8] sm:$0xff]   ;;  %v13946_v22 = vld [vmem:[%s15401_s15 + $0x50] sm:$0xff]   ;;  %489 = vst.msk [vmem:[#allocation4 + $0x20] sm:$0xf] %vm480_vm4, %v17230_v44  ;;  %vm2156_vm14 = vcmask 518144  }
  0xf3   : > { %12980 = vmatpush3.bf16.msra.mxu0 %v1091_v7  ;;  %12951 = vmatprep.mubr.msk.bf16.mxu0 %vm641_vm2, %v13938_v10  ;;  %v13947_v23 = vld [vmem:[%s15401_s15 + $0x58] sm:$0xff]   ;;  %v13948_v24 = vld [vmem:[%s15401_s15 + $0x60] sm:$0xff]   ;;  %v13949_v25 = vld [vmem:[%s15401_s15 + $0x68] sm:$0xff]   ;;  %490 = vst.msk [vmem:[#allocation4 + $0x24] sm:$0xf] %vm480_vm4, %v17230_v44 }
  0xf4   : > { %13013 = vmatprep.subr.bf16.mxu0 %v15090_v0  ;;  %13006 = vmatmul.mubr.msk.bf16.vlgmr.msra.gmra.mrb[0].mxu1 %vm641_vm2, %v13963_v18  ;;  %v13950_v26 = vld [vmem:[%s15401_s15 + $0x70] sm:$0xff]   ;;  %v13951_v27 = vld [vmem:[%s15401_s15 + $0x78] sm:$0xff]   ;;  %v13952_v28 = vld [vmem:[%s15401_s15 + $0x80] sm:$0xff]   ;;  %491 = vst.msk [vmem:[#allocation4 + $0x28] sm:$0xf] %vm480_vm4, %v17230_v44 }
  0xf5   : > { %13009 = vmatprep.mubr.msk.bf16.mxu1 %vm641_vm2, %v13966_v19  ;;  %v13953_v30 = vld [vmem:[%s15401_s15 + $0x88] sm:$0xff]   ;;  %v13954_v31 = vld [vmem:[%s15401_s15 + $0x90] sm:$0xff]   ;;  %v13955_v33 = vld [vmem:[%s15401_s15 + $0x98] sm:$0xff]   ;;  %492 = vst.msk [vmem:[#allocation4 + $0x2c] sm:$0xf] %vm480_vm4, %v17230_v44  ;;  %13043 = vmatprep.subr.bf16.mxu1 %v13975_v50 }
  0xf6   : > { %v13956_v34 = vld [vmem:[%s15401_s15 + $0xa0] sm:$0xff]   ;;  %v13957_v35 = vld [vmem:[%s15401_s15 + $0xa8] sm:$0xff]   ;;  %v13958_v36 = vld [vmem:[%s15401_s15 + $0xb0] sm:$0xff]   ;;  %493 = vst.msk [vmem:[#allocation4 + $0x30] sm:$0xf] %vm480_vm4, %v17230_v44  ;;  %13044 = vmatpush3.bf16.msra.mxu1 %v13975_v50 }
  0xf7   : > { %v13959_v37 = vld [vmem:[%s15401_s15 + $0xb8] sm:$0xff]   ;;  %v13960_v38 = vld [vmem:[%s15401_s15 + $0xc0] sm:$0xff]   ;;  %v13961_v39 = vld [vmem:[%s15401_s15 + $0xc8] sm:$0xff]   ;;  %494 = vst.msk [vmem:[#allocation4 + $0x34] sm:$0xf] %vm480_vm4, %v17230_v44  ;;  %13045 = vmatprep.subr.bf16.mxu1 %v13978_v52 }
  0xf8   : > { %v13964_v40 = vld [vmem:[%s15401_s15 + $0xd0] sm:$0xff]   ;;  %v13965_v41 = vld [vmem:[%s15401_s15 + $0xd8] sm:$0xff]   ;;  %v13968_v42 = vld [vmem:[%s15401_s15 + $0x100] sm:$0xff]   ;;  %495 = vst.msk [vmem:[#allocation4 + $0x38] sm:$0xf] %vm480_vm4, %v17230_v44 }
  0xf9   : > { %v13969_v43 = vld [vmem:[%s15401_s15 + $0x108] sm:$0xff]   ;;  %496 = vst.msk [vmem:[#allocation4 + $0x3c] sm:$0xf] %vm480_vm4, %v17230_v44  ;;  %497 = vst.msk [vmem:[#allocation4 + $0x40] sm:$0xf] %vm480_vm4, %v17230_v44  ;;  %v13970_v45 = vld [vmem:[%s15401_s15 + $0x110] sm:$0xff]  }
  0xfa   : > { %12952 = vmatmul.mubr.msk.bf16.gmra.mrb[4].mxu0 %vm641_vm2, %v13939_v11  ;;  %498 = vst.msk [vmem:[#allocation4 + $0x44] sm:$0xf] %vm480_vm4, %v17230_v44  ;;  %499 = vst.msk [vmem:[#allocation4 + $0x48] sm:$0xf] %vm480_vm4, %v17230_v44  ;;  %v13971_v46 = vld [vmem:[%s15401_s15 + $0x118] sm:$0xff]   ;;  %v14786_v47 = vld [vmem:[#allocation9 + $0x80] sm:$0xff]  ;;  %13046 = vmatpush3.bf16.msra.mxu1 %v13978_v52 }
  0xfb   : > { %12955 = vmatprep.mubr.msk.bf16.mxu0 %vm641_vm2, %v13940_v12  ;;  %500 = vst.msk [vmem:[#allocation4 + $0x4c] sm:$0xf] %vm480_vm4, %v17230_v44  ;;  %501 = vst.msk [vmem:[#allocation4 + $0x50] sm:$0xf] %vm480_vm4, %v17230_v44  ;;  %v13972_v48 = vld [vmem:[%s15401_s15 + $0x120] sm:$0xff]   ;;  %v13973_v49 = vld [vmem:[%s15401_s15 + $0x128] sm:$0xff]  }
  0xfc   : > { %13010 = vmatmul.mubr.msk.bf16.gmra.mrb[4].mxu1 %vm641_vm2, %v13967_v21  ;;  %502 = vst.msk [vmem:[#allocation4 + $0x54] sm:$0xf] %vm480_vm4, %v17230_v44  ;;  %503 = vst.msk [vmem:[#allocation4 + $0x58] sm:$0xf] %vm480_vm4, %v17230_v44  ;;  %v13979_v53 = vld [vmem:[#allocation15 + $0x30] sm:$0xff]   ;;  %v13980_v54 = vld [vmem:[#allocation15 + $0x38] sm:$0xff]  }
  0xfd   : > { %504 = vst.msk [vmem:[#allocation4 + $0x5c] sm:$0xf] %vm480_vm4, %v17230_v44  ;;  %505 = vst.msk [vmem:[#allocation4 + $0x60] sm:$0xf] %vm480_vm4, %v17230_v44  ;;  %13047 = vmatprep.subr.bf16.mxu1 %v13979_v53  ;;  %v15554_v55 = vld [vmem:[#allocation14] ss:$0 sm:$0xff] }
  0xfe   : > { %506 = vst [vmem:[#allocation7] sm:$0xf] %v17230_v44  ;;  %507 = vst [vmem:[#allocation7 + $0x4] sm:$0xf] %v17230_v44  ;;  %13048 = vmatpush3.bf16.msra.mxu1 %v13979_v53  ;;  %vm2115_vm7 = vsmask.f32 7942 }
  0xff   : > { %508 = vst [vmem:[#allocation7 + $0x8] sm:$0xf] %v17230_v44  ;;  %509 = vst [vmem:[#allocation7 + $0xc] sm:$0xf] %v17230_v44  ;;  %13049 = vmatprep.subr.bf16.mxu1 %v13980_v54  ;;  %vm17225_vm9 = vsmask.f32 1280 }
 0x100   : > { %510 = vst [vmem:[#allocation7 + $0x10] sm:$0xf] %v17230_v44  ;;  %511 = vst [vmem:[#allocation7 + $0x14] sm:$0xf] %v17230_v44  ;;  %vm17224_vm11 = vsmask.f32 7946 }
 0x101   : > { %512 = vst [vmem:[#allocation7 + $0x18] sm:$0xf] %v17230_v44  ;;  %513 = vst [vmem:[#allocation7 + $0x1c] sm:$0xf] %v17230_v44  ;;  %vm2128_vm13 = vsmask.f32 5392 }
 0x102   : > { %12956 = vmatmul.mubr.msk.bf16.gmra.mrb[8].mxu0 %vm641_vm2, %v13941_v13  ;;  %514 = vst [vmem:[#allocation7 + $0x20] sm:$0xf] %v17230_v44  ;;  %v13974_v51 = vld [vmem:[%s15401_s15 + $0x130] ss:$0 sps:$4 sm:$0x11]   ;;  %13050 = vmatpush3.bf16.msra.mxu1 %v13980_v54  ;;  %vm15617_vm12 = vmand %vm2114_vm6, %vm2115_vm7 }
 0x103   : > { %12959 = vmatprep.mubr.msk.bf16.mxu0 %vm641_vm2, %v13942_v14  ;;  %v13985_v14 = vld [vmem:[#allocation15] sm:$0xff]   ;;  %vm2157_vm15 = vsmask.f32 2304  ;;  %vm17227_vm6 = vsmask.f32 7950  ;;  %vm15645_vm7 = vmand %vm2150_vm10, %vm17224_vm11 }
 0x104   : > { %13067 = vmatprep.subr.bf16.mxu1 %v13985_v14  ;;  %vm15654_vm0 = vmor %vm17225_vm9, %vm2128_vm13 }
 0x105   : > { %vm15663_vm10 = vmand %vm2156_vm14, %vm2157_vm15  ;;  %vm17226_vm14 = vsmask.f32 3328 }
 0x106   : > { %vm15704_vm11 = vmand %vm480_vm4, %vm17226_vm14  ;;  %vm2219_vm14 = vsmask.f32 7938 }
 0x10a   : > { %12960 = vmatmul.mubr.msk.bf16.gmra.mrb[12].mxu0 %vm641_vm2, %v13943_v15 }
 0x10b   : > { %12963 = vmatprep.mubr.msk.bf16.mxu0 %vm641_vm2, %v13944_v16 }
 0x112   : > { %12964 = vmatmul.mubr.msk.bf16.gmra.mrb[16].mxu0 %vm641_vm2, %v13945_v20 }
 0x113   : > { %12967 = vmatprep.mubr.msk.bf16.mxu0 %vm641_vm2, %v13946_v22 }
 0x11a   : > { %12968 = vmatmul.mubr.msk.bf16.gmra.mrb[20].mxu0 %vm641_vm2, %v13947_v23 }
 0x11b   : > { %12971 = vmatprep.mubr.msk.bf16.mxu0 %vm641_vm2, %v13948_v24 }
 0x122   : > { %12972 = vmatmul.mubr.msk.bf16.gmra.mrb[24].mxu0 %vm641_vm2, %v13949_v25 }
 0x123   : > { %12975 = vmatprep.mubr.msk.bf16.mxu0 %vm641_vm2, %v13950_v26 }
 0x12a   : > { %12976 = vmatmul.mubr.msk.bf16.gmra.mrb[28].mxu0 %vm641_vm2, %v13951_v27 }
 0x12b   : > { %12981 = vmatprep.mubr.msk.bf16.mxu0 %vm641_vm2, %v13952_v28 }
 0x132   : > { %12982 = vmatmul.mubr.msk.bf16.vlgmr.msra.gmra.mrb[32].mxu0 %vm641_vm2, %v13953_v30 }
 0x133   : > { %12985 = vmatprep.mubr.msk.bf16.mxu0 %vm641_vm2, %v13954_v31  ;;  %13014 = vmatpush3.bf16.msra.mxu0 %v1393_v32 }
 0x13a   : > { %12986 = vmatmul.mubr.msk.bf16.gmra.mrb[36].mxu0 %vm641_vm2, %v13955_v33 }
 0x13b   : > { %12989 = vmatprep.mubr.msk.bf16.mxu0 %vm641_vm2, %v13956_v34 }
 0x142   : > { %12990 = vmatmul.mubr.msk.bf16.gmra.mrb[40].mxu0 %vm641_vm2, %v13957_v35 }
 0x143   : > { %12993 = vmatprep.mubr.msk.bf16.mxu0 %vm641_vm2, %v13958_v36 }
 0x14a   : > { %12994 = vmatmul.mubr.msk.bf16.gmra.mrb[44].mxu0 %vm641_vm2, %v13959_v37 }
 0x14b   : > { %12997 = vmatprep.mubr.msk.bf16.mxu0 %vm641_vm2, %v13960_v38 }
 0x152   : > { %12998 = vmatmul.mubr.msk.bf16.gmra.mrb[48].mxu0 %vm641_vm2, %v13961_v39 }
 0x153   : > { %13001 = vmatprep.mubr.msk.bf16.mxu0 %vm641_vm2, %v13964_v40 }
 0x15a   : > { %13002 = vmatmul.mubr.msk.bf16.gmra.mrb[52].mxu0 %vm641_vm2, %v13965_v41 }
 0x15b   : > { %13015 = vmatprep.mubr.msk.bf16.mxu0 %vm15092_vm3, %v15090_v0 }
 0x162   : > { %13016 = vmatmul.mubr.msk.bf16.vlgmr.msra.gmra.mrb[56].mxu0 %vm641_vm2, %v13968_v42 }
 0x163   : > { %13019 = vmatprep.mubr.msk.bf16.mxu0 %vm15092_vm3, %v15090_v0 }
 0x16a   : > { %13020 = vmatmul.mubr.msk.bf16.gmra.mrb[60].mxu0 %vm641_vm2, %v13969_v43 }
 0x16b   : > { %13023 = vmatprep.mubr.msk.bf16.mxu0 %vm15092_vm3, %v15090_v0 }
 0x172   : > { %13024 = vmatmul.mubr.msk.bf16.gmra.mrb[64].mxu0 %vm641_vm2, %v13970_v45 }
 0x173   : > { %13027 = vmatprep.mubr.msk.bf16.mxu0 %vm15092_vm3, %v15090_v0 }
 0x17a   : > { %13028 = vmatmul.mubr.msk.bf16.gmra.mrb[68].mxu0 %vm641_vm2, %v13971_v46 }
 0x17b   : > { %13031 = vmatprep.mubr.msk.bf16.mxu0 %vm15092_vm3, %v14786_v47 }
 0x182   : > { %13032 = vmatmul.mubr.msk.bf16.gmra.mrb[72].mxu0 %vm641_vm2, %v13972_v48 }
 0x183   : > { %13035 = vmatprep.mubr.msk.bf16.mxu0 %vm15092_vm3, %v14786_v47 }
 0x18a   : > { %13036 = vmatmul.mubr.msk.bf16.gmra.mrb[76].mxu0 %vm641_vm2, %v13973_v49 }
 0x18b   : > { %13039 = vmatprep.mubr.msk.bf16.mxu0 %vm15092_vm3, %v14786_v47  ;;  %vm2184_vm3 = vcmask 519171  }
 0x18c   : > { %vm15670_vm13 = vmand %vm2184_vm3, %vm17227_vm6  ;;  %vm2621_vm3 = vsmask.f32 7424  ;;  %vm2224_vm6 = vcmask 516096  }
 0x192   : > { %13040 = vmatmul.mubr.msk.bf16.gmra.mrb[80].mxu0 %vm641_vm2, %v13974_v51  ;;  %vm15625_vm2 = vmand %vm17229_vm8, %vm17225_vm9  ;;  %vm2225_vm9 = vsmask.f32 256 }
 0x193   : > { %vm15740_vm1 = vmand %vm2224_vm6, %vm2225_vm9  ;;  %vm2335_vm6 = vsmask.f32 6416 }
 0x194   : > { %vm15747_vm8 = vmand %vm480_vm4, %vm2219_vm14 }
 0x1c5   : > { %v12949_v56 = vpop.f32.mrb[0].mxu0 }
 0x1c6   : > { %v740_v57 = vadd.f32 %v12949_v56, %v15554_v55  ;;  %v731_v58 = vpop.f32.mrb[1].mxu0 }
 0x1c7   : > { %v732_v59 = vadd.f32 %v15554_v55, %v731_v58  ;;  %v12950_v60 = vpop.f32.mrb[2].mxu0  ;;  %v13007_v37 = vpop.f32.mrb[0].mxu1 }
 0x1c8   : > { %v860_v61 = vmax.f32 %v740_v57, 0.0  ;;  %v743_v62 = vadd.f32 %v12950_v60, %v15554_v55  ;;  %v734_v63 = vpop.f32.mrb[3].mxu0  ;;  %v1232_v42 = vadd.f32 %v13007_v37, %v15554_v55  ;;  %v1223_v43 = vpop.f32.mrb[1].mxu1 }
 0x1c9   : > { %v858_v0 = vmax.f32 %v732_v59, 0.0  ;;  %v735_v1 = vadd.f32 %v15554_v55, %v734_v63  ;;  %v1224_v48 = vadd.f32 %v15554_v55, %v1223_v43  ;;  %v13008_v49 = vpop.f32.mrb[2].mxu1 }
 0x1ca   : > { %893 = vst.msk [vmem:[#allocation2 + $0x10] sm:$0xff] %vm890_vm5, %v860_v61  ;;  %v861_v2 = vmax.f32 %v743_v62, 0.0  ;;  %v1280_v53 = vmax.f32 %v1232_v42, 0.0  ;;  %v1226_v54 = vpop.f32.mrb[3].mxu1  ;;  %v1235_v59 = vadd.f32 %v13008_v49, %v15554_v55 }
 0x1cb   : > { %891 = vst.msk [vmem:[#allocation2] sm:$0xff] %vm890_vm5, %v858_v0  ;;  %v859_v3 = vmax.f32 %v735_v1, 0.0  ;;  %v1278_v58 = vmax.f32 %v1224_v48, 0.0  ;;  %v1227_v63 = vadd.f32 %v15554_v55, %v1226_v54 }
 0x1cc   : > { %894 = vst.msk [vmem:[#allocation2 + $0x18] sm:$0xff] %vm890_vm5, %v861_v2  ;;  %1312 = vst.msk [vmem:[#allocation2 + $0x1d0] sm:$0xff] %vm890_vm5, %v1280_v53 }
 0x1cd   : > { %892 = vst.msk [vmem:[#allocation2 + $0x8] sm:$0xff] %vm890_vm5, %v859_v3  ;;  %v12953_v4 = vpop.f32.mrb[4].mxu0  ;;  %1310 = vst.msk [vmem:[#allocation2 + $0x1c0] sm:$0xff] %vm890_vm5, %v1278_v58 }
 0x1ce   : > { %v756_v5 = vadd.f32 %v12953_v4, %v15554_v55  ;;  %v747_v6 = vpop.f32.mrb[5].mxu0 }
 0x1cf   : > { %v748_v7 = vadd.f32 %v15554_v55, %v747_v6  ;;  %v12954_v8 = vpop.f32.mrb[6].mxu0 }
 0x1d0   : > { %v864_v9 = vmax.f32 %v756_v5, 0.0  ;;  %v759_v10 = vadd.f32 %v12954_v8, %v15554_v55  ;;  %v750_v11 = vpop.f32.mrb[7].mxu0  ;;  %v1281_v5 = vmax.f32 %v1235_v59, 0.0 }
 0x1d1   : > { %v862_v12 = vmax.f32 %v748_v7, 0.0  ;;  %v751_v13 = vadd.f32 %v15554_v55, %v750_v11  ;;  %v13011_v11 = vpop.f32.mrb[4].mxu1 }
 0x1d2   : > { %897 = vst.msk [vmem:[#allocation2 + $0x30] sm:$0xff] %vm890_vm5, %v864_v9  ;;  %v865_v15 = vmax.f32 %v759_v10, 0.0  ;;  %1313 = vst.msk [vmem:[#allocation2 + $0x1d8] sm:$0xff] %vm890_vm5, %v1281_v5  ;;  %v1279_v10 = vmax.f32 %v1227_v63, 0.0 }
 0x1d3   : > { %895 = vst.msk [vmem:[#allocation2 + $0x20] sm:$0xff] %vm890_vm5, %v862_v12  ;;  %v863_v16 = vmax.f32 %v751_v13, 0.0 }
 0x1d4   : > { %898 = vst.msk [vmem:[#allocation2 + $0x38] sm:$0xff] %vm890_vm5, %v865_v15  ;;  %v1510_v18 = vld [vmem:[#allocation2] ss:$2 sm:$0xff]  ;;  %v1584_v23 = vld [vmem:[#allocation2 + $0x1] ss:$2 sm:$0xff]  ;;  %1311 = vst.msk [vmem:[#allocation2 + $0x1c8] sm:$0xff] %vm890_vm5, %v1279_v10 }
 0x1d5   : > { %896 = vst.msk [vmem:[#allocation2 + $0x28] sm:$0xff] %vm890_vm5, %v863_v16  ;;  %v12957_v17 = vpop.f32.mrb[8].mxu0  ;;  %v1657_v32 = vmax.f32 %v1510_v18, %v1584_v23  ;;  %v1248_v16 = vadd.f32 %v13011_v11, %v15554_v55 }
 0x1d6   : > { %v772_v19 = vadd.f32 %v12957_v17, %v15554_v55  ;;  %v763_v20 = vpop.f32.mrb[9].mxu0  ;;  %v1239_v17 = vpop.f32.mrb[5].mxu1 }
 0x1d7   : > { %v764_v21 = vadd.f32 %v15554_v55, %v763_v20  ;;  %v12958_v22 = vpop.f32.mrb[10].mxu0  ;;  %v1240_v23 = vadd.f32 %v15554_v55, %v1239_v17 }
 0x1d8   : > { %v868_v24 = vmax.f32 %v772_v19, 0.0  ;;  %v775_v25 = vadd.f32 %v12958_v22, %v15554_v55  ;;  %v766_v26 = vpop.f32.mrb[11].mxu0 }
 0x1d9   : > { %v866_v27 = vmax.f32 %v764_v21, 0.0  ;;  %v767_v28 = vadd.f32 %v15554_v55, %v766_v26 }
 0x1da   : > { %v1695_v29 = vld [vmem:[#allocation2 + $0x12] ss:$2 sm:$0xff]  ;;  %v1769_v30 = vld [vmem:[#allocation2 + $0x13] ss:$2 sm:$0xff]  ;;  %901 = vst.msk [vmem:[#allocation2 + $0x50] sm:$0xff] %vm890_vm5, %v868_v24  ;;  %v869_v31 = vmax.f32 %v775_v25, 0.0 }
 0x1db   : > { %v1842_v33 = vmax.f32 %v1695_v29, %v1769_v30  ;;  %899 = vst.msk [vmem:[#allocation2 + $0x40] sm:$0xff] %vm890_vm5, %v866_v27  ;;  %v867_v34 = vmax.f32 %v767_v28, 0.0  ;;  %v1516_v0 = vld [vmem:[#allocation2 + $0x30] ss:$2 sm:$0xff]  ;;  %v1590_v1 = vld [vmem:[#allocation2 + $0x31] ss:$2 sm:$0xff] }
 0x1dc   : > { %902 = vst.msk [vmem:[#allocation2 + $0x58] sm:$0xff] %vm890_vm5, %v869_v31  ;;  %v1514_v38 = vld [vmem:[#allocation2 + $0x20] ss:$2 sm:$0xff]  ;;  %v1588_v39 = vld [vmem:[#allocation2 + $0x21] ss:$2 sm:$0xff]  ;;  %v1660_v12 = vmax.f32 %v1516_v0, %v1590_v1  ;;  %v13012_v24 = vpop.f32.mrb[6].mxu1 }
 0x1dd   : > { %v1879_v35 = vmax.f32 %v1657_v32, %v1842_v33  ;;  %900 = vst.msk [vmem:[#allocation2 + $0x48] sm:$0xff] %vm890_vm5, %v867_v34  ;;  %v12961_v36 = vpop.f32.mrb[12].mxu0  ;;  %v1659_v2 = vmax.f32 %v1514_v38, %v1588_v39  ;;  %v1284_v30 = vmax.f32 %v1248_v16, 0.0  ;;  %v15602_v31 = vpop.f32.mrb[7].mxu1 }
 0x1de   : > { %v788_v40 = vadd.f32 %v12961_v36, %v15554_v55  ;;  %v779_v41 = vpop.f32.mrb[13].mxu0 }
 0x1df   : > { %v12638_v45 = vpack.c.bf16 %v1879_v35, %v1879_v35  ;;  %v780_v46 = vadd.f32 %v15554_v55, %v779_v41  ;;  %v12962_v47 = vpop.f32.mrb[14].mxu0  ;;  %1316 = vst.msk [vmem:[#allocation2 + $0x1f0] sm:$0xff] %vm890_vm5, %v1284_v30  ;;  %v1251_v41 = vadd.f32 %v13012_v24, %v15554_v55 }
 0x1e0   : > { %v872_v50 = vmax.f32 %v788_v40, 0.0  ;;  %v791_v51 = vadd.f32 %v12962_v47, %v15554_v55  ;;  %v782_v52 = vpop.f32.mrb[15].mxu0  ;;  %v1282_v40 = vmax.f32 %v1240_v23, 0.0 }
 0x1e1   : > { %2065 = vst.msk [vmem:[#allocation3] sm:$0xf] %vm480_vm4, %v12638_v45  ;;  %v870_v56 = vmax.f32 %v780_v46, 0.0  ;;  %v783_v57 = vadd.f32 %v15554_v55, %v782_v52 }
 0x1e2   : > { %v1699_v60 = vld [vmem:[#allocation2 + $0x32] ss:$2 sm:$0xff]  ;;  %v1773_v61 = vld [vmem:[#allocation2 + $0x33] ss:$2 sm:$0xff]  ;;  %905 = vst.msk [vmem:[#allocation2 + $0x70] sm:$0xff] %vm890_vm5, %v872_v50  ;;  %v873_v62 = vmax.f32 %v791_v51, 0.0 }
 0x1e3   : > { %v1844_v3 = vmax.f32 %v1699_v60, %v1773_v61  ;;  %903 = vst.msk [vmem:[#allocation2 + $0x60] sm:$0xff] %vm890_vm5, %v870_v56  ;;  %v871_v4 = vmax.f32 %v783_v57, 0.0  ;;  %v1520_v42 = vld [vmem:[#allocation2 + $0x50] ss:$2 sm:$0xff]  ;;  %v1594_v43 = vld [vmem:[#allocation2 + $0x51] ss:$2 sm:$0xff] }
 0x1e4   : > { %v1701_v6 = vld [vmem:[#allocation2 + $0x42] ss:$2 sm:$0xff]  ;;  %906 = vst.msk [vmem:[#allocation2 + $0x78] sm:$0xff] %vm890_vm5, %v873_v62  ;;  %v1775_v8 = vld [vmem:[#allocation2 + $0x43] ss:$2 sm:$0xff]  ;;  %1314 = vst.msk [vmem:[#allocation2 + $0x1e0] sm:$0xff] %vm890_vm5, %v1282_v40  ;;  %v1662_v54 = vmax.f32 %v1520_v42, %v1594_v43 }
 0x1e5   : > { %v1881_v7 = vmax.f32 %v1659_v2, %v1844_v3  ;;  %904 = vst.msk [vmem:[#allocation2 + $0x68] sm:$0xff] %vm890_vm5, %v871_v4  ;;  %v12965_v9 = vpop.f32.mrb[16].mxu0  ;;  %v1845_v13 = vmax.f32 %v1701_v6, %v1775_v8  ;;  %v1518_v19 = vld [vmem:[#allocation2 + $0x40] ss:$2 sm:$0xff]  ;;  %v1592_v20 = vld [vmem:[#allocation2 + $0x41] ss:$2 sm:$0xff] }
 0x1e6   : > { %v804_v14 = vadd.f32 %v12965_v9, %v15554_v55  ;;  %v795_v15 = vpop.f32.mrb[17].mxu0  ;;  %v1661_v45 = vmax.f32 %v1518_v19, %v1592_v20  ;;  %v2117_v60 = vld [vmem:[#allocation4 + $0x4] sm:$0xe]  ;;  %v2123_v61 = vld [vmem:[#allocation4 + $0x8] sm:$0x3]  ;;  %v1285_v62 = vmax.f32 %v1251_v41, 0.0 }
 0x1e7   : > { %v12640_v18 = vpack.c.bf16 %v1881_v7, %v1881_v7  ;;  %v796_v21 = vadd.f32 %v15554_v55, %v795_v15  ;;  %v12966_v22 = vpop.f32.mrb[18].mxu0  ;;  %v1882_v25 = vmax.f32 %v1660_v12, %v1845_v13  ;;  %v2153_v40 = vld [vmem:[#allocation4 + $0x8] sm:$0xc] }
 0x1e8   : > { %v876_v26 = vmax.f32 %v804_v14, 0.0  ;;  %v807_v27 = vadd.f32 %v12966_v22, %v15554_v55  ;;  %v798_v28 = vpop.f32.mrb[19].mxu0  ;;  %v2102_v29 = vld [vmem:[#allocation3] sm:$0xf]  ;;  %1317 = vst.msk [vmem:[#allocation2 + $0x1f8] sm:$0xff] %vm890_vm5, %v1285_v62 }
 0x1e9   : > { %2067 = vst.msk [vmem:[#allocation3 + $0x8] sm:$0xf] %vm480_vm4, %v12640_v18  ;;  %v874_v32 = vmax.f32 %v796_v21, 0.0  ;;  %v799_v33 = vadd.f32 %v15554_v55, %v798_v28  ;;  %v2104_v34 = vshrl.u32 %v2102_v29, 16  ;;  %v2107_v35 = vshll.u32 %v2102_v29, 16 }
 0x1ea   : > { %v12641_v36 = vpack.c.bf16 %v1882_v25, %v1882_v25  ;;  %v1703_v37 = vld [vmem:[#allocation2 + $0x52] ss:$2 sm:$0xff]  ;;  %v1777_v38 = vld [vmem:[#allocation2 + $0x53] ss:$2 sm:$0xff]  ;;  %909 = vst.msk [vmem:[#allocation2 + $0x90] sm:$0xff] %vm890_vm5, %v876_v26  ;;  %v877_v39 = vmax.f32 %v807_v27, 0.0 }
 0x1eb   : > { %v1846_v46 = vmax.f32 %v1703_v37, %v1777_v38  ;;  %907 = vst.msk [vmem:[#allocation2 + $0x80] sm:$0xff] %vm890_vm5, %v874_v32  ;;  %v875_v47 = vmax.f32 %v799_v33, 0.0  ;;  %v2106_v48 = vrot.slane %v2104_v34, 6  ;;  %v2109_v53 = vrot.slane %v2107_v35, 7  ;;  %v1524_v11 = vld [vmem:[#allocation2 + $0x70] ss:$2 sm:$0xff] }
 0x1ec   : > { %2068 = vst.msk [vmem:[#allocation3 + $0xc] sm:$0xf] %vm480_vm4, %v12641_v36  ;;  %v1705_v49 = vld [vmem:[#allocation2 + $0x62] ss:$2 sm:$0xff]  ;;  %v1779_v51 = vld [vmem:[#allocation2 + $0x63] ss:$2 sm:$0xff] }
 0x1ed   : > { %910 = vst.msk [vmem:[#allocation2 + $0x98] sm:$0xff] %vm890_vm5, %v877_v39  ;;  %v1883_v50 = vmax.f32 %v1661_v45, %v1846_v46  ;;  %908 = vst.msk [vmem:[#allocation2 + $0x88] sm:$0xff] %vm890_vm5, %v875_v47  ;;  %v12969_v52 = vpop.f32.mrb[20].mxu0  ;;  %v1847_v56 = vmax.f32 %v1705_v49, %v1779_v51  ;;  %v1522_v0 = vld [vmem:[#allocation2 + $0x60] ss:$2 sm:$0xff]  ;;  %v2110_v4 = vor.u32 %v2109_v53, %v2106_v48 }
 0x1ee   : > { %v820_v57 = vadd.f32 %v12969_v52, %v15554_v55  ;;  %v811_v58 = vpop.f32.mrb[21].mxu0  ;;  %v1596_v1 = vld [vmem:[#allocation2 + $0x61] ss:$2 sm:$0xff]  ;;  %v1598_v12 = vld [vmem:[#allocation2 + $0x71] ss:$2 sm:$0xff] }
 0x1ef   : > { %v12642_v63 = vpack.c.bf16 %v1883_v50, %v1883_v50  ;;  %v812_v2 = vadd.f32 %v15554_v55, %v811_v58  ;;  %v12970_v3 = vpop.f32.mrb[22].mxu0  ;;  %v1884_v5 = vmax.f32 %v1662_v54, %v1847_v56  ;;  %v2111_v15 = vrot.slane %v2110_v4, 4  ;;  %v2544_v49 = vld [vmem:[#allocation4] sm:$0xf] }
 0x1f0   : > { %v880_v6 = vmax.f32 %v820_v57, 0.0  ;;  %v823_v7 = vadd.f32 %v12970_v3, %v15554_v55  ;;  %v814_v8 = vpop.f32.mrb[23].mxu0  ;;  %v2126_v10 = vld [vmem:[#allocation3 + $0x8] sm:$0xe]  ;;  %v2118_v16 = vsel %vm15617_vm12, %v2110_v4, %v2117_v60  ;;  %v1663_v17 = vmax.f32 %v1522_v0, %v1596_v1 }
 0x1f1   : > { %2069 = vst.msk [vmem:[#allocation3 + $0x10] sm:$0xf] %vm480_vm4, %v12642_v63  ;;  %v878_v13 = vmax.f32 %v812_v2, 0.0  ;;  %v815_v14 = vadd.f32 %v15554_v55, %v814_v8  ;;  %v12643_v18 = vpack.c.bf16 %v1884_v5, %v1884_v5  ;;  %2119 = vst [vmem:[#allocation4 + $0x4] sm:$0xe] %v2118_v16  ;;  %v2131_v22 = vshrl.u32 %v2126_v10, 16 }
 0x1f2   : > { %v1707_v19 = vld [vmem:[#allocation2 + $0x72] ss:$2 sm:$0xff]  ;;  %v1781_v20 = vld [vmem:[#allocation2 + $0x73] ss:$2 sm:$0xff]  ;;  %913 = vst.msk [vmem:[#allocation2 + $0xb0] sm:$0xff] %vm890_vm5, %v880_v6  ;;  %v881_v21 = vmax.f32 %v823_v7, 0.0  ;;  %v2124_v25 = vsel %vm15625_vm2, %v2111_v15, %v2123_v61  ;;  %v1664_v28 = vmax.f32 %v1524_v11, %v1598_v12 }
 0x1f3   : > { %v1848_v23 = vmax.f32 %v1707_v19, %v1781_v20  ;;  %911 = vst.msk [vmem:[#allocation2 + $0xa0] sm:$0xff] %vm890_vm5, %v878_v13  ;;  %v879_v24 = vmax.f32 %v815_v14, 0.0  ;;  %v2134_v26 = vshll.u32 %v2126_v10, 16  ;;  %2125 = vst [vmem:[#allocation4 + $0x8] sm:$0x3] %v2124_v25  ;;  %v2133_v34 = vrot.slane %v2131_v22, 6 }
 0x1f4   : > { %2070 = vst.msk [vmem:[#allocation3 + $0x14] sm:$0xf] %vm480_vm4, %v12643_v18  ;;  %v1709_v27 = vld [vmem:[#allocation2 + $0x82] ss:$2 sm:$0xff]  ;;  %v1783_v30 = vld [vmem:[#allocation2 + $0x83] ss:$2 sm:$0xff] }
 0x1f5   : > { %914 = vst.msk [vmem:[#allocation2 + $0xb8] sm:$0xff] %vm890_vm5, %v881_v21  ;;  %v1885_v29 = vmax.f32 %v1663_v17, %v1848_v23  ;;  %912 = vst.msk [vmem:[#allocation2 + $0xa8] sm:$0xff] %vm890_vm5, %v879_v24  ;;  %v12973_v32 = vpop.f32.mrb[24].mxu0  ;;  %v2127_v33 = vld [vmem:[#allocation3 + $0xc] sm:$0x1]  ;;  %v1849_v35 = vmax.f32 %v1709_v27, %v1783_v30  ;;  %v2136_v38 = vrot.slane %v2134_v26, 7 }
 0x1f6   : > { %v836_v36 = vadd.f32 %v12973_v32, %v15554_v55  ;;  %v827_v37 = vpop.f32.mrb[25].mxu0  ;;  %v2140_v39 = vshrl.u32 %v2127_v33, 16  ;;  %v1528_v42 = vld [vmem:[#allocation2 + $0x90] ss:$2 sm:$0xff]  ;;  %v1602_v43 = vld [vmem:[#allocation2 + $0x91] ss:$2 sm:$0xff] }
 0x1f7   : > { %v12644_v41 = vpack.c.bf16 %v1885_v29, %v1885_v29  ;;  %v828_v45 = vadd.f32 %v15554_v55, %v827_v37  ;;  %v12974_v46 = vpop.f32.mrb[26].mxu0  ;;  %v2143_v47 = vshll.u32 %v2127_v33, 16  ;;  %v1886_v50 = vmax.f32 %v1664_v28, %v1849_v35  ;;  %v2159_v7 = vld [vmem:[#allocation4 + $0xc] sm:$0x7]  ;;  %v2187_v11 = vld [vmem:[#allocation4 + $0xc] sm:$0x8] }
 0x1f8   : > { %v884_v51 = vmax.f32 %v836_v36, 0.0  ;;  %v839_v52 = vadd.f32 %v12974_v46, %v15554_v55  ;;  %v830_v53 = vpop.f32.mrb[27].mxu0  ;;  %v2137_v54 = vor.u32 %v2136_v38, %v2133_v34  ;;  %v2162_v56 = vld [vmem:[#allocation3 + $0x10] sm:$0xc]  ;;  %v2142_v61 = vrot.slane %v2140_v39, 6  ;;  %v13997_v25 = vld [vmem:[#allocation15 + $0x20] sm:$0xff]  }
 0x1f9   : > { %2071 = vst.msk [vmem:[#allocation3 + $0x18] sm:$0xf] %vm480_vm4, %v12644_v41  ;;  %v882_v57 = vmax.f32 %v828_v45, 0.0  ;;  %v831_v58 = vadd.f32 %v15554_v55, %v830_v53  ;;  %v2145_v62 = vrot.slane %v2143_v47, 7  ;;  %v2545_v63 = vld [vmem:[#allocation4 + $0x4] sm:$0xf]  ;;  %v12645_v0 = vpack.c.bf16 %v1886_v50, %v1886_v50  ;;  %13259 = vmatprep.subr.bf16.mxu0 %v13997_v25 }
 0x1fa   : > { %917 = vst.msk [vmem:[#allocation2 + $0xd0] sm:$0xff] %vm890_vm5, %v884_v51  ;;  %v885_v1 = vmax.f32 %v839_v52, 0.0  ;;  %v2138_v2 = vrot.slane %v2137_v54, 4  ;;  %v2154_v3 = vsel %vm15645_vm7, %v2137_v54, %v2153_v40  ;;  %v2165_v8 = vshll.u32 %v2162_v56, 16  ;;  %v13998_v26 = vld [vmem:[#allocation15 + $0x28] sm:$0xff]   ;;  %13260 = vmatpush3.bf16.msra.mxu0 %v13997_v25 }
 0x1fb   : > { %915 = vst.msk [vmem:[#allocation2 + $0xc0] sm:$0xff] %vm890_vm5, %v882_v57  ;;  %v883_v5 = vmax.f32 %v831_v58, 0.0  ;;  %v2146_v6 = vor.u32 %v2145_v62, %v2142_v61  ;;  %2155 = vst [vmem:[#allocation4 + $0x8] sm:$0xc] %v2154_v3  ;;  %v1666_v12 = vmax.f32 %v1528_v42, %v1602_v43  ;;  %v15676_v14 = vcombine.low %v2544_v49, %v2545_v63  ;;  %v2163_v24 = vld [vmem:[#allocation3 + $0x14] sm:$0x3] }
 0x1fc   : > { %2072 = vst.msk [vmem:[#allocation3 + $0x1c] sm:$0xf] %vm480_vm4, %v12645_v0  ;;  %v1713_v13 = vld [vmem:[#allocation2 + $0xa2] ss:$2 sm:$0xff]  ;;  %v1787_v15 = vld [vmem:[#allocation2 + $0xa3] ss:$2 sm:$0xff]  ;;  %13261 = vmatprep.subr.bf16.mxu0 %v13998_v26 }
 0x1fd   : > { %918 = vst.msk [vmem:[#allocation2 + $0xd8] sm:$0xff] %vm890_vm5, %v885_v1  ;;  %916 = vst.msk [vmem:[#allocation2 + $0xc8] sm:$0xff] %vm890_vm5, %v883_v5  ;;  %v12977_v16 = vpop.f32.mrb[28].mxu0  ;;  %v2147_v17 = vsel %vm15654_vm0, %v2138_v2, %v2146_v6  ;;  %v2167_v18 = vrot.slane %v2165_v8, 7  ;;  %v1851_v19 = vmax.f32 %v1713_v13, %v1787_v15  ;;  %v2168_v23 = vshrl.u32 %v2162_v56, 16  ;;  %v14000_v5 = vld [vmem:[#allocation15 + $0x30] sm:$0xff]  }
 0x1fe   : > { %v852_v20 = vadd.f32 %v12977_v16, %v15554_v55  ;;  %v843_v21 = vpop.f32.mrb[29].mxu0  ;;  %v2160_v22 = vsel %vm15663_vm10, %v2147_v17, %v2159_v7  ;;  %v1532_v30 = vld [vmem:[#allocation2 + $0xb0] ss:$2 sm:$0xff]  ;;  %v1606_v32 = vld [vmem:[#allocation2 + $0xb1] ss:$2 sm:$0xff]  ;;  %v2625_v40 = vshll.u32 %v15676_v14, 16  ;;  %13262 = vmatpush3.bf16.msra.mxu0 %v13998_v26 }
 0x1ff   : > { %v844_v27 = vadd.f32 %v15554_v55, %v843_v21  ;;  %v12978_v28 = vpop.f32.mrb[30].mxu0  ;;  %2161 = vst [vmem:[#allocation4 + $0xc] sm:$0x7] %v2160_v22  ;;  %v2188_v29 = vsel %vm15670_vm13, %v2167_v18, %v2187_v11  ;;  %v1888_v33 = vmax.f32 %v1666_v12, %v1851_v19  ;;  %v2170_v37 = vrot.slane %v2168_v23, 6  ;;  %v2193_v3 = vld [vmem:[#allocation4 + $0x10] sm:$0xf]  ;;  %13263 = vmatprep.subr.bf16.mxu0 %v14000_v5 }
 0x200   : > { %v888_v34 = vmax.f32 %v852_v20, 0.0  ;;  %v855_v35 = vadd.f32 %v12978_v28, %v15554_v55  ;;  %v846_v36 = vpop.f32.mrb[31].mxu0  ;;  %2189 = vst [vmem:[#allocation4 + $0xc] sm:$0x8] %v2188_v29  ;;  %v2174_v41 = vshrl.u32 %v2163_v24, 16  ;;  %v2177_v46 = vshll.u32 %v2163_v24, 16 }
 0x201   : > { %v886_v38 = vmax.f32 %v844_v27, 0.0  ;;  %v847_v39 = vadd.f32 %v15554_v55, %v846_v36  ;;  %v12647_v42 = vpack.c.bf16 %v1888_v33, %v1888_v33  ;;  %v2171_v45 = vor.u32 %v2170_v37, %v2167_v18  ;;  %v15693_v51 = vld [vmem:[#allocation3 + $0x18] sm:$0x8] }
 0x202   : > { %921 = vst.msk [vmem:[#allocation2 + $0xf0] sm:$0xff] %vm890_vm5, %v888_v34  ;;  %v889_v43 = vmax.f32 %v855_v35, 0.0  ;;  %v2623_v49 = vshrl.u32 %v15676_v14, 16  ;;  %v2627_v50 = vrot.slane %v2625_v40, 1  ;;  %v1668_v56 = vmax.f32 %v1532_v30, %v1606_v32  ;;  %v14001_v21 = vld [vmem:[#allocation15 + $0x38] sm:$0xff]   ;;  %13264 = vmatpush3.bf16.msra.mxu0 %v14000_v5 }
 0x203   : > { %919 = vst.msk [vmem:[#allocation2 + $0xe0] sm:$0xff] %vm890_vm5, %v886_v38  ;;  %v887_v47 = vmax.f32 %v847_v39, 0.0  ;;  %v2172_v61 = vrot.slane %v2171_v45, 4  ;;  %v2176_v1 = vrot.slane %v2174_v41, 6  ;;  %v2179_v2 = vrot.slane %v2177_v46, 7  ;;  %13265 = vmatprep.subr.bf16.mxu0 %v14001_v21 }
 0x204   : > { %2074 = vst.msk [vmem:[#allocation3 + $0x24] sm:$0xf] %vm480_vm4, %v12647_v42  ;;  %v1534_v52 = vld [vmem:[#allocation2 + $0xc0] ss:$2 sm:$0xff]  ;;  %v1608_v53 = vld [vmem:[#allocation2 + $0xc1] ss:$2 sm:$0xff]  ;;  %v2628_v25 = vor.u32 %v2627_v50, %v2623_v49 }
 0x205   : > { %v1717_v54 = vld [vmem:[#allocation2 + $0xc2] ss:$2 sm:$0xff]  ;;  %922 = vst.msk [vmem:[#allocation2 + $0xf8] sm:$0xff] %vm890_vm5, %v889_v43  ;;  %v1791_v57 = vld [vmem:[#allocation2 + $0xc3] ss:$2 sm:$0xff]  ;;  %920 = vst.msk [vmem:[#allocation2 + $0xe8] sm:$0xff] %vm890_vm5, %v887_v47  ;;  %v1669_v6 = vmax.f32 %v1534_v52, %v1608_v53  ;;  %v2180_v20 = vor.u32 %v2179_v2, %v2176_v1 }
 0x206   : > { %v12983_v58 = vpop.f32.mrb[32].mxu0  ;;  %v1853_v62 = vmax.f32 %v1717_v54, %v1791_v57  ;;  %v2199_v13 = vshrl.u32 %v15693_v51, 16  ;;  %v1536_v15 = vld [vmem:[#allocation2 + $0xd0] ss:$2 sm:$0xff]  ;;  %v1610_v22 = vld [vmem:[#allocation2 + $0xd1] ss:$2 sm:$0xff]  ;;  %13266 = vmatpush3.bf16.msra.mxu0 %v14001_v21 }
 0x207   : > { %v1136_v63 = vadd.f32 %v12983_v58, %v15554_v55  ;;  %v1127_v0 = vpop.f32.mrb[33].mxu0  ;;  %v15700_v11 = vld [vmem:[#allocation4 + $0x8] sm:$0xff]   ;;  %v2181_v32 = vsel %vm15654_vm0, %v2172_v61, %v2180_v20  ;;  %v2202_v33 = vshll.u32 %v15693_v51, 16  ;;  %v1670_v41 = vmax.f32 %v1536_v15, %v1610_v22  ;;  %v2227_v15 = vld [vmem:[#allocation4 + $0x18] sm:$0x1] }
 0x208   : > { %v1128_v7 = vadd.f32 %v15554_v55, %v1127_v0  ;;  %v12984_v8 = vpop.f32.mrb[34].mxu0  ;;  %v1890_v16 = vmax.f32 %v1668_v56, %v1853_v62  ;;  %v2630_v26 = vshll.u32 %v15700_v11, 16  ;;  %v2194_v37 = vsel %vm15704_vm11, %v2181_v32, %v2193_v3  ;;  %v2197_v38 = vld [vmem:[#allocation3 + $0x1c] sm:$0x7]  ;;  %v14004_v49 = vld [vmem:[#allocation15] sm:$0xff]  }
 0x209   : > { %v1256_v17 = vmax.f32 %v1136_v63, 0.0  ;;  %v1139_v18 = vadd.f32 %v12984_v8, %v15554_v55  ;;  %v1130_v19 = vpop.f32.mrb[35].mxu0  ;;  %2195 = vst [vmem:[#allocation4 + $0x10] sm:$0xf] %v2194_v37  ;;  %v2201_v40 = vrot.slane %v2199_v13, 6  ;;  %v2204_v54 = vrot.slane %v2202_v33, 7  ;;  %13275 = vmatprep.subr.bf16.mxu0 %v14004_v49 }
 0x20a   : > { %v1254_v23 = vmax.f32 %v1128_v7, 0.0  ;;  %v1131_v24 = vadd.f32 %v15554_v55, %v1130_v19  ;;  %v12649_v27 = vpack.c.bf16 %v1890_v16, %v1890_v16  ;;  %v1719_v28 = vld [vmem:[#allocation2 + $0xd2] ss:$2 sm:$0xff]  ;;  %v1793_v29 = vld [vmem:[#allocation2 + $0xd3] ss:$2 sm:$0xff]  ;;  %v15717_v36 = vrot.slane %v2630_v26, 1 }
 0x20b   : > { %1288 = vst.msk [vmem:[#allocation2 + $0x110] sm:$0xff] %vm890_vm5, %v1256_v17  ;;  %v1257_v30 = vmax.f32 %v1139_v18, 0.0  ;;  %v1854_v34 = vmax.f32 %v1719_v28, %v1793_v29  ;;  %v15726_v47 = vld [vmem:[#allocation3 + $0x24] sm:$0xf]  ;;  %v2208_v56 = vshrl.u32 %v2197_v38, 16  ;;  %v2211_v63 = vshll.u32 %v2197_v38, 16 }
 0x20c   : > { %1286 = vst.msk [vmem:[#allocation2 + $0x100] sm:$0xff] %vm890_vm5, %v1254_v23  ;;  %v1255_v35 = vmax.f32 %v1131_v24, 0.0  ;;  %v1721_v39 = vld [vmem:[#allocation2 + $0xe2] ss:$2 sm:$0xff]  ;;  %v1795_v43 = vld [vmem:[#allocation2 + $0xe3] ss:$2 sm:$0xff]  ;;  %v2633_v46 = vsel %vm2621_vm3, %v2628_v25, %v15717_v36  ;;  %v2205_v13 = vor.u32 %v2204_v54, %v2201_v40 }
 0x20d   : > { %2076 = vst.msk [vmem:[#allocation3 + $0x2c] sm:$0xf] %vm480_vm4, %v12649_v27  ;;  %v1891_v42 = vmax.f32 %v1669_v6, %v1854_v34  ;;  %v12987_v45 = vpop.f32.mrb[36].mxu0  ;;  %v1538_v50 = vld [vmem:[#allocation2 + $0xe0] ss:$2 sm:$0xff]  ;;  %v1855_v51 = vmax.f32 %v1721_v39, %v1795_v43  ;;  %13051 = vmatprep.mubr.msk.bf16.mxu1 %vm890_vm5, %v2633_v46  ;;  %v2232_v0 = vshrl.u32 %v15726_v47, 16 }
 0x20e   : > { %1289 = vst.msk [vmem:[#allocation2 + $0x118] sm:$0xff] %vm890_vm5, %v1257_v30  ;;  %1287 = vst.msk [vmem:[#allocation2 + $0x108] sm:$0xff] %vm890_vm5, %v1255_v35  ;;  %v1152_v52 = vadd.f32 %v12987_v45, %v15554_v55  ;;  %v1143_v53 = vpop.f32.mrb[37].mxu0  ;;  %v1612_v58 = vld [vmem:[#allocation2 + $0xe1] ss:$2 sm:$0xff]  ;;  %v2210_v17 = vrot.slane %v2208_v56, 6 }
 0x20f   : > { %v12650_v57 = vpack.c.bf16 %v1891_v42, %v1891_v42  ;;  %v1144_v61 = vadd.f32 %v15554_v55, %v1143_v53  ;;  %v12988_v62 = vpop.f32.mrb[38].mxu0  ;;  %v1540_v1 = vld [vmem:[#allocation2 + $0xf0] ss:$2 sm:$0xff]  ;;  %v1614_v2 = vld [vmem:[#allocation2 + $0xf1] ss:$2 sm:$0xff]  ;;  %v1892_v3 = vmax.f32 %v1670_v41, %v1855_v51  ;;  %v2213_v18 = vrot.slane %v2211_v63, 7 }
 0x210   : > { %v1260_v5 = vmax.f32 %v1152_v52, 0.0  ;;  %v15732_v6 = vld [vmem:[#allocation14] ss:$0 sm:$0xff]  ;;  %v1146_v8 = vpop.f32.mrb[39].mxu0  ;;  %v1671_v19 = vmax.f32 %v1538_v50, %v1612_v58  ;;  %v2206_v24 = vrot.slane %v2205_v13, 4  ;;  %v2216_v32 = vrot.slane %v2210_v17, 4 }
 0x211   : > { %v1155_v7 = vadd.f32 %v15732_v6, %v12988_v62  ;;  %2077 = vst.msk [vmem:[#allocation3 + $0x30] sm:$0xf] %vm480_vm4, %v12650_v57  ;;  %v1258_v16 = vmax.f32 %v1144_v61, 0.0  ;;  %v1147_v55 = vadd.f32 %v15732_v6, %v1146_v8  ;;  %v12651_v20 = vpack.c.bf16 %v1892_v3, %v1892_v3  ;;  %v2221_v30 = vld [vmem:[#allocation4 + $0x14] sm:$0xf] }
 0x212   : > { %1292 = vst.msk [vmem:[#allocation2 + $0x130] sm:$0xff] %vm890_vm5, %v1260_v5  ;;  %v2214_v28 = vor.u32 %v2213_v18, %v2210_v17  ;;  %v2634_v34 = vshrl.u32 %v15700_v11, 16  ;;  %v1243_v35 = vadd.f32 %v15732_v6, %v15602_v31  ;;  %v1672_v37 = vmax.f32 %v1540_v1, %v1614_v2  ;;  %v2242_v1 = vld [vmem:[#allocation4 + $0x18] sm:$0xe]  ;;  %v2270_v8 = vld [vmem:[#allocation4 + $0x1c] sm:$0xc] }
 0x213   : > { %v1723_v21 = vld [vmem:[#allocation2 + $0xf2] ss:$2 sm:$0xff]  ;;  %v1797_v22 = vld [vmem:[#allocation2 + $0xf3] ss:$2 sm:$0xff]  ;;  %v1261_v23 = vmax.f32 %v1155_v7, 0.0  ;;  %1290 = vst.msk [vmem:[#allocation2 + $0x120] sm:$0xff] %vm890_vm5, %v1258_v16  ;;  %v2228_v42 = vsel %vm15740_vm1, %v2216_v32, %v2227_v15 }
 0x214   : > { %v1856_v26 = vmax.f32 %v1723_v21, %v1797_v22  ;;  %v1259_v27 = vmax.f32 %v1147_v55, 0.0  ;;  %2078 = vst.msk [vmem:[#allocation3 + $0x34] sm:$0xf] %vm480_vm4, %v12651_v20  ;;  %v2215_v41 = vsel %vm15654_vm0, %v2206_v24, %v2214_v28  ;;  %2229 = vst [vmem:[#allocation4 + $0x18] sm:$0x1] %v2228_v42  ;;  %v2234_v49 = vrot.slane %v2232_v0, 6 }
 0x215   : > { %v1725_v33 = vld [vmem:[#allocation2 + $0x102] ss:$2 sm:$0xff]  ;;  %1293 = vst.msk [vmem:[#allocation2 + $0x138] sm:$0xff] %vm890_vm5, %v1261_v23  ;;  %v1799_v39 = vld [vmem:[#allocation2 + $0x103] ss:$2 sm:$0xff]  ;;  %v12991_v40 = vpop.f32.mrb[40].mxu0  ;;  %v2222_v31 = vsel %vm15747_vm8, %v2215_v41, %v2221_v30 }
 0x216   : > { %v1893_v38 = vmax.f32 %v1671_v19, %v1856_v26  ;;  %1291 = vst.msk [vmem:[#allocation2 + $0x128] sm:$0xff] %vm890_vm5, %v1259_v27  ;;  %v1542_v43 = vld [vmem:[#allocation2 + $0x100] ss:$2 sm:$0xff]  ;;  %v1857_v45 = vmax.f32 %v1725_v33, %v1799_v39  ;;  %v1168_v11 = vadd.f32 %v15732_v6, %v12991_v40  ;;  %v1159_v46 = vpop.f32.mrb[41].mxu0  ;;  %v2248_v50 = vld [vmem:[#allocation3 + $0x2c] sm:$0xe]  ;;  %v2636_v26 = vor.u32 %v2634_v34, %v15717_v36 }
 0x217   : > { %v1616_v52 = vld [vmem:[#allocation2 + $0x101] ss:$2 sm:$0xff]  ;;  %v1160_v53 = vadd.f32 %v15732_v6, %v1159_v46  ;;  %v12992_v54 = vpop.f32.mrb[42].mxu0  ;;  %2223 = vst [vmem:[#allocation4 + $0x14] sm:$0xf] %v2222_v31  ;;  %v2235_v56 = vshll.u32 %v15726_v47, 16 }
 0x218   : > { %v12652_v51 = vpack.c.bf16 %v1893_v38, %v1893_v38  ;;  %v2251_v57 = vshrl.u32 %v2248_v50, 16  ;;  %v1894_v58 = vmax.f32 %v1672_v37, %v1857_v45  ;;  %v1264_v61 = vmax.f32 %v1168_v11, 0.0  ;;  %v1162_v63 = vpop.f32.mrb[43].mxu0  ;;  %v2245_v22 = vld [vmem:[#allocation4 + $0x1c] sm:$0x3] }
 0x219   : > { %v1171_v62 = vadd.f32 %v15732_v6, %v12992_v54  ;;  %v2254_v2 = vshll.u32 %v2248_v50, 16  ;;  %v1262_v0 = vmax.f32 %v1160_v53, 0.0  ;;  %v1163_v3 = vadd.f32 %v15732_v6, %v1162_v63  ;;  %v2249_v24 = vld [vmem:[#allocation3 + $0x30] sm:$0x1]  ;;  %v15790_v31 = vld [vmem:[#allocation2 + $0x1d1] ss:$2 sm:$0xff] }
 0x21a   : > { %2079 = vst.msk [vmem:[#allocation3 + $0x38] sm:$0xf] %vm480_vm4, %v12652_v51  ;;  %v2237_v5 = vrot.slane %v2235_v56, 7  ;;  %v2253_v7 = vrot.slane %v2251_v57, 6  ;;  %v1673_v13 = vmax.f32 %v1542_v43, %v1616_v52  ;;  %v12653_v15 = vpack.c.bf16 %v1894_v58, %v1894_v58  ;;  %v1727_v16 = vld [vmem:[#allocation2 + $0x112] ss:$2 sm:$0xff] }
 0x21b   : > { %v1801_v47 = vld [vmem:[#allocation2 + $0x113] ss:$2 sm:$0xff]  ;;  %1296 = vst.msk [vmem:[#allocation2 + $0x150] sm:$0xff] %vm890_vm5, %v1264_v61  ;;  %v1265_v55 = vmax.f32 %v1171_v62, 0.0  ;;  %v2256_v17 = vrot.slane %v2254_v2, 7  ;;  %1294 = vst.msk [vmem:[#allocation2 + $0x140] sm:$0xff] %vm890_vm5, %v1262_v0 }
 0x21c   : > { %v1858_v18 = vmax.f32 %v1727_v16, %v1801_v47  ;;  %v1263_v19 = vmax.f32 %v1163_v3, 0.0  ;;  %v2238_v20 = vor.u32 %v2237_v5, %v2234_v49  ;;  %v1283_v21 = vmax.f32 %v1243_v35, 0.0  ;;  %2080 = vst.msk [vmem:[#allocation3 + $0x3c] sm:$0xf] %vm480_vm4, %v12653_v15  ;;  %v15788_v46 = vld [vmem:[#allocation2 + $0x1d0] ss:$2 sm:$0xff] }
 0x21d   : > { %1297 = vst.msk [vmem:[#allocation2 + $0x158] sm:$0xff] %vm890_vm5, %v1265_v55  ;;  %v15773_v23 = vor.u32 %v2256_v17, %v2253_v7  ;;  %v12995_v28 = vpop.f32.mrb[44].mxu0  ;;  %v2260_v41 = vshrl.u32 %v2249_v24, 16  ;;  %v2263_v58 = vshll.u32 %v2249_v24, 16  ;;  %v15797_v61 = vld [vmem:[#allocation3 + $0x34] sm:$0xc]  ;;  %v1686_v3 = vmax.f32 %v15788_v46, %v15790_v31 }
 0x21e   : > { %v1895_v27 = vmax.f32 %v1673_v13, %v1858_v18  ;;  %1295 = vst.msk [vmem:[#allocation2 + $0x148] sm:$0xff] %vm890_vm5, %v1263_v19  ;;  %v2239_v30 = vrot.slane %v2238_v20, 4  ;;  %v2243_v32 = vsel %vm15617_vm12, %v2238_v20, %v2242_v1  ;;  %1315 = vst.msk [vmem:[#allocation2 + $0x1e8] sm:$0xff] %vm890_vm5, %v1283_v21  ;;  %v13981_v33 = vld [vmem:[#allocation4 + $0x10] sm:$0xff]   ;;  %v1184_v35 = vadd.f32 %v15732_v6, %v12995_v28  ;;  %v1175_v37 = vpop.f32.mrb[45].mxu0  ;;  %v13988_v47 = vld [vmem:[#allocation15 + $0x10] sm:$0xff]  }
 0x21f   : > { %2244 = vst [vmem:[#allocation4 + $0x18] sm:$0xe] %v2243_v32  ;;  %v2271_v38 = vsel %vm15645_vm7, %v15773_v23, %v2270_v8  ;;  %v1176_v34 = vadd.f32 %v15732_v6, %v1175_v37  ;;  %v12996_v39 = vpop.f32.mrb[46].mxu0  ;;  %v2638_v42 = vshll.u32 %v13981_v33, 16  ;;  %v2258_v51 = vrot.slane %v15773_v23, 4  ;;  %v13986_v62 = vld [vmem:[#allocation15 + $0x8] sm:$0xff]  }
 0x220   : > { %v12654_v36 = vpack.c.bf16 %v1895_v27, %v1895_v27  ;;  %v2246_v40 = vsel %vm15625_vm2, %v2239_v30, %v2245_v22  ;;  %2272 = vst [vmem:[#allocation4 + $0x1c] sm:$0xc] %v2271_v38  ;;  %v1268_v43 = vmax.f32 %v1184_v35, 0.0  ;;  %v1187_v45 = vadd.f32 %v15732_v6, %v12996_v39  ;;  %v1178_v11 = vpop.f32.mrb[47].mxu0  ;;  %v14788_v16 = vld [vmem:[#allocation15] sm:$0xff]  }
 0x221   : > { %2247 = vst [vmem:[#allocation4 + $0x1c] sm:$0x3] %v2246_v40  ;;  %v1266_v49 = vmax.f32 %v1176_v34, 0.0  ;;  %v1179_v50 = vadd.f32 %v15732_v6, %v1178_v11  ;;  %v2642_v52 = vshrl.u32 %v13981_v33, 16  ;;  %v2640_v53 = vrot.slane %v2638_v42, 1 }
 0x222   : > { %2081 = vst.msk [vmem:[#allocation3 + $0x40] sm:$0xf] %vm480_vm4, %v12654_v36  ;;  %v1269_v54 = vmax.f32 %v1187_v45, 0.0  ;;  %v2262_v57 = vrot.slane %v2260_v41, 6  ;;  %v2265_v5 = vrot.slane %v2263_v58, 7  ;;  %v2279_v15 = vshll.u32 %v15797_v61, 16 }
 0x223   : > { %1300 = vst.msk [vmem:[#allocation2 + $0x170] sm:$0xff] %vm890_vm5, %v1268_v43  ;;  %1298 = vst.msk [vmem:[#allocation2 + $0x160] sm:$0xff] %vm890_vm5, %v1266_v49  ;;  %v1267_v56 = vmax.f32 %v1179_v50, 0.0  ;;  %v2641_v2 = vsel %vm2621_vm3, %v2636_v26, %v2640_v53  ;;  %v2644_v13 = vor.u32 %v2642_v52, %v2640_v53  ;;  %v2273_v22 = vld [vmem:[#allocation4 + $0x20] sm:$0x7]  ;;  %v2282_v42 = vshrl.u32 %v15797_v61, 16 }
 0x224   : > { %1301 = vst.msk [vmem:[#allocation2 + $0x178] sm:$0xff] %vm890_vm5, %v1269_v54  ;;  %13052 = vmatmul.mubr.msk.bf16.vlgmr.msra.gmra.mrb[8].mxu1 %vm890_vm5, %v2641_v2  ;;  %v2266_v21 = vor.u32 %v2265_v5, %v2262_v57  ;;  %v2298_v23 = vld [vmem:[#allocation4 + $0x20] sm:$0x8]  ;;  %v15811_v30 = vrot.slane %v2279_v15, 7  ;;  %v1552_v32 = vld [vmem:[#allocation2 + $0x150] ss:$2 sm:$0xff] }
 0x225   : > { %v1550_v63 = vld [vmem:[#allocation2 + $0x140] ss:$2 sm:$0xff]  ;;  %v1624_v1 = vld [vmem:[#allocation2 + $0x141] ss:$2 sm:$0xff]  ;;  %1299 = vst.msk [vmem:[#allocation2 + $0x168] sm:$0xff] %vm890_vm5, %v1267_v56  ;;  %v12999_v0 = vpop.f32.mrb[48].mxu0  ;;  %13068 = vmatpush3.bf16.msra.mxu1 %v14788_v16 }
 0x226   : > { %v1200_v7 = vadd.f32 %v15732_v6, %v12999_v0  ;;  %v1191_v8 = vpop.f32.mrb[49].mxu0  ;;  %v1677_v55 = vmax.f32 %v1550_v63, %v1624_v1  ;;  %v1753_v20 = vld [vmem:[#allocation2 + $0x1e2] ss:$2 sm:$0xff]  ;;  %13069 = vmatprep.subr.bf16.mxu1 %v13986_v62  ;;  %v1827_v28 = vld [vmem:[#allocation2 + $0x1e3] ss:$2 sm:$0xff]  ;;  %v2267_v41 = vsel %vm15654_vm0, %v2258_v51, %v2266_v21  ;;  %v2299_v51 = vsel %vm15670_vm13, %v15811_v30, %v2298_v23 }
 0x227   : > { %v1192_v17 = vadd.f32 %v15732_v6, %v1191_v8  ;;  %v13000_v18 = vpop.f32.mrb[50].mxu0  ;;  %v1626_v33 = vld [vmem:[#allocation2 + $0x151] ss:$2 sm:$0xff]  ;;  %v1871_v36 = vmax.f32 %v1753_v20, %v1827_v28  ;;  %v2277_v31 = vld [vmem:[#allocation3 + $0x38] sm:$0x3]  ;;  %v13991_v49 = vld [vmem:[#allocation15 + $0x18] sm:$0xff]   ;;  %v2274_v52 = vsel %vm15663_vm10, %v2267_v41, %v2273_v22 }
 0x228   : > { %v15808_v19 = vld [vmem:[#allocation4 + $0x18] sm:$0xff]   ;;  %v1272_v24 = vmax.f32 %v1200_v7, 0.0  ;;  %v1203_v26 = vadd.f32 %v15732_v6, %v13000_v18  ;;  %v1194_v27 = vpop.f32.mrb[51].mxu0  ;;  %v1678_v53 = vmax.f32 %v1552_v32, %v1626_v33  ;;  %2275 = vst [vmem:[#allocation4 + $0x20] sm:$0x7] %v2274_v52  ;;  %v2284_v0 = vrot.slane %v2282_v42, 6 }
 0x229   : > { %v1270_v35 = vmax.f32 %v1192_v17, 0.0  ;;  %v1195_v37 = vadd.f32 %v15732_v6, %v1194_v27  ;;  %v2646_v38 = vshll.u32 %v15808_v19, 16  ;;  %13070 = vmatpush3.bf16.msra.mxu1 %v13986_v62  ;;  %v1908_v46 = vmax.f32 %v1686_v3, %v1871_v36  ;;  %2300 = vst [vmem:[#allocation4 + $0x20] sm:$0x8] %v2299_v51  ;;  %v15833_v5 = vld [vmem:[#allocation3 + $0x3c] sm:$0x8] }
 0x22a   : > { %v1735_v34 = vld [vmem:[#allocation2 + $0x152] ss:$2 sm:$0xff]  ;;  %v1809_v39 = vld [vmem:[#allocation2 + $0x153] ss:$2 sm:$0xff]  ;;  %1304 = vst.msk [vmem:[#allocation2 + $0x190] sm:$0xff] %vm890_vm5, %v1272_v24  ;;  %v1273_v40 = vmax.f32 %v1203_v26, 0.0  ;;  %13071 = vmatprep.subr.bf16.mxu1 %v13988_v47  ;;  %v2285_v26 = vor.u32 %v2284_v0, %v15811_v30 }
 0x22b   : > { %v1862_v43 = vmax.f32 %v1735_v34, %v1809_v39  ;;  %1302 = vst.msk [vmem:[#allocation2 + $0x180] sm:$0xff] %vm890_vm5, %v1270_v35  ;;  %v1271_v45 = vmax.f32 %v1195_v37, 0.0  ;;  %v15820_v11 = vrot.slane %v2646_v38, 1  ;;  %v12667_v61 = vpack.c.bf16 %v1908_v46, %v1908_v46  ;;  %v15835_v7 = vld [vmem:[#allocation15 + $0x40] sm:$0xff]   ;;  %v2301_v42 = vld [vmem:[#allocation4 + $0x24] sm:$0xf] }
 0x22c   : > { %v1737_v50 = vld [vmem:[#allocation2 + $0x162] ss:$2 sm:$0xff]  ;;  %1305 = vst.msk [vmem:[#allocation2 + $0x198] sm:$0xff] %vm890_vm5, %v1273_v40  ;;  %v1811_v56 = vld [vmem:[#allocation2 + $0x163] ss:$2 sm:$0xff]  ;;  %v2288_v3 = vshrl.u32 %v2277_v31, 16 }
 0x22d   : > { %v1899_v54 = vmax.f32 %v1677_v55, %v1862_v43  ;;  %1303 = vst.msk [vmem:[#allocation2 + $0x188] sm:$0xff] %vm890_vm5, %v1271_v45  ;;  %v2649_v57 = vsel %vm2621_vm3, %v2644_v13, %v15820_v11  ;;  %v13003_v58 = vpop.f32.mrb[52].mxu0  ;;  %v1554_v62 = vld [vmem:[#allocation2 + $0x160] ss:$2 sm:$0xff]  ;;  %v1863_v63 = vmax.f32 %v1737_v50, %v1811_v56  ;;  %13072 = vmatpush3.bf16.msra.mxu1 %v13988_v47  ;;  %v1628_v13 = vld [vmem:[#allocation2 + $0x161] ss:$2 sm:$0xff] }
 0x22e   : > { %13055 = vmatprep.mubr.msk.bf16.mxu1 %vm890_vm5, %v2649_v57  ;;  %v1216_v1 = vadd.f32 %v15732_v6, %v13003_v58  ;;  %v1207_v2 = vpop.f32.mrb[53].mxu0  ;;  %v15838_v55 = vld [vmem:[#allocation2 + $0x1c2] ss:$2 sm:$0xff]  ;;  %v15840_v17 = vld [vmem:[#allocation2 + $0x1c3] ss:$2 sm:$0xff]  ;;  %v2291_v18 = vshll.u32 %v2277_v31, 16  ;;  %13073 = vmatprep.subr.bf16.mxu1 %v13991_v49  ;;  %v1679_v35 = vmax.f32 %v1554_v62, %v1628_v13 }
 0x22f   : > { %v12658_v8 = vpack.c.bf16 %v1899_v54, %v1899_v54  ;;  %v1208_v15 = vadd.f32 %v15732_v6, %v1207_v2  ;;  %v13004_v16 = vpop.f32.mrb[54].mxu0  ;;  %2094 = vst.msk [vmem:[#allocation3 + $0x74] sm:$0xf] %vm480_vm4, %v12667_v61  ;;  %v1556_v20 = vld [vmem:[#allocation2 + $0x170] ss:$2 sm:$0xff]  ;;  %v1900_v22 = vmax.f32 %v1678_v53, %v1863_v63  ;;  %v2290_v32 = vrot.slane %v2288_v3, 6 }
 0x230   : > { %v1630_v21 = vld [vmem:[#allocation2 + $0x171] ss:$2 sm:$0xff]  ;;  %v1276_v23 = vmax.f32 %v1216_v1, 0.0  ;;  %v1219_v47 = vadd.f32 %v15732_v6, %v13004_v16  ;;  %v1210_v24 = vpop.f32.mrb[55].mxu0  ;;  %v2293_v33 = vrot.slane %v2291_v18, 7  ;;  %v2286_v39 = vrot.slane %v2285_v26, 4 }
 0x231   : > { %2085 = vst.msk [vmem:[#allocation3 + $0x50] sm:$0xf] %vm480_vm4, %v12658_v8  ;;  %v1274_v27 = vmax.f32 %v1208_v15, 0.0  ;;  %v1211_v28 = vadd.f32 %v15732_v6, %v1210_v24  ;;  %v12659_v37 = vpack.c.bf16 %v1900_v22, %v1900_v22  ;;  %13074 = vmatpush3.bf16.msra.mxu1 %v13991_v49  ;;  %v2307_v43 = vshrl.u32 %v15833_v5, 16  ;;  %v2305_v49 = vld [vmem:[#allocation3 + $0x40] sm:$0x7] }
 0x232   : > { %v1739_v38 = vld [vmem:[#allocation2 + $0x172] ss:$2 sm:$0xff]  ;;  %v1813_v36 = vld [vmem:[#allocation2 + $0x173] ss:$2 sm:$0xff]  ;;  %1308 = vst.msk [vmem:[#allocation2 + $0x1b0] sm:$0xff] %vm890_vm5, %v1276_v23  ;;  %v1277_v34 = vmax.f32 %v1219_v47, 0.0  ;;  %v2294_v41 = vor.u32 %v2293_v33, %v2290_v32  ;;  %13091 = vmatprep.subr.bf16.mxu1 %v15835_v7  ;;  %v1869_v46 = vmax.f32 %v15838_v55, %v15840_v17  ;;  %v1680_v50 = vmax.f32 %v1556_v20, %v1630_v21 }
 0x233   : > { %v1864_v40 = vmax.f32 %v1739_v38, %v1813_v36  ;;  %1306 = vst.msk [vmem:[#allocation2 + $0x1a0] sm:$0xff] %vm890_vm5, %v1274_v27  ;;  %v1275_v30 = vmax.f32 %v1211_v28, 0.0  ;;  %v2650_v31 = vshrl.u32 %v15808_v19, 16  ;;  %v2309_v56 = vrot.slane %v2307_v43, 6  ;;  %v1560_v3 = vld [vmem:[#allocation2 + $0x190] ss:$2 sm:$0xff] }
 0x234   : > { %2086 = vst.msk [vmem:[#allocation3 + $0x54] sm:$0xf] %vm480_vm4, %v12659_v37  ;;  %v1741_v45 = vld [vmem:[#allocation2 + $0x182] ss:$2 sm:$0xff]  ;;  %v1815_v51 = vld [vmem:[#allocation2 + $0x183] ss:$2 sm:$0xff]  ;;  %v2295_v54 = vsel %vm15654_vm0, %v2286_v39, %v2294_v41 }
 0x235   : > { %1309 = vst.msk [vmem:[#allocation2 + $0x1b8] sm:$0xff] %vm890_vm5, %v1277_v34  ;;  %v1901_v52 = vmax.f32 %v1679_v35, %v1864_v40  ;;  %1307 = vst.msk [vmem:[#allocation2 + $0x1a8] sm:$0xff] %vm890_vm5, %v1275_v30  ;;  %v1429_v53 = vpop.f32.mrb[56].mxu0  ;;  %v1558_v57 = vld [vmem:[#allocation2 + $0x180] ss:$2 sm:$0xff]  ;;  %v1865_v58 = vmax.f32 %v1741_v45, %v1815_v51  ;;  %v2302_v62 = vsel %vm15704_vm11, %v2295_v54, %v2301_v42  ;;  %v2310_v1 = vshll.u32 %v15833_v5, 16 }
 0x236   : > { %v1430_v61 = vadd.f32 %v15732_v6, %v1429_v53  ;;  %v13017_v63 = vpop.f32.mrb[57].mxu0  ;;  %v15863_v2 = vld [vmem:[#allocation3 + $0x74] sm:$0xe]  ;;  %v1632_v13 = vld [vmem:[#allocation2 + $0x181] ss:$2 sm:$0xff]  ;;  %v2316_v20 = vshrl.u32 %v2305_v49, 16 }
 0x237   : > { %v12660_v0 = vpack.c.bf16 %v1901_v52, %v1901_v52  ;;  %v1634_v8 = vld [vmem:[#allocation2 + $0x191] ss:$2 sm:$0xff]  ;;  %v15865_v15 = vld [vmem:[#allocation2 + $0x1e0] ss:$2 sm:$0xff]  ;;  %v15867_v16 = vld [vmem:[#allocation2 + $0x1e1] ss:$2 sm:$0xff]  ;;  %v1902_v47 = vmax.f32 %v1680_v50, %v1865_v58  ;;  %v1681_v41 = vmax.f32 %v1558_v57, %v1632_v13 }
 0x238   : > { %2303 = vst [vmem:[#allocation4 + $0x24] sm:$0xf] %v2302_v62  ;;  %v1432_v18 = vpop.f32.mrb[58].mxu0  ;;  %v2319_v21 = vshll.u32 %v2305_v49, 16  ;;  %v2442_v22 = vshll.u32 %v15863_v2, 16  ;;  %v1483_v24 = vmax.f32 %v1430_v61, 0.0  ;;  %v1682_v52 = vmax.f32 %v1560_v3, %v1634_v8 }
 0x239   : > { %v2461_v23 = vld [vmem:[#allocation4 + $0x48] sm:$0x8]  ;;  %v1433_v5 = vadd.f32 %v15732_v6, %v1432_v18  ;;  %v13018_v26 = vpop.f32.mrb[59].mxu0  ;;  %v2312_v27 = vrot.slane %v2310_v1, 7  ;;  %v15871_v28 = vld [vmem:[#allocation3 + $0x50] sm:$0xe]  ;;  %v12661_v38 = vpack.c.bf16 %v1902_v47, %v1902_v47  ;;  %v1687_v53 = vmax.f32 %v15865_v15, %v15867_v16 }
 0x23a   : > { %2087 = vst.msk [vmem:[#allocation3 + $0x58] sm:$0xf] %vm480_vm4, %v12660_v0  ;;  %v2318_v32 = vrot.slane %v2316_v20, 6  ;;  %v2321_v33 = vrot.slane %v2319_v21, 7  ;;  %v2338_v35 = vshll.u32 %v15871_v28, 16  ;;  %v2341_v37 = vshrl.u32 %v15871_v28, 16 }
 0x23b   : > { %v1743_v36 = vld [vmem:[#allocation2 + $0x192] ss:$2 sm:$0xff]  ;;  %v1817_v34 = vld [vmem:[#allocation2 + $0x193] ss:$2 sm:$0xff]  ;;  %1496 = vst.msk [vmem:[#allocation2 + $0x200] sm:$0xff] %vm890_vm5, %v1483_v24  ;;  %v1484_v39 = vmax.f32 %v1433_v5, 0.0  ;;  %v2313_v40 = vor.u32 %v2312_v27, %v2309_v56 }
 0x23c   : > { %v15877_v30 = vrot.slane %v2442_v22, 6  ;;  %v1866_v42 = vmax.f32 %v1743_v36, %v1817_v34  ;;  %v1564_v43 = vld [vmem:[#allocation2 + $0x1b0] ss:$2 sm:$0xff]  ;;  %v1638_v45 = vld [vmem:[#allocation2 + $0x1b1] ss:$2 sm:$0xff]  ;;  %v2322_v49 = vor.u32 %v2321_v33, %v2318_v32  ;;  %v2324_v8 = vrot.slane %v2318_v32, 4 }
 0x23d   : > { %v2327_v50 = vld [vmem:[#allocation4 + $0x28] sm:$0xf]  ;;  %2088 = vst.msk [vmem:[#allocation3 + $0x5c] sm:$0xf] %vm480_vm4, %v12661_v38  ;;  %v1684_v51 = vmax.f32 %v1564_v43, %v1638_v45  ;;  %v2330_v54 = vld [vmem:[#allocation4 + $0x2c] sm:$0x1]  ;;  %v2652_v32 = vor.u32 %v2650_v31, %v15820_v11 }
 0x23e   : > { %1497 = vst.msk [vmem:[#allocation2 + $0x208] sm:$0xff] %vm890_vm5, %v1484_v39  ;;  %v2462_v56 = vsel %vm15670_vm13, %v15877_v30, %v2461_v23  ;;  %v1903_v57 = vmax.f32 %v1681_v41, %v1866_v42  ;;  %v1745_v58 = vld [vmem:[#allocation2 + $0x1a2] ss:$2 sm:$0xff]  ;;  %v1819_v61 = vld [vmem:[#allocation2 + $0x1a3] ss:$2 sm:$0xff]  ;;  %v2314_v62 = vrot.slane %v2313_v40, 4  ;;  %v2331_v33 = vsel %vm15740_vm1, %v2324_v8, %v2330_v54 }
 0x23f   : > { %v1437_v63 = vpop.f32.mrb[60].mxu0  ;;  %2463 = vst [vmem:[#allocation4 + $0x48] sm:$0x8] %v2462_v56  ;;  %v1906_v1 = vmax.f32 %v1684_v51, %v1869_v46  ;;  %v1867_v0 = vmax.f32 %v1745_v58, %v1819_v61  ;;  %v15889_v3 = vld [vmem:[#allocation4 + $0x20] sm:$0xff]   ;;  %v2357_v16 = vld [vmem:[#allocation4 + $0x34] sm:$0x8] }
 0x240   : > { %v1438_v13 = vadd.f32 %v15732_v6, %v1437_v63  ;;  %v13021_v15 = vpop.f32.mrb[61].mxu0  ;;  %v12662_v18 = vpack.c.bf16 %v1903_v57, %v1903_v57  ;;  %v15892_v20 = vld [vmem:[#allocation2 + $0x1f0] ss:$2 sm:$0xff]  ;;  %v2323_v21 = vsel %vm15654_vm0, %v2314_v62, %v2322_v49  ;;  %v2340_v23 = vrot.slane %v2338_v35, 6  ;;  %v15896_v55 = vld [vmem:[#allocation2 + $0x1f1] ss:$2 sm:$0xff] }
 0x241   : > { %v1440_v22 = vpop.f32.mrb[62].mxu0  ;;  %v12665_v47 = vpack.c.bf16 %v1906_v1, %v1906_v1  ;;  %v1904_v24 = vmax.f32 %v1682_v52, %v1867_v0  ;;  %v2654_v17 = vshll.u32 %v15889_v3, 16  ;;  %v2328_v46 = vsel %vm15747_vm8, %v2323_v21, %v2327_v50  ;;  %v2334_v26 = vld [vmem:[#allocation3 + $0x54] sm:$0x1]  ;;  %2332 = vst [vmem:[#allocation4 + $0x2c] sm:$0x1] %v2331_v33 }
 0x242   : > { %v13022_v5 = vpop.f32.mrb[63].mxu0  ;;  %2089 = vst.msk [vmem:[#allocation3 + $0x60] sm:$0xf] %vm480_vm4, %v12662_v18  ;;  %v1755_v27 = vld [vmem:[#allocation2 + $0x1f2] ss:$2 sm:$0xff]  ;;  %v1485_v35 = vmax.f32 %v1438_v13, 0.0  ;;  %v1441_v39 = vadd.f32 %v15732_v6, %v1440_v22  ;;  %v2358_v19 = vsel %vm15670_vm13, %v2340_v23, %v2357_v16  ;;  %v1688_v41 = vmax.f32 %v15892_v20, %v15896_v55  ;;  %vm15925_vm13 = vmor %vm2157_vm15, %vm2335_vm6 }
 0x243   : > { %v1829_v28 = vld [vmem:[#allocation2 + $0x1f3] ss:$2 sm:$0xff]  ;;  %2329 = vst [vmem:[#allocation4 + $0x28] sm:$0xf] %v2328_v46  ;;  %2092 = vst.msk [vmem:[#allocation3 + $0x6c] sm:$0xf] %vm480_vm4, %v12665_v47  ;;  %v12663_v38 = vpack.c.bf16 %v1904_v24, %v1904_v24 }
 0x244   : > { %v1872_v36 = vmax.f32 %v1755_v27, %v1829_v28  ;;  %v2656_v34 = vrot.slane %v2654_v17, 1  ;;  %1498 = vst.msk [vmem:[#allocation2 + $0x210] sm:$0xff] %vm890_vm5, %v1485_v35  ;;  %v2343_v40 = vrot.slane %v2341_v37, 5  ;;  %v2347_v11 = vshrl.u32 %v2334_v26, 16  ;;  %v2363_v31 = vld [vmem:[#allocation3 + $0x58] sm:$0xc] }
 0x245   : > { %2090 = vst.msk [vmem:[#allocation3 + $0x64] sm:$0xf] %vm480_vm4, %v12663_v38  ;;  %2359 = vst [vmem:[#allocation4 + $0x34] sm:$0x8] %v2358_v19  ;;  %v2364_v45 = vld [vmem:[#allocation3 + $0x5c] sm:$0x3] }
 0x246   : > { %v1909_v42 = vmax.f32 %v1687_v53, %v1872_v36  ;;  %v2657_v43 = vsel %vm2621_vm3, %v2652_v32, %v2656_v34  ;;  %v15917_v49 = vld [vmem:[#allocation2 + $0x200] ss:$2 sm:$0xff]  ;;  %v15919_v37 = vld [vmem:[#allocation2 + $0x201] ss:$2 sm:$0xff]  ;;  %v1486_v10 = vmax.f32 %v1441_v39, 0.0  ;;  %v1445_v50 = vpop.f32.mrb[64].mxu0  ;;  %v2344_v52 = vor.u32 %v2343_v40, %v2340_v23 }
 0x247   : > { %13056 = vmatmul.mubr.msk.bf16.gmra.mrb[12].mxu1 %vm890_vm5, %v2657_v43  ;;  %v2349_v51 = vrot.slane %v2347_v11, 5  ;;  %v2350_v54 = vshll.u32 %v2334_v26, 16  ;;  %v1446_v57 = vadd.f32 %v15732_v6, %v1445_v50  ;;  %v13025_v58 = vpop.f32.mrb[65].mxu0  ;;  %v2366_v53 = vshrl.u32 %v2363_v31, 16  ;;  %v2360_v0 = vld [vmem:[#allocation4 + $0x38] sm:$0xf] }
 0x248   : > { %v12668_v56 = vpack.c.bf16 %v1909_v42, %v1909_v42  ;;  %v2369_v61 = vshll.u32 %v2363_v31, 16  ;;  %1499 = vst.msk [vmem:[#allocation2 + $0x218] sm:$0xff] %vm890_vm5, %v1486_v10  ;;  %v1448_v62 = vpop.f32.mrb[66].mxu0  ;;  %v2345_v63 = vrot.slane %v2344_v52, 4  ;;  %v2375_v8 = vshrl.u32 %v2364_v45, 16  ;;  %v16047_v29 = vld [vmem:[#allocation4 + $0x18] sm:$0xff]  }
 0x249   : > { %v2352_v1 = vrot.slane %v2350_v54, 6  ;;  %v2378_v13 = vshll.u32 %v2364_v45, 16  ;;  %v1487_v16 = vmax.f32 %v1446_v57, 0.0  ;;  %v1449_v18 = vadd.f32 %v15732_v6, %v1448_v62  ;;  %v13026_v20 = vpop.f32.mrb[67].mxu0  ;;  %v2389_v39 = vld [vmem:[#allocation4 + $0x40] sm:$0x1] }
 0x24a   : > { %2095 = vst.msk [vmem:[#allocation3 + $0x78] sm:$0xf] %vm480_vm4, %v12668_v56  ;;  %v2368_v21 = vrot.slane %v2366_v53, 5  ;;  %v2371_v22 = vrot.slane %v2369_v61, 6  ;;  %v15931_v23 = vld [vmem:[#allocation4 + $0x28] sm:$0xff]   ;;  %v2658_v47 = vshrl.u32 %v15889_v3, 16  ;;  %v1689_v46 = vmax.f32 %v15917_v49, %v15919_v37 }
 0x24b   : > { %v2353_v24 = vor.u32 %v2352_v1, %v2349_v51  ;;  %v2377_v55 = vrot.slane %v2375_v8, 5  ;;  %v2380_v17 = vrot.slane %v2378_v13, 6  ;;  %v1757_v5 = vld [vmem:[#allocation2 + $0x202] ss:$2 sm:$0xff]  ;;  %v1831_v26 = vld [vmem:[#allocation2 + $0x203] ss:$2 sm:$0xff] }
 0x24c   : > { %1500 = vst.msk [vmem:[#allocation2 + $0x220] sm:$0xff] %vm890_vm5, %v1487_v16  ;;  %v1488_v27 = vmax.f32 %v1449_v18, 0.0  ;;  %v2372_v28 = vor.u32 %v2371_v22, %v2368_v21  ;;  %v2660_v32 = vor.u32 %v2658_v47, %v2656_v34  ;;  %v2662_v33 = vshll.u32 %v15931_v23, 16  ;;  %v15938_v38 = vld [vmem:[#allocation4 + $0x30] sm:$0xff]   ;;  %v2392_v42 = vld [vmem:[#allocation3 + $0x60] sm:$0x8] }
 0x24d   : > { %v1873_v35 = vmax.f32 %v1757_v5, %v1831_v26  ;;  %v2354_v36 = vsel %vm15925_vm13, %v2345_v63, %v2353_v24  ;;  %v2381_v11 = vor.u32 %v2380_v17, %v2377_v55  ;;  %v2383_v31 = vrot.slane %v2377_v55, 4  ;;  %v1453_v37 = vpop.f32.mrb[68].mxu0  ;;  %v2386_v10 = vld [vmem:[#allocation4 + $0x3c] sm:$0xf]  ;;  %v2393_v56 = vld [vmem:[#allocation3 + $0x64] sm:$0x7] }
 0x24e   : > { %1501 = vst.msk [vmem:[#allocation2 + $0x228] sm:$0xff] %vm890_vm5, %v1488_v27  ;;  %v2361_v40 = vsel %vm15704_vm11, %v2354_v36, %v2360_v0  ;;  %v2373_v19 = vrot.slane %v2372_v28, 4  ;;  %v2664_v43 = vrot.slane %v2662_v33, 1  ;;  %v2666_v45 = vshrl.u32 %v15931_v23, 16  ;;  %v13029_v52 = vpop.f32.mrb[69].mxu0 }
 0x24f   : > { %v1910_v34 = vmax.f32 %v1688_v41, %v1873_v35  ;;  %v2670_v49 = vshll.u32 %v15938_v38, 16  ;;  %2362 = vst [vmem:[#allocation4 + $0x38] sm:$0xf] %v2361_v40  ;;  %v1454_v50 = vadd.f32 %v15732_v6, %v1453_v37  ;;  %v2390_v54 = vsel %vm15740_vm1, %v2383_v31, %v2389_v39  ;;  %v1456_v61 = vpop.f32.mrb[70].mxu0  ;;  %v2421_v62 = vld [vmem:[#allocation3 + $0x6c] sm:$0xf] }
 0x250   : > { %v2382_v51 = vsel %vm15925_vm13, %v2373_v19, %v2381_v11  ;;  %v2395_v57 = vshrl.u32 %v2392_v42, 16  ;;  %v2665_v41 = vsel %vm2621_vm3, %v2660_v32, %v2664_v43  ;;  %v2668_v53 = vor.u32 %v2666_v45, %v2664_v43  ;;  %2391 = vst [vmem:[#allocation4 + $0x40] sm:$0x1] %v2390_v54  ;;  %v13030_v13 = vpop.f32.mrb[71].mxu0  ;;  %v1650_v17 = vld [vmem:[#allocation2 + $0x211] ss:$2 sm:$0xff] }
 0x251   : > { %v12669_v58 = vpack.c.bf16 %v1910_v34, %v1910_v34  ;;  %v2445_v63 = vshrl.u32 %v15863_v2, 16  ;;  %13059 = vmatprep.mubr.msk.bf16.mxu1 %vm890_vm5, %v2665_v41  ;;  %v2672_v1 = vrot.slane %v2670_v49, 1  ;;  %v1489_v0 = vmax.f32 %v1454_v50, 0.0  ;;  %v2440_v40 = vld [vmem:[#allocation3 + $0x78] sm:$0x1] }
 0x252   : > { %v1457_v8 = vadd.f32 %v15732_v6, %v1456_v61  ;;  %v2387_v16 = vsel %vm15747_vm8, %v2382_v51, %v2386_v10  ;;  %v2397_v21 = vrot.slane %v2395_v57, 5  ;;  %v2398_v22 = vshll.u32 %v2392_v42, 16  ;;  %v1576_v6 = vld [vmem:[#allocation2 + $0x210] ss:$2 sm:$0xff]  ;;  %v15964_v31 = vld [vmem:[#allocation14] ss:$0 sm:$0xff] }
 0x253   : > { %2096 = vst.msk [vmem:[#allocation3 + $0x7c] sm:$0xf] %vm480_vm4, %v12669_v58  ;;  %v1759_v18 = vld [vmem:[#allocation2 + $0x212] ss:$2 sm:$0xff]  ;;  %v1833_v20 = vld [vmem:[#allocation2 + $0x213] ss:$2 sm:$0xff]  ;;  %v2673_v2 = vsel %vm2621_vm3, %v2668_v53, %v2672_v1  ;;  %v1690_v52 = vmax.f32 %v1576_v6, %v1650_v17 }
 0x254   : > { %2388 = vst [vmem:[#allocation4 + $0x3c] sm:$0xf] %v2387_v16  ;;  %v1874_v47 = vmax.f32 %v1759_v18, %v1833_v20  ;;  %1502 = vst.msk [vmem:[#allocation2 + $0x230] sm:$0xff] %vm890_vm5, %v1489_v0  ;;  %v1490_v24 = vmax.f32 %v1457_v8, 0.0  ;;  %v2674_v55 = vshrl.u32 %v15938_v38, 16  ;;  %13060 = vmatmul.mubr.msk.bf16.gmra.mrb[16].mxu1 %vm890_vm5, %v2673_v2  ;;  %v2400_v5 = vrot.slane %v2398_v22, 6 }
 0x255   : > { %v2404_v26 = vshrl.u32 %v2393_v56, 16  ;;  %v2407_v28 = vshll.u32 %v2393_v56, 16  ;;  %v2423_v32 = vshrl.u32 %v2421_v62, 16  ;;  %v1461_v33 = vpop.f32.mrb[72].mxu0  ;;  %v2426_v39 = vshll.u32 %v2421_v62, 16 }
 0x256   : > { %v1911_v27 = vmax.f32 %v1689_v46, %v1874_v47  ;;  %1503 = vst.msk [vmem:[#allocation2 + $0x238] sm:$0xff] %vm890_vm5, %v1490_v24  ;;  %v2401_v35 = vor.u32 %v2400_v5, %v2397_v21  ;;  %v2447_v19 = vrot.slane %v2445_v63, 5  ;;  %v1462_v42 = vadd.f32 %v15964_v31, %v1461_v33  ;;  %v2415_v46 = vld [vmem:[#allocation4 + $0x40] sm:$0xe]  ;;  %v13033_v50 = vpop.f32.mrb[73].mxu0 }
 0x257   : > { %v2406_v36 = vrot.slane %v2404_v26, 5  ;;  %v15967_v43 = vld [vmem:[#allocation4 + $0x40] ss:$0 sps:$4 sm:$0x11]   ;;  %v2409_v34 = vrot.slane %v2407_v28, 6  ;;  %v2425_v49 = vrot.slane %v2423_v32, 5  ;;  %v2676_v61 = vor.u32 %v2674_v55, %v2672_v1 }
 0x258   : > { %v12670_v11 = vpack.c.bf16 %v1911_v27, %v1911_v27  ;;  %v2402_v45 = vrot.slane %v2401_v35, 4  ;;  %v2428_v37 = vrot.slane %v2426_v39, 6  ;;  %v2448_v10 = vor.u32 %v2447_v19, %v15877_v30  ;;  %v2418_v57 = vld [vmem:[#allocation4 + $0x44] sm:$0x3]  ;;  %v2433_v41 = vld [vmem:[#allocation4 + $0x44] sm:$0xc] }
 0x259   : > { %v1491_v51 = vmax.f32 %v1462_v42, 0.0  ;;  %v2410_v56 = vor.u32 %v2409_v34, %v2406_v36  ;;  %v2451_v63 = vshrl.u32 %v2440_v40, 16  ;;  %v2454_v0 = vshll.u32 %v2440_v40, 16  ;;  %v2436_v16 = vld [vmem:[#allocation4 + $0x48] sm:$0x7]  ;;  %v1464_v20 = vpop.f32.mrb[74].mxu0 }
 0x25a   : > { %2097 = vst.msk [vmem:[#allocation3 + $0x80] sm:$0xf] %vm480_vm4, %v12670_v11  ;;  %v2429_v62 = vor.u32 %v2428_v37, %v2425_v49  ;;  %v2686_v13 = vshll.u32 %v15967_v43, 16  ;;  %v2449_v18 = vrot.slane %v2448_v10, 4  ;;  %v1578_v21 = vld [vmem:[#allocation2 + $0x220] ss:$2 sm:$0xff] }
 0x25b   : > { %v15971_v54 = vld [vmem:[#allocation4 + $0x38] sm:$0xff]   ;;  %v1761_v58 = vld [vmem:[#allocation2 + $0x222] ss:$2 sm:$0xff]  ;;  %v1835_v53 = vld [vmem:[#allocation2 + $0x223] ss:$2 sm:$0xff]  ;;  %1504 = vst.msk [vmem:[#allocation2 + $0x240] sm:$0xff] %vm890_vm5, %v1491_v51  ;;  %v2411_v22 = vsel %vm15925_vm13, %v2402_v45, %v2410_v56  ;;  %v1465_v45 = vadd.f32 %v15964_v31, %v1464_v20 }
 0x25c   : > { %v1875_v8 = vmax.f32 %v1761_v58, %v1835_v53  ;;  %v2678_v30 = vshll.u32 %v15971_v54, 16  ;;  %v2412_v47 = vrot.slane %v2410_v56, 4  ;;  %v2430_v2 = vrot.slane %v2429_v62, 4  ;;  %v13034_v5 = vpop.f32.mrb[75].mxu0  ;;  %v1652_v26 = vld [vmem:[#allocation2 + $0x221] ss:$2 sm:$0xff] }
 0x25d   : > { %v2434_v1 = vsel %vm15645_vm7, %v2429_v62, %v2433_v41  ;;  %v2682_v6 = vshrl.u32 %v15971_v54, 16  ;;  %v2416_v17 = vsel %vm15617_vm12, %v2411_v22, %v2415_v46  ;;  %v2453_v32 = vrot.slane %v2451_v63, 5  ;;  %v2464_v35 = vld [vmem:[#allocation4 + $0x4c] sm:$0xf]  ;;  %v1469_v36 = vpop.f32.mrb[76].mxu0 }
 0x25e   : > { %v1912_v24 = vmax.f32 %v1690_v52, %v1875_v8  ;;  %v2680_v55 = vrot.slane %v2678_v30, 1  ;;  %2435 = vst [vmem:[#allocation4 + $0x44] sm:$0xc] %v2434_v1  ;;  %2417 = vst [vmem:[#allocation4 + $0x40] sm:$0xe] %v2416_v17  ;;  %v2419_v27 = vsel %vm15625_vm2, %v2412_v47, %v2418_v57  ;;  %v2437_v28 = vsel %vm15663_vm10, %v2430_v2, %v2436_v16  ;;  %v13037_v42 = vpop.f32.mrb[77].mxu0 }
 0x25f   : > { %v2456_v33 = vrot.slane %v2454_v0, 6  ;;  %v2688_v11 = vrot.slane %v2686_v13, 1  ;;  %2420 = vst [vmem:[#allocation4 + $0x44] sm:$0x3] %v2419_v27  ;;  %2438 = vst [vmem:[#allocation4 + $0x48] sm:$0x7] %v2437_v28  ;;  %v1470_v46 = vadd.f32 %v15964_v31, %v1469_v36  ;;  %v1691_v10 = vmax.f32 %v1578_v21, %v1652_v26 }
 0x260   : > { %v12671_v39 = vpack.c.bf16 %v1912_v24, %v1912_v24  ;;  %v2681_v40 = vsel %vm2621_vm3, %v2676_v61, %v2680_v55  ;;  %v2684_v19 = vor.u32 %v2682_v6, %v2680_v55  ;;  %v1472_v49 = vpop.f32.mrb[78].mxu0  ;;  %v2467_v37 = vld [vmem:[#allocation3 + $0x7c] sm:$0xc]  ;;  %v1492_v53 = vmax.f32 %v1465_v45, 0.0  ;;  %v13995_v47 = vld [vmem:[#allocation15 + $0x48] sm:$0xff]  }
 0x261   : > { %13063 = vmatprep.mubr.msk.bf16.mxu1 %vm890_vm5, %v2681_v40  ;;  %v2457_v34 = vor.u32 %v2456_v33, %v2453_v32  ;;  %v1473_v52 = vadd.f32 %v15964_v31, %v1472_v49  ;;  %v13038_v51 = vpop.f32.mrb[79].mxu0  ;;  %v2468_v56 = vld [vmem:[#allocation3 + $0x80] sm:$0x3]  ;;  %v1493_v61 = vmax.f32 %v1470_v46, 0.0  ;;  %vm2985_vm15 = vcmask 1046528   ;;  %v16024_v46 = vld [vmem:[#allocation4 + $0x10] sm:$0xff]  }
 0x262   : > { %2098 = vst.msk [vmem:[#allocation3 + $0x84] sm:$0xf] %vm480_vm4, %v12671_v39  ;;  %v2689_v50 = vsel %vm2621_vm3, %v2684_v19, %v2688_v11  ;;  %v1763_v57 = vld [vmem:[#allocation2 + $0x232] ss:$2 sm:$0xff]  ;;  %v1837_v41 = vld [vmem:[#allocation2 + $0x233] ss:$2 sm:$0xff] }
 0x263   : > { %13064 = vmatmul.mubr.msk.bf16.gmra.mrb[20].mxu1 %vm890_vm5, %v2689_v50  ;;  %v2458_v58 = vsel %vm15925_vm13, %v2449_v18, %v2457_v34  ;;  %v1876_v62 = vmax.f32 %v1763_v57, %v1837_v41  ;;  %v1494_v0 = vmax.f32 %v1473_v52, 0.0  ;;  %1505 = vst.msk [vmem:[#allocation2 + $0x248] sm:$0xff] %vm890_vm5, %v1492_v53  ;;  %1506 = vst.msk [vmem:[#allocation2 + $0x250] sm:$0xff] %vm890_vm5, %v1493_v61  ;;  %v2470_v8 = vshrl.u32 %v2467_v37, 16  ;;  %v2493_v5 = vld [vmem:[#allocation4 + $0x54] sm:$0x1] }
 0x264   : > { %13075 = vmatprep.mubr.msk.bf16.mxu1 %vm890_vm5, %v15676_v14  ;;  %v2465_v63 = vsel %vm15704_vm11, %v2458_v58, %v2464_v35  ;;  %v2473_v30 = vshll.u32 %v2467_v37, 16  ;;  %v2479_v13 = vshrl.u32 %v2468_v56, 16  ;;  %v2482_v16 = vshll.u32 %v2468_v56, 16  ;;  %v2490_v40 = vld [vmem:[#allocation4 + $0x50] sm:$0xf]  ;;  %v16020_v11 = vld [vmem:[#allocation4 + $0x8] sm:$0xff]  }
 0x265   : > { %2466 = vst [vmem:[#allocation4 + $0x4c] sm:$0xf] %v2465_v63  ;;  %v1913_v18 = vmax.f32 %v1691_v10, %v1876_v62  ;;  %v4606_v20 = vld [vmem:[#allocation4 + $0x40] sm:$0xf]  ;;  %1507 = vst.msk [vmem:[#allocation2 + $0x258] sm:$0xff] %vm890_vm5, %v1494_v0  ;;  %v2993_v14 = vrot.slane %v15889_v3, 1 }
 0x266   : > { %v2995_v12 = vrot.slane %v15931_v23, 1  ;;  %v2997_v21 = vrot.slane %v15938_v38, 1  ;;  %v16007_v22 = vld [vmem:[#allocation4 + $0x44] sm:$0xf]  ;;  %v2472_v2 = vrot.slane %v2470_v8, 5  ;;  %v2475_v1 = vrot.slane %v2473_v30, 6 }
 0x267   : > { %v12672_v24 = vpack.c.bf16 %v1913_v18, %v1913_v18  ;;  %v16010_v55 = vcombine.low %v4606_v20, %v16007_v22  ;;  %v2481_v6 = vrot.slane %v2479_v13, 5  ;;  %v2484_v17 = vrot.slane %v2482_v16, 6  ;;  %v1477_v26 = vpop.f32.mrb[80].mxu0  ;;  %v13996_v51 = vld [vmem:[#allocation15 + $0x50] sm:$0xff]   ;;  %v13999_v0 = vld [vmem:[#allocation15 + $0x58] sm:$0xff]  }
 0x268   : > { %v2476_v27 = vor.u32 %v2475_v1, %v2472_v2  ;;  %v1478_v32 = vadd.f32 %v15964_v31, %v1477_v26  ;;  %v16016_v33 = vsel %vm2985_vm15, %v2993_v14, %v2995_v12  ;;  %v13041_v19 = vpop.f32.mrb[81].mxu0  ;;  %v16037_v52 = vsel %vm2985_vm15, %v2995_v12, %v2997_v21  ;;  %v14793_v15 = vld [vmem:[#allocation4 + $0x4] sm:$0xf] }
 0x269   : > { %v2496_v28 = vld [vmem:[#allocation3 + $0x84] sm:$0x8]  ;;  %2099 = vst.msk [vmem:[#allocation3 + $0x88] sm:$0xf] %vm480_vm4, %v12672_v24  ;;  %v4651_v35 = vshll.u32 %v16010_v55, 16  ;;  %v2485_v36 = vor.u32 %v2484_v17, %v2481_v6  ;;  %v2487_v39 = vrot.slane %v2481_v6, 4 }
 0x26a   : > { %v2477_v42 = vrot.slane %v2476_v27, 4  ;;  %v2499_v31 = vshrl.u32 %v2496_v28, 16  ;;  %v2502_v34 = vshll.u32 %v2496_v28, 16  ;;  %v1495_v45 = vmax.f32 %v1478_v32, 0.0  ;;  %v1480_v53 = vpop.f32.mrb[82].mxu0  ;;  %v16053_v17 = vld [vmem:[#allocation15 + $0x60] sm:$0xff]  }
 0x26b   : > { %13076 = vmatmul.mubr.msk.bf16.vlgmr.msra.gmra.mrb[8].mxu1 %vm890_vm5, %v16020_v11  ;;  %v4649_v37 = vshrl.u32 %v16010_v55, 16  ;;  %v4653_v10 = vrot.slane %v4651_v35, 1  ;;  %v2494_v50 = vsel %vm15740_vm1, %v2487_v39, %v2493_v5  ;;  %vm17266_vm11 = vcmask 517120   ;;  %v1582_v62 = vld [vmem:[#allocation2 + $0x240] ss:$2 sm:$0xff]  ;;  %v13042_v20 = vpop.f32.mrb[83].mxu0 }
 0x26c   : > { %13079 = vmatprep.mubr.msk.bf16.mxu1 %vm890_vm5, %v16024_v46  ;;  %13092 = vmatpush3.bf16.msra.mxu1 %v15835_v7  ;;  %v16029_v49 = vld [vmem:[#allocation4 + $0x48] sm:$0xff]   ;;  %v2486_v56 = vsel %vm15925_vm13, %v2477_v42, %v2485_v36  ;;  %2495 = vst [vmem:[#allocation4 + $0x54] sm:$0x1] %v2494_v50  ;;  %1509 = vst.msk [vmem:[#allocation2 + $0x260] sm:$0x3] %vm17266_vm11, %v1495_v45  ;;  %v2501_v41 = vrot.slane %v2499_v31, 5 }
 0x26d   : > { %13093 = vmatprep.subr.bf16.mxu1 %v13995_v47  ;;  %v4654_v7 = vor.u32 %v4653_v10, %v4649_v37  ;;  %v4656_v57 = vshll.u32 %v16029_v49, 16  ;;  %v2491_v25 = vsel %vm15747_vm8, %v2486_v56, %v2490_v40  ;;  %v2504_v58 = vrot.slane %v2502_v34, 6  ;;  %v1656_v63 = vld [vmem:[#allocation2 + $0x241] ss:$2 sm:$0xff]  ;;  %v2519_v27 = vld [vmem:[#allocation4 + $0x54] sm:$0xe] }
 0x26e   : > { %2492 = vst [vmem:[#allocation4 + $0x50] sm:$0xf] %v2491_v25  ;;  %v1693_v12 = vmax.f32 %v1582_v62, %v1656_v63  ;;  %v2522_v32 = vld [vmem:[#allocation4 + $0x58] sm:$0x3]  ;;  %v2972_v39 = vld [vmem:[#allocation4] sm:$0xe] }
 0x26f   : > { %v4658_v61 = vrot.slane %v4656_v57, 1  ;;  %v2505_v30 = vor.u32 %v2504_v58, %v2501_v41  ;;  %v11922_v31 = vcombine.low %v2972_v39, %v14793_v15  ;;  %v2987_v34 = vrot.slane %v16020_v11, 1  ;;  %v14005_v62 = vld [vmem:[#allocation15 + $0x8] sm:$0xff]   ;;  %v14794_v20 = vld [vmem:[#allocation15] sm:$0xff]  }
 0x270   : > { %13094 = vmatpush3.bf16.msra.mxu1 %v13995_v47  ;;  %v2497_v8 = vld [vmem:[#allocation3 + $0x88] sm:$0x7]  ;;  %v4660_v59 = vshrl.u32 %v16029_v49, 16  ;;  %v2989_v53 = vrot.slane %v16024_v46, 1  ;;  %v2537_v63 = vld [vmem:[#allocation4 + $0x58] sm:$0xc] }
 0x271   : > { %13095 = vmatprep.subr.bf16.mxu1 %v13996_v51  ;;  %v4659_v13 = vsel %vm2621_vm3, %v4654_v7, %v4658_v61  ;;  %v2508_v16 = vshrl.u32 %v2497_v8, 16  ;;  %v2511_v18 = vshll.u32 %v2497_v8, 16  ;;  %v2506_v47 = vrot.slane %v2505_v30, 4 }
 0x272   : > { %13267 = vmatprep.mubr.msk.bf16.mxu0 %vm890_vm5, %v4659_v13  ;;  %v2986_v45 = vrot.slane %v11922_v31, 1  ;;  %v4662_v50 = vor.u32 %v4660_v59, %v4658_v61  ;;  %v2991_v61 = vrot.slane %v16047_v29, 1  ;;  %vm3679_vm1 = vcmask 1045504   ;;  %v4879_v31 = vld [vmem:[#allocation4 + $0x40] sm:$0xe] }
 0x273   : > { %13080 = vmatmul.mubr.msk.bf16.gmra.mrb[12].mxu1 %vm890_vm5, %v16047_v29  ;;  %v2510_v2 = vrot.slane %v2508_v16, 5  ;;  %v2513_v1 = vrot.slane %v2511_v18, 6  ;;  %v1767_v24 = vld [vmem:[#allocation2 + $0x252] ss:$2 sm:$0xff]  ;;  %v1841_v6 = vld [vmem:[#allocation2 + $0x253] ss:$2 sm:$0xff] }
 0x274   : > { %13083 = vmatprep.mubr.msk.bf16.mxu1 %vm890_vm5, %v15889_v3  ;;  %13096 = vmatpush3.bf16.msra.mxu1 %v13996_v51  ;;  %v1878_v5 = vmax.f32 %v1767_v24, %v1841_v6  ;;  %v2988_v9 = vsel %vm2985_vm15, %v2986_v45, %v2987_v34  ;;  %v2540_v18 = vld [vmem:[#allocation4 + $0x5c] sm:$0x7]  ;;  %v2992_v24 = vsel %vm2985_vm15, %v2989_v53, %v2991_v61  ;;  %v2999_v15 = vrot.slane %v15971_v54, 1 }
 0x275   : > { %13097 = vmatprep.subr.bf16.mxu1 %v13999_v0  ;;  %v2514_v26 = vor.u32 %v2513_v1, %v2510_v2  ;;  %v2990_v2 = vsel %vm2985_vm15, %v2987_v34, %v2989_v53  ;;  %v14008_v1 = vld [vmem:[#allocation15 + $0x10] sm:$0xff]   ;;  %v16122_v34 = vld [vmem:[#allocation4 + $0x2c] sm:$0xff]   ;;  %vm3424_vm6 = vsmask.f32 6400  ;;  %vm4118_vm11 = vsmask.f32 5376 }
 0x276   : > { %v1915_v28 = vmax.f32 %v1693_v12, %v1878_v5  ;;  %v14006_v12 = vld [vmem:[#allocation15 + $0x68] sm:$0xff]   ;;  %v3165_v5 = vld [vmem:[#allocation4 + $0x8] sm:$0xf] }
 0x277   : > { %v2515_v35 = vsel %vm15925_vm13, %v2506_v47, %v2514_v26  ;;  %v2516_v36 = vrot.slane %v2514_v26, 4  ;;  %v14009_v26 = vld [vmem:[#allocation15 + $0x18] sm:$0xff]   ;;  %v16110_v3 = vld [vmem:[#allocation4 + $0x1c] sm:$0xff]  }
 0x278   : > { %13098 = vmatpush3.bf16.msra.mxu1 %v13999_v0  ;;  %v2520_v40 = vsel %vm15617_vm12, %v2515_v35, %v2519_v27  ;;  %v12674_v19 = vpack.c.bf16 %v1915_v28, %v1915_v28  ;;  %v14010_v27 = vld [vmem:[#allocation15 + $0x70] sm:$0xff]   ;;  %v16096_v28 = vld [vmem:[#allocation4 + $0xc] sm:$0xff]   ;;  %v2994_v35 = vsel %vm2985_vm15, %v2991_v61, %v2993_v14  ;;  %v14012_v14 = vld [vmem:[#allocation15 + $0x48] sm:$0xff]   ;;  %v3685_v45 = vrot.slane %v16110_v3, 2 }
 0x279   : > { %13115 = vmatprep.subr.bf16.mxu1 %v16053_v17  ;;  %2521 = vst [vmem:[#allocation4 + $0x54] sm:$0xe] %v2520_v40  ;;  %v2523_v42 = vsel %vm15625_vm2, %v2516_v36, %v2522_v32  ;;  %v3666_v32 = vld [vmem:[#allocation4 + $0x4] sm:$0xc]  ;;  %v14011_v36 = vld [vmem:[#allocation15 + $0x40] sm:$0xff]   ;;  %v3681_v39 = vrot.slane %v16096_v28, 2 }
 0x27a   : > { %2101 = vst.msk [vmem:[#allocation3 + $0x90] sm:$0xf] %vm480_vm4, %v12674_v19  ;;  %2524 = vst [vmem:[#allocation4 + $0x58] sm:$0x3] %v2523_v42  ;;  %v11969_v4 = vcombine.low %v3666_v32, %v3165_v5  ;;  %v16108_v40 = vld [vmem:[#allocation4 + $0x14] sm:$0xff]   ;;  %vm17267_vm4 = vcmask 1044480  }
 0x27b   : > { %13084 = vmatmul.mubr.msk.bf16.gmra.mrb[16].mxu1 %vm890_vm5, %v15931_v23  ;;  %v16112_v19 = vld [vmem:[#allocation15 + $0x80] sm:$0xff]   ;;  %v3683_v59 = vrot.slane %v16108_v40, 2  ;;  %vm17268_vm8 = vmmov %vm17267_vm4 }
 0x27c   : > { %13087 = vmatprep.mubr.msk.bf16.mxu1 %vm890_vm5, %v15938_v38  ;;  %vm17269_vm12 = vmmov %vm17267_vm4 }
 0x27d   : > { %vm17270_vm2 = vmmov %vm17267_vm4 }
 0x27e   : > { %vm17273_vm13 = vmmov %vm17270_vm2 }
 0x280   : > { %v16069_v37 = vld [vmem:[#allocation4 + $0x50] sm:$0xff]  }
 0x281   : > { %v2525_v10 = vld [vmem:[#allocation3 + $0x90] sm:$0xf]  ;;  %v4664_v23 = vshll.u32 %v16069_v37, 16  ;;  %v16075_v7 = vld [vmem:[#allocation4 + $0x58] ss:$0 sps:$4 sm:$0x33]  }
 0x282   : > { %v2527_v51 = vshrl.u32 %v2525_v10, 16  ;;  %v2530_v56 = vshll.u32 %v2525_v10, 16  ;;  %v4668_v11 = vshrl.u32 %v16069_v37, 16  ;;  %v4672_v58 = vshll.u32 %v16075_v7, 16 }
 0x283   : > { %13088 = vmatmul.mubr.msk.bf16.gmra.mrb[20].mxu1 %vm890_vm5, %v15971_v54  ;;  %v4666_v57 = vrot.slane %v4664_v23, 1  ;;  %v4676_v16 = vshrl.u32 %v16075_v7, 16  ;;  %v12051_v54 = vcombine.low %v4879_v31, %v16007_v22  ;;  %v3000_v10 = vsel %vm2985_vm15, %v2997_v21, %v2999_v15  ;;  %v16135_v23 = vld [vmem:[#allocation4 + $0x34] sm:$0xff]   ;;  %v16208_v31 = vld [vmem:[#allocation4 + $0x44] ss:$0 sps:$4 sm:$0x11]  }
 0x284   : > { %13099 = vmatprep.mubr.msk.bf16.mxu1 %vm890_vm5, %v2988_v9  ;;  %v2529_v25 = vrot.slane %v2527_v51, 5  ;;  %v2532_v41 = vrot.slane %v2530_v56, 6  ;;  %v4674_v13 = vrot.slane %v4672_v58, 1  ;;  %v14017_v9 = vld [vmem:[#allocation15 + $0x50] sm:$0xff]   ;;  %v16140_v56 = vsel %vm3679_vm1, %v3681_v39, %v3683_v59  ;;  %v14018_v58 = vld [vmem:[#allocation15 + $0x58] sm:$0xff]  }
 0x285   : > { %v4667_v0 = vsel %vm2621_vm3, %v4662_v50, %v4666_v57  ;;  %v4670_v30 = vor.u32 %v4668_v11, %v4666_v57  ;;  %v3164_v50 = vld [vmem:[#allocation4 + $0x4] sm:$0xe]  ;;  %v16137_v51 = vld [vmem:[#allocation4 + $0x3c] sm:$0xff]   ;;  %v16143_v11 = vsel %vm3679_vm1, %v3683_v59, %v3685_v45  ;;  %v14016_v22 = vld [vmem:[#allocation4 + $0x58] ss:$0 sps:$4 sm:$0x11]  }
 0x286   : > { %v2533_v8 = vor.u32 %v2532_v41, %v2529_v25  ;;  %13268 = vmatmul.mubr.msk.bf16.vlgmr.msra.gmra.mrb[84].mxu0 %vm890_vm5, %v4667_v0  ;;  %v4678_v48 = vor.u32 %v4676_v16, %v4674_v13  ;;  %v3689_v21 = vrot.slane %v16122_v34, 2  ;;  %v16149_v57 = vcombine.low %v3164_v50, %v3165_v5  ;;  %v14027_v5 = vld [vmem:[#allocation15 + $0x70] sm:$0xff]   ;;  %v16210_v59 = vld [vmem:[#allocation4 + $0xc] sm:$0xf] }
 0x287   : > { %13276 = vmatpush3.bf16.msra.mxu0 %v14794_v20  ;;  %v4675_v29 = vsel %vm2621_vm3, %v4670_v30, %v4674_v13  ;;  %v3001_v25 = vrot.slane %v15967_v43, 1  ;;  %v4891_v41 = vrot.slane %v12051_v54, 1  ;;  %v4896_v20 = vrot.slane %v16075_v7, 1  ;;  %v16186_v7 = vld [vmem:[#allocation4 + $0x4c] sm:$0xff]  }
 0x288   : > { %v2538_v46 = vsel %vm15645_vm7, %v2533_v8, %v2537_v63  ;;  %v2534_v47 = vrot.slane %v2533_v8, 4  ;;  %13277 = vmatprep.subr.bf16.mxu0 %v14005_v62  ;;  %13271 = vmatprep.mubr.msk.bf16.mxu0 %vm890_vm5, %v4675_v29  ;;  %v3693_v63 = vrot.slane %v16137_v51, 2  ;;  %v3233_v43 = vrot.slane %v16149_v57, 1  ;;  %v14023_v29 = vld [vmem:[#allocation15 + $0x68] sm:$0xff]   ;;  %vm17271_vm7 = vmmov %vm17270_vm2 }
 0x289   : > { %2539 = vst [vmem:[#allocation4 + $0x58] sm:$0xc] %v2538_v46  ;;  %v4894_v8 = vrot.slane %v16069_v37, 1  ;;  %v3002_v16 = vsel %vm2985_vm15, %v2999_v15, %v3001_v25  ;;  %v3236_v46 = vrot.slane %v16108_v40, 1  ;;  %v5039_v32 = vrot.slane %v16186_v7, 1 }
 0x28a   : > { %v2541_v6 = vsel %vm15663_vm10, %v2534_v47, %v2540_v18  ;;  %v14022_v18 = vld [vmem:[#allocation15 + $0x60] sm:$0xff]   ;;  %v3244_v15 = vrot.slane %v16135_v23, 1  ;;  %v3434_v50 = vshrl.u32 %v16096_v28, 16  ;;  %v5173_v25 = vshrl.u32 %v16186_v7, 16  ;;  %vm17272_vm10 = vmmov %vm17270_vm2 }
 0x28b   : > { %13100 = vmatmul.mubr.msk.bf16.vlgmr.msra.gmra.mrb[8].mxu1 %vm890_vm5, %v2990_v2  ;;  %2542 = vst [vmem:[#allocation4 + $0x5c] sm:$0x7] %v2541_v6  ;;  %13278 = vmatpush3.bf16.msra.mxu0 %v14005_v62  ;;  %v3691_v62 = vrot.slane %v16135_v23, 2  ;;  %v4897_v47 = vsel %vm2985_vm15, %v4894_v8, %v4896_v20  ;;  %v3238_v2 = vrot.slane %v16110_v3, 1  ;;  %v14025_v6 = vld [vmem:[#allocation15 + $0x88] sm:$0xff]  }
 0x28c   : > { %13103 = vmatprep.mubr.msk.bf16.mxu1 %vm890_vm5, %v2992_v24  ;;  %13116 = vmatpush3.bf16.msra.mxu1 %v16053_v17  ;;  %v14013_v17 = vld [vmem:[#allocation15 + $0x78] sm:$0xff]  }
 0x28d   : > { %13117 = vmatprep.subr.bf16.mxu1 %v14006_v12  ;;  %13279 = vmatprep.subr.bf16.mxu0 %v14008_v1  ;;  %v16167_v30 = vsel %vm3679_vm1, %v3689_v21, %v3691_v62  ;;  %v16172_v13 = vsel %vm3679_vm1, %v3691_v62, %v3693_v63  ;;  %v16183_v24 = vld [vmem:[#allocation4 + $0x48] sm:$0xf] }
 0x28e   : > { %13272 = vmatmul.mubr.msk.bf16.gmra.mrb[88].mxu0 %vm890_vm5, %v4678_v48 }
 0x28f   : > { %13280 = vmatpush3.bf16.msra.mxu0 %v14008_v1  ;;  %13283 = vmatprep.mubr.msk.bf16.mxu0 %vm890_vm5, %v16010_v55  ;;  %v3680_v55 = vrot.slane %v11969_v4, 2  ;;  %v5005_v1 = vld [vmem:[#allocation4 + $0x44] sm:$0xe] }
 0x290   : > { %13118 = vmatpush3.bf16.msra.mxu1 %v14006_v12  ;;  %13281 = vmatprep.subr.bf16.mxu0 %v14009_v26  ;;  %v14030_v4 = vld [vmem:[#allocation15 + $0x78] sm:$0xff]  }
 0x291   : > { %13119 = vmatprep.subr.bf16.mxu1 %v14010_v27  ;;  %v16115_v42 = vsel %vm3679_vm1, %v3680_v55, %v3681_v39  ;;  %v14032_v39 = vld [vmem:[#allocation15 + $0x90] sm:$0xff]  }
 0x292   : > { %v16202_v55 = vld [vmem:[#allocation4 + $0x5c] ss:$0 sps:$4 sm:$0x33]  }
 0x293   : > { %13104 = vmatmul.mubr.msk.bf16.gmra.mrb[12].mxu1 %vm890_vm5, %v2994_v35  ;;  %13282 = vmatpush3.bf16.msra.mxu0 %v14009_v26  ;;  %v16191_v26 = vcombine.low %v5005_v1, %v16183_v24 }
 0x294   : > { %13107 = vmatprep.mubr.msk.bf16.mxu1 %vm890_vm5, %v16016_v33  ;;  %13120 = vmatpush3.bf16.msra.mxu1 %v14010_v27  ;;  %v16120_v33 = vld [vmem:[#allocation4 + $0x24] sm:$0xff]   ;;  %v3239_v27 = vsel %vm2985_vm15, %v3236_v46, %v3238_v2 }
 0x295   : > { %13121 = vmatprep.subr.bf16.mxu1 %v14013_v17  ;;  %13291 = vmatprep.subr.bf16.mxu0 %v14011_v36  ;;  %v3687_v38 = vrot.slane %v16120_v33, 2  ;;  %v3240_v35 = vrot.slane %v16120_v33, 1 }
 0x296   : > { %13284 = vmatmul.mubr.msk.bf16.vlgmr.msra.gmra.mrb[84].mxu0 %vm890_vm5, %v16029_v49 }
 0x297   : > { %13292 = vmatpush3.bf16.msra.mxu0 %v14011_v36  ;;  %13287 = vmatprep.mubr.msk.bf16.mxu0 %vm890_vm5, %v16069_v37  ;;  %v16153_v53 = vsel %vm3679_vm1, %v3685_v45, %v3687_v38  ;;  %v16156_v61 = vsel %vm3679_vm1, %v3687_v38, %v3689_v21  ;;  %v5038_v36 = vrot.slane %v16191_v26, 1  ;;  %v3241_v54 = vsel %vm2985_vm15, %v3238_v2, %v3240_v35  ;;  %v4360_v38 = vld [vmem:[#allocation4 + $0x8] sm:$0x8] }
 0x298   : > { %13122 = vmatpush3.bf16.msra.mxu1 %v14013_v17  ;;  %13293 = vmatprep.subr.bf16.mxu0 %v14012_v14  ;;  %v16198_v17 = vld [vmem:[#allocation4 + $0x54] sm:$0xff]  }
 0x299   : > { %13139 = vmatprep.subr.bf16.mxu1 %v16112_v19  ;;  %v5041_v45 = vrot.slane %v16198_v17, 1 }
 0x29b   : > { %13108 = vmatmul.mubr.msk.bf16.gmra.mrb[16].mxu1 %vm890_vm5, %v16037_v52  ;;  %v4892_v52 = vrot.slane %v16029_v49, 1  ;;  %13294 = vmatpush3.bf16.msra.mxu0 %v14012_v14  ;;  %v3234_v49 = vrot.slane %v16096_v28, 1  ;;  %v3242_v14 = vrot.slane %v16122_v34, 1 }
 0x29c   : > { %13111 = vmatprep.mubr.msk.bf16.mxu1 %vm890_vm5, %v3000_v10  ;;  %13295 = vmatprep.subr.bf16.mxu0 %v14017_v9  ;;  %v14035_v10 = vld [vmem:[#allocation15 + $0x80] sm:$0xff]  }
 0x29d   : > { %v4893_v0 = vsel %vm2985_vm15, %v4891_v41, %v4892_v52  ;;  %v3235_v12 = vsel %vm2985_vm15, %v3233_v43, %v3234_v49  ;;  %v4895_v37 = vsel %vm2985_vm15, %v4892_v52, %v4894_v8  ;;  %v3237_v48 = vsel %vm2985_vm15, %v3234_v49, %v3236_v46  ;;  %v16221_v41 = vld [vmem:[#allocation4 + $0x10] sm:$0xff]   ;;  %v16231_v8 = vld [vmem:[#allocation4 + $0x20] sm:$0xff]  }
 0x29e   : > { %13288 = vmatmul.mubr.msk.bf16.gmra.mrb[92].mxu0 %vm890_vm5, %v14016_v22  ;;  %v3437_v22 = vshll.u32 %v16096_v28, 16  ;;  %v5043_v52 = vrot.slane %v16202_v55, 1  ;;  %v3243_v21 = vsel %vm2985_vm15, %v3240_v35, %v3242_v14  ;;  %v12016_v49 = vcombine.low %v4360_v38, %v16210_v59  ;;  %v16239_v46 = vld [vmem:[#allocation4 + $0x30] sm:$0xff]  }
 0x29f   : > { %13296 = vmatpush3.bf16.msra.mxu0 %v14017_v9  ;;  %13299 = vmatprep.mubr.msk.bf16.mxu0 %vm890_vm5, %v4893_v0  ;;  %v14038_v9 = vld [vmem:[#allocation15 + $0x98] sm:$0xff]   ;;  %v3245_v62 = vsel %vm2985_vm15, %v3242_v14, %v3244_v15  ;;  %v3246_v28 = vrot.slane %v16137_v51, 1  ;;  %v3248_v0 = vrot.slane %v16208_v31, 1  ;;  %v5176_v43 = vshll.u32 %v16186_v7, 16  ;;  %v14043_v55 = vld [vmem:[#allocation15 + $0xa0] sm:$0xff]  }
 0x2a0   : > { %13297 = vmatprep.subr.bf16.mxu0 %v14018_v58  ;;  %v3439_v2 = vrot.slane %v3437_v22, 2  ;;  %v5044_v1 = vsel %vm2985_vm15, %v5041_v45, %v5043_v52  ;;  %v4379_v14 = vrot.slane %v16231_v8, 3  ;;  %v5306_v31 = vld [vmem:[#allocation4 + $0x44] sm:$0xc] }
 0x2a3   : > { %13112 = vmatmul.mubr.msk.bf16.gmra.mrb[20].mxu1 %vm890_vm5, %v3002_v16  ;;  %13298 = vmatpush3.bf16.msra.mxu0 %v14018_v58  ;;  %v16223_v58 = vld [vmem:[#allocation4 + $0x18] sm:$0xff]   ;;  %v16233_v16 = vld [vmem:[#allocation4 + $0x28] sm:$0xff]  }
 0x2a4   : > { %13123 = vmatprep.mubr.msk.bf16.mxu1 %vm890_vm5, %v3235_v12  ;;  %13307 = vmatprep.subr.bf16.mxu0 %v14022_v18  ;;  %v3429_v12 = vshll.u32 %v16149_v57, 16  ;;  %v4377_v35 = vrot.slane %v16223_v58, 3 }
 0x2a6   : > { %13300 = vmatmul.mubr.msk.bf16.vlgmr.msra.gmra.mrb[84].mxu0 %vm890_vm5, %v4895_v37  ;;  %v5165_v37 = vshrl.u32 %v16191_v26, 16  ;;  %v16271_v38 = vsel %vm17269_vm12, %v4377_v35, %v4379_v14  ;;  %vm17276_vm12 = vmmov %vm17270_vm2 }
 0x2a7   : > { %13308 = vmatpush3.bf16.msra.mxu0 %v14022_v18  ;;  %13303 = vmatprep.mubr.msk.bf16.mxu0 %vm890_vm5, %v4897_v47  ;;  %v5042_v18 = vsel %vm2985_vm15, %v5039_v32, %v5041_v45  ;;  %v3436_v47 = vrot.slane %v3434_v50, 1 }
 0x2a8   : > { %13309 = vmatprep.subr.bf16.mxu0 %v14023_v29  ;;  %v5167_v45 = vrot.slane %v5165_v37, 1 }
 0x2ab   : > { %13124 = vmatmul.mubr.msk.bf16.vlgmr.msra.gmra.mrb[8].mxu1 %vm890_vm5, %v3237_v48  ;;  %13310 = vmatpush3.bf16.msra.mxu0 %v14023_v29  ;;  %v14036_v29 = vld [vmem:[#allocation15 + $0x88] sm:$0xff]   ;;  %v16245_v48 = vld [vmem:[#allocation15 + $0xa0] sm:$0xff]  }
 0x2ac   : > { %13127 = vmatprep.mubr.msk.bf16.mxu1 %vm890_vm5, %v3239_v27  ;;  %13140 = vmatpush3.bf16.msra.mxu1 %v16112_v19  ;;  %v5040_v19 = vsel %vm2985_vm15, %v5038_v36, %v5039_v32  ;;  %v5175_v27 = vrot.slane %v5173_v25, 1  ;;  %v4374_v32 = vrot.slane %v12016_v49, 3  ;;  %v3247_v36 = vsel %vm2985_vm15, %v3244_v15, %v3246_v28 }
 0x2ad   : > { %13141 = vmatprep.subr.bf16.mxu1 %v14025_v6  ;;  %13311 = vmatprep.subr.bf16.mxu0 %v14027_v5  ;;  %v4383_v15 = vrot.slane %v16239_v46, 3  ;;  %v5182_v25 = vshrl.u32 %v16198_v17, 16  ;;  %v5185_v49 = vshll.u32 %v16198_v17, 16 }
 0x2ae   : > { %13304 = vmatmul.mubr.msk.bf16.gmra.mrb[96].mxu0 %vm890_vm5, %v4896_v20  ;;  %v3426_v20 = vshrl.u32 %v16149_v57, 16  ;;  %v16249_v57 = vld [vmem:[#allocation4 + $0x40] sm:$0xff]  }
 0x2af   : > { %13312 = vmatpush3.bf16.msra.mxu0 %v14027_v5  ;;  %13315 = vmatprep.mubr.msk.bf16.mxu0 %vm890_vm5, %v5040_v19  ;;  %v16247_v5 = vld [vmem:[#allocation4 + $0x38] sm:$0xff]   ;;  %v4381_v19 = vrot.slane %v16233_v16, 3  ;;  %v5184_v44 = vrot.slane %v5182_v25, 1 }
 0x2b0   : > { %13142 = vmatpush3.bf16.msra.mxu1 %v14025_v6  ;;  %13313 = vmatprep.subr.bf16.mxu0 %v14030_v4  ;;  %v5168_v6 = vshll.u32 %v16191_v26, 16  ;;  %v5178_v26 = vrot.slane %v5176_v43, 2 }
 0x2b1   : > { %13143 = vmatprep.subr.bf16.mxu1 %v14032_v39  ;;  %v16281_v43 = vsel %vm17271_vm7, %v4381_v19, %v4383_v15  ;;  %vm17278_vm7 = vsmask.f32 7950 }
 0x2b2   : > { %v5170_v22 = vrot.slane %v5168_v6, 2  ;;  %v5179_v37 = vor.u32 %v5178_v26, %v5175_v27  ;;  %v14041_v27 = vld [vmem:[#allocation15 + $0x98] sm:$0xff]   ;;  %v3443_v26 = vshrl.u32 %v16108_v40, 16 }
 0x2b3   : > { %13128 = vmatmul.mubr.msk.bf16.gmra.mrb[12].mxu1 %vm890_vm5, %v3241_v54  ;;  %13314 = vmatpush3.bf16.msra.mxu0 %v14030_v4  ;;  %v4375_v4 = vrot.slane %v16221_v41, 3 }
 0x2b4   : > { %13131 = vmatprep.mubr.msk.bf16.mxu1 %vm890_vm5, %v3243_v21  ;;  %13144 = vmatpush3.bf16.msra.mxu1 %v14032_v39  ;;  %v16257_v39 = vld [vmem:[#allocation4 + $0x5c] ss:$0 sps:$4 sm:$0x77]   ;;  %v4385_v21 = vrot.slane %v16247_v5, 3 }
 0x2b5   : > { %13145 = vmatprep.subr.bf16.mxu1 %v14038_v9  ;;  %13323 = vmatprep.subr.bf16.mxu0 %v14035_v10  ;;  %v16263_v54 = vsel %vm17267_vm4, %v4374_v32, %v4375_v4  ;;  %v16266_v50 = vsel %vm17268_vm8, %v4375_v4, %v4377_v35  ;;  %v5194_v6 = vshll.u32 %v16257_v39, 16  ;;  %v3431_v4 = vrot.slane %v3429_v12, 2  ;;  %vm17274_vm4 = vmmov %vm17270_vm2 }
 0x2b6   : > { %13316 = vmatmul.mubr.msk.bf16.vlgmr.msra.gmra.mrb[84].mxu0 %vm890_vm5, %v5042_v18  ;;  %v4387_v18 = vrot.slane %v16249_v57, 3  ;;  %v16288_v32 = vsel %vm17272_vm10, %v4383_v15, %v4385_v21  ;;  %v3452_v15 = vshrl.u32 %v16110_v3, 16  ;;  %vm17275_vm8 = vmmov %vm17270_vm2 }
 0x2b7   : > { %13324 = vmatpush3.bf16.msra.mxu0 %v14035_v10  ;;  %13319 = vmatprep.mubr.msk.bf16.mxu0 %vm890_vm5, %v5044_v1  ;;  %v16274_v10 = vsel %vm17270_vm2, %v4379_v14, %v4381_v19  ;;  %v5191_v1 = vshrl.u32 %v16257_v39, 16  ;;  %v3440_v14 = vor.u32 %v3439_v2, %v3436_v47  ;;  %v3446_v19 = vshll.u32 %v16108_v40, 16 }
 0x2b8   : > { %13146 = vmatpush3.bf16.msra.mxu1 %v14038_v9  ;;  %13325 = vmatprep.subr.bf16.mxu0 %v14036_v29  ;;  %v14040_v9 = vld [vmem:[#allocation15 + $0x90] sm:$0xff]   ;;  %v16293_v35 = vsel %vm17273_vm13, %v4385_v21, %v4387_v18  ;;  %v5196_v2 = vrot.slane %v5194_v6, 2  ;;  %v3249_v40 = vsel %vm2985_vm15, %v3246_v28, %v3248_v0  ;;  %v3454_v21 = vrot.slane %v3452_v15, 1  ;;  %v14045_v6 = vld [vmem:[#allocation15 + $0xa8] sm:$0xff]  }
 0x2b9   : > { %13163 = vmatprep.subr.bf16.mxu1 %v16245_v48  ;;  %v5193_v47 = vrot.slane %v5191_v1, 1  ;;  %v3461_v28 = vshrl.u32 %v16120_v33, 16  ;;  %v3464_v0 = vshll.u32 %v16120_v33, 16  ;;  %vm6073_vm13 = vcmask 1041408  }
 0x2bb   : > { %13132 = vmatmul.mubr.msk.bf16.gmra.mrb[16].mxu1 %vm890_vm5, %v3245_v62  ;;  %13326 = vmatpush3.bf16.msra.mxu0 %v14036_v29  ;;  %v3428_v62 = vrot.slane %v3426_v20, 1  ;;  %v3455_v29 = vshll.u32 %v16110_v3, 16  ;;  %v5187_v20 = vrot.slane %v5185_v49, 2  ;;  %v3445_v3 = vrot.slane %v3443_v26, 1 }
 0x2bc   : > { %13135 = vmatprep.mubr.msk.bf16.mxu1 %vm890_vm5, %v3247_v36  ;;  %13327 = vmatprep.subr.bf16.mxu0 %v14040_v9  ;;  %v5171_v36 = vor.u32 %v5170_v22, %v5167_v45  ;;  %v3448_v22 = vrot.slane %v3446_v19, 2  ;;  %v3473_v26 = vshll.u32 %v16122_v34, 16  ;;  %v14046_v19 = vld [vmem:[#allocation15 + $0xa8] sm:$0xff]   ;;  %v3463_v33 = vrot.slane %v3461_v28, 1 }
 0x2bd   : > { %v3432_v45 = vor.u32 %v3431_v4, %v3428_v62  ;;  %v3457_v25 = vrot.slane %v3455_v29, 2  ;;  %v5188_v49 = vor.u32 %v5187_v20, %v5184_v44  ;;  %v3466_v29 = vrot.slane %v3464_v0, 2 }
 0x2be   : > { %13320 = vmatmul.mubr.msk.bf16.gmra.mrb[100].mxu0 %vm890_vm5, %v5043_v52  ;;  %v5180_v12 = vsel %vm3424_vm6, %v5171_v36, %v5179_v37  ;;  %v3449_v1 = vor.u32 %v3448_v22, %v3445_v3  ;;  %v3470_v36 = vshrl.u32 %v16122_v34, 16  ;;  %v14050_v3 = vld [vmem:[#allocation15 + $0xb0] sm:$0xff]   ;;  %v5321_v28 = vrot.slane %v16198_v17, 2 }
 0x2bf   : > { %13328 = vmatpush3.bf16.msra.mxu0 %v14040_v9  ;;  %13331 = vmatprep.mubr.msk.bf16.mxu0 %vm890_vm5, %v5180_v12  ;;  %v3441_v52 = vsel %vm3424_vm6, %v3432_v45, %v3440_v14  ;;  %v5197_v9 = vor.u32 %v5196_v2, %v5193_v47  ;;  %v3458_v62 = vor.u32 %v3457_v25, %v3454_v21  ;;  %v3475_v12 = vrot.slane %v3473_v26, 2  ;;  %v14049_v2 = vld [vmem:[#allocation15 + $0xb8] sm:$0xff]   ;;  %v14052_v26 = vld [vmem:[#allocation15 + $0xc8] sm:$0xff]  }
 0x2c0   : > { %13329 = vmatprep.subr.bf16.mxu0 %v14041_v27  ;;  %v5189_v4 = vsel %vm3424_vm6, %v5179_v37, %v5188_v49  ;;  %v3450_v15 = vsel %vm3424_vm6, %v3440_v14, %v3449_v1  ;;  %v14047_v37 = vld [vmem:[#allocation15 + $0xb0] sm:$0xff]   ;;  %v3472_v20 = vrot.slane %v3470_v36, 1  ;;  %v5319_v47 = vrot.slane %v16186_v7, 2 }
 0x2c1   : > { %v5198_v44 = vsel %vm3424_vm6, %v5188_v49, %v5197_v9  ;;  %v3459_v34 = vsel %vm3424_vm6, %v3449_v1, %v3458_v62  ;;  %v3467_v14 = vor.u32 %v3466_v29, %v3463_v33  ;;  %v3479_v45 = vshrl.u32 %v16135_v23, 16  ;;  %v14051_v49 = vld [vmem:[#allocation15 + $0xc0] sm:$0xff]  }
 0x2c2   : > { %v3476_v22 = vor.u32 %v3475_v12, %v3472_v20  ;;  %v5323_v0 = vrot.slane %v16257_v39, 2  ;;  %v5322_v17 = vsel %vm3679_vm1, %v5319_v47, %v5321_v28  ;;  %v16350_v29 = vld [vmem:[#allocation4 + $0x50] sm:$0xff]   ;;  %v14056_v12 = vld [vmem:[#allocation15 + $0xd0] sm:$0xff]  }
 0x2c3   : > { %13136 = vmatmul.mubr.msk.bf16.gmra.mrb[20].mxu1 %vm890_vm5, %v3249_v40  ;;  %13330 = vmatpush3.bf16.msra.mxu0 %v14041_v27  ;;  %v12081_v27 = vcombine.low %v5306_v31, %v16183_v24  ;;  %v3482_v40 = vshll.u32 %v16135_v23, 16  ;;  %v3468_v21 = vsel %vm3424_vm6, %v3458_v62, %v3467_v14  ;;  %v3481_v25 = vrot.slane %v3479_v45, 1  ;;  %v16335_v31 = vld [vmem:[#allocation4 + $0x44] ss:$0 sps:$4 sm:$0x33]   ;;  %v14059_v45 = vld [vmem:[#allocation15 + $0xd8] sm:$0xff]  }
 0x2c4   : > { %13147 = vmatprep.mubr.msk.bf16.mxu1 %vm890_vm5, %v3441_v52  ;;  %13339 = vmatprep.subr.bf16.mxu0 %v14043_v55  ;;  %v3491_v52 = vshll.u32 %v16137_v51, 16  ;;  %v3477_v1 = vsel %vm3424_vm6, %v3467_v14, %v3476_v22  ;;  %v5432_v62 = vld [vmem:[#allocation4 + $0x48] sm:$0xc]  ;;  %v5324_v39 = vsel %vm3679_vm1, %v5321_v28, %v5323_v0  ;;  %v5466_v14 = vrot.slane %v16350_v29, 2 }
 0x2c5   : > { %v5318_v24 = vrot.slane %v12081_v27, 2  ;;  %v3484_v23 = vrot.slane %v3482_v40, 2  ;;  %v3500_v27 = vshll.u32 %v16335_v31, 16  ;;  %v16358_v40 = vld [vmem:[#allocation4 + $0x58] sm:$0xff]  }
 0x2c6   : > { %13332 = vmatmul.mubr.msk.bf16.vlgmr.msra.gmra.mrb[84].mxu0 %vm890_vm5, %v5189_v4  ;;  %v16342_v4 = vld [vmem:[#allocation4 + $0x4c] sm:$0xf] }
 0x2c7   : > { %13335 = vmatprep.mubr.msk.bf16.mxu0 %vm890_vm5, %v5198_v44  ;;  %13340 = vmatpush3.bf16.msra.mxu0 %v14043_v55  ;;  %v3488_v55 = vshrl.u32 %v16137_v51, 16  ;;  %v5320_v7 = vsel %vm3679_vm1, %v5318_v24, %v5319_v47  ;;  %v3485_v36 = vor.u32 %v3484_v23, %v3481_v25  ;;  %v3497_v44 = vshrl.u32 %v16335_v31, 16 }
 0x2c8   : > { %13341 = vmatprep.subr.bf16.mxu0 %v14045_v6  ;;  %v12090_v33 = vcombine.low %v5432_v62, %v16342_v4  ;;  %v3502_v20 = vrot.slane %v3500_v27, 2  ;;  %v5600_v23 = vshrl.u32 %v16350_v29, 16  ;;  %v5609_v27 = vshrl.u32 %v16358_v40, 16 }
 0x2ca   : > { %v5465_v47 = vrot.slane %v12090_v33, 2  ;;  %v5595_v25 = vshll.u32 %v12090_v33, 16  ;;  %v5602_v62 = vrot.slane %v5600_v23, 2 }
 0x2cb   : > { %13148 = vmatmul.mubr.msk.bf16.vlgmr.msra.gmra.mrb[8].mxu1 %vm890_vm5, %v3450_v15  ;;  %13342 = vmatpush3.bf16.msra.mxu0 %v14045_v6  ;;  %v3493_v6 = vrot.slane %v3491_v52, 2  ;;  %v14062_v52 = vld [vmem:[#allocation15 + $0xe0] sm:$0xff]  }
 0x2cc   : > { %13151 = vmatprep.mubr.msk.bf16.mxu1 %vm890_vm5, %v3459_v34  ;;  %13164 = vmatpush3.bf16.msra.mxu1 %v16245_v48  ;;  %v14054_v48 = vld [vmem:[#allocation15 + $0xb8] sm:$0xff]   ;;  %v3499_v34 = vrot.slane %v3497_v44, 1  ;;  %v14066_v44 = vld [vmem:[#allocation15 + $0xf0] sm:$0xff]  }
 0x2cd   : > { %13165 = vmatprep.subr.bf16.mxu1 %v14046_v19  ;;  %13343 = vmatprep.subr.bf16.mxu0 %v14047_v37 }
 0x2ce   : > { %13336 = vmatmul.mubr.msk.bf16.gmra.mrb[104].mxu0 %vm890_vm5, %v5197_v9  ;;  %v3490_v9 = vrot.slane %v3488_v55, 1 }
 0x2cf   : > { %13344 = vmatpush3.bf16.msra.mxu0 %v14047_v37  ;;  %13347 = vmatprep.mubr.msk.bf16.mxu0 %vm890_vm5, %v5320_v7  ;;  %v3486_v37 = vsel %vm3424_vm6, %v3476_v22, %v3485_v36  ;;  %v5467_v22 = vsel %vm3679_vm1, %v5465_v47, %v5466_v14  ;;  %v5468_v7 = vrot.slane %v16358_v40, 2  ;;  %v14072_v47 = vld [vmem:[#allocation15 + $0xd8] sm:$0xff]  }
 0x2d0   : > { %13166 = vmatpush3.bf16.msra.mxu1 %v14046_v19  ;;  %13345 = vmatprep.subr.bf16.mxu0 %v14049_v2  ;;  %v14060_v19 = vld [vmem:[#allocation15 + $0xc0] sm:$0xff]   ;;  %v3494_v15 = vor.u32 %v3493_v6, %v3490_v9 }
 0x2d1   : > { %13167 = vmatprep.subr.bf16.mxu1 %v14050_v3  ;;  %v5469_v9 = vsel %vm3679_vm1, %v5466_v14, %v5468_v7  ;;  %v14069_v14 = vld [vmem:[#allocation15 + $0x100] sm:$0xff]  }
 0x2d2   : > { %v3495_v24 = vsel %vm3424_vm6, %v3485_v36, %v3494_v15 }
 0x2d3   : > { %13152 = vmatmul.mubr.msk.bf16.gmra.mrb[12].mxu1 %vm890_vm5, %v3468_v21  ;;  %13346 = vmatpush3.bf16.msra.mxu0 %v14049_v2  ;;  %v3503_v2 = vor.u32 %v3502_v20, %v3499_v34  ;;  %v5592_v21 = vshrl.u32 %v12090_v33, 16  ;;  %v14067_v34 = vld [vmem:[#allocation15 + $0xf8] sm:$0xff]   ;;  %v14068_v20 = vld [vmem:[#allocation15 + $0xd0] sm:$0xff]  }
 0x2d4   : > { %13155 = vmatprep.mubr.msk.bf16.mxu1 %vm890_vm5, %v3477_v1  ;;  %13168 = vmatpush3.bf16.msra.mxu1 %v14050_v3  ;;  %v14063_v3 = vld [vmem:[#allocation4 + $0x60] ss:$0 sps:$4 sm:$0x77]   ;;  %v14064_v1 = vld [vmem:[#allocation15 + $0xe8] sm:$0xff]  }
 0x2d5   : > { %13169 = vmatprep.subr.bf16.mxu1 %v14054_v48  ;;  %13355 = vmatprep.subr.bf16.mxu0 %v14051_v49  ;;  %v3504_v55 = vsel %vm3424_vm6, %v3494_v15, %v3503_v2  ;;  %v5594_v28 = vrot.slane %v5592_v21, 2  ;;  %v5612_v15 = vshll.u32 %v16358_v40, 16  ;;  %vm6172_vm6 = vsmask.f32 4368 }
 0x2d6   : > { %13348 = vmatmul.mubr.msk.bf16.vlgmr.msra.gmra.mrb[84].mxu0 %vm890_vm5, %v5322_v17 }
 0x2d7   : > { %13351 = vmatprep.mubr.msk.bf16.mxu0 %vm890_vm5, %v5324_v39  ;;  %13356 = vmatpush3.bf16.msra.mxu0 %v14051_v49  ;;  %v5603_v49 = vshll.u32 %v16350_v29, 16 }
 0x2d8   : > { %13170 = vmatpush3.bf16.msra.mxu1 %v14054_v48  ;;  %13357 = vmatprep.subr.bf16.mxu0 %v14052_v26  ;;  %v5470_v48 = vrot.slane %v14063_v3, 2  ;;  %v5733_v3 = vld [vmem:[#allocation4 + $0x48] sm:$0x8] }
 0x2d9   : > { %13187 = vmatprep.subr.bf16.mxu1 %v14060_v19  ;;  %v5605_v36 = vrot.slane %v5603_v49, 3  ;;  %v14077_v49 = vld [vmem:[#allocation15 + $0x118] sm:$0xff]  }
 0x2da   : > { %v5471_v6 = vsel %vm3679_vm1, %v5468_v7, %v5470_v48 }
 0x2db   : > { %13156 = vmatmul.mubr.msk.bf16.gmra.mrb[16].mxu1 %vm890_vm5, %v3486_v37  ;;  %13358 = vmatpush3.bf16.msra.mxu0 %v14052_v26  ;;  %v14065_v26 = vld [vmem:[#allocation15 + $0xc8] sm:$0xff]   ;;  %v5606_v39 = vor.u32 %v5605_v36, %v5602_v62  ;;  %v14085_v36 = vld [vmem:[#allocation15 + $0xf0] sm:$0xff]  }
 0x2dc   : > { %13159 = vmatprep.mubr.msk.bf16.mxu1 %vm890_vm5, %v3495_v24  ;;  %13359 = vmatprep.subr.bf16.mxu0 %v14056_v12 }
 0x2de   : > { %13352 = vmatmul.mubr.msk.bf16.gmra.mrb[108].mxu0 %vm890_vm5, %v5323_v0  ;;  %v5597_v0 = vrot.slane %v5595_v25, 3  ;;  %v5746_v25 = vrot.slane %v16350_v29, 3 }
 0x2df   : > { %13360 = vmatpush3.bf16.msra.mxu0 %v14056_v12  ;;  %13363 = vmatprep.mubr.msk.bf16.mxu0 %vm890_vm5, %v5467_v22  ;;  %v5614_v12 = vrot.slane %v5612_v15, 3  ;;  %v14071_v22 = vld [vmem:[#allocation15 + $0x108] sm:$0xff]  }
 0x2e0   : > { %13361 = vmatprep.subr.bf16.mxu0 %v14059_v45  ;;  %v5598_v17 = vor.u32 %v5597_v0, %v5594_v28  ;;  %v3932_v28 = vrot.slane %v16231_v8, 2  ;;  %v14082_v0 = vld [vmem:[#allocation15 + $0xe8] sm:$0xff]  }
 0x2e3   : > { %13160 = vmatmul.mubr.msk.bf16.gmra.mrb[20].mxu1 %vm890_vm5, %v3504_v55  ;;  %13362 = vmatpush3.bf16.msra.mxu0 %v14059_v45  ;;  %v14079_v55 = vld [vmem:[#allocation15 + $0xe0] sm:$0xff]  }
 0x2e4   : > { %13171 = vmatprep.mubr.msk.bf16.mxu1 %vm890_vm5, %v16115_v42  ;;  %13371 = vmatprep.subr.bf16.mxu0 %v14062_v52  ;;  %v16373_v42 = vld [vmem:[#allocation4 + $0x60] ss:$0 sps:$4 sm:$0xff]  }
 0x2e5   : > { %v5618_v33 = vshrl.u32 %v16373_v42, 16  ;;  %v5621_v37 = vshll.u32 %v16373_v42, 16  ;;  %v5750_v29 = vrot.slane %v16373_v42, 3  ;;  %v3934_v42 = vrot.slane %v16233_v16, 2 }
 0x2e6   : > { %13364 = vmatmul.mubr.msk.bf16.vlgmr.msra.gmra.mrb[84].mxu0 %vm890_vm5, %v5469_v9 }
 0x2e7   : > { %13367 = vmatprep.mubr.msk.bf16.mxu0 %vm890_vm5, %v5471_v6  ;;  %13372 = vmatpush3.bf16.msra.mxu0 %v14062_v52  ;;  %v5623_v24 = vrot.slane %v5621_v37, 3  ;;  %v3930_v6 = vrot.slane %v16223_v58, 2  ;;  %v3935_v15 = vsel %vm3679_vm1, %v3932_v28, %v3934_v42  ;;  %v3940_v37 = vrot.slane %v16249_v57, 2 }
 0x2e8   : > { %13373 = vmatprep.subr.bf16.mxu0 %v14064_v1 }
 0x2e9   : > { %v3933_v62 = vsel %vm3679_vm1, %v3930_v6, %v3932_v28 }
 0x2eb   : > { %13172 = vmatmul.mubr.msk.bf16.vlgmr.msra.gmra.mrb[8].mxu1 %vm890_vm5, %v16140_v56  ;;  %13374 = vmatpush3.bf16.msra.mxu0 %v14064_v1  ;;  %v5611_v56 = vrot.slane %v5609_v27, 2  ;;  %v3928_v1 = vrot.slane %v16221_v41, 2  ;;  %v17277_v27 = vmov 0  }
 0x2ec   : > { %13175 = vmatprep.mubr.msk.bf16.mxu1 %vm890_vm5, %v16143_v11  ;;  %13188 = vmatpush3.bf16.msra.mxu1 %v14060_v19  ;;  %v5607_v11 = vsel %vm4118_vm11, %v5598_v17, %v5606_v39  ;;  %v5620_v19 = vrot.slane %v5618_v33, 2  ;;  %v3938_v33 = vrot.slane %v16247_v5, 2 }
 0x2ed   : > { %13189 = vmatprep.subr.bf16.mxu1 %v14065_v26  ;;  %13375 = vmatprep.subr.bf16.mxu0 %v14066_v44  ;;  %v5615_v2 = vor.u32 %v5614_v12, %v5611_v56 }
 0x2ee   : > { %13368 = vmatmul.mubr.msk.bf16.gmra.mrb[112].mxu0 %vm890_vm5, %v5470_v48  ;;  %v5624_v45 = vor.u32 %v5623_v24, %v5620_v19  ;;  %v3858_v48 = vld [vmem:[#allocation4 + $0x8] sm:$0xc]  ;;  %v14087_v19 = vld [vmem:[#allocation4 + $0x48] ss:$0 sps:$4 sm:$0x33]   ;;  %v3941_v24 = vsel %vm3679_vm1, %v3938_v33, %v3940_v37 }
 0x2ef   : > { %13376 = vmatpush3.bf16.msra.mxu0 %v14066_v44  ;;  %13379 = vmatprep.mubr.msk.bf16.mxu0 %vm890_vm5, %v5607_v11  ;;  %v5616_v52 = vsel %vm4118_vm11, %v5606_v39, %v5615_v2  ;;  %v11982_v23 = vcombine.low %v3858_v48, %v16210_v59  ;;  %v14088_v44 = vld [vmem:[#allocation15 + $0xf8] sm:$0xff]   ;;  %v14089_v39 = vld [vmem:[#allocation15 + $0x100] sm:$0xff]  }
 0x2f0   : > { %13190 = vmatpush3.bf16.msra.mxu1 %v14065_v26  ;;  %13377 = vmatprep.subr.bf16.mxu0 %v14067_v34  ;;  %v5625_v7 = vsel %vm4118_vm11, %v5615_v2, %v5624_v45  ;;  %v3936_v26 = vrot.slane %v16239_v46, 2 }
 0x2f1   : > { %13191 = vmatprep.subr.bf16.mxu1 %v14068_v20  ;;  %v3927_v9 = vrot.slane %v11982_v23, 2  ;;  %v4120_v56 = vshrl.u32 %v11982_v23, 16  ;;  %v4123_v12 = vshll.u32 %v11982_v23, 16 }
 0x2f2   : > { %v3937_v17 = vsel %vm3679_vm1, %v3934_v42, %v3936_v26  ;;  %v3939_v11 = vsel %vm3679_vm1, %v3936_v26, %v3938_v33  ;;  %v14093_v42 = vld [vmem:[#allocation15 + $0x118] sm:$0xff]  }
 0x2f3   : > { %13176 = vmatmul.mubr.msk.bf16.gmra.mrb[12].mxu1 %vm890_vm5, %v16153_v53  ;;  %13378 = vmatpush3.bf16.msra.mxu0 %v14067_v34  ;;  %v12111_v53 = vcombine.low %v5733_v3, %v16342_v4  ;;  %v3695_v4 = vrot.slane %v16335_v31, 2  ;;  %v3929_v59 = vsel %vm3679_vm1, %v3927_v9, %v3928_v1  ;;  %v5748_v31 = vrot.slane %v16358_v40, 3 }
 0x2f4   : > { %13179 = vmatprep.mubr.msk.bf16.mxu1 %vm890_vm5, %v16156_v61  ;;  %13192 = vmatpush3.bf16.msra.mxu1 %v14068_v20  ;;  %v14075_v61 = vld [vmem:[#allocation15 + $0x110] sm:$0xff]   ;;  %v3931_v40 = vsel %vm3679_vm1, %v3928_v1, %v3930_v6  ;;  %v4128_v34 = vshrl.u32 %v16221_v41, 16  ;;  %v4131_v20 = vshll.u32 %v16221_v41, 16  ;;  %v4122_v2 = vrot.slane %v4120_v56, 2 }
 0x2f5   : > { %13193 = vmatprep.subr.bf16.mxu1 %v14072_v47  ;;  %13387 = vmatprep.subr.bf16.mxu0 %v14069_v14  ;;  %v5745_v21 = vrot.slane %v12111_v53, 3  ;;  %v5749_v51 = vsel %vm17275_vm8, %v5746_v25, %v5748_v31  ;;  %v3942_v3 = vrot.slane %v14087_v19, 2  ;;  %v4137_v41 = vshrl.u32 %v16223_v58, 16 }
 0x2f6   : > { %13380 = vmatmul.mubr.msk.bf16.vlgmr.msra.gmra.mrb[84].mxu0 %vm890_vm5, %v5616_v52  ;;  %v4146_v52 = vshrl.u32 %v16231_v8, 16  ;;  %v4158_v1 = vshll.u32 %v16233_v16, 16  ;;  %v4167_v9 = vshll.u32 %v16239_v46, 16  ;;  %vm17281_vm8 = vsmask.f32 1280 }
 0x2f7   : > { %13383 = vmatprep.mubr.msk.bf16.mxu0 %vm890_vm5, %v5625_v7  ;;  %13388 = vmatpush3.bf16.msra.mxu0 %v14069_v14  ;;  %v4133_v14 = vrot.slane %v4131_v20, 3  ;;  %v4149_v7 = vshll.u32 %v16231_v8, 16  ;;  %v4139_v48 = vrot.slane %v4137_v41, 2  ;;  %v4164_v8 = vshrl.u32 %v16239_v46, 16 }
 0x2f8   : > { %13194 = vmatpush3.bf16.msra.mxu1 %v14072_v47  ;;  %13389 = vmatprep.subr.bf16.mxu0 %v14071_v22  ;;  %v4130_v47 = vrot.slane %v4128_v34, 2  ;;  %v4148_v23 = vrot.slane %v4146_v52, 2  ;;  %v4176_v46 = vshll.u32 %v16247_v5, 16 }
 0x2f9   : > { %13211 = vmatprep.subr.bf16.mxu1 %v14079_v55  ;;  %v4166_v28 = vrot.slane %v4164_v8, 2 }
 0x2fb   : > { %13180 = vmatmul.mubr.msk.bf16.gmra.mrb[16].mxu1 %vm890_vm5, %v16167_v30  ;;  %13390 = vmatpush3.bf16.msra.mxu0 %v14071_v22  ;;  %v5747_v30 = vsel %vm17274_vm4, %v5745_v21, %v5746_v25  ;;  %v4140_v22 = vshll.u32 %v16223_v58, 16  ;;  %v4155_v58 = vshrl.u32 %v16233_v16, 16  ;;  %v14091_v16 = vld [vmem:[#allocation15 + $0x110] sm:$0xff]   ;;  %vm6173_vm4 = vmor %vm2225_vm9, %vm6172_vm6  ;;  %vm17286_vm6 = vsmask.f32 7946 }
 0x2fc   : > { %13183 = vmatprep.mubr.msk.bf16.mxu1 %vm890_vm5, %v16172_v13  ;;  %13391 = vmatprep.subr.bf16.mxu0 %v14075_v61  ;;  %v3696_v13 = vsel %vm3679_vm1, %v3693_v63, %v3695_v4  ;;  %v5751_v63 = vsel %vm17276_vm12, %v5748_v31, %v5750_v29  ;;  %v4151_v4 = vrot.slane %v4149_v7, 3  ;;  %vm16507_vm12 = vmand %vm6073_vm13, %vm17281_vm8 }
 0x2fd   : > { %v4142_v21 = vrot.slane %v4140_v22, 3  ;;  %v4157_v31 = vrot.slane %v4155_v58, 2 }
 0x2fe   : > { %13384 = vmatmul.mubr.msk.bf16.gmra.mrb[116].mxu0 %vm890_vm5, %v5624_v45  ;;  %v4125_v45 = vrot.slane %v4123_v12, 3 }
 0x2ff   : > { %13392 = vmatpush3.bf16.msra.mxu0 %v14075_v61  ;;  %13395 = vmatprep.mubr.msk.bf16.mxu0 %vm890_vm5, %v5747_v30  ;;  %v3943_v61 = vsel %vm3679_vm1, %v3940_v37, %v3942_v3  ;;  %v4152_v30 = vor.u32 %v4151_v4, %v4148_v23 }
 0x300   : > { %13393 = vmatprep.subr.bf16.mxu0 %v14077_v49  ;;  %v4126_v53 = vor.u32 %v4125_v45, %v4122_v2 }
 0x303   : > { %13184 = vmatmul.mubr.msk.bf16.gmra.mrb[20].mxu1 %vm890_vm5, %v3696_v13  ;;  %13394 = vmatpush3.bf16.msra.mxu0 %v14077_v49  ;;  %v4143_v49 = vor.u32 %v4142_v21, %v4139_v48  ;;  %v14090_v13 = vld [vmem:[#allocation15 + $0x108] sm:$0xff]  }
 0x304   : > { %13195 = vmatprep.mubr.msk.bf16.mxu1 %vm890_vm5, %v3929_v59 }
 0x305   : > { %v4153_v6 = vsel %vm4118_vm11, %v4143_v49, %v4152_v30 }
 0x306   : > { %13396 = vmatmul.mubr.msk.bf16.vlgmr.msra.gmra.mrb[84].mxu0 %vm890_vm5, %v5749_v51  ;;  %v4169_v51 = vrot.slane %v4167_v9, 3 }
 0x307   : > { %13399 = vmatprep.mubr.msk.bf16.mxu0 %vm890_vm5, %v5751_v63 }
 0x30b   : > { %13196 = vmatmul.mubr.msk.bf16.vlgmr.msra.gmra.mrb[8].mxu1 %vm890_vm5, %v3931_v40  ;;  %v4170_v40 = vor.u32 %v4169_v51, %v4166_v28 }
 0x30c   : > { %13199 = vmatprep.mubr.msk.bf16.mxu1 %vm890_vm5, %v3933_v62  ;;  %13212 = vmatpush3.bf16.msra.mxu1 %v14079_v55  ;;  %v4134_v55 = vor.u32 %v4133_v14, %v4130_v47  ;;  %v4182_v62 = vshrl.u32 %v16249_v57, 16 }
 0x30d   : > { %13213 = vmatprep.subr.bf16.mxu1 %v14082_v0 }
 0x30e   : > { %13400 = vmatmul.mubr.msk.bf16.gmra.mrb[120].mxu0 %vm890_vm5, %v5750_v29  ;;  %v4135_v25 = vsel %vm4118_vm11, %v4126_v53, %v4134_v55  ;;  %v4144_v59 = vsel %vm4118_vm11, %v4134_v55, %v4143_v49  ;;  %v4160_v29 = vrot.slane %v4158_v1, 3  ;;  %v4184_v33 = vrot.slane %v4182_v62, 2 }
 0x30f   : > { %6440 = vmatprep.mubr.bf16.mxu0 %v17277_v27 }
 0x310   : > { %13214 = vmatpush3.bf16.msra.mxu1 %v14082_v0  ;;  %v4161_v63 = vor.u32 %v4160_v29, %v4157_v31  ;;  %v4173_v0 = vshrl.u32 %v16247_v5, 16 }
 0x311   : > { %13215 = vmatprep.subr.bf16.mxu1 %v14085_v36 }
 0x312   : > { %v4162_v26 = vsel %vm4118_vm11, %v4152_v30, %v4161_v63 }
 0x313   : > { %13200 = vmatmul.mubr.msk.bf16.gmra.mrb[12].mxu1 %vm890_vm5, %v3935_v15  ;;  %v4178_v15 = vrot.slane %v4176_v46, 3 }
 0x314   : > { %13203 = vmatprep.mubr.msk.bf16.mxu1 %vm890_vm5, %v3937_v17  ;;  %13216 = vmatpush3.bf16.msra.mxu1 %v14085_v36  ;;  %v4185_v36 = vshll.u32 %v16249_v57, 16  ;;  %v14092_v17 = vld [vmem:[#allocation4 + $0x48] ss:$0 sps:$4 sm:$0x77]  }
 0x315   : > { %13217 = vmatprep.subr.bf16.mxu1 %v14088_v44  ;;  %v4191_v34 = vshrl.u32 %v14092_v17, 16  ;;  %v4194_v20 = vshll.u32 %v14092_v17, 16  ;;  %v4389_v2 = vrot.slane %v14092_v17, 3  ;;  %v14095_v17 = vld [vmem:[#allocation18 + $0x80] ss:$8 sps:$4 sm:$0xff]  }
 0x316   : > { %v4187_v37 = vrot.slane %v4185_v36, 3 }
 0x317   : > { %v4196_v19 = vrot.slane %v4194_v20, 3 }
 0x318   : > { %13218 = vmatpush3.bf16.msra.mxu1 %v14088_v44  ;;  %v4175_v44 = vrot.slane %v4173_v0, 2  ;;  %v4188_v56 = vor.u32 %v4187_v37, %v4184_v33  ;;  %v14100_v33 = vld [vmem:[#allocation18 + $0x94] ss:$8 sps:$4 sm:$0xff]  }
 0x319   : > { %13235 = vmatprep.subr.bf16.mxu1 %v14089_v39 }
 0x31a   : > { %v4179_v5 = vor.u32 %v4178_v15, %v4175_v44 }
 0x31b   : > { %13204 = vmatmul.mubr.msk.bf16.gmra.mrb[16].mxu1 %vm890_vm5, %v3939_v11  ;;  %v4193_v11 = vrot.slane %v4191_v34, 2 }
 0x31c   : > { %13207 = vmatprep.mubr.msk.bf16.mxu1 %vm890_vm5, %v3941_v24  ;;  %v4180_v12 = vsel %vm4118_vm11, %v4170_v40, %v4179_v5  ;;  %v4189_v24 = vsel %vm4118_vm11, %v4179_v5, %v4188_v56  ;;  %v14098_v5 = vld [vmem:[#allocation18 + $0x90] ss:$8 sps:$4 sm:$0xff]  }
 0x31d   : > { %v4197_v47 = vor.u32 %v4196_v19, %v4193_v11 }
 0x31f   : > { %v4198_v14 = vsel %vm4118_vm11, %v4188_v56, %v4197_v47  ;;  %v14103_v56 = vld [vmem:[#allocation18 + $0xa4] ss:$8 sps:$4 sm:$0xff]   ;;  %v14101_v47 = vld [vmem:[#allocation18 + $0xa0] ss:$8 sps:$4 sm:$0xff]  }
 0x323   : > { %13208 = vmatmul.mubr.msk.bf16.gmra.mrb[20].mxu1 %vm890_vm5, %v3943_v61 }
 0x324   : > { %13219 = vmatprep.mubr.msk.bf16.mxu1 %vm890_vm5, %v4135_v25 }
 0x32b   : > { %13220 = vmatmul.mubr.msk.bf16.vlgmr.msra.gmra.mrb[8].mxu1 %vm890_vm5, %v4144_v59 }
 0x32c   : > { %13223 = vmatprep.mubr.msk.bf16.mxu1 %vm890_vm5, %v4153_v6  ;;  %13236 = vmatpush3.bf16.msra.mxu1 %v14089_v39  ;;  %v4171_v39 = vsel %vm4118_vm11, %v4161_v63, %v4170_v40 }
 0x32d   : > { %13237 = vmatprep.subr.bf16.mxu1 %v14090_v13 }
 0x330   : > { %13238 = vmatpush3.bf16.msra.mxu1 %v14090_v13 }
 0x331   : > { %13239 = vmatprep.subr.bf16.mxu1 %v14091_v16 }
 0x333   : > { %13224 = vmatmul.mubr.msk.bf16.gmra.mrb[12].mxu1 %vm890_vm5, %v4162_v26 }
 0x334   : > { %13227 = vmatprep.mubr.msk.bf16.mxu1 %vm890_vm5, %v4171_v39  ;;  %13240 = vmatpush3.bf16.msra.mxu1 %v14091_v16  ;;  %v14097_v39 = vld [vmem:[#allocation18 + $0x84] ss:$8 sps:$4 sm:$0xff]  }
 0x335   : > { %13241 = vmatprep.subr.bf16.mxu1 %v14093_v42  ;;  %6408 = vmatprep.subr.bf16.mxu0 %v14097_v39 }
 0x336   : > { %6409 = vmatpush1.bf16.msra.mxu0 %v14095_v17 }
 0x337   : > { %6410 = vmatprep.subr.bf16.mxu0 %v14100_v33 }
 0x338   : > { %13242 = vmatpush3.bf16.msra.mxu1 %v14093_v42 }
 0x33a   : > { %6411 = vmatpush1.bf16.msra.mxu0 %v14098_v5 }
 0x33b   : > { %13228 = vmatmul.mubr.msk.bf16.gmra.mrb[16].mxu1 %vm890_vm5, %v4180_v12  ;;  %6412 = vmatprep.subr.bf16.mxu0 %v14103_v56 }
 0x33c   : > { %13231 = vmatprep.mubr.msk.bf16.mxu1 %vm890_vm5, %v4189_v24 }
 0x33e   : > { %6413 = vmatpush1.bf16.msra.mxu0 %v14101_v47 }
 0x343   : > { %13232 = vmatmul.mubr.msk.bf16.gmra.mrb[20].mxu1 %vm890_vm5, %v4198_v14  ;;  %v14106_v14 = vld [vmem:[#allocation18 + $0xb4] ss:$8 sps:$4 sm:$0xff]  }
 0x344   : > { %13243 = vmatprep.mubr.msk.bf16.mxu1 %vm890_vm5, %v16263_v54  ;;  %v4390_v54 = vsel %vm17270_vm2, %v4387_v18, %v4389_v2  ;;  %v16489_v2 = vld [vmem:[#allocation17] ss:$0 sm:$0xff]  ;;  %6414 = vmatprep.subr.bf16.mxu0 %v14106_v14  ;;  %vm6095_vm2 = vcmask 1040384  }
 0x34b   : > { %13244 = vmatmul.mubr.msk.bf16.vlgmr.msra.gmra.mrb[8].mxu1 %vm890_vm5, %v16266_v50 }
 0x34c   : > { %13247 = vmatprep.mubr.msk.bf16.mxu1 %vm890_vm5, %v16271_v38 }
 0x353   : > { %13248 = vmatmul.mubr.msk.bf16.gmra.mrb[12].mxu1 %vm890_vm5, %v16274_v10 }
 0x354   : > { %13251 = vmatprep.mubr.msk.bf16.mxu1 %vm890_vm5, %v16281_v43 }
 0x35b   : > { %13252 = vmatmul.mubr.msk.bf16.gmra.mrb[16].mxu1 %vm890_vm5, %v16288_v32 }
 0x35c   : > { %13255 = vmatprep.mubr.msk.bf16.mxu1 %vm890_vm5, %v16293_v35 }
 0x361   : > { %v13273_v50 = vpop.f32.mrb[88].mxu0 }
 0x362   : > { %v4765_v38 = vpop.f32.mrb[89].mxu0 }
 0x363   : > { %13256 = vmatmul.mubr.msk.bf16.gmra.mrb[20].mxu1 %vm890_vm5, %v4390_v54  ;;  %v13274_v45 = vpop.f32.mrb[90].mxu0  ;;  %vm6068_vm5 = vcmask 1043459  }
 0x364   : > { %v4768_v10 = vpop.f32.mrb[91].mxu0  ;;  %vm16499_vm10 = vmand %vm6068_vm5, %vm17278_vm7  ;;  %vm6090_vm5 = vcmask 1043458  }
 0x365   : > { %vm16526_vm7 = vmand %vm6095_vm2, %vm2225_vm9  ;;  %vm6111_vm9 = vcmask 1043457   ;;  %vm6139_vm2 = vsmask.f32 2306 }
 0x366   : > { %vm16532_vm13 = vmand %vm6090_vm5, %vm17286_vm6 }
 0x371   : > { %v13289_v3 = vpop.f32.mrb[92].mxu0 }
 0x372   : > { %v4874_v41 = vadd.f32 %v13289_v3, %v13273_v50  ;;  %v4865_v43 = vpop.f32.mrb[93].mxu0  ;;  %v14104_v50 = vld [vmem:[#allocation18 + $0xb0] ss:$8 sps:$4 sm:$0xff]  }
 0x373   : > { %v4866_v22 = vadd.f32 %v4865_v43, %v4765_v38  ;;  %v13290_v55 = vpop.f32.mrb[94].mxu0  ;;  %6415 = vmatpush1.bf16.msra.mxu0 %v14104_v50 }
 0x374   : > { %v4868_v32 = vpop.f32.mrb[95].mxu0 }
 0x375   : > { %v4869_v52 = vadd.f32 %v4868_v32, %v4768_v10  ;;  %v14109_v10 = vld [vmem:[#allocation18 + $0xc4] ss:$8 sps:$4 sm:$0xff]  }
 0x376   : > { %6416 = vmatprep.subr.bf16.mxu0 %v14109_v10 }
 0x381   : > { %v13305_v7 = vpop.f32.mrb[96].mxu0 }
 0x382   : > { %v5004_v35 = vadd.f32 %v13305_v7, %v4874_v41  ;;  %v4984_v53 = vpop.f32.mrb[97].mxu0  ;;  %v14107_v7 = vld [vmem:[#allocation18 + $0xc0] ss:$8 sps:$4 sm:$0xff]  }
 0x383   : > { %v5002_v61 = vadd.f32 %v4984_v53, %v4866_v22  ;;  %v13306_v57 = vpop.f32.mrb[98].mxu0  ;;  %v14112_v53 = vld [vmem:[#allocation18 + $0xd4] ss:$8 sps:$4 sm:$0xff]   ;;  %6417 = vmatpush1.bf16.msra.mxu0 %v14107_v7 }
 0x384   : > { %v4987_v48 = vpop.f32.mrb[99].mxu0  ;;  %6418 = vmatprep.subr.bf16.mxu0 %v14112_v53 }
 0x385   : > { %v5003_v18 = vadd.f32 %v4987_v48, %v4869_v52  ;;  %v14110_v48 = vld [vmem:[#allocation18 + $0xd0] ss:$8 sps:$4 sm:$0xff]  }
 0x387   : > { %6419 = vmatpush1.bf16.msra.mxu0 %v14110_v48 }
 0x391   : > { %v13321_v21 = vpop.f32.mrb[100].mxu0 }
 0x392   : > { %v5151_v25 = vadd.f32 %v13321_v21, %v5004_v35  ;;  %v5131_v23 = vpop.f32.mrb[101].mxu0 }
 0x393   : > { %v5149_v4 = vadd.f32 %v5131_v23, %v5002_v61  ;;  %v13322_v49 = vpop.f32.mrb[102].mxu0 }
 0x394   : > { %v5134_v58 = vpop.f32.mrb[103].mxu0 }
 0x395   : > { %v5150_v1 = vadd.f32 %v5134_v58, %v5003_v18 }
 0x3a1   : > { %v13337_v30 = vpop.f32.mrb[104].mxu0 }
 0x3a2   : > { %v5305_v8 = vadd.f32 %v13337_v30, %v5151_v25  ;;  %v5285_v9 = vpop.f32.mrb[105].mxu0  ;;  %v14115_v25 = vld [vmem:[#allocation18 + $0xe4] ss:$8 sps:$4 sm:$0xff]  }
 0x3a3   : > { %v5303_v13 = vadd.f32 %v5285_v9, %v5149_v4  ;;  %v13338_v59 = vpop.f32.mrb[106].mxu0  ;;  %6420 = vmatprep.subr.bf16.mxu0 %v14115_v25 }
 0x3a4   : > { %v5288_v31 = vpop.f32.mrb[107].mxu0 }
 0x3a5   : > { %v5304_v29 = vadd.f32 %v5288_v31, %v5150_v1 }
 0x3b1   : > { %v13353_v6 = vpop.f32.mrb[108].mxu0 }
 0x3b2   : > { %v5431_v28 = vadd.f32 %v13353_v6, %v5305_v8  ;;  %v5411_v51 = vpop.f32.mrb[109].mxu0  ;;  %v14113_v8 = vld [vmem:[#allocation18 + $0xe0] ss:$8 sps:$4 sm:$0xff]   ;;  %v14116_v6 = vld [vmem:[#allocation18 + $0xf0] ss:$8 sps:$4 sm:$0xff]  }
 0x3b3   : > { %v5429_v16 = vadd.f32 %v5411_v51, %v5303_v13  ;;  %v13354_v63 = vpop.f32.mrb[110].mxu0  ;;  %v14118_v13 = vld [vmem:[#allocation18 + $0xf4] ss:$8 sps:$4 sm:$0xff]   ;;  %6421 = vmatpush1.bf16.msra.mxu0 %v14113_v8 }
 0x3b4   : > { %v5414_v0 = vpop.f32.mrb[111].mxu0  ;;  %6422 = vmatprep.subr.bf16.mxu0 %v14118_v13 }
 0x3b5   : > { %v5430_v46 = vadd.f32 %v5414_v0, %v5304_v29 }
 0x3b7   : > { %6423 = vmatpush1.bf16.msra.mxu0 %v14116_v6 }
 0x3c1   : > { %v13369_v40 = vpop.f32.mrb[112].mxu0 }
 0x3c2   : > { %v5578_v62 = vadd.f32 %v13369_v40, %v5431_v28  ;;  %v5558_v36 = vpop.f32.mrb[113].mxu0  ;;  %v14123_v28 = vld [vmem:[#allocation18 + $0x4] ss:$8 sps:$4 sm:$0xff]  }
 0x3c3   : > { %v5576_v42 = vadd.f32 %v5558_v36, %v5429_v16  ;;  %v13370_v26 = vpop.f32.mrb[114].mxu0  ;;  %6568 = vmatprep.subr.bf16.mxu0 %v14123_v28 }
 0x3c4   : > { %v5561_v44 = vpop.f32.mrb[115].mxu0 }
 0x3c5   : > { %v5577_v15 = vadd.f32 %v5561_v44, %v5430_v46 }
 0x3d1   : > { %v13385_v37 = vpop.f32.mrb[116].mxu0 }
 0x3d2   : > { %v5732_v34 = vadd.f32 %v13385_v37, %v5578_v62  ;;  %v5712_v20 = vpop.f32.mrb[117].mxu0 }
 0x3d3   : > { %v5730_v12 = vadd.f32 %v5712_v20, %v5576_v42  ;;  %v13386_v11 = vpop.f32.mrb[118].mxu0 }
 0x3d4   : > { %v5715_v19 = vpop.f32.mrb[119].mxu0 }
 0x3d5   : > { %v5731_v24 = vadd.f32 %v5715_v19, %v5577_v15 }
 0x3d9   : > { %v13397_v54 = vpop.f32.mrb[84].mxu0 }
 0x3da   : > { %v5861_v38 = vadd.f32 %v13397_v54, %v16489_v2  ;;  %v5822_v45 = vpop.f32.mrb[85].mxu0  ;;  %v6191_v54 = vld [vmem:[#allocation7 + $0x18] sm:$0x8] }
 0x3db   : > { %v5859_v3 = vadd.f32 %v16489_v2, %v5822_v45  ;;  %v13398_v41 = vpop.f32.mrb[86].mxu0 }
 0x3dc   : > { %v5868_v43 = vmax.f32 %v5861_v38, 0.0  ;;  %v5862_v22 = vadd.f32 %v13398_v41, %v16489_v2  ;;  %v5825_v55 = vpop.f32.mrb[87].mxu0 }
 0x3dd   : > { %v5866_v32 = vmax.f32 %v5859_v3, 0.0  ;;  %v5860_v52 = vadd.f32 %v16489_v2, %v5825_v55 }
 0x3de   : > { %5875 = vst [vmem:[#allocation5 + $0x90] sm:$0xff] %v5868_v43  ;;  %v5869_v35 = vmax.f32 %v5862_v22, 0.0 }
 0x3df   : > { %5873 = vst [vmem:[#allocation5 + $0x80] sm:$0xff] %v5866_v32  ;;  %v5867_v61 = vmax.f32 %v5860_v52, 0.0  ;;  %v6194_v32 = vld [vmem:[#allocation7 + $0x1c] sm:$0x3] }
 0x3e0   : > { %5876 = vst [vmem:[#allocation5 + $0x98] sm:$0xff] %v5869_v35 }
 0x3e1   : > { %5874 = vst [vmem:[#allocation5 + $0x88] sm:$0xff] %v5867_v61  ;;  %v13401_v57 = vpop.f32.mrb[120].mxu0 }
 0x3e2   : > { %v5858_v18 = vadd.f32 %v13401_v57, %v5732_v34  ;;  %v5838_v21 = vpop.f32.mrb[121].mxu0 }
 0x3e3   : > { %v5856_v23 = vadd.f32 %v5838_v21, %v5730_v12  ;;  %v13402_v4 = vpop.f32.mrb[122].mxu0 }
 0x3e4   : > { %v5865_v49 = vadd.f32 %v16489_v2, %v5858_v18  ;;  %v5841_v58 = vpop.f32.mrb[123].mxu0 }
 0x3e5   : > { %v5863_v1 = vadd.f32 %v16489_v2, %v5856_v23  ;;  %v5857_v30 = vadd.f32 %v5841_v58, %v5731_v24 }
 0x3e6   : > { %v5872_v9 = vmax.f32 %v5865_v49, 0.0 }
 0x3e7   : > { %v5870_v59 = vmax.f32 %v5863_v1, 0.0  ;;  %v5864_v31 = vadd.f32 %v16489_v2, %v5857_v30  ;;  %v5898_v46 = vld [vmem:[#allocation5 + $0x90] ss:$2 sm:$0xff]  ;;  %v5920_v40 = vld [vmem:[#allocation5 + $0x91] ss:$2 sm:$0xff] }
 0x3e8   : > { %5879 = vst [vmem:[#allocation5 + $0xb0] sm:$0x3] %v5872_v9  ;;  %v5896_v51 = vld [vmem:[#allocation5 + $0x80] ss:$2 sm:$0xff]  ;;  %v5918_v16 = vld [vmem:[#allocation5 + $0x81] ss:$2 sm:$0xff]  ;;  %v5932_v33 = vmax.f32 %v5898_v46, %v5920_v40 }
 0x3e9   : > { %5877 = vst [vmem:[#allocation5 + $0xa0] sm:$0xff] %v5870_v59  ;;  %v5871_v29 = vmax.f32 %v5864_v31, 0.0  ;;  %v5951_v63 = vld [vmem:[#allocation5 + $0x8a] ss:$2 sm:$0xff]  ;;  %v5973_v0 = vld [vmem:[#allocation5 + $0x8b] ss:$2 sm:$0xff]  ;;  %v5931_v42 = vmax.f32 %v5896_v51, %v5918_v16 }
 0x3ea   : > { %v5986_v26 = vmax.f32 %v5951_v63, %v5973_v0 }
 0x3eb   : > { %5878 = vst [vmem:[#allocation5 + $0xa8] sm:$0xff] %v5871_v29 }
 0x3ec   : > { %v5997_v20 = vmax.f32 %v5931_v42, %v5986_v26 }
 0x3f0   : > { %v5900_v62 = vld [vmem:[#allocation5 + $0xa0] ss:$2 sm:$0xf]  ;;  %v5922_v36 = vld [vmem:[#allocation5 + $0xa1] ss:$2 sm:$0xf] }
 0x3f1   : > { %v5933_v37 = vmax.f32 %v5900_v62, %v5922_v36 }
 0x3f2   : > { %v5953_v44 = vld [vmem:[#allocation5 + $0x9a] ss:$2 sm:$0xff]  ;;  %v5955_v15 = vld [vmem:[#allocation5 + $0xaa] ss:$2 sm:$0xf] }
 0x3f3   : > { %v5975_v17 = vld [vmem:[#allocation5 + $0x9b] ss:$2 sm:$0xff]  ;;  %v5977_v39 = vld [vmem:[#allocation5 + $0xab] ss:$2 sm:$0xf] }
 0x3f4   : > { %v5987_v5 = vmax.f32 %v5953_v44, %v5975_v17  ;;  %v5988_v34 = vmax.f32 %v5955_v15, %v5977_v39 }
 0x3f6   : > { %v5998_v56 = vmax.f32 %v5932_v33, %v5987_v5  ;;  %v5999_v12 = vmax.f32 %v5933_v37, %v5988_v34 }
 0x3f8   : > { %v12685_v11 = vpack.c.bf16 %v5999_v12, %v5999_v12  ;;  %v12717_v19 = vpack.c.bf16 %v5998_v56, %v5997_v20 }
 0x3fa   : > { %12722 = vst [vmem:[#allocation6 + $0x20] sm:$0xff] %v12717_v19   ;;  %6055 = vst [vmem:[#allocation6 + $0x28] sm:$0x3] %v12685_v11 }
 0x401   : > { %v6170_v47 = vld [vmem:[#allocation6 + $0x20] sm:$0x8]  ;;  %v6171_v14 = vld [vmem:[#allocation6 + $0x24] sm:$0x1]  ;;  %v6197_v42 = vld [vmem:[#allocation6 + $0x28] sm:$0x3] }
 0x402   : > { %v6175_v50 = vshll.u32 %v6170_v47, 16  ;;  %v6177_v38 = vshrl.u32 %v6170_v47, 16  ;;  %v6182_v45 = vshrl.u32 %v6171_v14, 16  ;;  %v6185_v3 = vshll.u32 %v6171_v14, 16 }
 0x403   : > { %v6199_v39 = vshrl.u32 %v6197_v42, 16  ;;  %v6202_v20 = vshll.u32 %v6197_v42, 16 }
 0x404   : > { %v6184_v10 = vrot.slane %v6182_v45, 7  ;;  %v6192_v41 = vsel %vm16499_vm10, %v6175_v50, %v6191_v54  ;;  %v12131_v22 = vrot.slane %v6177_v38, 11 }
 0x405   : > { %6193 = vst [vmem:[#allocation7 + $0x18] sm:$0x8] %v6192_v41  ;;  %v6201_v12 = vrot.slane %v6199_v39, 5  ;;  %v6204_v14 = vrot.slane %v6202_v20, 6 }
 0x406   : > { %v6187_v55 = vor.u32 %v6185_v3, %v6184_v10 }
 0x407   : > { %v6205_v3 = vor.u32 %v6204_v14, %v6201_v12 }
 0x408   : > { %v6188_v52 = vsel %vm6173_vm4, %v12131_v22, %v6187_v55  ;;  %vm6112_vm4 = vsmask.f32 3334 }
 0x409   : > { %v6195_v7 = vsel %vm16507_vm12, %v6188_v52, %v6194_v32  ;;  %v6206_v52 = vrot.slane %v6201_v12, 4  ;;  %vm16553_vm8 = vmand %vm6111_vm9, %vm6112_vm4  ;;  %vm7096_vm9 = vsmask.f32 4352 }
 0x40a   : > { %6196 = vst [vmem:[#allocation7 + $0x1c] sm:$0x3] %v6195_v7 }
 0x41e   : > { %v13245_v35 = vpop.f32.mrb[8].mxu1 }
 0x41f   : > { %v4560_v53 = vadd.f32 %v13245_v35, %v16489_v2  ;;  %v4473_v61 = vpop.f32.mrb[9].mxu1 }
 0x420   : > { %v4558_v57 = vadd.f32 %v16489_v2, %v4473_v61  ;;  %v13246_v48 = vpop.f32.mrb[10].mxu1 }
 0x421   : > { %v4576_v18 = vmax.f32 %v4560_v53, 0.0  ;;  %v4561_v21 = vadd.f32 %v13246_v48, %v16489_v2  ;;  %v4476_v25 = vpop.f32.mrb[11].mxu1 }
 0x422   : > { %v4574_v23 = vmax.f32 %v4558_v57, 0.0  ;;  %v4559_v4 = vadd.f32 %v16489_v2, %v4476_v25  ;;  %v6209_v25 = vld [vmem:[#allocation7 + $0x1c] sm:$0xc] }
 0x423   : > { %4592 = vst [vmem:[#allocation5 + $0x10] sm:$0xff] %v4576_v18  ;;  %v4577_v49 = vmax.f32 %v4561_v21, 0.0 }
 0x424   : > { %4590 = vst [vmem:[#allocation5] sm:$0xff] %v4574_v23  ;;  %v4575_v58 = vmax.f32 %v4559_v4, 0.0  ;;  %v6212_v23 = vld [vmem:[#allocation7 + $0x20] sm:$0x1] }
 0x425   : > { %4593 = vst [vmem:[#allocation5 + $0x18] sm:$0xff] %v4577_v49 }
 0x426   : > { %4591 = vst [vmem:[#allocation5 + $0x8] sm:$0xff] %v4575_v58  ;;  %v13249_v1 = vpop.f32.mrb[12].mxu1 }
 0x427   : > { %v4564_v30 = vadd.f32 %v13249_v1, %v16489_v2  ;;  %v4489_v8 = vpop.f32.mrb[13].mxu1 }
 0x428   : > { %v4562_v9 = vadd.f32 %v16489_v2, %v4489_v8  ;;  %v13250_v13 = vpop.f32.mrb[14].mxu1  ;;  %v6210_v8 = vsel %vm16532_vm13, %v6205_v3, %v6209_v25 }
 0x429   : > { %v4580_v59 = vmax.f32 %v4564_v30, 0.0  ;;  %v4565_v31 = vadd.f32 %v13250_v13, %v16489_v2  ;;  %v4492_v29 = vpop.f32.mrb[15].mxu1  ;;  %6211 = vst [vmem:[#allocation7 + $0x1c] sm:$0xc] %v6210_v8 }
 0x42a   : > { %v4578_v6 = vmax.f32 %v4562_v9, 0.0  ;;  %v4563_v28 = vadd.f32 %v16489_v2, %v4492_v29  ;;  %v6213_v9 = vsel %vm16526_vm7, %v6206_v52, %v6212_v23 }
 0x42b   : > { %4596 = vst [vmem:[#allocation5 + $0x30] sm:$0xff] %v4580_v59  ;;  %v4581_v51 = vmax.f32 %v4565_v31, 0.0  ;;  %6214 = vst [vmem:[#allocation7 + $0x20] sm:$0x1] %v6213_v9 }
 0x42c   : > { %4594 = vst [vmem:[#allocation5 + $0x20] sm:$0xff] %v4578_v6  ;;  %v4579_v16 = vmax.f32 %v4563_v28, 0.0  ;;  %v5882_v11 = vld [vmem:[#allocation5 + $0x10] ss:$2 sm:$0xff]  ;;  %v5904_v19 = vld [vmem:[#allocation5 + $0x11] ss:$2 sm:$0xff] }
 0x42d   : > { %4597 = vst [vmem:[#allocation5 + $0x38] sm:$0xff] %v4581_v51  ;;  %v5880_v40 = vld [vmem:[#allocation5] ss:$2 sm:$0xff]  ;;  %v5902_v26 = vld [vmem:[#allocation5 + $0x1] ss:$2 sm:$0xff]  ;;  %v5924_v41 = vmax.f32 %v5882_v11, %v5904_v19 }
 0x42e   : > { %4595 = vst [vmem:[#allocation5 + $0x28] sm:$0xff] %v4579_v16  ;;  %v13253_v63 = vpop.f32.mrb[16].mxu1  ;;  %v5935_v33 = vld [vmem:[#allocation5 + $0xa] ss:$2 sm:$0xff]  ;;  %v5957_v37 = vld [vmem:[#allocation5 + $0xb] ss:$2 sm:$0xff]  ;;  %v5923_v54 = vmax.f32 %v5880_v40, %v5902_v26 }
 0x42f   : > { %v4568_v0 = vadd.f32 %v13253_v63, %v16489_v2  ;;  %v4505_v46 = vpop.f32.mrb[17].mxu1  ;;  %v5978_v50 = vmax.f32 %v5935_v33, %v5957_v37 }
 0x430   : > { %v4566_v62 = vadd.f32 %v16489_v2, %v4505_v46  ;;  %v13254_v36 = vpop.f32.mrb[18].mxu1 }
 0x431   : > { %v4584_v44 = vmax.f32 %v4568_v0, 0.0  ;;  %v4569_v15 = vadd.f32 %v13254_v36, %v16489_v2  ;;  %v4508_v17 = vpop.f32.mrb[19].mxu1  ;;  %v5989_v57 = vmax.f32 %v5923_v54, %v5978_v50 }
 0x432   : > { %v4582_v5 = vmax.f32 %v4566_v62, 0.0  ;;  %v4567_v34 = vadd.f32 %v16489_v2, %v4508_v17 }
 0x433   : > { %4600 = vst [vmem:[#allocation5 + $0x50] sm:$0xff] %v4584_v44  ;;  %v4585_v56 = vmax.f32 %v4569_v15, 0.0 }
 0x434   : > { %4598 = vst [vmem:[#allocation5 + $0x40] sm:$0xff] %v4582_v5  ;;  %v4583_v47 = vmax.f32 %v4567_v34, 0.0  ;;  %v5886_v29 = vld [vmem:[#allocation5 + $0x30] ss:$2 sm:$0xff]  ;;  %v5908_v6 = vld [vmem:[#allocation5 + $0x31] ss:$2 sm:$0xff] }
 0x435   : > { %v5937_v38 = vld [vmem:[#allocation5 + $0x1a] ss:$2 sm:$0xff]  ;;  %4601 = vst [vmem:[#allocation5 + $0x58] sm:$0xff] %v4585_v56  ;;  %v5959_v10 = vld [vmem:[#allocation5 + $0x1b] ss:$2 sm:$0xff]  ;;  %v5926_v46 = vmax.f32 %v5886_v29, %v5908_v6 }
 0x436   : > { %4599 = vst [vmem:[#allocation5 + $0x48] sm:$0xff] %v4583_v47  ;;  %v5979_v22 = vmax.f32 %v5937_v38, %v5959_v10  ;;  %v13257_v55 = vpop.f32.mrb[20].mxu1  ;;  %v5884_v7 = vld [vmem:[#allocation5 + $0x20] ss:$2 sm:$0xff]  ;;  %v5906_v35 = vld [vmem:[#allocation5 + $0x21] ss:$2 sm:$0xff] }
 0x437   : > { %v4572_v53 = vadd.f32 %v13257_v55, %v16489_v2  ;;  %v4521_v61 = vpop.f32.mrb[21].mxu1  ;;  %v5939_v4 = vld [vmem:[#allocation5 + $0x2a] ss:$2 sm:$0xff]  ;;  %v5961_v49 = vld [vmem:[#allocation5 + $0x2b] ss:$2 sm:$0xff]  ;;  %v5925_v51 = vmax.f32 %v5884_v7, %v5906_v35 }
 0x438   : > { %v5990_v48 = vmax.f32 %v5924_v41, %v5979_v22  ;;  %v4570_v18 = vadd.f32 %v16489_v2, %v4521_v61  ;;  %v13258_v21 = vpop.f32.mrb[22].mxu1  ;;  %v5980_v16 = vmax.f32 %v5939_v4, %v5961_v49  ;;  %v6070_v38 = vld [vmem:[#allocation7] sm:$0x8]  ;;  %v6075_v4 = vld [vmem:[#allocation7 + $0x4] sm:$0x3] }
 0x439   : > { %v4588_v58 = vmax.f32 %v4572_v53, 0.0  ;;  %v4573_v1 = vadd.f32 %v13258_v21, %v16489_v2  ;;  %v4524_v30 = vpop.f32.mrb[23].mxu1 }
 0x43a   : > { %v12697_v13 = vpack.c.bf16 %v5990_v48, %v5989_v57  ;;  %v4586_v59 = vmax.f32 %v4570_v18, 0.0  ;;  %v4571_v31 = vadd.f32 %v16489_v2, %v4524_v30  ;;  %v5991_v36 = vmax.f32 %v5925_v51, %v5980_v16 }
 0x43b   : > { %4604 = vst [vmem:[#allocation5 + $0x70] sm:$0xff] %v4588_v58  ;;  %v4589_v28 = vmax.f32 %v4573_v1, 0.0 }
 0x43c   : > { %12698 = vst [vmem:[#allocation6] sm:$0xff] %v12697_v13   ;;  %4602 = vst [vmem:[#allocation5 + $0x60] sm:$0xff] %v4586_v59  ;;  %v4587_v62 = vmax.f32 %v4571_v31, 0.0  ;;  %v5890_v17 = vld [vmem:[#allocation5 + $0x50] ss:$2 sm:$0xff] }
 0x43d   : > { %v5941_v63 = vld [vmem:[#allocation5 + $0x3a] ss:$2 sm:$0xff]  ;;  %v5963_v0 = vld [vmem:[#allocation5 + $0x3b] ss:$2 sm:$0xff]  ;;  %4605 = vst [vmem:[#allocation5 + $0x78] sm:$0xff] %v4589_v28 }
 0x43e   : > { %v5981_v40 = vmax.f32 %v5941_v63, %v5963_v0  ;;  %4603 = vst [vmem:[#allocation5 + $0x68] sm:$0xff] %v4587_v62  ;;  %v5888_v2 = vld [vmem:[#allocation5 + $0x40] ss:$2 sm:$0xff]  ;;  %v5910_v26 = vld [vmem:[#allocation5 + $0x41] ss:$2 sm:$0xff] }
 0x43f   : > { %v5943_v44 = vld [vmem:[#allocation5 + $0x4a] ss:$2 sm:$0xff]  ;;  %v5965_v39 = vld [vmem:[#allocation5 + $0x4b] ss:$2 sm:$0xff]  ;;  %v5927_v12 = vmax.f32 %v5888_v2, %v5910_v26 }
 0x440   : > { %v5992_v42 = vmax.f32 %v5926_v46, %v5981_v40  ;;  %v5912_v56 = vld [vmem:[#allocation5 + $0x51] ss:$2 sm:$0xff]  ;;  %v5982_v54 = vmax.f32 %v5943_v44, %v5965_v39  ;;  %v6092_v13 = vld [vmem:[#allocation7 + $0x4] sm:$0xc]  ;;  %v6097_v59 = vld [vmem:[#allocation7 + $0x8] sm:$0x1] }
 0x441   : > { %v5928_v52 = vmax.f32 %v5890_v17, %v5912_v56  ;;  %v6114_v17 = vld [vmem:[#allocation7 + $0x8] sm:$0xe] }
 0x442   : > { %v12702_v15 = vpack.c.bf16 %v5992_v42, %v5991_v36  ;;  %v5993_v23 = vmax.f32 %v5927_v12, %v5982_v54 }
 0x443   : > { %v6056_v33 = vld [vmem:[#allocation6] sm:$0x3]  ;;  %v6078_v37 = vld [vmem:[#allocation6 + $0x4] sm:$0x6] }
 0x444   : > { %12719 = vst [vmem:[#allocation6 + $0x8] sm:$0xff] %v12702_v15   ;;  %v5894_v5 = vld [vmem:[#allocation5 + $0x70] ss:$2 sm:$0xff]  ;;  %v5916_v34 = vld [vmem:[#allocation5 + $0x71] ss:$2 sm:$0xff]  ;;  %v6058_v47 = vshll.u32 %v6056_v33, 16 }
 0x445   : > { %v5949_v20 = vld [vmem:[#allocation5 + $0x7a] ss:$2 sm:$0xff]  ;;  %v5930_v11 = vmax.f32 %v5894_v5, %v5916_v34  ;;  %v5971_v19 = vld [vmem:[#allocation5 + $0x7b] ss:$2 sm:$0xff]  ;;  %v6061_v14 = vshrl.u32 %v6056_v33, 16  ;;  %v6080_v10 = vshrl.u32 %v6078_v37, 16 }
 0x446   : > { %v5985_v50 = vmax.f32 %v5949_v20, %v5971_v19  ;;  %v6083_v3 = vshll.u32 %v6078_v37, 16  ;;  %v5892_v41 = vld [vmem:[#allocation5 + $0x60] ss:$2 sm:$0xff]  ;;  %v5914_v22 = vld [vmem:[#allocation5 + $0x61] ss:$2 sm:$0xff]  ;;  %v6060_v21 = vrot.slane %v6058_v47, 5 }
 0x447   : > { %v5945_v55 = vld [vmem:[#allocation5 + $0x5a] ss:$2 sm:$0xff]  ;;  %v5929_v35 = vmax.f32 %v5892_v41, %v5914_v22  ;;  %v5947_v53 = vld [vmem:[#allocation5 + $0x6a] ss:$2 sm:$0xff]  ;;  %v5967_v61 = vld [vmem:[#allocation5 + $0x5b] ss:$2 sm:$0xff] }
 0x448   : > { %v5996_v7 = vmax.f32 %v5930_v11, %v5985_v50  ;;  %v5969_v57 = vld [vmem:[#allocation5 + $0x6b] ss:$2 sm:$0xff]  ;;  %v5983_v48 = vmax.f32 %v5945_v55, %v5967_v61  ;;  %v6063_v25 = vrot.slane %v6061_v14, 4  ;;  %v6082_v49 = vrot.slane %v6080_v10, 6 }
 0x449   : > { %v5984_v18 = vmax.f32 %v5947_v53, %v5969_v57  ;;  %v6085_v58 = vrot.slane %v6083_v3, 7  ;;  %v6071_v9 = vsel %vm16499_vm10, %v6060_v21, %v6070_v38  ;;  %v6153_v41 = vld [vmem:[#allocation7 + $0x14] sm:$0xe] }
 0x44a   : > { %v5994_v1 = vmax.f32 %v5928_v52, %v5983_v48  ;;  %v6064_v8 = vor.u32 %v6063_v25, %v6060_v21  ;;  %6072 = vst [vmem:[#allocation7] sm:$0x8] %v6071_v9  ;;  %v6087_v6 = vrot.slane %v6082_v49, 4  ;;  %v6167_v25 = vld [vmem:[#allocation7 + $0x18] sm:$0x7] }
 0x44b   : > { %v5995_v30 = vmax.f32 %v5929_v35, %v5984_v18  ;;  %v6100_v31 = vld [vmem:[#allocation6 + $0x8] sm:$0xc]  ;;  %v6086_v29 = vor.u32 %v6085_v58, %v6082_v49  ;;  %v6117_v16 = vld [vmem:[#allocation6 + $0xc] sm:$0x8]  ;;  %v6141_v35 = vld [vmem:[#allocation7 + $0xc] sm:$0x7] }
 0x44c   : > { %v6102_v28 = vshrl.u32 %v6100_v31, 16  ;;  %v6105_v51 = vshll.u32 %v6100_v31, 16  ;;  %v12707_v63 = vpack.c.bf16 %v5994_v1, %v5993_v23  ;;  %v6065_v46 = vrot.slane %v6064_v8, 4  ;;  %v6255_v31 = vld [vmem:[#allocation7 + $0x1c] sm:$0x3] }
 0x44d   : > { %v12712_v0 = vpack.c.bf16 %v5996_v7, %v5995_v30  ;;  %v6093_v40 = vsel %vm16532_vm13, %v6086_v29, %v6092_v13  ;;  %v6098_v62 = vsel %vm16526_vm7, %v6087_v6, %v6097_v59  ;;  %v6120_v26 = vshrl.u32 %v6117_v16, 16 }
 0x44e   : > { %v6104_v36 = vrot.slane %v6102_v28, 4  ;;  %v6107_v42 = vrot.slane %v6105_v51, 5  ;;  %12720 = vst [vmem:[#allocation6 + $0x10] sm:$0xff] %v12707_v63   ;;  %v6076_v2 = vsel %vm16507_vm12, %v6065_v46, %v6075_v4  ;;  %6094 = vst [vmem:[#allocation7 + $0x4] sm:$0xc] %v6093_v40  ;;  %v6123_v44 = vshll.u32 %v6117_v16, 16 }
 0x44f   : > { %12721 = vst [vmem:[#allocation6 + $0x18] sm:$0xff] %v12712_v0   ;;  %6099 = vst [vmem:[#allocation7 + $0x8] sm:$0x1] %v6098_v62  ;;  %v6122_v33 = vrot.slane %v6120_v26, 6  ;;  %vm6138_vm12 = vcmask 1042432  }
 0x450   : > { %6077 = vst [vmem:[#allocation7 + $0x4] sm:$0x3] %v6076_v2  ;;  %v6108_v15 = vor.u32 %v6107_v42, %v6104_v36  ;;  %v6125_v37 = vrot.slane %v6123_v44, 7  ;;  %vm6140_vm5 = vmand %vm6138_vm12, %vm6139_vm2  ;;  %v6843_v16 = vld [vmem:[#allocation7 + $0x1c] sm:$0xf] }
 0x451   : > { %v6231_v61 = vld [vmem:[#allocation7] sm:$0xf]  ;;  %v14121_v44 = vld [vmem:[#allocation18] ss:$8 sps:$4 sm:$0xff]   ;;  %vm17297_vm2 = vsmask.f32 3328 }
 0x452   : > { %v6109_v39 = vrot.slane %v6108_v15, 4  ;;  %v6126_v56 = vor.u32 %v6125_v37, %v6122_v33  ;;  %v6641_v1 = vld [vmem:[#allocation7] sm:$0xe] }
 0x453   : > { %v6842_v30 = vld [vmem:[#allocation7] sm:$0x8] }
 0x454   : > { %v6115_v5 = vsel %vm16553_vm8, %v6109_v39, %v6114_v17  ;;  %v6127_v52 = vrot.slane %v6126_v56, 4  ;;  %v14126_v39 = vld [vmem:[#allocation18 + $0x14] ss:$8 sps:$4 sm:$0xff]  }
 0x455   : > { %6116 = vst [vmem:[#allocation7 + $0x8] sm:$0xe] %v6115_v5  ;;  %v6118_v43 = vld [vmem:[#allocation6 + $0x10] sm:$0x1] }
 0x456   : > { %v6144_v34 = vld [vmem:[#allocation6 + $0x18] sm:$0x6]  ;;  %v6156_v20 = vld [vmem:[#allocation6 + $0x1c] sm:$0xc]  ;;  %v6129_v12 = vshrl.u32 %v6118_v43, 16  ;;  %v6132_v11 = vshll.u32 %v6118_v43, 16 }
 0x457   : > { %v6146_v19 = vshrl.u32 %v6144_v34, 16  ;;  %v6158_v47 = vshrl.u32 %v6156_v20, 16  ;;  %v6161_v14 = vshll.u32 %v6156_v20, 16  ;;  %v6149_v10 = vshll.u32 %v6144_v34, 16  ;;  %v6232_v3 = vld [vmem:[#allocation7 + $0x4] sm:$0xf] }
 0x458   : > { %v6131_v54 = vrot.slane %v6129_v12, 6  ;;  %v6134_v50 = vrot.slane %v6132_v11, 7  ;;  %v16561_v18 = vcombine.low %v6231_v61, %v6232_v3  ;;  %v12169_v8 = vcombine.low %v6641_v1, %v6232_v3  ;;  %v14124_v20 = vld [vmem:[#allocation18 + $0x10] ss:$8 sps:$4 sm:$0xff]   ;;  %v14152_v1 = vld [vmem:[#allocation18 + $0x114] ss:$8 sps:$4 sm:$0xff]  }
 0x459   : > { %v6148_v38 = vrot.slane %v6146_v19, 7  ;;  %v6160_v22 = vrot.slane %v6158_v47, 5  ;;  %v6163_v55 = vrot.slane %v6161_v14, 6  ;;  %v12186_v9 = vcombine.low %v6842_v30, %v6232_v3  ;;  %v14130_v19 = vld [vmem:[#allocation18 + $0x24] ss:$8 sps:$4 sm:$0xff]  }
 0x45a   : > { %v6135_v7 = vor.u32 %v6134_v50, %v6131_v54  ;;  %v6296_v58 = vshll.u32 %v16561_v18, 16  ;;  %v6294_v29 = vshrl.u32 %v16561_v18, 16  ;;  %v6662_v6 = vrot.slane %v12169_v8, 1  ;;  %v14128_v54 = vld [vmem:[#allocation18 + $0x20] ss:$8 sps:$4 sm:$0xff]  }
 0x45b   : > { %v6151_v53 = vor.u32 %v6149_v10, %v6148_v38  ;;  %v6164_v57 = vor.u32 %v6163_v55, %v6160_v22  ;;  %v6867_v51 = vrot.slane %v12186_v9, 3  ;;  %v14133_v50 = vld [vmem:[#allocation18 + $0x34] ss:$8 sps:$4 sm:$0xff]   ;;  %v14131_v3 = vld [vmem:[#allocation18 + $0x30] ss:$8 sps:$4 sm:$0xff]  }
 0x45c   : > { %v6136_v48 = vsel %vm15654_vm0, %v6127_v52, %v6135_v7  ;;  %v6298_v60 = vrot.slane %v6296_v58, 1  ;;  %vm17291_vm0 = vcmask 1044480   ;;  %v14137_v22 = vld [vmem:[#allocation18 + $0x44] ss:$8 sps:$4 sm:$0xff]   ;;  %v14135_v7 = vld [vmem:[#allocation18 + $0x40] ss:$8 sps:$4 sm:$0xff]  }
 0x45d   : > { %v6154_v21 = vsel %vm16553_vm8, %v6151_v53, %v6153_v41  ;;  %v6142_v23 = vsel %vm6140_vm5, %v6136_v48, %v6141_v35  ;;  %v6165_v4 = vrot.slane %v6164_v57, 4  ;;  %vm17292_vm6 = vmmov %vm17291_vm0  ;;  %v14140_v35 = vld [vmem:[#allocation18 + $0x54] ss:$8 sps:$4 sm:$0xff]   ;;  %v14138_v61 = vld [vmem:[#allocation18 + $0x50] ss:$8 sps:$4 sm:$0xff]  }
 0x45e   : > { %6155 = vst [vmem:[#allocation7 + $0x14] sm:$0xe] %v6154_v21  ;;  %6143 = vst [vmem:[#allocation7 + $0xc] sm:$0x7] %v6142_v23  ;;  %v6299_v36 = vor.u32 %v6298_v60, %v6294_v29  ;;  %v14143_v57 = vld [vmem:[#allocation18 + $0x64] ss:$8 sps:$4 sm:$0xff]  }
 0x45f   : > { %v6168_v49 = vsel %vm6140_vm5, %v6165_v4, %v6167_v25  ;;  %vm17293_vm13 = vmmov %vm17291_vm0  ;;  %v14141_v21 = vld [vmem:[#allocation18 + $0x60] ss:$8 sps:$4 sm:$0xff]   ;;  %v14146_v23 = vld [vmem:[#allocation18 + $0x74] ss:$8 sps:$4 sm:$0xff]   ;;  %vm17298_vm5 = vcmask 1043456  }
 0x460   : > { %6169 = vst [vmem:[#allocation7 + $0x18] sm:$0x7] %v6168_v49  ;;  %v14144_v4 = vld [vmem:[#allocation18 + $0x70] ss:$8 sps:$4 sm:$0xff]   ;;  %v14149_v49 = vld [vmem:[#allocation18 + $0x104] ss:$8 sps:$4 sm:$0xff]   ;;  %vm17294_vm4 = vmmov %vm17291_vm0 }
 0x461   : > { %v14147_v58 = vld [vmem:[#allocation18 + $0x100] ss:$8 sps:$4 sm:$0xff]   ;;  %v14150_v30 = vld [vmem:[#allocation18 + $0x110] ss:$8 sps:$4 sm:$0xff]   ;;  %v14155_v8 = vld [vmem:[#allocation18 + $0x124] ss:$8 sps:$4 sm:$0xff]  }
 0x462   : > { %v14153_v9 = vld [vmem:[#allocation18 + $0x120] ss:$8 sps:$4 sm:$0xff]   ;;  %v14158_v60 = vld [vmem:[#allocation18 + $0x134] ss:$8 sps:$4 sm:$0xff]   ;;  %v14161_v29 = vld [vmem:[#allocation18 + $0x144] ss:$8 sps:$4 sm:$0xff]  }
 0x463   : > { %vm17295_vm8 = vmmov %vm17291_vm0 }
 0x464   : > { %vm17296_vm12 = vmmov %vm17291_vm0 }
 0x465   : > { %v16566_v13 = vld [vmem:[#allocation7 + $0x10] sm:$0xff]   ;;  %v16568_v59 = vld [vmem:[#allocation7 + $0x8] sm:$0xff]  }
 0x466   : > { %v6665_v28 = vrot.slane %v16566_v13, 1  ;;  %v6301_v63 = vshll.u32 %v16568_v59, 16  ;;  %v6663_v46 = vrot.slane %v16568_v59, 1  ;;  %v6868_v40 = vrot.slane %v16568_v59, 3 }
 0x467   : > { %v16573_v0 = vld [vmem:[#allocation7 + $0x18] sm:$0xf]  ;;  %v6870_v62 = vrot.slane %v16566_v13, 3  ;;  %v6305_v56 = vshrl.u32 %v16568_v59, 16  ;;  %v6309_v12 = vshll.u32 %v16566_v13, 16  ;;  %v6313_v41 = vshrl.u32 %v16566_v13, 16 }
 0x468   : > { %v16579_v42 = vcombine.low %v16573_v0, %v6255_v31  ;;  %v12187_v2 = vcombine.low %v16573_v0, %v6843_v16  ;;  %v6303_v26 = vrot.slane %v6301_v63, 1  ;;  %v16583_v15 = vsel %vm2985_vm15, %v6662_v6, %v6663_v46  ;;  %v14156_v31 = vld [vmem:[#allocation18 + $0x130] ss:$8 sps:$4 sm:$0xff]   ;;  %v14164_v6 = vld [vmem:[#allocation18 + $0x154] ss:$8 sps:$4 sm:$0xff]  }
 0x469   : > { %v16586_v32 = vsel %vm2985_vm15, %v6663_v46, %v6665_v28  ;;  %v16589_v17 = vsel %vm17291_vm0, %v6867_v51, %v6868_v40  ;;  %v16594_v5 = vsel %vm17292_vm6, %v6868_v40, %v6870_v62  ;;  %v6311_v14 = vrot.slane %v6309_v12, 1  ;;  %v14168_v51 = vld [vmem:[#allocation18 + $0x164] ss:$8 sps:$4 sm:$0xff]   ;;  %v14166_v16 = vld [vmem:[#allocation18 + $0x160] ss:$8 sps:$4 sm:$0xff]   ;;  %vm6216_vm0 = vmand %vm17298_vm5, %vm17297_vm2 }
 0x46a   : > { %v6667_v33 = vrot.slane %v16579_v42, 1  ;;  %v6304_v37 = vsel %vm2621_vm3, %v6299_v36, %v6303_v26  ;;  %v16596_v43 = vrot.slane %v12187_v2, 3  ;;  %v6307_v47 = vor.u32 %v6305_v56, %v6303_v26  ;;  %v14171_v46 = vld [vmem:[#allocation18 + $0x174] ss:$8 sps:$4 sm:$0xff]   ;;  %v14169_v40 = vld [vmem:[#allocation18 + $0x170] ss:$8 sps:$4 sm:$0xff]  }
 0x46b   : > { %6441 = vmatmul.mubr.bf16.vlgmr.msra.gmra.mrb[124].mxu0 %v6304_v37  ;;  %v6317_v10 = vshll.u32 %v16579_v42, 16  ;;  %v6315_v55 = vor.u32 %v6313_v41, %v6311_v14  ;;  %v6321_v48 = vshrl.u32 %v16579_v42, 16  ;;  %v14178_v36 = vld [vmem:[#allocation18 + $0x194] ss:$8 sps:$4 sm:$0xff]   ;;  %v14176_v2 = vld [vmem:[#allocation18 + $0x190] ss:$8 sps:$4 sm:$0xff]  }
 0x46c   : > { %v16601_v34 = vsel %vm2985_vm15, %v6665_v28, %v6667_v33  ;;  %6569 = vmatpush1.bf16.msra.mxu0 %v14121_v44  ;;  %6450 = vmatprep.mubr.bf16.mxu0 %v17277_v27  ;;  %v16608_v11 = vsel %vm17293_vm13, %v6870_v62, %v16596_v43  ;;  %v6312_v38 = vsel %vm2621_vm3, %v6307_v47, %v6311_v14  ;;  %v14162_v28 = vld [vmem:[#allocation18 + $0x150] ss:$8 sps:$4 sm:$0xff]   ;;  %v14173_v62 = vld [vmem:[#allocation18 + $0x180] ss:$8 sps:$4 sm:$0xff]   ;;  %v14184_v44 = vld [vmem:[#allocation18 + $0x1b4] ss:$8 sps:$4 sm:$0xff]  }
 0x46d   : > { %6570 = vmatprep.subr.bf16.mxu0 %v14126_v39  ;;  %v6319_v52 = vrot.slane %v6317_v10, 1  ;;  %v14179_v26 = vld [vmem:[#allocation18 + $0x1a0] ss:$8 sps:$4 sm:$0xff]   ;;  %v14182_v39 = vld [vmem:[#allocation18 + $0x1b0] ss:$8 sps:$4 sm:$0xff]   ;;  %vm6217_vm6 = vcmask 1047556  }
 0x46e   : > { %v14187_v37 = vld [vmem:[#allocation18 + $0x1c4] ss:$8 sps:$4 sm:$0xff]   ;;  %v14188_v56 = vld [vmem:[#allocation18 + $0x1d0] ss:$8 sps:$4 sm:$0xff]   ;;  %v14204_v42 = vld [vmem:[#allocation18 + $0x220] ss:$8 sps:$4 sm:$0xff]  }
 0x46f   : > { %v6320_v53 = vsel %vm2621_vm3, %v6315_v55, %v6319_v52  ;;  %v6323_v25 = vor.u32 %v6321_v48, %v6319_v52  ;;  %v14193_v12 = vld [vmem:[#allocation18 + $0x1e4] ss:$8 sps:$4 sm:$0xff]   ;;  %v14194_v47 = vld [vmem:[#allocation18 + $0x1f0] ss:$8 sps:$4 sm:$0xff]   ;;  %v16641_v55 = vld [vmem:[#allocation7 + $0x4] sm:$0xf] }
 0x470   : > { %6571 = vmatpush1.bf16.msra.mxu0 %v14124_v20  ;;  %v14190_v20 = vld [vmem:[#allocation18 + $0x1d4] ss:$8 sps:$4 sm:$0xff]   ;;  %v14200_v14 = vld [vmem:[#allocation18 + $0x204] ss:$8 sps:$4 sm:$0xff]   ;;  %v14207_v10 = vld [vmem:[#allocation18 + $0x230] ss:$8 sps:$4 sm:$0xff]  }
 0x471   : > { %6572 = vmatprep.subr.bf16.mxu0 %v14130_v19  ;;  %v14196_v19 = vld [vmem:[#allocation18 + $0x1f4] ss:$8 sps:$4 sm:$0xff]   ;;  %v16639_v41 = vld [vmem:[#allocation7 + $0xc] sm:$0xf]  ;;  %v16643_v52 = vld [vmem:[#allocation7 + $0x8] sm:$0xf] }
 0x472   : > { %vm6218_vm13 = vmand %vm6217_vm6, %vm2621_vm3  ;;  %vm6224_vm2 = vsmask.f32 7954 }
 0x473   : > { %6451 = vmatmul.mubr.bf16.gmra.mrb[128].mxu0 %v6312_v38  ;;  %v14206_v38 = vld [vmem:[#allocation18 + $0x224] ss:$8 sps:$4 sm:$0xff]  }
 0x474   : > { %6573 = vmatpush1.bf16.msra.mxu0 %v14128_v54  ;;  %6460 = vmatprep.mubr.bf16.mxu0 %v17277_v27  ;;  %v14203_v54 = vld [vmem:[#allocation18 + $0x214] ss:$8 sps:$4 sm:$0xff]  }
 0x475   : > { %6574 = vmatprep.subr.bf16.mxu0 %v14133_v50  ;;  %v14201_v50 = vld [vmem:[#allocation18 + $0x210] ss:$8 sps:$4 sm:$0xff]  }
 0x478   : > { %6575 = vmatpush1.bf16.msra.mxu0 %v14131_v3  ;;  %v14212_v3 = vld [vmem:[#allocation18 + $0x244] ss:$8 sps:$4 sm:$0xff]  }
 0x479   : > { %6576 = vmatprep.subr.bf16.mxu0 %v14137_v22  ;;  %v14215_v22 = vld [vmem:[#allocation18 + $0x254] ss:$8 sps:$4 sm:$0xff]  }
 0x47b   : > { %6461 = vmatmul.mubr.bf16.gmra.mrb[132].mxu0 %v6320_v53 }
 0x47c   : > { %6577 = vmatpush1.bf16.msra.mxu0 %v14135_v7  ;;  %6470 = vmatprep.mubr.bf16.mxu0 %v17277_v27  ;;  %v12205_v7 = vcombine.low %v16643_v52, %v16639_v41 }
 0x47d   : > { %6578 = vmatprep.subr.bf16.mxu0 %v14140_v35  ;;  %v14213_v35 = vld [vmem:[#allocation18 + $0x250] ss:$8 sps:$4 sm:$0xff]  }
 0x47e   : > { %v7109_v48 = vshll.u32 %v12205_v7, 16 }
 0x480   : > { %6579 = vmatpush1.bf16.msra.mxu0 %v14138_v61  ;;  %v14218_v61 = vld [vmem:[#allocation18 + $0x264] ss:$8 sps:$4 sm:$0xff]  }
 0x481   : > { %6580 = vmatprep.subr.bf16.mxu0 %v14143_v57  ;;  %v7106_v57 = vshrl.u32 %v12205_v7, 16  ;;  %v16677_v7 = vld [vmem:[#allocation10 + $0x10] sm:$0xff] }
 0x482   : > { %8202 = vperm.xlu1 %13932, %v16677_v7  }
 0x483   : > { %6471 = vmatmul.mubr.bf16.gmra.mrb[136].mxu0 %v6323_v25  ;;  %v16652_v25 = vld [vmem:[#allocation7 + $0x14] sm:$0xf] }
 0x484   : > { %6581 = vmatpush1.bf16.msra.mxu0 %v14141_v21  ;;  %6600 = vmatprep.mubr.bf16.mxu0 %v17277_v27  ;;  %v16650_v21 = vld [vmem:[#allocation7 + $0x10] sm:$0xf] }
 0x485   : > { %6582 = vmatprep.subr.bf16.mxu0 %v14146_v23  ;;  %v14216_v23 = vld [vmem:[#allocation18 + $0x260] ss:$8 sps:$4 sm:$0xff]  }
 0x488   : > { %6583 = vmatpush1.bf16.msra.mxu0 %v14144_v4 }
 0x489   : > { %6753 = vmatprep.subr.bf16.mxu0 %v14149_v49 }
 0x48b   : > { %6601 = vmatmul.mubr.bf16.vlgmr.msra.gmra.mrb[124].mxu0 %v16561_v18  ;;  %v14159_v18 = vld [vmem:[#allocation18 + $0x140] ss:$8 sps:$4 sm:$0xff]  }
 0x48c   : > { %6754 = vmatpush1.bf16.msra.mxu0 %v14147_v58  ;;  %6610 = vmatprep.mubr.bf16.mxu0 %v17277_v27  ;;  %v7108_v58 = vrot.slane %v7106_v57, 3  ;;  %v14330_v57 = vld [vmem:[#allocation21 + $0x204] ss:$8 sps:$4 sm:$0xff]  }
 0x48d   : > { %6755 = vmatprep.subr.bf16.mxu0 %v14152_v1  ;;  %v7111_v1 = vrot.slane %v7109_v48, 4  ;;  %v16684_v48 = vld [vmem:[#allocation10 + $0x18] sm:$0xff]  ;;  %9276 = vmatprep.subr.bf16.mxu1 %v14330_v57 }
 0x48e   : > { %8207 = vperm.xlu1 %13932, %v16684_v48   ;;  %v14299_v57 = vld [vmem:[#allocation18 + $0x3e4] ss:$8 sps:$4 sm:$0xff]  }
 0x490   : > { %6756 = vmatpush1.bf16.msra.mxu0 %v14150_v30  ;;  %v12206_v30 = vcombine.low %v16650_v21, %v16652_v25 }
 0x491   : > { %6757 = vmatprep.subr.bf16.mxu0 %v14155_v8  ;;  %v14219_v8 = vld [vmem:[#allocation18 + $0x270] ss:$8 sps:$4 sm:$0xff]  }
 0x493   : > { %6611 = vmatmul.mubr.bf16.gmra.mrb[128].mxu0 %v16568_v59  ;;  %v6238_v59 = vld [vmem:[#allocation7 + $0x1c] sm:$0x1] }
 0x494   : > { %6758 = vmatpush1.bf16.msra.mxu0 %v14153_v9  ;;  %6620 = vmatprep.mubr.bf16.mxu0 %v17277_v27  ;;  %v12152_v63 = vcombine.low %v16573_v0, %v6238_v59  ;;  %v14181_v0 = vld [vmem:[#allocation18 + $0x1a4] ss:$8 sps:$4 sm:$0xff]   ;;  %v14224_v59 = vld [vmem:[#allocation18 + $0x280] ss:$8 sps:$4 sm:$0xff]  }
 0x495   : > { %6759 = vmatprep.subr.bf16.mxu0 %v14158_v60 }
 0x498   : > { %6760 = vmatpush1.bf16.msra.mxu0 %v14156_v31  ;;  %v14226_v31 = vld [vmem:[#allocation18 + $0x284] ss:$8 sps:$4 sm:$0xff]  }
 0x499   : > { %6761 = vmatprep.subr.bf16.mxu0 %v14161_v29  ;;  %v7112_v29 = vor.u32 %v7111_v1, %v7108_v58  ;;  %v8186_v58 = vld [vmem:[#allocation10 + $0x20] sm:$0xff] }
 0x49a   : > { %v14334_v1 = vld [vmem:[#allocation21 + $0x210] ss:$8 sps:$4 sm:$0xff]  }
 0x49b   : > { %6621 = vmatmul.mubr.bf16.gmra.mrb[132].mxu0 %v16566_v13  ;;  %v14175_v13 = vld [vmem:[#allocation18 + $0x184] ss:$8 sps:$4 sm:$0xff]  }
 0x49c   : > { %6762 = vmatpush1.bf16.msra.mxu0 %v14159_v18  ;;  %6630 = vmatprep.mubr.bf16.mxu0 %v17277_v27  ;;  %v7115_v18 = vshrl.u32 %v12206_v30, 16 }
 0x49d   : > { %6763 = vmatprep.subr.bf16.mxu0 %v14164_v6  ;;  %v7118_v6 = vshll.u32 %v12206_v30, 16  ;;  %v8187_v30 = vld [vmem:[#allocation10 + $0x28] sm:$0xff] }
 0x49e   : > { %8217 = vperm.xlu1 %13932, %v8187_v30  }
 0x4a0   : > { %6764 = vmatpush1.bf16.msra.mxu0 %v14162_v28  ;;  %v16658_v28 = vld [vmem:[#allocation7 + $0x18] sm:$0xf] }
 0x4a1   : > { %6765 = vmatprep.subr.bf16.mxu0 %v14168_v51 }
 0x4a3   : > { %6631 = vmatmul.mubr.bf16.gmra.mrb[136].mxu0 %v12152_v63 }
 0x4a4   : > { %6766 = vmatpush1.bf16.msra.mxu0 %v14166_v16  ;;  %6785 = vmatprep.mubr.bf16.mxu0 %v17277_v27  ;;  %v14229_v16 = vld [vmem:[#allocation18 + $0x294] ss:$8 sps:$4 sm:$0xff]  }
 0x4a5   : > { %6767 = vmatprep.subr.bf16.mxu0 %v14171_v46  ;;  %v7117_v46 = vrot.slane %v7115_v18, 3  ;;  %v14348_v18 = vld [vmem:[#allocation21 + $0x234] ss:$8 sps:$4 sm:$0xff]  }
 0x4a8   : > { %6768 = vmatpush1.bf16.msra.mxu0 %v14169_v40  ;;  %v7120_v40 = vrot.slane %v7118_v6, 4  ;;  %v14259_v6 = vld [vmem:[#allocation18 + $0x320] ss:$8 sps:$4 sm:$0xff]  }
 0x4a9   : > { %6958 = vmatprep.subr.bf16.mxu0 %v14175_v13 }
 0x4ab   : > { %6786 = vmatmul.mubr.bf16.vlgmr.msra.gmra.mrb[124].mxu0 %v16583_v15  ;;  %v14185_v15 = vld [vmem:[#allocation18 + $0x1c0] ss:$8 sps:$4 sm:$0xff]  }
 0x4ac   : > { %6959 = vmatpush1.bf16.msra.mxu0 %v14173_v62  ;;  %6795 = vmatprep.mubr.bf16.mxu0 %v17277_v27  ;;  %v14227_v62 = vld [vmem:[#allocation18 + $0x290] ss:$8 sps:$4 sm:$0xff]  }
 0x4ad   : > { %6960 = vmatprep.subr.bf16.mxu0 %v14178_v36  ;;  %v14233_v36 = vld [vmem:[#allocation18 + $0x2a4] ss:$8 sps:$4 sm:$0xff]  }
 0x4b0   : > { %6961 = vmatpush1.bf16.msra.mxu0 %v14176_v2  ;;  %v7121_v2 = vor.u32 %v7120_v40, %v7117_v46  ;;  %v14262_v46 = vld [vmem:[#allocation18 + $0x330] ss:$8 sps:$4 sm:$0xff]   ;;  %v14268_v40 = vld [vmem:[#allocation18 + $0x344] ss:$8 sps:$4 sm:$0xff]  }
 0x4b1   : > { %6962 = vmatprep.subr.bf16.mxu0 %v14181_v0 }
 0x4b3   : > { %6796 = vmatmul.mubr.bf16.gmra.mrb[128].mxu0 %v16586_v32  ;;  %v14191_v32 = vld [vmem:[#allocation18 + $0x1e0] ss:$8 sps:$4 sm:$0xff]  }
 0x4b4   : > { %6963 = vmatpush1.bf16.msra.mxu0 %v14179_v26  ;;  %6805 = vmatprep.mubr.bf16.mxu0 %v17277_v27 }
 0x4b5   : > { %6964 = vmatprep.subr.bf16.mxu0 %v14184_v44  ;;  %v14231_v44 = vld [vmem:[#allocation18 + $0x2a0] ss:$8 sps:$4 sm:$0xff]  }
 0x4b8   : > { %6965 = vmatpush1.bf16.msra.mxu0 %v14182_v39  ;;  %v14236_v39 = vld [vmem:[#allocation18 + $0x2b4] ss:$8 sps:$4 sm:$0xff]  }
 0x4b9   : > { %6966 = vmatprep.subr.bf16.mxu0 %v14187_v37  ;;  %v7122_v37 = vsel %vm7096_vm9, %v7112_v29, %v7121_v2 }
 0x4bb   : > { %6806 = vmatmul.mubr.bf16.gmra.mrb[132].mxu0 %v16601_v34  ;;  %v14198_v34 = vld [vmem:[#allocation18 + $0x200] ss:$8 sps:$4 sm:$0xff]  }
 0x4bc   : > { %6967 = vmatpush1.bf16.msra.mxu0 %v14185_v15  ;;  %6815 = vmatprep.mubr.bf16.mxu0 %v17277_v27 }
 0x4bd   : > { %6968 = vmatprep.subr.bf16.mxu0 %v14190_v20 }
 0x4c0   : > { %6969 = vmatpush1.bf16.msra.mxu0 %v14188_v56  ;;  %v14234_v56 = vld [vmem:[#allocation18 + $0x2b0] ss:$8 sps:$4 sm:$0xff]  }
 0x4c1   : > { %6970 = vmatprep.subr.bf16.mxu0 %v14193_v12  ;;  %v14240_v12 = vld [vmem:[#allocation18 + $0x2c4] ss:$8 sps:$4 sm:$0xff]  }
 0x4c3   : > { %6816 = vmatmul.mubr.bf16.gmra.mrb[136].mxu0 %v6667_v33  ;;  %v14209_v33 = vld [vmem:[#allocation18 + $0x234] ss:$8 sps:$4 sm:$0xff]  }
 0x4c4   : > { %6971 = vmatpush1.bf16.msra.mxu0 %v14191_v32  ;;  %6990 = vmatprep.mubr.bf16.mxu0 %v17277_v27  ;;  %v16668_v32 = vld [vmem:[#allocation7 + $0x20] sm:$0x1] }
 0x4c5   : > { %6972 = vmatprep.subr.bf16.mxu0 %v14196_v19 }
 0x4c8   : > { %6973 = vmatpush1.bf16.msra.mxu0 %v14194_v47  ;;  %v14238_v47 = vld [vmem:[#allocation18 + $0x2c0] ss:$8 sps:$4 sm:$0xff]  }
 0x4c9   : > { %7221 = vmatprep.subr.bf16.mxu0 %v14200_v14  ;;  %v12208_v14 = vcombine.low %v16668_v32, %v16668_v32 }
 0x4cb   : > { %6991 = vmatmul.mubr.bf16.vlgmr.msra.gmra.mrb[124].mxu0 %v16589_v17  ;;  %v14210_v17 = vld [vmem:[#allocation18 + $0x240] ss:$8 sps:$4 sm:$0xff]  }
 0x4cc   : > { %7222 = vmatpush1.bf16.msra.mxu0 %v14198_v34  ;;  %7000 = vmatprep.mubr.bf16.mxu0 %v17277_v27  ;;  %v14243_v34 = vld [vmem:[#allocation18 + $0x2d4] ss:$8 sps:$4 sm:$0xff]  }
 0x4cd   : > { %7223 = vmatprep.subr.bf16.mxu0 %v14203_v54 }
 0x4d0   : > { %7224 = vmatpush1.bf16.msra.mxu0 %v14201_v50  ;;  %v14241_v50 = vld [vmem:[#allocation18 + $0x2d0] ss:$8 sps:$4 sm:$0xff]  }
 0x4d1   : > { %7225 = vmatprep.subr.bf16.mxu0 %v14206_v38  ;;  %v7133_v38 = vshll.u32 %v12208_v14, 16 }
 0x4d3   : > { %7001 = vmatmul.mubr.bf16.gmra.mrb[128].mxu0 %v16594_v5  ;;  %v7047_v5 = vld [vmem:[#allocation7] sm:$0x8] }
 0x4d4   : > { %7226 = vmatpush1.bf16.msra.mxu0 %v14204_v42  ;;  %7010 = vmatprep.mubr.bf16.mxu0 %v17277_v27  ;;  %v12204_v53 = vcombine.low %v7047_v5, %v16641_v55  ;;  %v14247_v42 = vld [vmem:[#allocation18 + $0x2e4] ss:$8 sps:$4 sm:$0xff]   ;;  %v14248_v5 = vld [vmem:[#allocation18 + $0x2f0] ss:$8 sps:$4 sm:$0xff]  }
 0x4d5   : > { %7227 = vmatprep.subr.bf16.mxu0 %v14209_v33  ;;  %v7135_v33 = vrot.slane %v7133_v38, 4  ;;  %v14285_v38 = vld [vmem:[#allocation18 + $0x3a0] ss:$8 sps:$4 sm:$0xff]  }
 0x4d6   : > { %v7098_v4 = vshrl.u32 %v12204_v53, 16  ;;  %v7101_v49 = vshll.u32 %v12204_v53, 16  ;;  %v16682_v53 = vld [vmem:[#allocation10 + $0x8] sm:$0xff] }
 0x4d8   : > { %7228 = vmatpush1.bf16.msra.mxu0 %v14207_v10  ;;  %v7100_v9 = vrot.slane %v7098_v4, 3  ;;  %v7103_v60 = vrot.slane %v7101_v49, 4  ;;  %v14245_v10 = vld [vmem:[#allocation18 + $0x2e0] ss:$8 sps:$4 sm:$0xff]   ;;  %v12225_v49 = vcombine.low %v16641_v55, %v16643_v52 }
 0x4d9   : > { %7229 = vmatprep.subr.bf16.mxu0 %v14212_v3  ;;  %v14250_v3 = vld [vmem:[#allocation18 + $0x2f4] ss:$8 sps:$4 sm:$0xff]   ;;  %v14252_v4 = vld [vmem:[#allocation18 + $0x300] ss:$8 sps:$4 sm:$0xff]  }
 0x4da   : > { %v7104_v51 = vor.u32 %v7103_v60, %v7100_v9  ;;  %v14255_v9 = vld [vmem:[#allocation18 + $0x310] ss:$8 sps:$4 sm:$0xff]   ;;  %v14261_v60 = vld [vmem:[#allocation18 + $0x324] ss:$8 sps:$4 sm:$0xff]  }
 0x4db   : > { %7011 = vmatmul.mubr.bf16.gmra.mrb[132].mxu0 %v16608_v11  ;;  %v14221_v11 = vld [vmem:[#allocation18 + $0x274] ss:$8 sps:$4 sm:$0xff]   ;;  %v8188_v55 = vld [vmem:[#allocation10 + $0x30] sm:$0xff] }
 0x4dc   : > { %7230 = vmatpush1.bf16.msra.mxu0 %v14210_v17  ;;  %7020 = vmatprep.mubr.bf16.mxu0 %v17277_v27  ;;  %v7113_v63 = vsel %vm7096_vm9, %v7104_v51, %v7112_v29  ;;  %v8189_v29 = vld [vmem:[#allocation10 + $0x38] sm:$0x3]  ;;  %v16693_v51 = vcombine.low %v16639_v41, %v16650_v21  ;;  %v14360_v21 = vld [vmem:[#allocation21 + $0x254] ss:$8 sps:$4 sm:$0xff]  }
 0x4dd   : > { %7231 = vmatprep.subr.bf16.mxu0 %v14215_v22  ;;  %v16675_v22 = vld [vmem:[#allocation10] sm:$0xff]  ;;  %8227 = vperm.xlu1 %13932, %v8189_v29   ;;  %v14352_v41 = vld [vmem:[#allocation21 + $0x240] ss:$8 sps:$4 sm:$0xff]  }
 0x4de   : > { %8192 = vperm.xlu0 %13931, %v16675_v22  }
 0x4e0   : > { %7232 = vmatpush1.bf16.msra.mxu0 %v14213_v35  ;;  %v14254_v35 = vld [vmem:[#allocation18 + $0x304] ss:$8 sps:$4 sm:$0xff]  }
 0x4e1   : > { %7233 = vmatprep.subr.bf16.mxu0 %v14218_v61  ;;  %v14328_v61 = vld [vmem:[#allocation21 + $0x200] ss:$8 sps:$4 sm:$0xff]   ;;  %11465 = vperm.xlu1 %13932, %v8187_v30  }
 0x4e2   : > { %8197 = vperm.xlu0 %13931, %v16682_v53   ;;  %9277 = vmatpush1.bf16.msra.mxu1 %v14328_v61  ;;  %v14294_v61 = vld [vmem:[#allocation18 + $0x3d0] ss:$8 sps:$4 sm:$0xff]  }
 0x4e3   : > { %7021 = vmatmul.mubr.bf16.gmra.mrb[136].mxu0 %v16596_v43  ;;  %v16660_v43 = vld [vmem:[#allocation7 + $0x1c] sm:$0xf] }
 0x4e4   : > { %7234 = vmatpush1.bf16.msra.mxu0 %v14216_v23  ;;  %7253 = vmatprep.mubr.bf16.mxu0 %v17277_v27  ;;  %v12207_v13 = vcombine.low %v16658_v28, %v16660_v43  ;;  %v14336_v23 = vld [vmem:[#allocation21 + $0x214] ss:$8 sps:$4 sm:$0xff]  }
 0x4e5   : > { %7235 = vmatprep.subr.bf16.mxu0 %v14221_v11  ;;  %v14257_v11 = vld [vmem:[#allocation18 + $0x314] ss:$8 sps:$4 sm:$0xff]   ;;  %9278 = vmatprep.subr.bf16.mxu1 %v14336_v23  ;;  %v7742_v23 = vshll.u32 %v16693_v51, 16 }
 0x4e6   : > { %v7124_v0 = vshrl.u32 %v12207_v13, 16  ;;  %v7127_v26 = vshll.u32 %v12207_v13, 16  ;;  %8212 = vperm.xlu0 %13931, %v8186_v58   ;;  %9279 = vmatpush1.bf16.msra.mxu1 %v14334_v1  ;;  %v14266_v13 = vld [vmem:[#allocation18 + $0x340] ss:$8 sps:$4 sm:$0xff]  }
 0x4e7   : > { %11440 = vperm.xlu1 %13932, %v16675_v22   ;;  %v14293_v22 = vld [vmem:[#allocation18 + $0x3c4] ss:$8 sps:$4 sm:$0xff]   ;;  %v7744_v30 = vrot.slane %v7742_v23, 3 }
 0x4e8   : > { %7236 = vmatpush1.bf16.msra.mxu0 %v14219_v8  ;;  %v7126_v15 = vrot.slane %v7124_v0, 3  ;;  %v7129_v20 = vrot.slane %v7127_v26, 4  ;;  %v14342_v8 = vld [vmem:[#allocation21 + $0x224] ss:$8 sps:$4 sm:$0xff]   ;;  %v11437_v0 = vld [vmem:[#allocation10 + $0x38] sm:$0x3] }
 0x4e9   : > { %7415 = vmatprep.subr.bf16.mxu0 %v14226_v31  ;;  %v14340_v31 = vld [vmem:[#allocation21 + $0x220] ss:$8 sps:$4 sm:$0xff]   ;;  %9280 = vmatprep.subr.bf16.mxu1 %v14342_v8  ;;  %v14269_v26 = vld [vmem:[#allocation18 + $0x350] ss:$8 sps:$4 sm:$0xff]  }
 0x4ea   : > { %v7130_v19 = vor.u32 %v7129_v20, %v7126_v15  ;;  %8222 = vperm.xlu0 %13931, %v8188_v55   ;;  %9281 = vmatpush1.bf16.msra.mxu1 %v14340_v31  ;;  %v14275_v15 = vld [vmem:[#allocation18 + $0x370] ss:$8 sps:$4 sm:$0xff]   ;;  %v14355_v23 = vld [vmem:[#allocation21 + $0x140] ss:$8 sps:$4 sm:$0xff]  }
 0x4eb   : > { %7254 = vmatmul.mubr.bf16.vlgmr.msra.gmra.mrb[124].mxu0 %v7113_v63  ;;  %9282 = vmatprep.subr.bf16.mxu1 %v14348_v18  ;;  %v14354_v63 = vld [vmem:[#allocation21 + $0x244] ss:$8 sps:$4 sm:$0xff]  }
 0x4ec   : > { %7416 = vmatpush1.bf16.msra.mxu0 %v14224_v59  ;;  %7263 = vmatprep.mubr.bf16.mxu0 %v17277_v27  ;;  %v7131_v54 = vsel %vm7096_vm9, %v7121_v2, %v7130_v19  ;;  %v7136_v17 = vsel %vm7096_vm9, %v7130_v19, %v7135_v33  ;;  %v14264_v59 = vld [vmem:[#allocation18 + $0x334] ss:$8 sps:$4 sm:$0xff]   ;;  %v14279_v19 = vld [vmem:[#allocation18 + $0x380] ss:$8 sps:$4 sm:$0xff]   ;;  %v7505_v33 = vld [vmem:[#allocation7 + $0x20] sm:$0x7] }
 0x4ed   : > { %7417 = vmatprep.subr.bf16.mxu0 %v14229_v16  ;;  %v14346_v16 = vld [vmem:[#allocation21 + $0x230] ss:$8 sps:$4 sm:$0xff]   ;;  %11475 = vperm.xlu1 %13932, %v11437_v0   ;;  %v14309_v0 = vld [vmem:[#allocation18 + $0x420] ss:$8 sps:$4 sm:$0xff]  }
 0x4ee   : > { %11460 = vperm.xlu0 %13931, %v8186_v58   ;;  %9283 = vmatpush1.bf16.msra.mxu1 %v14346_v16  ;;  %v14358_v2 = vld [vmem:[#allocation21 + $0x250] ss:$8 sps:$4 sm:$0xff]  }
 0x4ef   : > { %9284 = vmatprep.subr.bf16.mxu1 %v14354_v63  ;;  %v14302_v58 = vld [vmem:[#allocation18 + $0x3f4] ss:$8 sps:$4 sm:$0xff]   ;;  %v14300_v8 = vld [vmem:[#allocation18 + $0x3f0] ss:$8 sps:$4 sm:$0xff]  }
 0x4f0   : > { %7418 = vmatpush1.bf16.msra.mxu0 %v14227_v62  ;;  %v16699_v62 = vcombine.low %v16652_v25, %v16658_v28  ;;  %v14272_v25 = vld [vmem:[#allocation18 + $0x360] ss:$8 sps:$4 sm:$0xff]   ;;  %v12228_v28 = vcombine.low %v16660_v43, %v16668_v32  ;;  %v14308_v16 = vld [vmem:[#allocation18 + $0x414] ss:$8 sps:$4 sm:$0xff]   ;;  %v7709_v63 = vld [vmem:[#allocation7 + $0x20] sm:$0xf] }
 0x4f1   : > { %7419 = vmatprep.subr.bf16.mxu0 %v14233_v36  ;;  %v14271_v36 = vld [vmem:[#allocation18 + $0x354] ss:$8 sps:$4 sm:$0xff]   ;;  %11455 = vperm.xlu1 %13932, %v16684_v48   ;;  %v7739_v48 = vshrl.u32 %v16693_v51, 16 }
 0x4f2   : > { %11470 = vperm.xlu0 %13931, %v8188_v55   ;;  %9285 = vmatpush1.bf16.msra.mxu1 %v14352_v41  ;;  %v14305_v55 = vld [vmem:[#allocation18 + $0x404] ss:$8 sps:$4 sm:$0xff]   ;;  %v7748_v29 = vshrl.u32 %v16699_v62, 16  ;;  %v7751_v18 = vshll.u32 %v16699_v62, 16 }
 0x4f3   : > { %7264 = vmatmul.mubr.bf16.gmra.mrb[128].mxu0 %v7122_v37  ;;  %9286 = vmatprep.subr.bf16.mxu1 %v14360_v21  ;;  %v7504_v37 = vld [vmem:[#allocation7 + $0x4] sm:$0xc]  ;;  %v7741_v1 = vrot.slane %v7739_v48, 2  ;;  %v14306_v21 = vld [vmem:[#allocation18 + $0x410] ss:$8 sps:$4 sm:$0xff]  }
 0x4f4   : > { %7420 = vmatpush1.bf16.msra.mxu0 %v14231_v44  ;;  %7273 = vmatprep.mubr.bf16.mxu0 %v17277_v27  ;;  %v14274_v44 = vld [vmem:[#allocation18 + $0x364] ss:$8 sps:$4 sm:$0xff]   ;;  %v12245_v20 = vcombine.low %v7504_v37, %v16643_v52  ;;  %v7753_v41 = vrot.slane %v7751_v18, 3 }
 0x4f5   : > { %7421 = vmatprep.subr.bf16.mxu0 %v14236_v39  ;;  %v14277_v39 = vld [vmem:[#allocation18 + $0x374] ss:$8 sps:$4 sm:$0xff]   ;;  %v7745_v31 = vor.u32 %v7744_v30, %v7741_v1  ;;  %v14376_v18 = vld [vmem:[#allocation21 + $0x280] ss:$8 sps:$4 sm:$0xff]  }
 0x4f6   : > { %11445 = vperm.xlu0 %13931, %v16682_v53   ;;  %9287 = vmatpush1.bf16.msra.mxu1 %v14358_v2  ;;  %v7529_v32 = vrot.slane %v12245_v20, 2  ;;  %v6220_v1 = vld [vmem:[#allocation8] sm:$0xff] }
 0x4f8   : > { %7422 = vmatpush1.bf16.msra.mxu0 %v14234_v56  ;;  %v14281_v56 = vld [vmem:[#allocation18 + $0x384] ss:$8 sps:$4 sm:$0xff]  }
 0x4f9   : > { %7423 = vmatprep.subr.bf16.mxu0 %v14240_v12  ;;  %v7530_v12 = vrot.slane %v16693_v51, 2 }
 0x4fa   : > { %11450 = vperm.xlu0 %13931, %v16677_v7  }
 0x4fb   : > { %7274 = vmatmul.mubr.bf16.gmra.mrb[132].mxu0 %v7131_v54  ;;  %v7531_v14 = vsel %vm3679_vm1, %v7529_v32, %v7530_v12  ;;  %v14287_v54 = vld [vmem:[#allocation18 + $0x3a4] ss:$8 sps:$4 sm:$0xff]  }
 0x4fc   : > { %7424 = vmatpush1.bf16.msra.mxu0 %v14238_v47  ;;  %7283 = vmatprep.mubr.bf16.mxu0 %v17277_v27  ;;  %v14284_v47 = vld [vmem:[#allocation18 + $0x394] ss:$8 sps:$4 sm:$0xff]  }
 0x4fd   : > { %7425 = vmatprep.subr.bf16.mxu0 %v14243_v34  ;;  %v14282_v34 = vld [vmem:[#allocation18 + $0x390] ss:$8 sps:$4 sm:$0xff]  }
 0x500   : > { %7426 = vmatpush1.bf16.msra.mxu0 %v14241_v50  ;;  %v7532_v50 = vrot.slane %v16699_v62, 2 }
 0x501   : > { %7427 = vmatprep.subr.bf16.mxu0 %v14247_v42  ;;  %v14290_v42 = vld [vmem:[#allocation18 + $0x3b4] ss:$8 sps:$4 sm:$0xff]  }
 0x503   : > { %7284 = vmatmul.mubr.bf16.gmra.mrb[136].mxu0 %v7136_v17  ;;  %v12246_v17 = vcombine.low %v16660_v43, %v7505_v33  ;;  %v7960_v33 = vrot.slane %v16693_v51, 3 }
 0x504   : > { %7428 = vmatpush1.bf16.msra.mxu0 %v14245_v10  ;;  %7447 = vmatprep.mubr.bf16.mxu0 %v17277_v27  ;;  %v7533_v10 = vsel %vm3679_vm1, %v7530_v12, %v7532_v50  ;;  %v14320_v12 = vld [vmem:[#allocation18 + $0x454] ss:$8 sps:$4 sm:$0xff]  }
 0x505   : > { %7429 = vmatprep.subr.bf16.mxu0 %v14250_v3  ;;  %v14288_v3 = vld [vmem:[#allocation18 + $0x3b0] ss:$8 sps:$4 sm:$0xff]   ;;  %v7534_v7 = vrot.slane %v12246_v17, 2 }
 0x506   : > { %v14339_v17 = vld [vmem:[#allocation21 + $0x114] ss:$8 sps:$4 sm:$0xff]  }
 0x507   : > { %v7535_v53 = vsel %vm3679_vm1, %v7532_v50, %v7534_v7  ;;  %v14324_v50 = vld [vmem:[#allocation18 + $0x470] ss:$8 sps:$4 sm:$0xff]  }
 0x508   : > { %7430 = vmatpush1.bf16.msra.mxu0 %v14248_v5  ;;  %v14291_v5 = vld [vmem:[#allocation18 + $0x3c0] ss:$8 sps:$4 sm:$0xff]  }
 0x509   : > { %7620 = vmatprep.subr.bf16.mxu0 %v14254_v35  ;;  %v14296_v35 = vld [vmem:[#allocation18 + $0x3d4] ss:$8 sps:$4 sm:$0xff]  }
 0x50b   : > { %7448 = vmatmul.mubr.bf16.vlgmr.msra.gmra.mrb[124].mxu0 %v12225_v49  ;;  %v7731_v49 = vshrl.u32 %v12245_v20, 16 }
 0x50c   : > { %7621 = vmatpush1.bf16.msra.mxu0 %v14252_v4  ;;  %7457 = vmatprep.mubr.bf16.mxu0 %v17277_v27  ;;  %v14297_v4 = vld [vmem:[#allocation18 + $0x3e0] ss:$8 sps:$4 sm:$0xff]  }
 0x50d   : > { %7622 = vmatprep.subr.bf16.mxu0 %v14257_v11  ;;  %v7734_v11 = vshll.u32 %v12245_v20, 16 }
 0x510   : > { %7623 = vmatpush1.bf16.msra.mxu0 %v14255_v9  ;;  %v7733_v9 = vrot.slane %v7731_v49, 2  ;;  %v14361_v49 = vld [vmem:[#allocation21 + $0x150] ss:$8 sps:$4 sm:$0xff]  }
 0x511   : > { %7624 = vmatprep.subr.bf16.mxu0 %v14261_v60  ;;  %v7736_v60 = vrot.slane %v7734_v11, 3  ;;  %v14364_v11 = vld [vmem:[#allocation21 + $0x260] ss:$8 sps:$4 sm:$0xff]  }
 0x513   : > { %7458 = vmatmul.mubr.bf16.gmra.mrb[128].mxu0 %v16693_v51  ;;  %v14351_v51 = vld [vmem:[#allocation21 + $0x134] ss:$8 sps:$4 sm:$0xff]  }
 0x514   : > { %7625 = vmatpush1.bf16.msra.mxu0 %v14259_v6  ;;  %7467 = vmatprep.mubr.bf16.mxu0 %v17277_v27  ;;  %v7737_v6 = vor.u32 %v7736_v60, %v7733_v9  ;;  %v14370_v9 = vld [vmem:[#allocation21 + $0x270] ss:$8 sps:$4 sm:$0xff]   ;;  %v14372_v60 = vld [vmem:[#allocation21 + $0x274] ss:$8 sps:$4 sm:$0xff]  }
 0x515   : > { %7626 = vmatprep.subr.bf16.mxu0 %v14264_v59  ;;  %v14303_v59 = vld [vmem:[#allocation18 + $0x400] ss:$8 sps:$4 sm:$0xff]  }
 0x518   : > { %7627 = vmatpush1.bf16.msra.mxu0 %v14262_v46  ;;  %v7746_v46 = vsel %vm4118_vm11, %v7737_v6, %v7745_v31  ;;  %v14379_v6 = vld [vmem:[#allocation21 + $0x180] ss:$8 sps:$4 sm:$0xff]  }
 0x519   : > { %7628 = vmatprep.subr.bf16.mxu0 %v14268_v40  ;;  %v7750_v40 = vrot.slane %v7748_v29, 2  ;;  %v14378_v29 = vld [vmem:[#allocation21 + $0x284] ss:$8 sps:$4 sm:$0xff]  }
 0x51b   : > { %7468 = vmatmul.mubr.bf16.gmra.mrb[132].mxu0 %v16699_v62  ;;  %v7754_v2 = vor.u32 %v7753_v41, %v7750_v40  ;;  %v14387_v40 = vld [vmem:[#allocation21 + $0x194] ss:$8 sps:$4 sm:$0xff]   ;;  %v14390_v41 = vld [vmem:[#allocation21 + $0x2a4] ss:$8 sps:$4 sm:$0xff]  }
 0x51c   : > { %7629 = vmatpush1.bf16.msra.mxu0 %v14266_v13  ;;  %7477 = vmatprep.mubr.bf16.mxu0 %v17277_v27  ;;  %v16728_v13 = vcombine.low %v16660_v43, %v7709_v63  ;;  %v14384_v63 = vld [vmem:[#allocation21 + $0x294] ss:$8 sps:$4 sm:$0xff]  }
 0x51d   : > { %7630 = vmatprep.subr.bf16.mxu0 %v14271_v36  ;;  %v14311_v36 = vld [vmem:[#allocation18 + $0x424] ss:$8 sps:$4 sm:$0xff]  }
 0x51e   : > { %v7964_v48 = vrot.slane %v16728_v13, 3 }
 0x520   : > { %7631 = vmatpush1.bf16.msra.mxu0 %v14269_v26  ;;  %v7757_v26 = vshrl.u32 %v16728_v13, 16 }
 0x521   : > { %7632 = vmatprep.subr.bf16.mxu0 %v14274_v44  ;;  %v7760_v44 = vshll.u32 %v16728_v13, 16  ;;  %v14391_v13 = vld [vmem:[#allocation21 + $0x1a0] ss:$8 sps:$4 sm:$0xff]  }
 0x522   : > { %v7759_v43 = vrot.slane %v7757_v26, 2  ;;  %v14397_v26 = vld [vmem:[#allocation21 + $0x1b0] ss:$8 sps:$4 sm:$0xff]  }
 0x523   : > { %7478 = vmatmul.mubr.bf16.gmra.mrb[136].mxu0 %v12228_v28  ;;  %v7755_v28 = vsel %vm4118_vm11, %v7745_v31, %v7754_v2  ;;  %v7762_v37 = vrot.slane %v7760_v44, 3  ;;  %v14375_v31 = vld [vmem:[#allocation21 + $0x174] ss:$8 sps:$4 sm:$0xff]  }
 0x524   : > { %7633 = vmatpush1.bf16.msra.mxu0 %v14272_v25  ;;  %7652 = vmatprep.mubr.bf16.mxu0 %v17277_v27  ;;  %v14314_v25 = vld [vmem:[#allocation18 + $0x434] ss:$8 sps:$4 sm:$0xff]  }
 0x525   : > { %7634 = vmatprep.subr.bf16.mxu0 %v14277_v39  ;;  %v14312_v39 = vld [vmem:[#allocation18 + $0x430] ss:$8 sps:$4 sm:$0xff]   ;;  %v7763_v20 = vor.u32 %v7762_v37, %v7759_v43  ;;  %v6227_v37 = vld [vmem:[#allocation8 + $0x40] sm:$0xff] }
 0x526   : > { %v14399_v44 = vld [vmem:[#allocation21 + $0x1b4] ss:$8 sps:$4 sm:$0xff]   ;;  %v14405_v43 = vld [vmem:[#allocation21 + $0x1c4] ss:$8 sps:$4 sm:$0xff]  }
 0x527   : > { %v7764_v32 = vsel %vm4118_vm11, %v7754_v2, %v7763_v20  ;;  %v14394_v2 = vld [vmem:[#allocation21 + $0x2b0] ss:$8 sps:$4 sm:$0xff]  }
 0x528   : > { %7635 = vmatpush1.bf16.msra.mxu0 %v14275_v15  ;;  %v14317_v15 = vld [vmem:[#allocation18 + $0x444] ss:$8 sps:$4 sm:$0xff]  }
 0x529   : > { %7849 = vmatprep.subr.bf16.mxu0 %v14281_v56  ;;  %v14315_v56 = vld [vmem:[#allocation18 + $0x440] ss:$8 sps:$4 sm:$0xff]  }
 0x52b   : > { %7653 = vmatmul.mubr.bf16.vlgmr.msra.gmra.mrb[124].mxu0 %v7531_v14  ;;  %v14321_v14 = vld [vmem:[#allocation18 + $0x460] ss:$8 sps:$4 sm:$0xff]  }
 0x52c   : > { %7850 = vmatpush1.bf16.msra.mxu0 %v14279_v19  ;;  %7662 = vmatprep.mubr.bf16.mxu0 %v17277_v27  ;;  %v14318_v19 = vld [vmem:[#allocation18 + $0x450] ss:$8 sps:$4 sm:$0xff]  }
 0x52d   : > { %7851 = vmatprep.subr.bf16.mxu0 %v14284_v47  ;;  %v14323_v47 = vld [vmem:[#allocation18 + $0x464] ss:$8 sps:$4 sm:$0xff]  }
 0x530   : > { %7852 = vmatpush1.bf16.msra.mxu0 %v14282_v34  ;;  %v14326_v34 = vld [vmem:[#allocation18 + $0x474] ss:$8 sps:$4 sm:$0xff]  }
 0x531   : > { %7853 = vmatprep.subr.bf16.mxu0 %v14287_v54  ;;  %v7938_v54 = vld [vmem:[#allocation7 + $0x4] sm:$0x8] }
 0x533   : > { %7663 = vmatmul.mubr.bf16.gmra.mrb[128].mxu0 %v7533_v10 }
 0x534   : > { %7854 = vmatpush1.bf16.msra.mxu0 %v14285_v38  ;;  %7672 = vmatprep.mubr.bf16.mxu0 %v17277_v27  ;;  %v12280_v38 = vcombine.low %v7938_v54, %v16643_v52  ;;  %v7962_v52 = vrot.slane %v16699_v62, 3  ;;  %v14420_v54 = vld [vmem:[#allocation21 + $0x2f4] ss:$8 sps:$4 sm:$0xff]  }
 0x535   : > { %7855 = vmatprep.subr.bf16.mxu0 %v14290_v42  ;;  %v14333_v42 = vld [vmem:[#allocation21 + $0x104] ss:$8 sps:$4 sm:$0xff]  }
 0x536   : > { %v7959_v10 = vrot.slane %v12280_v38, 3  ;;  %v7965_v62 = vsel %vm17296_vm12, %v7962_v52, %v7964_v48  ;;  %v14418_v38 = vld [vmem:[#allocation21 + $0x2f0] ss:$8 sps:$4 sm:$0xff]  }
 0x538   : > { %7856 = vmatpush1.bf16.msra.mxu0 %v14288_v3  ;;  %v14331_v3 = vld [vmem:[#allocation21 + $0x100] ss:$8 sps:$4 sm:$0xff]  }
 0x539   : > { %7857 = vmatprep.subr.bf16.mxu0 %v14293_v22  ;;  %v7961_v22 = vsel %vm17294_vm4, %v7959_v10, %v7960_v33  ;;  %vm6219_vm4 = vmor %vm6218_vm13, %vm6216_vm0  ;;  %v14429_v10 = vld [vmem:[#allocation21 + $0x4] ss:$8 sps:$4 sm:$0xff]  }
 0x53a   : > { %v6221_v30 = vsel %vm6219_vm4, 0, %v6220_v1 }
 0x53b   : > { %7673 = vmatmul.mubr.bf16.gmra.mrb[132].mxu0 %v7535_v53  ;;  %v7963_v53 = vsel %vm17295_vm8, %v7960_v33, %v7962_v52  ;;  %6222 = vst [vmem:[#allocation8] sm:$0xff] %v6221_v30  ;;  %vm17299_vm8 = vmmov %vm17298_vm5  ;;  %v14426_v33 = vld [vmem:[#allocation21 + $0x304] ss:$8 sps:$4 sm:$0xff]  }
 0x53c   : > { %7858 = vmatpush1.bf16.msra.mxu0 %v14291_v5  ;;  %7682 = vmatprep.mubr.bf16.mxu0 %v17277_v27  ;;  %v14345_v5 = vld [vmem:[#allocation21 + $0x124] ss:$8 sps:$4 sm:$0xff]   ;;  %vm6223_vm12 = vmand %vm17299_vm8, %vm2219_vm14  ;;  %vm8375_vm14 = vcmask 1047559   ;;  %vm8286_vm8 = vsmask.f32 7440 }
 0x53d   : > { %7859 = vmatprep.subr.bf16.mxu0 %v14296_v35  ;;  %v14343_v35 = vld [vmem:[#allocation21 + $0x120] ss:$8 sps:$4 sm:$0xff]   ;;  %vm6225_vm5 = vmand %vm6217_vm6, %vm6224_vm2  ;;  %vm8376_vm6 = vsmask.f32 7966 }
 0x53e   : > { %vm6226_vm0 = vmor %vm6225_vm5, %vm6223_vm12  ;;  %vm17302_vm12 = vsmask.f32 3328 }
 0x53f   : > { %vm16770_vm13 = vmand %vm8375_vm14, %vm8376_vm6 }
 0x540   : > { %7860 = vmatpush1.bf16.msra.mxu0 %v14294_v61  ;;  %v14349_v61 = vld [vmem:[#allocation21 + $0x130] ss:$8 sps:$4 sm:$0xff]   ;;  %vm8378_vm4 = vmor %vm16770_vm13, %vm16499_vm10  ;;  %vm8389_vm10 = vcmask 1044484  }
 0x541   : > { %7861 = vmatprep.subr.bf16.mxu0 %v14299_v57  ;;  %v14357_v57 = vld [vmem:[#allocation21 + $0x144] ss:$8 sps:$4 sm:$0xff]   ;;  %vm16789_vm2 = vmor %vm17302_vm12, %vm8286_vm8 }
 0x542   : > { %vm16820_vm5 = vmand %vm8389_vm10, %vm7096_vm9 }
 0x543   : > { %7683 = vmatmul.mubr.bf16.gmra.mrb[136].mxu0 %v7534_v7  ;;  %v14337_v7 = vld [vmem:[#allocation21 + $0x110] ss:$8 sps:$4 sm:$0xff]  }
 0x544   : > { %7862 = vmatpush1.bf16.msra.mxu0 %v14297_v4  ;;  %7881 = vmatprep.mubr.bf16.mxu0 %v17277_v27  ;;  %v14363_v4 = vld [vmem:[#allocation21 + $0x154] ss:$8 sps:$4 sm:$0xff]  }
 0x545   : > { %7863 = vmatprep.subr.bf16.mxu0 %v14302_v58  ;;  %v14366_v58 = vld [vmem:[#allocation21 + $0x264] ss:$8 sps:$4 sm:$0xff]  }
 0x546   : > { %9288 = vmatprep.subr.bf16.mxu1 %v14366_v58 }
 0x547   : > { %9289 = vmatpush1.bf16.msra.mxu1 %v14364_v11 }
 0x548   : > { %7864 = vmatpush1.bf16.msra.mxu0 %v14300_v8  ;;  %v14369_v8 = vld [vmem:[#allocation21 + $0x164] ss:$8 sps:$4 sm:$0xff]   ;;  %9290 = vmatprep.subr.bf16.mxu1 %v14372_v60 }
 0x549   : > { %8050 = vmatprep.subr.bf16.mxu0 %v14305_v55  ;;  %v14373_v55 = vld [vmem:[#allocation21 + $0x170] ss:$8 sps:$4 sm:$0xff]  }
 0x54b   : > { %7882 = vmatmul.mubr.bf16.vlgmr.msra.gmra.mrb[124].mxu0 %v7746_v46  ;;  %9291 = vmatpush1.bf16.msra.mxu1 %v14370_v9  ;;  %v14385_v46 = vld [vmem:[#allocation21 + $0x190] ss:$8 sps:$4 sm:$0xff]  }
 0x54c   : > { %8051 = vmatpush1.bf16.msra.mxu0 %v14303_v59  ;;  %7891 = vmatprep.mubr.bf16.mxu0 %v17277_v27  ;;  %v14381_v59 = vld [vmem:[#allocation21 + $0x184] ss:$8 sps:$4 sm:$0xff]  }
 0x54d   : > { %8052 = vmatprep.subr.bf16.mxu0 %v14308_v16  ;;  %9292 = vmatprep.subr.bf16.mxu1 %v14378_v29  ;;  %v14382_v16 = vld [vmem:[#allocation21 + $0x290] ss:$8 sps:$4 sm:$0xff]  }
 0x54f   : > { %9293 = vmatpush1.bf16.msra.mxu1 %v14376_v18 }
 0x550   : > { %8053 = vmatpush1.bf16.msra.mxu0 %v14306_v21  ;;  %9294 = vmatprep.subr.bf16.mxu1 %v14384_v63  ;;  %v14388_v21 = vld [vmem:[#allocation21 + $0x2a0] ss:$8 sps:$4 sm:$0xff]  }
 0x551   : > { %8054 = vmatprep.subr.bf16.mxu0 %v14311_v36  ;;  %v14393_v36 = vld [vmem:[#allocation21 + $0x1a4] ss:$8 sps:$4 sm:$0xff]  }
 0x553   : > { %7892 = vmatmul.mubr.bf16.gmra.mrb[128].mxu0 %v7755_v28  ;;  %9295 = vmatpush1.bf16.msra.mxu1 %v14382_v16  ;;  %v14400_v28 = vld [vmem:[#allocation21 + $0x2c0] ss:$8 sps:$4 sm:$0xff]  }
 0x554   : > { %8055 = vmatpush1.bf16.msra.mxu0 %v14309_v0  ;;  %7901 = vmatprep.mubr.bf16.mxu0 %v17277_v27  ;;  %v14396_v0 = vld [vmem:[#allocation21 + $0x2b4] ss:$8 sps:$4 sm:$0xff]  }
 0x555   : > { %8056 = vmatprep.subr.bf16.mxu0 %v14314_v25  ;;  %9296 = vmatprep.subr.bf16.mxu1 %v14390_v41  ;;  %v14402_v25 = vld [vmem:[#allocation21 + $0x2c4] ss:$8 sps:$4 sm:$0xff]  }
 0x557   : > { %9297 = vmatpush1.bf16.msra.mxu1 %v14388_v21 }
 0x558   : > { %8057 = vmatpush1.bf16.msra.mxu0 %v14312_v39  ;;  %9298 = vmatprep.subr.bf16.mxu1 %v14396_v0  ;;  %v14403_v39 = vld [vmem:[#allocation21 + $0x1c0] ss:$8 sps:$4 sm:$0xff]  }
 0x559   : > { %8058 = vmatprep.subr.bf16.mxu0 %v14317_v15  ;;  %v6228_v15 = vsel %vm6226_vm0, 0, %v6227_v37  ;;  %vm8391_vm0 = vmor %vm16820_vm5, %vm16526_vm7 }
 0x55a   : > { %6229 = vst [vmem:[#allocation8 + $0x40] sm:$0xff] %v6228_v15 }
 0x55b   : > { %7902 = vmatmul.mubr.bf16.gmra.mrb[132].mxu0 %v7764_v32  ;;  %9299 = vmatpush1.bf16.msra.mxu1 %v14394_v2  ;;  %v14411_v32 = vld [vmem:[#allocation21 + $0x1d4] ss:$8 sps:$4 sm:$0xff]  }
 0x55c   : > { %8059 = vmatpush1.bf16.msra.mxu0 %v14315_v56  ;;  %7911 = vmatprep.mubr.bf16.mxu0 %v17277_v27  ;;  %v14408_v56 = vld [vmem:[#allocation21 + $0x2d4] ss:$8 sps:$4 sm:$0xff]  }
 0x55d   : > { %8060 = vmatprep.subr.bf16.mxu0 %v14320_v12  ;;  %9300 = vmatprep.subr.bf16.mxu1 %v14402_v25  ;;  %v14409_v12 = vld [vmem:[#allocation21 + $0x1d0] ss:$8 sps:$4 sm:$0xff]  }
 0x55f   : > { %9301 = vmatpush1.bf16.msra.mxu1 %v14400_v28 }
 0x560   : > { %8061 = vmatpush1.bf16.msra.mxu0 %v14318_v19  ;;  %9302 = vmatprep.subr.bf16.mxu1 %v14408_v56  ;;  %v14414_v19 = vld [vmem:[#allocation21 + $0x2e4] ss:$8 sps:$4 sm:$0xff]  }
 0x561   : > { %8062 = vmatprep.subr.bf16.mxu0 %v14323_v47  ;;  %v14412_v47 = vld [vmem:[#allocation21 + $0x2e0] ss:$8 sps:$4 sm:$0xff]  }
 0x563   : > { %7912 = vmatmul.mubr.bf16.gmra.mrb[136].mxu0 %v7763_v20  ;;  %v14406_v20 = vld [vmem:[#allocation21 + $0x2d0] ss:$8 sps:$4 sm:$0xff]  }
 0x564   : > { %8063 = vmatpush1.bf16.msra.mxu0 %v14321_v14  ;;  %8082 = vmatprep.mubr.bf16.mxu0 %v17277_v27  ;;  %v14417_v14 = vld [vmem:[#allocation21 + $0x1e4] ss:$8 sps:$4 sm:$0xff]  }
 0x565   : > { %8064 = vmatprep.subr.bf16.mxu0 %v14326_v34  ;;  %9303 = vmatpush1.bf16.msra.mxu1 %v14406_v20  ;;  %v14415_v34 = vld [vmem:[#allocation21 + $0x1e0] ss:$8 sps:$4 sm:$0xff]  }
 0x566   : > { %9304 = vmatprep.subr.bf16.mxu1 %v14414_v19 }
 0x568   : > { %8065 = vmatpush1.bf16.msra.mxu0 %v14324_v50  ;;  %v14423_v50 = vld [vmem:[#allocation21 + $0x1f4] ss:$8 sps:$4 sm:$0xff]  }
 0x569   : > { %8736 = vmatprep.subr.bf16.mxu0 %v14333_v42  ;;  %9305 = vmatpush1.bf16.msra.mxu1 %v14412_v47  ;;  %v14421_v42 = vld [vmem:[#allocation21 + $0x1f0] ss:$8 sps:$4 sm:$0xff]  }
 0x56a   : > { %9306 = vmatprep.subr.bf16.mxu1 %v14420_v54 }
 0x56b   : > { %8083 = vmatmul.mubr.bf16.vlgmr.msra.gmra.mrb[124].mxu0 %v7961_v22 }
 0x56c   : > { %8092 = vmatprep.mubr.bf16.mxu0 %v17277_v27  ;;  %8737 = vmatpush1.bf16.msra.mxu0 %v14331_v3  ;;  %v8140_v3 = vlaneseq }
 0x56d   : > { %8738 = vmatprep.subr.bf16.mxu0 %v14339_v17  ;;  %9307 = vmatpush1.bf16.msra.mxu1 %v14418_v38 }
 0x56e   : > { %9592 = vmatprep.subr.bf16.mxu1 %v14426_v33  ;;  %v16754_v17 = vshrl.u32 %v8140_v3, 7 }
 0x570   : > { %8739 = vmatpush1.bf16.msra.mxu0 %v14337_v7  ;;  %v8142_v22 = vsub.s32 0, %v16754_v17  ;;  %v6230_v7 = vld [vmem:[#allocation20] sm:$0x3] }
 0x571   : > { %8740 = vmatprep.subr.bf16.mxu0 %v14345_v5  ;;  %v8146_v5 = vsub.s32 1, %v16754_v17 }
 0x572   : > { %v16760_v52 = vrot.slane %v6230_v7, %v8142_v22 }
 0x573   : > { %8093 = vmatmul.mubr.bf16.gmra.mrb[128].mxu0 %v7963_v53 }
 0x574   : > { %8102 = vmatprep.mubr.bf16.mxu0 %v17277_v27  ;;  %8741 = vmatpush1.bf16.msra.mxu0 %v14343_v35  ;;  %v16764_v35 = vrot.slane %v6230_v7, %v8146_v5 }
 0x575   : > { %8742 = vmatprep.subr.bf16.mxu0 %v14351_v51  ;;  %v8193_v51 = vpop.permute.xlu0 %8192 }
 0x578   : > { %8743 = vmatpush1.bf16.msra.mxu0 %v14349_v61 }
 0x579   : > { %8744 = vmatprep.subr.bf16.mxu0 %v14357_v57 }
 0x57b   : > { %8103 = vmatmul.mubr.bf16.gmra.mrb[132].mxu0 %v7965_v62 }
 0x57c   : > { %8112 = vmatprep.mubr.bf16.mxu0 %v17277_v27  ;;  %8745 = vmatpush1.bf16.msra.mxu0 %v14355_v23  ;;  %v14367_v27 = vld [vmem:[#allocation21 + $0x160] ss:$8 sps:$4 sm:$0xff]  }
 0x57d   : > { %8746 = vmatprep.subr.bf16.mxu0 %v14363_v4 }
 0x580   : > { %8747 = vmatpush1.bf16.msra.mxu0 %v14361_v49 }
 0x581   : > { %8748 = vmatprep.subr.bf16.mxu0 %v14369_v8 }
 0x583   : > { %8113 = vmatmul.mubr.bf16.gmra.mrb[136].mxu0 %v7964_v48 }
 0x584   : > { %8749 = vmatpush1.bf16.msra.mxu0 %v14367_v27  ;;  %v8198_v27 = vpop.permute.xlu0 %8197 }
 0x585   : > { %8750 = vmatprep.subr.bf16.mxu0 %v14375_v31 }
 0x588   : > { %8751 = vmatpush1.bf16.msra.mxu0 %v14373_v55  ;;  %v8203_v55 = vpop.permute.xlu1 %8202 }
 0x589   : > { %8752 = vmatprep.subr.bf16.mxu0 %v14381_v59 }
 0x58c   : > { %8753 = vmatpush1.bf16.msra.mxu0 %v14379_v6  ;;  %v8208_v20 = vpop.permute.xlu1 %8207 }
 0x58d   : > { %8754 = vmatprep.subr.bf16.mxu0 %v14387_v40 }
 0x590   : > { %8755 = vmatpush1.bf16.msra.mxu0 %v14385_v46 }
 0x591   : > { %8756 = vmatprep.subr.bf16.mxu0 %v14393_v36 }
 0x594   : > { %8757 = vmatpush1.bf16.msra.mxu0 %v14391_v13  ;;  %v8379_v13 = vld [vmem:[#allocation8] sm:$0x88] }
 0x595   : > { %8758 = vmatprep.subr.bf16.mxu0 %v14399_v44 }
 0x598   : > { %8759 = vmatpush1.bf16.msra.mxu0 %v14397_v26 }
 0x599   : > { %8760 = vmatprep.subr.bf16.mxu0 %v14405_v43 }
 0x59c   : > { %8761 = vmatpush1.bf16.msra.mxu0 %v14403_v39 }
 0x59d   : > { %8762 = vmatprep.subr.bf16.mxu0 %v14411_v32 }
 0x5a0   : > { %8763 = vmatpush1.bf16.msra.mxu0 %v14409_v12 }
 0x5a1   : > { %8764 = vmatprep.subr.bf16.mxu0 %v14417_v14 }
 0x5a4   : > { %8765 = vmatpush1.bf16.msra.mxu0 %v14415_v34 }
 0x5a5   : > { %8766 = vmatprep.subr.bf16.mxu0 %v14423_v50 }
 0x5a8   : > { %8767 = vmatpush1.bf16.msra.mxu0 %v14421_v42 }
 0x5a9   : > { %8982 = vmatprep.subr.bf16.mxu0 %v14429_v10 }
 0x63e   : > { %v8084_v53 = vpop.f32.mrb[124].mxu0 }
 0x63f   : > { %v8150_v61 = vadd.f32 %v16760_v52, %v8084_v53  ;;  %v8086_v57 = vpop.f32.mrb[125].mxu0 }
 0x640   : > { %v8151_v48 = vadd.f32 %v16764_v35, %v8086_v57  ;;  %v8088_v23 = vpop.f32.mrb[126].mxu0 }
 0x641   : > { %v8166_v4 = vmax.f32 %v8150_v61, 0.0  ;;  %v8152_v62 = vadd.f32 %v16760_v52, %v8088_v23  ;;  %v8090_v49 = vpop.f32.mrb[127].mxu0 }
 0x642   : > { %v8167_v11 = vmax.f32 %v8151_v48, 0.0  ;;  %v8153_v58 = vadd.f32 %v16764_v35, %v8090_v49 }
 0x643   : > { %v8230_v1 = vmul.f32 %v8193_v51, %v8166_v4  ;;  %v8168_v30 = vmax.f32 %v8152_v62, 0.0 }
 0x644   : > { %v8231_v8 = vmul.f32 %v8193_v51, %v8167_v11  ;;  %v8169_v9 = vmax.f32 %v8153_v58, 0.0 }
 0x645   : > { %v8232_v60 = vmul.f32 %v8198_v27, %v8168_v30 }
 0x646   : > { %v12686_v31 = vpack.c.bf16 %v8231_v8, %v8230_v1  ;;  %v8233_v18 = vmul.f32 %v8198_v27, %v8169_v9  ;;  %v8094_v6 = vpop.f32.mrb[128].mxu0  ;;  %v8213_v1 = vpop.permute.xlu0 %8212 }
 0x647   : > { %v8154_v59 = vadd.f32 %v16760_v52, %v8094_v6  ;;  %v8096_v16 = vpop.f32.mrb[129].mxu0  ;;  %v8218_v6 = vpop.permute.xlu1 %8217 }
 0x648   : > { %v8289_v63 = vshll.u32 %v12686_v31, 16  ;;  %v8292_v46 = vshrl.u32 %v12686_v31, 16  ;;  %v12687_v40 = vpack.c.bf16 %v8233_v18, %v8232_v60  ;;  %v8155_v41 = vadd.f32 %v16764_v35, %v8096_v16  ;;  %v8098_v21 = vpop.f32.mrb[130].mxu0 }
 0x649   : > { %v8170_v36 = vmax.f32 %v8154_v59, 0.0  ;;  %v8156_v2 = vadd.f32 %v16760_v52, %v8098_v21  ;;  %v8100_v0 = vpop.f32.mrb[131].mxu0 }
 0x64a   : > { %v8291_v26 = vrot.slane %v8289_v63, 5  ;;  %v8294_v44 = vrot.slane %v8292_v46, 4  ;;  %v8298_v25 = vshll.u32 %v12687_v40, 16  ;;  %v8302_v28 = vshrl.u32 %v12687_v40, 16 }
 0x64b   : > { %v8234_v39 = vmul.f32 %v8203_v55, %v8170_v36  ;;  %v8171_v43 = vmax.f32 %v8155_v41, 0.0  ;;  %v8172_v37 = vmax.f32 %v8156_v2, 0.0  ;;  %v8157_v15 = vadd.f32 %v16764_v35, %v8100_v0 }
 0x64c   : > { %v8295_v56 = vor.u32 %v8294_v44, %v8291_v26  ;;  %v8380_v12 = vsel %vm8378_vm4, %v8291_v26, %v8379_v13  ;;  %v8300_v32 = vrot.slane %v8298_v25, 5  ;;  %v8304_v19 = vrot.slane %v8302_v28, 4 }
 0x64d   : > { %8381 = vst [vmem:[#allocation8] sm:$0x88] %v8380_v12  ;;  %v8235_v14 = vmul.f32 %v8203_v55, %v8171_v43  ;;  %v8236_v34 = vmul.f32 %v8208_v20, %v8172_v37  ;;  %v8173_v54 = vmax.f32 %v8157_v15, 0.0 }
 0x64e   : > { %v8296_v50 = vrot.slane %v8295_v56, 4  ;;  %v8305_v38 = vor.u32 %v8304_v19, %v8300_v32  ;;  %v8104_v42 = vpop.f32.mrb[132].mxu0 }
 0x64f   : > { %v12688_v33 = vpack.c.bf16 %v8235_v14, %v8234_v39  ;;  %v8237_v10 = vmul.f32 %v8208_v20, %v8173_v54  ;;  %v8158_v24 = vadd.f32 %v16760_v52, %v8104_v42  ;;  %v8106_v3 = vpop.f32.mrb[133].mxu0  ;;  %v8223_v14 = vpop.permute.xlu0 %8222 }
 0x650   : > { %v16796_v7 = vsel %vm16789_vm2, %v8296_v50, %v8300_v32  ;;  %v8159_v51 = vadd.f32 %v16764_v35, %v8106_v3  ;;  %v8108_v53 = vpop.f32.mrb[134].mxu0  ;;  %v8306_v62 = vrot.slane %v8305_v38, 4  ;;  %v8228_v3 = vpop.permute.xlu1 %8227 }
 0x651   : > { %8382 = vst [vmem:[#allocation8 + $0x8] sm:$0xff] %v16796_v7  ;;  %v8308_v61 = vshll.u32 %v12688_v33, 16  ;;  %v8312_v57 = vshrl.u32 %v12688_v33, 16  ;;  %v12689_v48 = vpack.c.bf16 %v8237_v10, %v8236_v34  ;;  %v8174_v23 = vmax.f32 %v8158_v24, 0.0  ;;  %v8110_v4 = vpop.f32.mrb[135].mxu0 }
 0x652   : > { %v8175_v49 = vmax.f32 %v8159_v51, 0.0  ;;  %v8160_v11 = vadd.f32 %v16760_v52, %v8108_v53  ;;  %v8161_v58 = vadd.f32 %v16764_v35, %v8110_v4 }
 0x653   : > { %v8310_v30 = vrot.slane %v8308_v61, 5  ;;  %v8314_v27 = vrot.slane %v8312_v57, 4  ;;  %v8318_v8 = vshll.u32 %v12689_v48, 16  ;;  %v8322_v9 = vshrl.u32 %v12689_v48, 16 }
 0x654   : > { %v8238_v60 = vmul.f32 %v8213_v1, %v8174_v23  ;;  %v8239_v55 = vmul.f32 %v8213_v1, %v8175_v49  ;;  %v8176_v31 = vmax.f32 %v8160_v11, 0.0  ;;  %v8177_v29 = vmax.f32 %v8161_v58, 0.0  ;;  %v9055_v18 = vld [vmem:[#allocation8] sm:$0xee] }
 0x655   : > { %v8311_v59 = vsel %vm16789_vm2, %v8306_v62, %v8310_v30  ;;  %v8315_v16 = vor.u32 %v8314_v27, %v8310_v30  ;;  %v8320_v63 = vrot.slane %v8318_v8, 5  ;;  %v8324_v46 = vrot.slane %v8322_v9, 4  ;;  %v8400_v62 = vld [vmem:[#allocation8] sm:$0xff] }
 0x656   : > { %8383 = vst [vmem:[#allocation8 + $0x10] sm:$0xff] %v8311_v59  ;;  %v12690_v40 = vpack.c.bf16 %v8239_v55, %v8238_v60  ;;  %v8240_v41 = vmul.f32 %v8218_v6, %v8176_v31  ;;  %v8241_v21 = vmul.f32 %v8218_v6, %v8177_v29  ;;  %v8114_v13 = vpop.f32.mrb[136].mxu0  ;;  %v12380_v36 = vcombine.low %v9055_v18, %v16796_v7  ;;  %v14433_v30 = vld [vmem:[#allocation21 + $0x10] ss:$8 sps:$4 sm:$0xff]  }
 0x657   : > { %v8316_v2 = vrot.slane %v8315_v16, 4  ;;  %v8325_v0 = vor.u32 %v8324_v46, %v8320_v63  ;;  %v8162_v26 = vadd.f32 %v16760_v52, %v8114_v13  ;;  %v8116_v44 = vpop.f32.mrb[137].mxu0  ;;  %v12381_v25 = vcombine.high %v9055_v18, %v16796_v7  ;;  %v8392_v46 = vld [vmem:[#allocation8 + $0x40] sm:$0x11] }
 0x658   : > { %v8328_v28 = vshll.u32 %v12690_v40, 16  ;;  %v8332_v39 = vshrl.u32 %v12690_v40, 16  ;;  %v12691_v43 = vpack.c.bf16 %v8241_v21, %v8240_v41  ;;  %v8163_v37 = vadd.f32 %v16764_v35, %v8116_v44  ;;  %v8118_v15 = vpop.f32.mrb[138].mxu0  ;;  %v14432_v13 = vld [vmem:[#allocation21 + $0x314] ss:$8 sps:$4 sm:$0xff]  }
 0x659   : > { %v8321_v20 = vsel %vm16789_vm2, %v8316_v2, %v8320_v63  ;;  %v8326_v56 = vrot.slane %v8325_v0, 4  ;;  %v8178_v12 = vmax.f32 %v8162_v26, 0.0  ;;  %v8164_v32 = vadd.f32 %v16760_v52, %v8118_v15  ;;  %v8120_v19 = vpop.f32.mrb[139].mxu0 }
 0x65a   : > { %8384 = vst [vmem:[#allocation8 + $0x18] sm:$0xff] %v8321_v20  ;;  %v8330_v34 = vrot.slane %v8328_v28, 5  ;;  %v8334_v54 = vrot.slane %v8332_v39, 4  ;;  %v8338_v50 = vshll.u32 %v12691_v43, 16  ;;  %v8342_v38 = vshrl.u32 %v12691_v43, 16 }
 0x65b   : > { %v8242_v42 = vmul.f32 %v8223_v14, %v8178_v12  ;;  %v8179_v33 = vmax.f32 %v8163_v37, 0.0  ;;  %v8180_v10 = vmax.f32 %v8164_v32, 0.0  ;;  %v8165_v24 = vadd.f32 %v16764_v35, %v8120_v19 }
 0x65c   : > { %v8331_v51 = vsel %vm16789_vm2, %v8326_v56, %v8330_v34  ;;  %v8335_v53 = vor.u32 %v8334_v54, %v8330_v34  ;;  %v8340_v61 = vrot.slane %v8338_v50, 5  ;;  %v8344_v57 = vrot.slane %v8342_v38, 4  ;;  %v14430_v56 = vld [vmem:[#allocation21 + $0x310] ss:$8 sps:$4 sm:$0xff]   ;;  %v14438_v34 = vld [vmem:[#allocation21 + $0x324] ss:$8 sps:$4 sm:$0xff]  }
 0x65d   : > { %8385 = vst [vmem:[#allocation8 + $0x20] sm:$0xff] %v8331_v51  ;;  %v8243_v52 = vmul.f32 %v8223_v14, %v8179_v33  ;;  %v8244_v48 = vmul.f32 %v8228_v3, %v8180_v10  ;;  %v8181_v23 = vmax.f32 %v8165_v24, 0.0  ;;  %v16814_v4 = vcombine.low %v8311_v59, %v8321_v20 }
 0x65e   : > { %v8336_v49 = vrot.slane %v8335_v53, 4  ;;  %v8345_v11 = vor.u32 %v8344_v57, %v8340_v61  ;;  %v16816_v58 = vcombine.high %v8311_v59, %v8321_v20  ;;  %v9094_v27 = vrot.slane %v12380_v36, 1  ;;  %v14424_v59 = vld [vmem:[#allocation21 + $0x300] ss:$8 sps:$4 sm:$0xff]  }
 0x65f   : > { %v12692_v1 = vpack.c.bf16 %v8243_v52, %v8242_v42  ;;  %v8245_v35 = vmul.f32 %v8228_v3, %v8181_v23  ;;  %v9095_v8 = vrot.slane %v16814_v4, 1  ;;  %v9097_v60 = vrot.slane %v12381_v25, 1  ;;  %v14427_v42 = vld [vmem:[#allocation21] ss:$8 sps:$4 sm:$0xff]   ;;  %v14435_v23 = vld [vmem:[#allocation21 + $0x14] ss:$8 sps:$4 sm:$0xff]  }
 0x660   : > { %v8341_v9 = vsel %vm16789_vm2, %v8336_v49, %v8340_v61  ;;  %v9098_v55 = vrot.slane %v16816_v58, 1  ;;  %v16829_v31 = vcombine.low %v8400_v62, %v16796_v7  ;;  %v8346_v63 = vrot.slane %v8345_v11, 4  ;;  %v14436_v53 = vld [vmem:[#allocation21 + $0x320] ss:$8 sps:$4 sm:$0xff]  }
 0x661   : > { %8386 = vst [vmem:[#allocation8 + $0x28] sm:$0xff] %v8341_v9  ;;  %v8348_v29 = vshll.u32 %v12692_v1, 16  ;;  %v8352_v18 = vshrl.u32 %v12692_v1, 16  ;;  %v12693_v6 = vpack.c.bf16 %v8245_v35, %v8244_v48  ;;  %v9096_v16 = vsel %vm2985_vm15, %v9094_v27, %v9095_v8  ;;  %v14444_v35 = vld [vmem:[#allocation21 + $0x334] ss:$8 sps:$4 sm:$0xff]  }
 0x662   : > { %v9099_v40 = vsel %vm2985_vm15, %v9097_v60, %v9098_v55  ;;  %v16840_v41 = vcombine.high %v8400_v62, %v16796_v7  ;;  %v8526_v21 = vshll.u32 %v16816_v58, 16  ;;  %v8507_v28 = vshrl.u32 %v16829_v31, 16 }
 0x663   : > { %v8350_v36 = vrot.slane %v8348_v29, 5  ;;  %v8354_v2 = vrot.slane %v8352_v18, 4  ;;  %v8358_v0 = vshll.u32 %v12693_v6, 16  ;;  %v8362_v26 = vshrl.u32 %v12693_v6, 16  ;;  %9308 = vmatprep.mubr.bf16.mxu1 %v9099_v40  ;;  %v14441_v29 = vld [vmem:[#allocation21 + $0x24] ss:$8 sps:$4 sm:$0xff]  }
 0x664   : > { %9309 = vmatmul.mubr.bf16.vlgmr.msra.gmra.mrb[24].mxu1 %v9096_v16  ;;  %v8519_v44 = vshrl.u32 %v16840_v41, 16  ;;  %v8521_v25 = vshll.u32 %v16840_v41, 16  ;;  %v8509_v39 = vshll.u32 %v16829_v31, 16  ;;  %v8528_v20 = vrot.slane %v8526_v21, 1  ;;  %v14439_v16 = vld [vmem:[#allocation21 + $0x20] ss:$8 sps:$4 sm:$0xff]  }
 0x665   : > { %v16849_v43 = vsel %vm16789_vm2, %v8346_v63, %v8350_v36  ;;  %v8355_v37 = vor.u32 %v8354_v2, %v8350_v36  ;;  %v8393_v15 = vsel %vm8391_vm0, %v8362_v26, %v8392_v46  ;;  %9593 = vmatpush1.bf16.msra.mxu1 %v14424_v59  ;;  %v8514_v19 = vshll.u32 %v16814_v4, 16  ;;  %v14448_v40 = vld [vmem:[#allocation21 + $0x340] ss:$8 sps:$4 sm:$0xff]   ;;  %v14447_v21 = vld [vmem:[#allocation21 + $0x34] ss:$8 sps:$4 sm:$0xff]  }
 0x666   : > { %8387 = vst [vmem:[#allocation8 + $0x30] sm:$0xff] %v16849_v43  ;;  %8394 = vst [vmem:[#allocation8 + $0x40] sm:$0x11] %v8393_v15  ;;  %v8523_v12 = vrot.slane %v8521_v25, 1  ;;  %v8511_v32 = vrot.slane %v8509_v39, 1  ;;  %9594 = vmatprep.subr.bf16.mxu1 %v14432_v13  ;;  %v16858_v14 = vcombine.high %v8331_v51, %v8341_v9  ;;  %v8360_v50 = vrot.slane %v8358_v0, 5 }
 0x667   : > { %v8356_v54 = vrot.slane %v8355_v37, 4  ;;  %v16860_v38 = vcombine.low %v8331_v51, %v8341_v9  ;;  %v8516_v10 = vrot.slane %v8514_v19, 1  ;;  %v8538_v57 = vshrl.u32 %v16816_v58, 16  ;;  %v14456_v2 = vld [vmem:[#allocation21 + $0x354] ss:$8 sps:$4 sm:$0xff]  }
 0x668   : > { %v8524_v45 = vor.u32 %v8523_v12, %v8519_v44  ;;  %v8512_v33 = vor.u32 %v8511_v32, %v8507_v28  ;;  %v9102_v24 = vrot.slane %v16858_v14, 1  ;;  %v8542_v52 = vshll.u32 %v16858_v14, 16  ;;  %v14445_v39 = vld [vmem:[#allocation21 + $0x30] ss:$8 sps:$4 sm:$0xff]   ;;  %v14453_v32 = vld [vmem:[#allocation21 + $0x44] ss:$8 sps:$4 sm:$0xff]  }
 0x669   : > { %v16865_v3 = vsel %vm16789_vm2, %v8356_v54, %v8360_v50  ;;  %9595 = vmatpush1.bf16.msra.mxu1 %v14430_v56  ;;  %v9100_v61 = vrot.slane %v16860_v38, 1  ;;  %v8540_v49 = vor.u32 %v8538_v57, %v8528_v20  ;;  %v8534_v1 = vshll.u32 %v16860_v38, 16  ;;  %v14454_v50 = vld [vmem:[#allocation21 + $0x350] ss:$8 sps:$4 sm:$0xff]  }
 0x66a   : > { %8388 = vst [vmem:[#allocation8 + $0x38] sm:$0xff] %v16865_v3  ;;  %v8529_v51 = vsel %vm2621_vm3, %v8524_v45, %v8528_v20  ;;  %v8517_v48 = vsel %vm2621_vm3, %v8512_v33, %v8516_v10  ;;  %v9103_v62 = vsel %vm2985_vm15, %v9098_v55, %v9102_v24  ;;  %9596 = vmatprep.subr.bf16.mxu1 %v14438_v34  ;;  %v8544_v11 = vrot.slane %v8542_v52, 1  ;;  %v14442_v55 = vld [vmem:[#allocation21 + $0x330] ss:$8 sps:$4 sm:$0xff]   ;;  %v16891_v45 = vld [vmem:[#allocation8] sm:$0x88] }
 0x66b   : > { %8768 = vmatprep.mubr.bf16.mxu0 %v8529_v51  ;;  %9318 = vmatprep.mubr.bf16.mxu1 %v9103_v62  ;;  %v9101_v47 = vsel %vm2985_vm15, %v9095_v8, %v9100_v61  ;;  %v8530_v9 = vshrl.u32 %v16814_v4, 16  ;;  %v8536_v60 = vrot.slane %v8534_v1, 1  ;;  %v14450_v8 = vld [vmem:[#allocation21 + $0x344] ss:$8 sps:$4 sm:$0xff]   ;;  %v12417_v6 = vcombine.high %v16849_v43, %v16865_v3  ;;  %v14460_v52 = vld [vmem:[#allocation21 + $0x360] ss:$8 sps:$4 sm:$0xff]  }
 0x66c   : > { %8769 = vmatmul.mubr.bf16.vlgmr.msra.gmra.mrb[140].mxu0 %v8517_v48  ;;  %9319 = vmatmul.mubr.bf16.gmra.mrb[28].mxu1 %v9101_v47  ;;  %v8545_v27 = vsel %vm2621_vm3, %v8540_v49, %v8544_v11  ;;  %v12416_v59 = vcombine.low %v16849_v43, %v16865_v3  ;;  %v8554_v0 = vshrl.u32 %v16858_v14, 16  ;;  %v8546_v15 = vshrl.u32 %v16860_v38, 16  ;;  %v14462_v33 = vld [vmem:[#allocation21 + $0x364] ss:$8 sps:$4 sm:$0xff]   ;;  %v14468_v48 = vld [vmem:[#allocation21 + $0x374] ss:$8 sps:$4 sm:$0xff]  }
 0x66d   : > { %8983 = vmatpush1.bf16.msra.mxu0 %v14427_v42  ;;  %9597 = vmatpush1.bf16.msra.mxu1 %v14436_v53  ;;  %v8532_v18 = vor.u32 %v8530_v9, %v8516_v10  ;;  %v14451_v10 = vld [vmem:[#allocation21 + $0x40] ss:$8 sps:$4 sm:$0xff]   ;;  %v12415_v57 = vcombine.high %v16891_v45, %v16796_v7  ;;  %v9414_v51 = vrot.slane %v16816_v58, 3  ;;  %v14465_v62 = vld [vmem:[#allocation21 + $0x64] ss:$8 sps:$4 sm:$0xff]   ;;  %vm17319_vm2 = vcmask 1043456  }
 0x66e   : > { %8984 = vmatprep.subr.bf16.mxu0 %v14435_v23  ;;  %8778 = vmatprep.mubr.bf16.mxu0 %v8545_v27  ;;  %v8556_v37 = vor.u32 %v8554_v0, %v8544_v11  ;;  %v8548_v34 = vor.u32 %v8546_v15, %v8536_v60  ;;  %v14457_v23 = vld [vmem:[#allocation21 + $0x50] ss:$8 sps:$4 sm:$0xff]   ;;  %v14463_v27 = vld [vmem:[#allocation21 + $0x60] ss:$8 sps:$4 sm:$0xff]   ;;  %v14486_v0 = vld [vmem:[#allocation21 + $0x3a4] ss:$8 sps:$4 sm:$0xff]  }
 0x66f   : > { %9598 = vmatprep.subr.bf16.mxu1 %v14444_v35  ;;  %v8537_v63 = vsel %vm2621_vm3, %v8532_v18, %v8536_v60  ;;  %v9413_v47 = vrot.slane %v12415_v57, 3  ;;  %v14466_v49 = vld [vmem:[#allocation21 + $0x370] ss:$8 sps:$4 sm:$0xff]   ;;  %v14474_v35 = vld [vmem:[#allocation21 + $0x384] ss:$8 sps:$4 sm:$0xff]   ;;  %vm17320_vm10 = vmmov %vm17319_vm2 }
 0x670   : > { %v14471_v60 = vld [vmem:[#allocation21 + $0x74] ss:$8 sps:$4 sm:$0xff]   ;;  %v16924_v15 = vld [vmem:[#allocation8 + $0x28] sm:$0xff]  ;;  %v14502_v57 = vld [vmem:[#allocation21 + $0x3d0] ss:$8 sps:$4 sm:$0xff]  }
 0x671   : > { %8985 = vmatpush1.bf16.msra.mxu0 %v14433_v30  ;;  %9599 = vmatpush1.bf16.msra.mxu1 %v14442_v55  ;;  %v8440_v46 = vld [vmem:[#allocation8 + $0x38] sm:$0x33]  ;;  %v16901_v30 = vld [vmem:[#allocation8 + $0x10] sm:$0xff]  ;;  %v16903_v55 = vld [vmem:[#allocation8 + $0x8] sm:$0xff] }
 0x672   : > { %8986 = vmatprep.subr.bf16.mxu0 %v14441_v29  ;;  %v12313_v13 = vcombine.high %v16849_v43, %v8440_v46  ;;  %9600 = vmatprep.subr.bf16.mxu1 %v14450_v8  ;;  %v12312_v36 = vcombine.low %v16849_v43, %v8440_v46  ;;  %v14472_v29 = vld [vmem:[#allocation21 + $0x380] ss:$8 sps:$4 sm:$0xff]   ;;  %v12493_v8 = vcombine.high %v16903_v55, %v16901_v30  ;;  %v14480_v18 = vld [vmem:[#allocation21 + $0x394] ss:$8 sps:$4 sm:$0xff]   ;;  %v14469_v46 = vld [vmem:[#allocation21 + $0x70] ss:$8 sps:$4 sm:$0xff]  }
 0x673   : > { %v14535_v3 = vld [vmem:[#allocation21 + $0x450] ss:$8 sps:$4 sm:$0xff]   ;;  %vm17321_vm5 = vmmov %vm17319_vm2 }
 0x674   : > { %8779 = vmatmul.mubr.bf16.gmra.mrb[144].mxu0 %v8537_v63  ;;  %v9106_v26 = vrot.slane %v12313_v13, 1  ;;  %v9104_v44 = vrot.slane %v12312_v36, 1  ;;  %v8558_v25 = vshll.u32 %v12313_v13, 16  ;;  %v8550_v28 = vshll.u32 %v12312_v36, 16  ;;  %vm17322_vm0 = vmmov %vm17319_vm2 }
 0x675   : > { %8987 = vmatpush1.bf16.msra.mxu0 %v14439_v16  ;;  %9601 = vmatpush1.bf16.msra.mxu1 %v14448_v40  ;;  %v8565_v54 = vshrl.u32 %v12313_v13, 16  ;;  %v8562_v1 = vshrl.u32 %v12312_v36, 16  ;;  %v16907_v16 = vld [vmem:[#allocation8 + $0x20] sm:$0xff]  ;;  %v12492_v63 = vcombine.low %v16903_v55, %v16901_v30  ;;  %v14477_v40 = vld [vmem:[#allocation21 + $0x84] ss:$8 sps:$4 sm:$0xff]  }
 0x676   : > { %8988 = vmatprep.subr.bf16.mxu0 %v14447_v21  ;;  %v9107_v20 = vsel %vm2985_vm15, %v9102_v24, %v9106_v26  ;;  %v9105_v56 = vsel %vm2985_vm15, %v9100_v61, %v9104_v44  ;;  %v8560_v12 = vrot.slane %v8558_v25, 1  ;;  %v8552_v19 = vrot.slane %v8550_v28, 1  ;;  %9602 = vmatprep.subr.bf16.mxu1 %v14456_v2  ;;  %v14459_v61 = vld [vmem:[#allocation21 + $0x54] ss:$8 sps:$4 sm:$0xff]   ;;  %v14478_v13 = vld [vmem:[#allocation21 + $0x390] ss:$8 sps:$4 sm:$0xff]  }
 0x677   : > { %9328 = vmatprep.mubr.bf16.mxu1 %v9107_v20  ;;  %v16912_v21 = vld [vmem:[#allocation8 + $0x18] sm:$0xff]  ;;  %v16922_v28 = vld [vmem:[#allocation8 + $0x30] sm:$0xff] }
 0x678   : > { %9329 = vmatmul.mubr.bf16.gmra.mrb[32].mxu1 %v9105_v56  ;;  %v8561_v42 = vsel %vm2621_vm3, %v8556_v37, %v8560_v12  ;;  %v8553_v24 = vsel %vm2621_vm3, %v8548_v34, %v8552_v19  ;;  %v8567_v53 = vor.u32 %v8565_v54, %v8560_v12  ;;  %vm17307_vm3 = vcmask 1044480   ;;  %v14492_v25 = vld [vmem:[#allocation21 + $0x3b4] ss:$8 sps:$4 sm:$0xff]   ;;  %v14489_v37 = vld [vmem:[#allocation21 + $0xa4] ss:$8 sps:$4 sm:$0xff]  }
 0x679   : > { %8989 = vmatpush1.bf16.msra.mxu0 %v14445_v39  ;;  %8788 = vmatprep.mubr.bf16.mxu0 %v8561_v42  ;;  %v9415_v11 = vsel %vm17307_vm3, %v9413_v47, %v9414_v51  ;;  %v8564_v9 = vor.u32 %v8562_v1, %v8552_v19  ;;  %v16916_v36 = vcombine.high %v16912_v21, %v16907_v16  ;;  %v14481_v39 = vld [vmem:[#allocation21 + $0x90] ss:$8 sps:$4 sm:$0xff]   ;;  %v14487_v34 = vld [vmem:[#allocation21 + $0xa0] ss:$8 sps:$4 sm:$0xff]   ;;  %v14495_v54 = vld [vmem:[#allocation21 + $0xb4] ss:$8 sps:$4 sm:$0xff]  }
 0x67a   : > { %8990 = vmatprep.subr.bf16.mxu0 %v14453_v32  ;;  %9338 = vmatprep.mubr.bf16.mxu1 %v9106_v26  ;;  %v16920_v2 = vcombine.low %v16912_v21, %v16907_v16  ;;  %v14475_v26 = vld [vmem:[#allocation21 + $0x80] ss:$8 sps:$4 sm:$0xff]   ;;  %v14490_v20 = vld [vmem:[#allocation21 + $0x3b0] ss:$8 sps:$4 sm:$0xff]   ;;  %v16928_v56 = vcombine.high %v16924_v15, %v16922_v28  ;;  %v16932_v12 = vcombine.low %v16924_v15, %v16922_v28  ;;  %v14498_v32 = vld [vmem:[#allocation21 + $0x3c4] ss:$8 sps:$4 sm:$0xff]  }
 0x67b   : > { %9603 = vmatpush1.bf16.msra.mxu1 %v14454_v50  ;;  %v16934_v19 = vld [vmem:[#allocation8 + $0x38] sm:$0xff]  ;;  %v16936_v50 = vld [vmem:[#allocation8 + $0x40] sm:$0x11]  ;;  %v14496_v42 = vld [vmem:[#allocation21 + $0x3c0] ss:$8 sps:$4 sm:$0xff]   ;;  %v12414_v1 = vcombine.low %v16891_v45, %v16796_v7 }
 0x67c   : > { %8789 = vmatmul.mubr.bf16.gmra.mrb[148].mxu0 %v8553_v24  ;;  %9604 = vmatprep.subr.bf16.mxu1 %v14462_v33  ;;  %v12499_v33 = vcombine.high %v16934_v19, %v16936_v50  ;;  %v14504_v24 = vld [vmem:[#allocation21 + $0x3d4] ss:$8 sps:$4 sm:$0xff]   ;;  %vm17308_vm15 = vmmov %vm17307_vm3 }
 0x67d   : > { %8991 = vmatpush1.bf16.msra.mxu0 %v14451_v10  ;;  %8798 = vmatprep.mubr.bf16.mxu0 %v8567_v53  ;;  %v12498_v10 = vcombine.low %v16934_v19, %v16936_v50  ;;  %v14493_v53 = vld [vmem:[#allocation21 + $0xb0] ss:$8 sps:$4 sm:$0xff]   ;;  %v14516_v47 = vld [vmem:[#allocation21 + $0x3f4] ss:$8 sps:$4 sm:$0xff]   ;;  %vm17309_vm7 = vmmov %vm17307_vm3 }
 0x67e   : > { %8992 = vmatprep.subr.bf16.mxu0 %v14459_v61  ;;  %v14501_v61 = vld [vmem:[#allocation21 + $0xc4] ss:$8 sps:$4 sm:$0xff]   ;;  %vm17310_vm14 = vmmov %vm17307_vm3 }
 0x67f   : > { %9605 = vmatpush1.bf16.msra.mxu1 %v14460_v52  ;;  %v14510_v52 = vld [vmem:[#allocation21 + $0x3e4] ss:$8 sps:$4 sm:$0xff]   ;;  %vm17311_vm6 = vmmov %vm17307_vm3 }
 0x680   : > { %9339 = vmatmul.mubr.bf16.gmra.mrb[36].mxu1 %v9104_v44  ;;  %9606 = vmatprep.subr.bf16.mxu1 %v14468_v48  ;;  %v14484_v44 = vld [vmem:[#allocation21 + $0x3a0] ss:$8 sps:$4 sm:$0xff]   ;;  %vm17312_vm13 = vmmov %vm17307_vm3 }
 0x681   : > { %8993 = vmatpush1.bf16.msra.mxu0 %v14457_v23  ;;  %9624 = vmatprep.mubr.bf16.mxu1 %v9415_v11  ;;  %v14499_v48 = vld [vmem:[#allocation21 + $0xc0] ss:$8 sps:$4 sm:$0xff]   ;;  %v14507_v23 = vld [vmem:[#allocation21 + $0xd4] ss:$8 sps:$4 sm:$0xff]   ;;  %v14513_v11 = vld [vmem:[#allocation21 + $0xe4] ss:$8 sps:$4 sm:$0xff]  }
 0x682   : > { %8994 = vmatprep.subr.bf16.mxu0 %v14465_v62  ;;  %v14508_v62 = vld [vmem:[#allocation21 + $0x3e0] ss:$8 sps:$4 sm:$0xff]  }
 0x683   : > { %9607 = vmatpush1.bf16.msra.mxu1 %v14466_v49  ;;  %v14505_v49 = vld [vmem:[#allocation21 + $0xd0] ss:$8 sps:$4 sm:$0xff]  }
 0x684   : > { %8799 = vmatmul.mubr.bf16.gmra.mrb[152].mxu0 %v8564_v9  ;;  %9608 = vmatprep.subr.bf16.mxu1 %v14474_v35  ;;  %v14514_v35 = vld [vmem:[#allocation21 + $0x3f0] ss:$8 sps:$4 sm:$0xff]   ;;  %v14511_v9 = vld [vmem:[#allocation21 + $0xe0] ss:$8 sps:$4 sm:$0xff]  }
 0x685   : > { %8995 = vmatpush1.bf16.msra.mxu0 %v14463_v27  ;;  %9014 = vmatprep.mubr.bf16.mxu0 %v16840_v41  ;;  %v14483_v41 = vld [vmem:[#allocation21 + $0x94] ss:$8 sps:$4 sm:$0xff]   ;;  %v14522_v27 = vld [vmem:[#allocation21 + $0x404] ss:$8 sps:$4 sm:$0xff]  }
 0x686   : > { %8996 = vmatprep.subr.bf16.mxu0 %v14471_v60  ;;  %v9411_v60 = vrot.slane %v16814_v4, 3 }
 0x687   : > { %9609 = vmatpush1.bf16.msra.mxu1 %v14472_v29  ;;  %v14519_v29 = vld [vmem:[#allocation21 + $0xf4] ss:$8 sps:$4 sm:$0xff]  }
 0x688   : > { %9610 = vmatprep.subr.bf16.mxu1 %v14480_v18  ;;  %v9418_v18 = vrot.slane %v16858_v14, 3 }
 0x689   : > { %8997 = vmatpush1.bf16.msra.mxu0 %v14469_v46  ;;  %v9410_v46 = vrot.slane %v12414_v1, 3 }
 0x68a   : > { %8998 = vmatprep.subr.bf16.mxu0 %v14477_v40  ;;  %v14520_v40 = vld [vmem:[#allocation21 + $0x400] ss:$8 sps:$4 sm:$0xff]   ;;  %v9419_v45 = vsel %vm17309_vm7, %v9414_v51, %v9418_v18  ;;  %vm17325_vm7 = vmmov %vm17322_vm0 }
 0x68b   : > { %9611 = vmatpush1.bf16.msra.mxu1 %v14478_v13  ;;  %v14525_v13 = vld [vmem:[#allocation21 + $0x414] ss:$8 sps:$4 sm:$0xff]   ;;  %v9412_v7 = vsel %vm17308_vm15, %v9410_v46, %v9411_v60  ;;  %v14547_v46 = vld [vmem:[#allocation21 + $0x480] ss:$8 sps:$4 sm:$0xff]   ;;  %vm17324_vm15 = vmmov %vm17322_vm0 }
 0x68c   : > { %9612 = vmatprep.subr.bf16.mxu1 %v14486_v0  ;;  %v14517_v0 = vld [vmem:[#allocation21 + $0xf0] ss:$8 sps:$4 sm:$0xff]  }
 0x68d   : > { %8999 = vmatpush1.bf16.msra.mxu0 %v14475_v26  ;;  %v14523_v26 = vld [vmem:[#allocation21 + $0x410] ss:$8 sps:$4 sm:$0xff]  }
 0x68e   : > { %9000 = vmatprep.subr.bf16.mxu0 %v14483_v41  ;;  %v14528_v41 = vld [vmem:[#allocation21 + $0x424] ss:$8 sps:$4 sm:$0xff]  }
 0x68f   : > { %9613 = vmatpush1.bf16.msra.mxu1 %v14484_v44  ;;  %v9416_v44 = vrot.slane %v16860_v38, 3 }
 0x690   : > { %9614 = vmatprep.subr.bf16.mxu1 %v14492_v25  ;;  %v9422_v25 = vrot.slane %v12417_v6, 3  ;;  %v16960_v6 = vld [vmem:[#allocation8] sm:$0x88] }
 0x691   : > { %9001 = vmatpush1.bf16.msra.mxu0 %v14481_v39  ;;  %v14526_v39 = vld [vmem:[#allocation21 + $0x420] ss:$8 sps:$4 sm:$0xff]   ;;  %v9417_v51 = vsel %vm17310_vm14, %v9411_v60, %v9416_v44  ;;  %v14544_v60 = vld [vmem:[#allocation21 + $0x470] ss:$8 sps:$4 sm:$0xff]   ;;  %vm17326_vm14 = vmmov %vm17322_vm0 }
 0x692   : > { %9002 = vmatprep.subr.bf16.mxu0 %v14489_v37  ;;  %v14531_v37 = vld [vmem:[#allocation21 + $0x434] ss:$8 sps:$4 sm:$0xff]  }
 0x693   : > { %9615 = vmatpush1.bf16.msra.mxu1 %v14490_v20  ;;  %v9423_v20 = vsel %vm17311_vm6, %v9418_v18, %v9422_v25  ;;  %vm17327_vm6 = vmmov %vm17322_vm0 }
 0x694   : > { %9616 = vmatprep.subr.bf16.mxu1 %v14498_v32  ;;  %v12453_v32 = vcombine.high %v16901_v30, %v16912_v21 }
 0x695   : > { %9003 = vmatpush1.bf16.msra.mxu0 %v14487_v34  ;;  %v14529_v34 = vld [vmem:[#allocation21 + $0x430] ss:$8 sps:$4 sm:$0xff]  }
 0x696   : > { %9004 = vmatprep.subr.bf16.mxu0 %v14495_v54  ;;  %v14534_v54 = vld [vmem:[#allocation21 + $0x444] ss:$8 sps:$4 sm:$0xff]  }
 0x697   : > { %9617 = vmatpush1.bf16.msra.mxu1 %v14496_v42  ;;  %v9786_v42 = vshrl.u32 %v12453_v32, 16 }
 0x698   : > { %9618 = vmatprep.subr.bf16.mxu1 %v14504_v24  ;;  %v9789_v24 = vshll.u32 %v12453_v32, 16 }
 0x699   : > { %9005 = vmatpush1.bf16.msra.mxu0 %v14493_v53  ;;  %v14532_v53 = vld [vmem:[#allocation21 + $0x440] ss:$8 sps:$4 sm:$0xff]  }
 0x69a   : > { %9006 = vmatprep.subr.bf16.mxu0 %v14501_v61  ;;  %v14537_v61 = vld [vmem:[#allocation21 + $0x454] ss:$8 sps:$4 sm:$0xff]  }
 0x69b   : > { %9619 = vmatpush1.bf16.msra.mxu1 %v14502_v57 }
 0x69c   : > { %9620 = vmatprep.subr.bf16.mxu1 %v14510_v52 }
 0x69d   : > { %9007 = vmatpush1.bf16.msra.mxu0 %v14499_v48 }
 0x69e   : > { %9008 = vmatprep.subr.bf16.mxu0 %v14507_v23  ;;  %v9788_v23 = vrot.slane %v9786_v42, 3 }
 0x69f   : > { %9621 = vmatpush1.bf16.msra.mxu1 %v14508_v62  ;;  %v9791_v62 = vrot.slane %v9789_v24, 4 }
 0x6a0   : > { %9622 = vmatprep.subr.bf16.mxu1 %v14516_v47  ;;  %v14540_v47 = vld [vmem:[#allocation21 + $0x464] ss:$8 sps:$4 sm:$0xff]  }
 0x6a1   : > { %9009 = vmatpush1.bf16.msra.mxu0 %v14505_v49 }
 0x6a2   : > { %9010 = vmatprep.subr.bf16.mxu0 %v14513_v11 }
 0x6a3   : > { %9623 = vmatpush1.bf16.msra.mxu1 %v14514_v35  ;;  %v14538_v35 = vld [vmem:[#allocation21 + $0x460] ss:$8 sps:$4 sm:$0xff]  }
 0x6a4   : > { %10008 = vmatprep.subr.bf16.mxu1 %v14522_v27  ;;  %v14546_v27 = vld [vmem:[#allocation21 + $0x474] ss:$8 sps:$4 sm:$0xff]  }
 0x6a5   : > { %9011 = vmatpush1.bf16.msra.mxu0 %v14511_v9 }
 0x6a6   : > { %9012 = vmatprep.subr.bf16.mxu0 %v14519_v29  ;;  %9625 = vmatmul.mubr.bf16.vlgmr.msra.gmra.mrb[24].mxu1 %v9412_v7  ;;  %v14549_v29 = vld [vmem:[#allocation21 + $0x484] ss:$8 sps:$4 sm:$0xff]   ;;  %v14558_v7 = vld [vmem:[#allocation21 + $0x4b4] ss:$8 sps:$4 sm:$0xff]  }
 0x6a7   : > { %9634 = vmatprep.mubr.bf16.mxu1 %v9419_v45  ;;  %10009 = vmatpush1.bf16.msra.mxu1 %v14520_v40  ;;  %v14550_v40 = vld [vmem:[#allocation21 + $0x490] ss:$8 sps:$4 sm:$0xff]  }
 0x6a8   : > { %10010 = vmatprep.subr.bf16.mxu1 %v14525_v13  ;;  %v14555_v13 = vld [vmem:[#allocation21 + $0x4a4] ss:$8 sps:$4 sm:$0xff]   ;;  %v14556_v45 = vld [vmem:[#allocation21 + $0x4b0] ss:$8 sps:$4 sm:$0xff]  }
 0x6a9   : > { %9013 = vmatpush1.bf16.msra.mxu0 %v14517_v0  ;;  %v14553_v0 = vld [vmem:[#allocation21 + $0x4a0] ss:$8 sps:$4 sm:$0xff]  }
 0x6ab   : > { %10011 = vmatpush1.bf16.msra.mxu1 %v14523_v26  ;;  %v14561_v26 = vld [vmem:[#allocation21 + $0x4c4] ss:$8 sps:$4 sm:$0xff]  }
 0x6ac   : > { %9015 = vmatmul.mubr.bf16.vlgmr.msra.gmra.mrb[140].mxu0 %v16829_v31  ;;  %10012 = vmatprep.subr.bf16.mxu1 %v14528_v41  ;;  %v12451_v31 = vcombine.high %v16960_v6, %v16903_v55  ;;  %v14559_v41 = vld [vmem:[#allocation21 + $0x4c0] ss:$8 sps:$4 sm:$0xff]  }
 0x6ad   : > { %9024 = vmatprep.mubr.bf16.mxu0 %v16816_v58  ;;  %v9420_v58 = vrot.slane %v12416_v59, 3  ;;  %v8407_v59 = vld [vmem:[#allocation8 + $0x38] sm:$0x11] }
 0x6ae   : > { %9635 = vmatmul.mubr.bf16.gmra.mrb[28].mxu1 %v9417_v51  ;;  %v9778_v57 = vshrl.u32 %v12451_v31, 16  ;;  %v9781_v52 = vshll.u32 %v12451_v31, 16  ;;  %v12347_v1 = vcombine.high %v16849_v43, %v8407_v59  ;;  %v12346_v18 = vcombine.low %v16849_v43, %v8407_v59  ;;  %v14564_v43 = vld [vmem:[#allocation21 + $0x4d4] ss:$8 sps:$4 sm:$0xff]   ;;  %v14567_v51 = vld [vmem:[#allocation21 + $0x4e4] ss:$8 sps:$4 sm:$0xff]  }
 0x6af   : > { %9644 = vmatprep.mubr.bf16.mxu1 %v9423_v20  ;;  %10013 = vmatpush1.bf16.msra.mxu1 %v14526_v39  ;;  %v9421_v48 = vsel %vm17312_vm13, %v9416_v44, %v9420_v58  ;;  %v12452_v44 = vcombine.low %v16901_v30, %v16912_v21  ;;  %v12450_v39 = vcombine.low %v16960_v6, %v16903_v55  ;;  %v14565_v31 = vld [vmem:[#allocation21 + $0x4e0] ss:$8 sps:$4 sm:$0xff]   ;;  %v14570_v21 = vld [vmem:[#allocation21 + $0x4f4] ss:$8 sps:$4 sm:$0xff]   ;;  %vm17328_vm13 = vmmov %vm17322_vm0 }
 0x6b0   : > { %10014 = vmatprep.subr.bf16.mxu1 %v14531_v37  ;;  %v9780_v49 = vrot.slane %v9778_v57, 3  ;;  %v9783_v11 = vrot.slane %v9781_v52, 4  ;;  %v14562_v37 = vld [vmem:[#allocation21 + $0x4d0] ss:$8 sps:$4 sm:$0xff]   ;;  %v12457_v52 = vcombine.high %v16922_v28, %v16934_v19  ;;  %v14644_v55 = vld [vmem:[#allocation21 + $0x640] ss:$8 sps:$4 sm:$0xff]  }
 0x6b1   : > { %v9769_v20 = vshrl.u32 %v12452_v44, 16  ;;  %v9772_v32 = vshll.u32 %v12452_v44, 16  ;;  %v9764_v42 = vshll.u32 %v12450_v39, 16 }
 0x6b3   : > { %10015 = vmatpush1.bf16.msra.mxu1 %v14529_v34  ;;  %v9771_v24 = vrot.slane %v9769_v20, 3 }
 0x6b4   : > { %9025 = vmatmul.mubr.bf16.gmra.mrb[144].mxu0 %v16814_v4  ;;  %10016 = vmatprep.subr.bf16.mxu1 %v14534_v54  ;;  %v16970_v4 = vor.u32 %v9791_v62, %v9788_v23  ;;  %v9766_v62 = vrot.slane %v9764_v42, 4 }
 0x6b5   : > { %9034 = vmatprep.mubr.bf16.mxu0 %v16858_v14  ;;  %v9784_v14 = vor.u32 %v9783_v11, %v9780_v49 }
 0x6b6   : > { %9645 = vmatmul.mubr.bf16.gmra.mrb[32].mxu1 %v9421_v48  ;;  %v14568_v48 = vld [vmem:[#allocation21 + $0x4f0] ss:$8 sps:$4 sm:$0xff]  }
 0x6b7   : > { %9654 = vmatprep.mubr.bf16.mxu1 %v9422_v25  ;;  %10017 = vmatpush1.bf16.msra.mxu1 %v14532_v53  ;;  %v9793_v9 = vsel %vm7096_vm9, %v9784_v14, %v16970_v4  ;;  %v12455_v25 = vcombine.high %v16907_v16, %v16924_v15  ;;  %v9774_v53 = vrot.slane %v9772_v32, 4 }
 0x6b8   : > { %10018 = vmatprep.subr.bf16.mxu1 %v14537_v61  ;;  %v12454_v61 = vcombine.low %v16907_v16, %v16924_v15  ;;  %v14572_v16 = vld [vmem:[#allocation21 + $0x500] ss:$8 sps:$4 sm:$0xff]   ;;  %v14578_v15 = vld [vmem:[#allocation21 + $0x514] ss:$8 sps:$4 sm:$0xff]  }
 0x6b9   : > { %v9804_v34 = vshrl.u32 %v12455_v25, 16  ;;  %v9807_v54 = vshll.u32 %v12455_v25, 16  ;;  %v9775_v59 = vor.u32 %v9774_v53, %v9771_v24  ;;  %v14592_v24 = vld [vmem:[#allocation21 + $0x550] ss:$8 sps:$4 sm:$0xff]  }
 0x6ba   : > { %v9798_v49 = vshll.u32 %v12454_v61, 16 }
 0x6bb   : > { %10019 = vmatpush1.bf16.msra.mxu1 %v14535_v3  ;;  %v9806_v6 = vrot.slane %v9804_v34, 3  ;;  %v9809_v57 = vrot.slane %v9807_v54, 4  ;;  %v14574_v3 = vld [vmem:[#allocation21 + $0x504] ss:$8 sps:$4 sm:$0xff]   ;;  %v14588_v34 = vld [vmem:[#allocation21 + $0x540] ss:$8 sps:$4 sm:$0xff]   ;;  %v12458_v54 = vcombine.low %v16936_v50, %v16936_v50 }
 0x6bc   : > { %9035 = vmatmul.mubr.bf16.gmra.mrb[148].mxu0 %v16860_v38  ;;  %10020 = vmatprep.subr.bf16.mxu1 %v14540_v47  ;;  %v14552_v38 = vld [vmem:[#allocation21 + $0x494] ss:$8 sps:$4 sm:$0xff]   ;;  %v9795_v47 = vshrl.u32 %v12454_v61, 16  ;;  %v14598_v61 = vld [vmem:[#allocation21 + $0x564] ss:$8 sps:$4 sm:$0xff]  }
 0x6bd   : > { %9044 = vmatprep.mubr.bf16.mxu0 %v12347_v1  ;;  %v9810_v11 = vor.u32 %v9809_v57, %v9806_v6  ;;  %v9822_v1 = vshrl.u32 %v12457_v52, 16  ;;  %v9831_v53 = vshll.u32 %v12458_v54, 16  ;;  %v14596_v57 = vld [vmem:[#allocation21 + $0x560] ss:$8 sps:$4 sm:$0xff]   ;;  %v14663_v54 = vld [vmem:[#allocation21 + $0x690] ss:$8 sps:$4 sm:$0xff]  }
 0x6be   : > { %9655 = vmatmul.mubr.bf16.gmra.mrb[36].mxu1 %v9420_v58  ;;  %v9761_v58 = vshrl.u32 %v12450_v39, 16 }
 0x6bf   : > { %10021 = vmatpush1.bf16.msra.mxu1 %v14538_v35  ;;  %10040 = vmatprep.mubr.bf16.mxu1 %v9793_v9  ;;  %v9825_v35 = vshll.u32 %v12457_v52, 16  ;;  %v9797_v9 = vrot.slane %v9795_v47, 3  ;;  %v9833_v6 = vrot.slane %v9831_v53, 4  ;;  %v14602_v52 = vld [vmem:[#allocation21 + $0x574] ss:$8 sps:$4 sm:$0xff]  }
 0x6c0   : > { %10022 = vmatprep.subr.bf16.mxu1 %v14546_v27  ;;  %v9763_v23 = vrot.slane %v9761_v58, 3  ;;  %v14594_v58 = vld [vmem:[#allocation21 + $0x554] ss:$8 sps:$4 sm:$0xff]   ;;  %v14606_v47 = vld [vmem:[#allocation21 + $0x590] ss:$8 sps:$4 sm:$0xff]  }
 0x6c1   : > { %v14675_v53 = vld [vmem:[#allocation21 + $0x6d0] ss:$8 sps:$4 sm:$0xff]  }
 0x6c2   : > { %v9767_v14 = vor.u32 %v9766_v62, %v9763_v23  ;;  %v14600_v23 = vld [vmem:[#allocation21 + $0x570] ss:$8 sps:$4 sm:$0xff]   ;;  %v14605_v62 = vld [vmem:[#allocation21 + $0x584] ss:$8 sps:$4 sm:$0xff]  }
 0x6c3   : > { %10023 = vmatpush1.bf16.msra.mxu1 %v14544_v60  ;;  %v9800_v60 = vrot.slane %v9798_v49, 4  ;;  %v14611_v49 = vld [vmem:[#allocation21 + $0x5a4] ss:$8 sps:$4 sm:$0xff]  }
 0x6c4   : > { %9045 = vmatmul.mubr.bf16.gmra.mrb[152].mxu0 %v12346_v18  ;;  %10024 = vmatprep.subr.bf16.mxu1 %v14549_v29  ;;  %v9776_v27 = vsel %vm7096_vm9, %v9767_v14, %v9775_v59  ;;  %v12456_v29 = vcombine.low %v16922_v28, %v16934_v19  ;;  %v9811_v18 = vsel %vm7096_vm9, %v16970_v4, %v9810_v11  ;;  %v14617_v14 = vld [vmem:[#allocation21 + $0x5c4] ss:$8 sps:$4 sm:$0xff]  }
 0x6c5   : > { %v12459_v28 = vcombine.high %v16936_v50, %v16936_v50  ;;  %v14671_v50 = vld [vmem:[#allocation21 + $0x6b4] ss:$8 sps:$4 sm:$0xff]  }
 0x6c7   : > { %10025 = vmatpush1.bf16.msra.mxu1 %v14547_v46  ;;  %v9824_v46 = vrot.slane %v9822_v1, 3  ;;  %v9836_v20 = vshll.u32 %v12459_v28, 16  ;;  %v14614_v1 = vld [vmem:[#allocation21 + $0x5b4] ss:$8 sps:$4 sm:$0xff]   ;;  %v14654_v28 = vld [vmem:[#allocation21 + $0x664] ss:$8 sps:$4 sm:$0xff]  }
 0x6c8   : > { %10026 = vmatprep.subr.bf16.mxu1 %v14552_v38  ;;  %v9827_v38 = vrot.slane %v9825_v35, 4  ;;  %v14612_v35 = vld [vmem:[#allocation21 + $0x5b0] ss:$8 sps:$4 sm:$0xff]  }
 0x6cb   : > { %10027 = vmatpush1.bf16.msra.mxu1 %v14550_v40  ;;  %v14576_v40 = vld [vmem:[#allocation21 + $0x510] ss:$8 sps:$4 sm:$0xff]  }
 0x6cc   : > { %10028 = vmatprep.subr.bf16.mxu1 %v14555_v13  ;;  %v14582_v13 = vld [vmem:[#allocation21 + $0x524] ss:$8 sps:$4 sm:$0xff]  }
 0x6cf   : > { %10029 = vmatpush1.bf16.msra.mxu1 %v14553_v0  ;;  %v9801_v0 = vor.u32 %v9800_v60, %v9797_v9  ;;  %v14621_v9 = vld [vmem:[#allocation21 + $0x5e0] ss:$8 sps:$4 sm:$0xff]   ;;  %v14626_v60 = vld [vmem:[#allocation21 + $0x5f4] ss:$8 sps:$4 sm:$0xff]  }
 0x6d0   : > { %10030 = vmatprep.subr.bf16.mxu1 %v14558_v7  ;;  %v9813_v7 = vshrl.u32 %v12456_v29, 16 }
 0x6d1   : > { %v9802_v4 = vsel %vm7096_vm9, %v9775_v59, %v9801_v0  ;;  %v14608_v59 = vld [vmem:[#allocation21 + $0x594] ss:$8 sps:$4 sm:$0xff]  }
 0x6d2   : > { %v9815_v44 = vrot.slane %v9813_v7, 3  ;;  %v14642_v7 = vld [vmem:[#allocation21 + $0x634] ss:$8 sps:$4 sm:$0xff]  }
 0x6d3   : > { %10031 = vmatpush1.bf16.msra.mxu1 %v14556_v45  ;;  %v9816_v45 = vshll.u32 %v12456_v29, 16  ;;  %v14624_v29 = vld [vmem:[#allocation21 + $0x5f0] ss:$8 sps:$4 sm:$0xff]  }
 0x6d4   : > { %10032 = vmatprep.subr.bf16.mxu1 %v14561_v26  ;;  %v9828_v26 = vor.u32 %v9827_v38, %v9824_v46  ;;  %v14628_v46 = vld [vmem:[#allocation21 + $0x600] ss:$8 sps:$4 sm:$0xff]   ;;  %v14634_v38 = vld [vmem:[#allocation21 + $0x614] ss:$8 sps:$4 sm:$0xff]  }
 0x6d5   : > { %v9818_v25 = vrot.slane %v9816_v45, 4  ;;  %v14640_v45 = vld [vmem:[#allocation21 + $0x630] ss:$8 sps:$4 sm:$0xff]  }
 0x6d6   : > { %v9829_v39 = vsel %vm7096_vm9, %v9810_v11, %v9828_v26  ;;  %v14609_v11 = vld [vmem:[#allocation21 + $0x5a0] ss:$8 sps:$4 sm:$0xff]  }
 0x6d7   : > { %10033 = vmatpush1.bf16.msra.mxu1 %v14559_v41  ;;  %v14580_v41 = vld [vmem:[#allocation21 + $0x520] ss:$8 sps:$4 sm:$0xff]   ;;  %v9819_v32 = vor.u32 %v9818_v25, %v9815_v44  ;;  %v10444_v44 = vrot.slane %v16916_v36, 2 }
 0x6d8   : > { %10034 = vmatprep.subr.bf16.mxu1 %v14564_v43  ;;  %v14586_v43 = vld [vmem:[#allocation21 + $0x534] ss:$8 sps:$4 sm:$0xff]   ;;  %v14652_v25 = vld [vmem:[#allocation21 + $0x660] ss:$8 sps:$4 sm:$0xff]  }
 0x6d9   : > { %v9820_v42 = vsel %vm7096_vm9, %v9801_v0, %v9819_v32  ;;  %v14636_v0 = vld [vmem:[#allocation21 + $0x620] ss:$8 sps:$4 sm:$0xff]  }
 0x6db   : > { %10035 = vmatpush1.bf16.msra.mxu1 %v14562_v37  ;;  %v14584_v37 = vld [vmem:[#allocation21 + $0x530] ss:$8 sps:$4 sm:$0xff]  }
 0x6dc   : > { %10036 = vmatprep.subr.bf16.mxu1 %v14567_v51  ;;  %v14590_v51 = vld [vmem:[#allocation21 + $0x544] ss:$8 sps:$4 sm:$0xff]  }
 0x6df   : > { %10037 = vmatpush1.bf16.msra.mxu1 %v14565_v31  ;;  %v9838_v31 = vrot.slane %v9836_v20, 4  ;;  %v14662_v20 = vld [vmem:[#allocation21 + $0x684] ss:$8 sps:$4 sm:$0xff]  }
 0x6e0   : > { %10038 = vmatprep.subr.bf16.mxu1 %v14570_v21 }
 0x6e1   : > { %v9839_v21 = vsel %vm7096_vm9, %v9828_v26, %v9838_v31  ;;  %v14646_v26 = vld [vmem:[#allocation21 + $0x644] ss:$8 sps:$4 sm:$0xff]  }
 0x6e2   : > { %v14668_v31 = vld [vmem:[#allocation21 + $0x6a4] ss:$8 sps:$4 sm:$0xff]  }
 0x6e3   : > { %10039 = vmatpush1.bf16.msra.mxu1 %v14568_v48  ;;  %v9834_v48 = vsel %vm7096_vm9, %v9819_v32, %v9833_v6  ;;  %v14660_v32 = vld [vmem:[#allocation21 + $0x680] ss:$8 sps:$4 sm:$0xff]  }
 0x6e4   : > { %10306 = vmatprep.subr.bf16.mxu1 %v14574_v3  ;;  %v14603_v3 = vld [vmem:[#allocation21 + $0x580] ss:$8 sps:$4 sm:$0xff]  }
 0x6e5   : > { %v14678_v6 = vld [vmem:[#allocation21 + $0x6e0] ss:$8 sps:$4 sm:$0xff]  }
 0x6e6   : > { %10041 = vmatmul.mubr.bf16.vlgmr.msra.gmra.mrb[24].mxu1 %v9776_v27  ;;  %v14623_v27 = vld [vmem:[#allocation21 + $0x5e4] ss:$8 sps:$4 sm:$0xff]  }
 0x6e7   : > { %10050 = vmatprep.mubr.bf16.mxu1 %v9811_v18  ;;  %10307 = vmatpush1.bf16.msra.mxu1 %v14572_v16  ;;  %v14620_v16 = vld [vmem:[#allocation21 + $0x5d4] ss:$8 sps:$4 sm:$0xff]   ;;  %v14630_v18 = vld [vmem:[#allocation21 + $0x604] ss:$8 sps:$4 sm:$0xff]  }
 0x6e8   : > { %10308 = vmatprep.subr.bf16.mxu1 %v14578_v15  ;;  %v14618_v15 = vld [vmem:[#allocation21 + $0x5d0] ss:$8 sps:$4 sm:$0xff]  }
 0x6eb   : > { %10309 = vmatpush1.bf16.msra.mxu1 %v14576_v40  ;;  %v14632_v40 = vld [vmem:[#allocation21 + $0x610] ss:$8 sps:$4 sm:$0xff]  }
 0x6ec   : > { %10310 = vmatprep.subr.bf16.mxu1 %v14582_v13  ;;  %v14638_v13 = vld [vmem:[#allocation21 + $0x624] ss:$8 sps:$4 sm:$0xff]  }
 0x6ee   : > { %10051 = vmatmul.mubr.bf16.gmra.mrb[28].mxu1 %v9802_v4 }
 0x6ef   : > { %10060 = vmatprep.mubr.bf16.mxu1 %v9829_v39  ;;  %10311 = vmatpush1.bf16.msra.mxu1 %v14580_v41  ;;  %v14648_v41 = vld [vmem:[#allocation21 + $0x650] ss:$8 sps:$4 sm:$0xff]  }
 0x6f0   : > { %10312 = vmatprep.subr.bf16.mxu1 %v14586_v43  ;;  %v10395_v43 = vld [vmem:[#allocation8 + $0x8] sm:$0xcc] }
 0x6f1   : > { %v17015_v4 = vcombine.high %v10395_v43, %v16901_v30 }
 0x6f3   : > { %10313 = vmatpush1.bf16.msra.mxu1 %v14584_v37  ;;  %v10443_v39 = vrot.slane %v17015_v4, 2  ;;  %v14659_v37 = vld [vmem:[#allocation21 + $0x674] ss:$8 sps:$4 sm:$0xff]  }
 0x6f4   : > { %10314 = vmatprep.subr.bf16.mxu1 %v14590_v51  ;;  %v14657_v51 = vld [vmem:[#allocation21 + $0x670] ss:$8 sps:$4 sm:$0xff]  }
 0x6f6   : > { %10061 = vmatmul.mubr.bf16.gmra.mrb[32].mxu1 %v9820_v42  ;;  %v14674_v42 = vld [vmem:[#allocation21 + $0x6c4] ss:$8 sps:$4 sm:$0xff]  }
 0x6f7   : > { %10070 = vmatprep.mubr.bf16.mxu1 %v9839_v21  ;;  %10315 = vmatpush1.bf16.msra.mxu1 %v14588_v34  ;;  %v14665_v34 = vld [vmem:[#allocation21 + $0x694] ss:$8 sps:$4 sm:$0xff]   ;;  %v14672_v21 = vld [vmem:[#allocation21 + $0x6c0] ss:$8 sps:$4 sm:$0xff]  }
 0x6f8   : > { %10316 = vmatprep.subr.bf16.mxu1 %v14594_v58  ;;  %v14666_v58 = vld [vmem:[#allocation21 + $0x6a0] ss:$8 sps:$4 sm:$0xff]  }
 0x6fb   : > { %10317 = vmatpush1.bf16.msra.mxu1 %v14592_v24  ;;  %v14677_v24 = vld [vmem:[#allocation21 + $0x6d4] ss:$8 sps:$4 sm:$0xff]  }
 0x6fc   : > { %10318 = vmatprep.subr.bf16.mxu1 %v14598_v61  ;;  %v14680_v61 = vld [vmem:[#allocation21 + $0x6e4] ss:$8 sps:$4 sm:$0xff]  }
 0x6fe   : > { %10071 = vmatmul.mubr.bf16.gmra.mrb[36].mxu1 %v9834_v48  ;;  %v14681_v48 = vld [vmem:[#allocation21 + $0x6f0] ss:$8 sps:$4 sm:$0xff]  }
 0x6ff   : > { %10319 = vmatpush1.bf16.msra.mxu1 %v14596_v57  ;;  %10338 = vmatprep.mubr.bf16.mxu1 %v12493_v8  ;;  %v14615_v8 = vld [vmem:[#allocation21 + $0x5c0] ss:$8 sps:$4 sm:$0xff]   ;;  %v14683_v57 = vld [vmem:[#allocation21 + $0x6f4] ss:$8 sps:$4 sm:$0xff]  }
 0x700   : > { %10320 = vmatprep.subr.bf16.mxu1 %v14602_v52  ;;  %v17024_v52 = vcombine.low %v10395_v43, %v16901_v30 }
 0x703   : > { %10321 = vmatpush1.bf16.msra.mxu1 %v14600_v23  ;;  %v14686_v23 = vld [vmem:[#allocation21 + $0x704] ss:$8 sps:$4 sm:$0xff]  }
 0x704   : > { %10322 = vmatprep.subr.bf16.mxu1 %v14605_v62  ;;  %v10441_v62 = vrot.slane %v16920_v2, 2 }
 0x707   : > { %10323 = vmatpush1.bf16.msra.mxu1 %v14603_v3  ;;  %v10448_v3 = vrot.slane %v16928_v56, 2 }
 0x708   : > { %10324 = vmatprep.subr.bf16.mxu1 %v14608_v59  ;;  %v10440_v59 = vrot.slane %v17024_v52, 2 }
 0x709   : > { %v10449_v30 = vsel %vm3679_vm1, %v10444_v44, %v10448_v3 }
 0x70b   : > { %10325 = vmatpush1.bf16.msra.mxu1 %v14606_v47  ;;  %v14684_v47 = vld [vmem:[#allocation21 + $0x700] ss:$8 sps:$4 sm:$0xff]  }
 0x70c   : > { %10326 = vmatprep.subr.bf16.mxu1 %v14611_v49  ;;  %v14689_v49 = vld [vmem:[#allocation21 + $0x714] ss:$8 sps:$4 sm:$0xff]  }
 0x70f   : > { %10327 = vmatpush1.bf16.msra.mxu1 %v14609_v11  ;;  %v10442_v11 = vsel %vm3679_vm1, %v10440_v59, %v10441_v62 }
 0x710   : > { %10328 = vmatprep.subr.bf16.mxu1 %v14614_v1  ;;  %v10396_v1 = vld [vmem:[#allocation8 + $0x40] sm:$0x77] }
 0x713   : > { %10329 = vmatpush1.bf16.msra.mxu1 %v14612_v35  ;;  %v12535_v35 = vcombine.high %v16934_v19, %v10396_v1 }
 0x714   : > { %10330 = vmatprep.subr.bf16.mxu1 %v14617_v14  ;;  %v14687_v14 = vld [vmem:[#allocation21 + $0x710] ss:$8 sps:$4 sm:$0xff]  }
 0x717   : > { %10331 = vmatpush1.bf16.msra.mxu1 %v14615_v8  ;;  %v14692_v8 = vld [vmem:[#allocation21 + $0x724] ss:$8 sps:$4 sm:$0xff]  }
 0x718   : > { %10332 = vmatprep.subr.bf16.mxu1 %v14620_v16  ;;  %v10446_v16 = vrot.slane %v16932_v12, 2 }
 0x71b   : > { %10333 = vmatpush1.bf16.msra.mxu1 %v14618_v15  ;;  %v10452_v15 = vrot.slane %v12535_v35, 2 }
 0x71c   : > { %10334 = vmatprep.subr.bf16.mxu1 %v14623_v27  ;;  %v14690_v27 = vld [vmem:[#allocation21 + $0x720] ss:$8 sps:$4 sm:$0xff]  }
 0x71f   : > { %10335 = vmatpush1.bf16.msra.mxu1 %v14621_v9  ;;  %v14696_v9 = vld [vmem:[#allocation21 + $0x734] ss:$8 sps:$4 sm:$0xff]  }
 0x720   : > { %10336 = vmatprep.subr.bf16.mxu1 %v14626_v60  ;;  %v10447_v60 = vsel %vm3679_vm1, %v10441_v62, %v10446_v16 }
 0x723   : > { %10337 = vmatpush1.bf16.msra.mxu1 %v14624_v29  ;;  %v12534_v29 = vcombine.low %v16934_v19, %v10396_v1  ;;  %v14722_v1 = vld [vmem:[#allocation21 + $0x7c0] ss:$8 sps:$4 sm:$0xff]  }
 0x724   : > { %10622 = vmatprep.subr.bf16.mxu1 %v14630_v18  ;;  %v10453_v18 = vsel %vm3679_vm1, %v10448_v3, %v10452_v15  ;;  %v14719_v3 = vld [vmem:[#allocation21 + $0x7b0] ss:$8 sps:$4 sm:$0xff]  }
 0x726   : > { %10339 = vmatmul.mubr.bf16.vlgmr.msra.gmra.mrb[24].mxu1 %v12492_v63  ;;  %v14650_v63 = vld [vmem:[#allocation21 + $0x654] ss:$8 sps:$4 sm:$0xff]  }
 0x727   : > { %10348 = vmatprep.mubr.bf16.mxu1 %v16916_v36  ;;  %10623 = vmatpush1.bf16.msra.mxu1 %v14628_v46  ;;  %v14694_v46 = vld [vmem:[#allocation21 + $0x730] ss:$8 sps:$4 sm:$0xff]  }
 0x728   : > { %10624 = vmatprep.subr.bf16.mxu1 %v14634_v38  ;;  %v14700_v38 = vld [vmem:[#allocation21 + $0x744] ss:$8 sps:$4 sm:$0xff]  }
 0x72b   : > { %10625 = vmatpush1.bf16.msra.mxu1 %v14632_v40  ;;  %v10450_v40 = vrot.slane %v12534_v29, 2  ;;  %v10794_v29 = vshrl.u32 %v16928_v56, 16 }
 0x72c   : > { %10626 = vmatprep.subr.bf16.mxu1 %v14638_v13  ;;  %v10776_v13 = vshrl.u32 %v16916_v36, 16 }
 0x72e   : > { %10349 = vmatmul.mubr.bf16.gmra.mrb[28].mxu1 %v16920_v2 }
 0x72f   : > { %10358 = vmatprep.mubr.bf16.mxu1 %v16928_v56  ;;  %10627 = vmatpush1.bf16.msra.mxu1 %v14636_v0  ;;  %v10779_v0 = vshll.u32 %v16916_v36, 16 }
 0x730   : > { %10628 = vmatprep.subr.bf16.mxu1 %v14642_v7  ;;  %v14698_v7 = vld [vmem:[#allocation21 + $0x740] ss:$8 sps:$4 sm:$0xff]  }
 0x731   : > { %v10781_v43 = vrot.slane %v10779_v0, 3 }
 0x733   : > { %10629 = vmatpush1.bf16.msra.mxu1 %v14640_v45  ;;  %v14703_v45 = vld [vmem:[#allocation21 + $0x754] ss:$8 sps:$4 sm:$0xff]  }
 0x734   : > { %10630 = vmatprep.subr.bf16.mxu1 %v14646_v26  ;;  %v10768_v26 = vshrl.u32 %v17015_v4, 16 }
 0x736   : > { %10359 = vmatmul.mubr.bf16.gmra.mrb[32].mxu1 %v16932_v12 }
 0x737   : > { %10368 = vmatprep.mubr.bf16.mxu1 %v12499_v33  ;;  %10631 = vmatpush1.bf16.msra.mxu1 %v14644_v55  ;;  %v10445_v33 = vsel %vm3679_vm1, %v10443_v39, %v10444_v44  ;;  %v10771_v55 = vshll.u32 %v17015_v4, 16  ;;  %v14706_v44 = vld [vmem:[#allocation21 + $0x764] ss:$8 sps:$4 sm:$0xff]  }
 0x738   : > { %10632 = vmatprep.subr.bf16.mxu1 %v14650_v63  ;;  %v10451_v63 = vsel %vm3679_vm1, %v10446_v16, %v10450_v40  ;;  %v14730_v16 = vld [vmem:[#allocation21 + $0x7e4] ss:$8 sps:$4 sm:$0xff]   ;;  %vm17313_vm1 = vmmov %vm17307_vm3 }
 0x739   : > { %v10773_v39 = vrot.slane %v10771_v55, 3  ;;  %vm17315_vm9 = vmmov %vm17313_vm1 }
 0x73a   : > { %vm17316_vm4 = vmmov %vm17313_vm1 }
 0x73b   : > { %10633 = vmatpush1.bf16.msra.mxu1 %v14648_v41  ;;  %v10778_v41 = vrot.slane %v10776_v13, 2  ;;  %v14733_v13 = vld [vmem:[#allocation21 + $0x7f4] ss:$8 sps:$4 sm:$0xff]   ;;  %vm17317_vm8 = vmmov %vm17313_vm1 }
 0x73c   : > { %10634 = vmatprep.subr.bf16.mxu1 %v14654_v28  ;;  %v14701_v28 = vld [vmem:[#allocation21 + $0x750] ss:$8 sps:$4 sm:$0xff]   ;;  %vm17318_vm12 = vmmov %vm17313_vm1 }
 0x73d   : > { %vm17323_vm3 = vmmov %vm17322_vm0 }
 0x73e   : > { %10369 = vmatmul.mubr.bf16.gmra.mrb[36].mxu1 %v12498_v10  ;;  %v14669_v10 = vld [vmem:[#allocation21 + $0x6b0] ss:$8 sps:$4 sm:$0xff]  }
 0x73f   : > { %10635 = vmatpush1.bf16.msra.mxu1 %v14652_v25  ;;  %10654 = vmatprep.mubr.bf16.mxu1 %v10445_v33  ;;  %v10770_v25 = vrot.slane %v10768_v26, 2  ;;  %v14704_v33 = vld [vmem:[#allocation21 + $0x760] ss:$8 sps:$4 sm:$0xff]   ;;  %v10796_v26 = vrot.slane %v10794_v29, 2 }
 0x740   : > { %10636 = vmatprep.subr.bf16.mxu1 %v14659_v37  ;;  %v17041_v37 = vor.u32 %v10781_v43, %v10778_v41  ;;  %v14731_v41 = vld [vmem:[#allocation21 + $0x7f0] ss:$8 sps:$4 sm:$0xff]  }
 0x743   : > { %10637 = vmatpush1.bf16.msra.mxu1 %v14657_v51  ;;  %v10774_v51 = vor.u32 %v10773_v39, %v10770_v25  ;;  %v10785_v39 = vshrl.u32 %v16932_v12, 16 }
 0x744   : > { %10638 = vmatprep.subr.bf16.mxu1 %v14662_v20  ;;  %v14709_v20 = vld [vmem:[#allocation21 + $0x774] ss:$8 sps:$4 sm:$0xff]  }
 0x745   : > { %v10783_v4 = vsel %vm4118_vm11, %v10774_v51, %v17041_v37 }
 0x747   : > { %10639 = vmatpush1.bf16.msra.mxu1 %v14660_v32 }
 0x748   : > { %10640 = vmatprep.subr.bf16.mxu1 %v14665_v34  ;;  %v14707_v34 = vld [vmem:[#allocation21 + $0x770] ss:$8 sps:$4 sm:$0xff]  }
 0x74b   : > { %10641 = vmatpush1.bf16.msra.mxu1 %v14663_v54 }
 0x74c   : > { %10642 = vmatprep.subr.bf16.mxu1 %v14668_v31  ;;  %v14712_v31 = vld [vmem:[#allocation21 + $0x784] ss:$8 sps:$4 sm:$0xff]  }
 0x74f   : > { %10643 = vmatpush1.bf16.msra.mxu1 %v14666_v58 }
 0x750   : > { %10644 = vmatprep.subr.bf16.mxu1 %v14671_v50 }
 0x753   : > { %10645 = vmatpush1.bf16.msra.mxu1 %v14669_v10  ;;  %v14710_v10 = vld [vmem:[#allocation21 + $0x780] ss:$8 sps:$4 sm:$0xff]  }
 0x754   : > { %10646 = vmatprep.subr.bf16.mxu1 %v14674_v42  ;;  %v14715_v42 = vld [vmem:[#allocation21 + $0x794] ss:$8 sps:$4 sm:$0xff]  }
 0x757   : > { %10647 = vmatpush1.bf16.msra.mxu1 %v14672_v21 }
 0x758   : > { %10648 = vmatprep.subr.bf16.mxu1 %v14677_v24  ;;  %v14713_v24 = vld [vmem:[#allocation21 + $0x790] ss:$8 sps:$4 sm:$0xff]  }
 0x75b   : > { %10649 = vmatpush1.bf16.msra.mxu1 %v14675_v53 }
 0x75c   : > { %10650 = vmatprep.subr.bf16.mxu1 %v14680_v61  ;;  %v14718_v61 = vld [vmem:[#allocation21 + $0x7a4] ss:$8 sps:$4 sm:$0xff]  }
 0x75f   : > { %10651 = vmatpush1.bf16.msra.mxu1 %v14678_v6 }
 0x760   : > { %10652 = vmatprep.subr.bf16.mxu1 %v14683_v57 }
 0x763   : > { %10653 = vmatpush1.bf16.msra.mxu1 %v14681_v48  ;;  %v14716_v48 = vld [vmem:[#allocation21 + $0x7a0] ss:$8 sps:$4 sm:$0xff]  }
 0x764   : > { %10988 = vmatprep.subr.bf16.mxu1 %v14686_v23  ;;  %v14721_v23 = vld [vmem:[#allocation21 + $0x7b4] ss:$8 sps:$4 sm:$0xff]  }
 0x766   : > { %10655 = vmatmul.mubr.bf16.vlgmr.msra.gmra.mrb[24].mxu1 %v10442_v11 }
 0x767   : > { %10664 = vmatprep.mubr.bf16.mxu1 %v10449_v30  ;;  %10989 = vmatpush1.bf16.msra.mxu1 %v14684_v47  ;;  %v14724_v47 = vld [vmem:[#allocation21 + $0x7c4] ss:$8 sps:$4 sm:$0xff]   ;;  %v14727_v30 = vld [vmem:[#allocation21 + $0x7d4] ss:$8 sps:$4 sm:$0xff]  }
 0x768   : > { %10990 = vmatprep.subr.bf16.mxu1 %v14689_v49 }
 0x76b   : > { %10991 = vmatpush1.bf16.msra.mxu1 %v14687_v14  ;;  %v14725_v14 = vld [vmem:[#allocation21 + $0x7d0] ss:$8 sps:$4 sm:$0xff]  }
 0x76c   : > { %10992 = vmatprep.subr.bf16.mxu1 %v14692_v8 }
 0x76e   : > { %10665 = vmatmul.mubr.bf16.gmra.mrb[28].mxu1 %v10447_v60 }
 0x76f   : > { %10674 = vmatprep.mubr.bf16.mxu1 %v10453_v18  ;;  %10993 = vmatpush1.bf16.msra.mxu1 %v14690_v27  ;;  %v10759_v27 = vshrl.u32 %v16920_v2, 16  ;;  %v10797_v18 = vshll.u32 %v16928_v56, 16 }
 0x770   : > { %10994 = vmatprep.subr.bf16.mxu1 %v14696_v9  ;;  %v10762_v9 = vshll.u32 %v16920_v2, 16 }
 0x771   : > { %v10761_v0 = vrot.slane %v10759_v27, 2  ;;  %v10799_v55 = vrot.slane %v10797_v18, 3 }
 0x773   : > { %10995 = vmatpush1.bf16.msra.mxu1 %v14694_v46  ;;  %v14728_v46 = vld [vmem:[#allocation21 + $0x7e0] ss:$8 sps:$4 sm:$0xff]  }
 0x774   : > { %10996 = vmatprep.subr.bf16.mxu1 %v14700_v38  ;;  %v10751_v38 = vshrl.u32 %v17024_v52, 16 }
 0x776   : > { %10675 = vmatmul.mubr.bf16.gmra.mrb[32].mxu1 %v10451_v63  ;;  %v10753_v43 = vrot.slane %v10751_v38, 2  ;;  %v14744_v38 = vld [vmem:[#allocation21 + $0x830] ss:$8 sps:$4 sm:$0xff]  }
 0x777   : > { %10684 = vmatprep.mubr.bf16.mxu1 %v10452_v15  ;;  %10997 = vmatpush1.bf16.msra.mxu1 %v14698_v7  ;;  %v10764_v7 = vrot.slane %v10762_v9, 3  ;;  %v14746_v9 = vld [vmem:[#allocation21 + $0x834] ss:$8 sps:$4 sm:$0xff]  }
 0x778   : > { %10998 = vmatprep.subr.bf16.mxu1 %v14703_v45  ;;  %v10711_v45 = vld [vmem:[#allocation8 + $0x40] sm:$0xff] }
 0x779   : > { %v17084_v63 = vcombine.high %v16934_v19, %v10711_v45  ;;  %v10765_v25 = vor.u32 %v10764_v7, %v10761_v0  ;;  %v14748_v0 = vld [vmem:[#allocation21 + $0x840] ss:$8 sps:$4 sm:$0xff]   ;;  %v14753_v7 = vld [vmem:[#allocation21 + $0x854] ss:$8 sps:$4 sm:$0xff]  }
 0x77b   : > { %10999 = vmatpush1.bf16.msra.mxu1 %v14701_v28  ;;  %v10812_v51 = vshrl.u32 %v17084_v63, 16 }
 0x77c   : > { %11000 = vmatprep.subr.bf16.mxu1 %v14706_v44  ;;  %v14736_v44 = vld [vmem:[#allocation21 + $0x804] ss:$8 sps:$4 sm:$0xff]  }
 0x77e   : > { %10685 = vmatmul.mubr.bf16.gmra.mrb[36].mxu1 %v10450_v40  ;;  %v10754_v40 = vshll.u32 %v17024_v52, 16  ;;  %v10788_v52 = vshll.u32 %v16932_v12, 16 }
 0x77f   : > { %v17045_v32 = vpop.f32.mrb[140].mxu0  ;;  %11001 = vmatpush1.bf16.msra.mxu1 %v14704_v33  ;;  %11020 = vmatprep.mubr.bf16.mxu1 %v10783_v4  ;;  %v10800_v33 = vor.u32 %v10799_v55, %v10796_v26  ;;  %v14751_v26 = vld [vmem:[#allocation21 + $0x850] ss:$8 sps:$4 sm:$0xff]   ;;  %v11077_v55 = vld [vmem:[#allocation8 + $0x8] sm:$0x88] }
 0x780   : > { %v17047_v54 = vpop.f32.mrb[141].mxu0  ;;  %11002 = vmatprep.subr.bf16.mxu1 %v14709_v20  ;;  %v10756_v28 = vrot.slane %v10754_v40, 3  ;;  %v10815_v20 = vshll.u32 %v17084_v63, 16  ;;  %v14750_v40 = vld [vmem:[#allocation21 + $0x844] ss:$8 sps:$4 sm:$0xff]  }
 0x781   : > { %v17049_v58 = vpop.f32.mrb[142].mxu0 }
 0x782   : > { %v17051_v50 = vpop.f32.mrb[143].mxu0  ;;  %v10757_v4 = vor.u32 %v10756_v28, %v10753_v43  ;;  %v14795_v43 = vld [vmem:[#allocation8 + $0x10] sm:$0xff] }
 0x783   : > { %11003 = vmatpush1.bf16.msra.mxu1 %v14707_v34  ;;  %v14734_v34 = vld [vmem:[#allocation21 + $0x800] ss:$8 sps:$4 sm:$0xff]   ;;  %v12603_v28 = vcombine.high %v11077_v55, %v14795_v43 }
 0x784   : > { %11004 = vmatprep.subr.bf16.mxu1 %v14712_v31  ;;  %v14739_v31 = vld [vmem:[#allocation21 + $0x814] ss:$8 sps:$4 sm:$0xff]  }
 0x787   : > { %v17053_v21 = vpop.f32.mrb[144].mxu0  ;;  %11005 = vmatpush1.bf16.msra.mxu1 %v14710_v10  ;;  %v10766_v10 = vsel %vm4118_vm11, %v10757_v4, %v10765_v25  ;;  %v14762_v4 = vld [vmem:[#allocation21 + $0x880] ss:$8 sps:$4 sm:$0xff]  }
 0x788   : > { %v17055_v53 = vpop.f32.mrb[145].mxu0  ;;  %11006 = vmatprep.subr.bf16.mxu1 %v14715_v42  ;;  %v10787_v42 = vrot.slane %v10785_v39, 2  ;;  %v11119_v39 = vrot.slane %v12603_v28, 3 }
 0x789   : > { %v17057_v6 = vpop.f32.mrb[146].mxu0 }
 0x78a   : > { %v17059_v57 = vpop.f32.mrb[147].mxu0 }
 0x78b   : > { %11007 = vmatpush1.bf16.msra.mxu1 %v14713_v24  ;;  %v10790_v24 = vrot.slane %v10788_v52, 3  ;;  %v14761_v52 = vld [vmem:[#allocation21 + $0x874] ss:$8 sps:$4 sm:$0xff]  }
 0x78c   : > { %11008 = vmatprep.subr.bf16.mxu1 %v14718_v61  ;;  %v17092_v61 = vcombine.low %v16934_v19, %v10711_v45  ;;  %v14740_v19 = vld [vmem:[#allocation21 + $0x820] ss:$8 sps:$4 sm:$0xff]  }
 0x78f   : > { %v17061_v62 = vpop.f32.mrb[148].mxu0  ;;  %11009 = vmatpush1.bf16.msra.mxu1 %v14716_v48  ;;  %v10801_v48 = vsel %vm4118_vm11, %v17041_v37, %v10800_v33 }
 0x790   : > { %v17063_v59 = vpop.f32.mrb[149].mxu0  ;;  %11010 = vmatprep.subr.bf16.mxu1 %v14721_v23  ;;  %v10814_v23 = vrot.slane %v10812_v51, 2  ;;  %v14759_v51 = vld [vmem:[#allocation21 + $0x870] ss:$8 sps:$4 sm:$0xff]  }
 0x791   : > { %v17065_v49 = vpop.f32.mrb[150].mxu0 }
 0x792   : > { %v17067_v11 = vpop.f32.mrb[151].mxu0 }
 0x793   : > { %11011 = vmatpush1.bf16.msra.mxu1 %v14719_v3  ;;  %v10817_v3 = vrot.slane %v10815_v20, 3  ;;  %v14764_v20 = vld [vmem:[#allocation21 + $0x884] ss:$8 sps:$4 sm:$0xff]  }
 0x794   : > { %11012 = vmatprep.subr.bf16.mxu1 %v14724_v47  ;;  %v14737_v47 = vld [vmem:[#allocation21 + $0x810] ss:$8 sps:$4 sm:$0xff]  }
 0x795   : > { %v10818_v27 = vor.u32 %v10817_v3, %v10814_v23  ;;  %v14774_v23 = vld [vmem:[#allocation21 + $0x8c0] ss:$8 sps:$4 sm:$0xff]   ;;  %v14779_v3 = vld [vmem:[#allocation21 + $0x8d4] ss:$8 sps:$4 sm:$0xff]  }
 0x797   : > { %v17069_v35 = vpop.f32.mrb[152].mxu0  ;;  %11013 = vmatpush1.bf16.msra.mxu1 %v14722_v1  ;;  %v14742_v1 = vld [vmem:[#allocation21 + $0x824] ss:$8 sps:$4 sm:$0xff]  }
 0x798   : > { %v17071_v8 = vpop.f32.mrb[153].mxu0  ;;  %11014 = vmatprep.subr.bf16.mxu1 %v14727_v30  ;;  %v10791_v30 = vor.u32 %v10790_v24, %v10787_v42  ;;  %v14773_v42 = vld [vmem:[#allocation21 + $0x8b4] ss:$8 sps:$4 sm:$0xff]   ;;  %v14771_v24 = vld [vmem:[#allocation21 + $0x8b0] ss:$8 sps:$4 sm:$0xff]  }
 0x799   : > { %v17073_v15 = vpop.f32.mrb[154].mxu0 }
 0x79a   : > { %v17077_v60 = vpop.f32.mrb[155].mxu0  ;;  %v10792_v29 = vsel %vm4118_vm11, %v10765_v25, %v10791_v30  ;;  %v14754_v25 = vld [vmem:[#allocation21 + $0x860] ss:$8 sps:$4 sm:$0xff]  }
 0x79b   : > { %11015 = vmatpush1.bf16.msra.mxu1 %v14725_v14  ;;  %v10803_v14 = vshrl.u32 %v17092_v61, 16 }
 0x79c   : > { %11016 = vmatprep.subr.bf16.mxu1 %v14730_v16  ;;  %v10806_v16 = vshll.u32 %v17092_v61, 16 }
 0x79d   : > { %v10805_v37 = vrot.slane %v10803_v14, 2  ;;  %v14785_v14 = vld [vmem:[#allocation21 + $0x8f4] ss:$8 sps:$4 sm:$0xff]  }
 0x79e   : > { %v10808_v18 = vrot.slane %v10806_v16, 3  ;;  %v12602_v16 = vcombine.low %v11077_v55, %v14795_v43 }
 0x79f   : > { %11017 = vmatpush1.bf16.msra.mxu1 %v14728_v46  ;;  %v10819_v46 = vsel %vm4118_vm11, %v10800_v33, %v10818_v27 }
 0x7a0   : > { %11018 = vmatprep.subr.bf16.mxu1 %v14733_v13  ;;  %v10809_v13 = vor.u32 %v10808_v18, %v10805_v37 }
 0x7a2   : > { %v10810_v45 = vsel %vm4118_vm11, %v10791_v30, %v10809_v13  ;;  %v14780_v30 = vld [vmem:[#allocation21 + $0x8e0] ss:$8 sps:$4 sm:$0xff]   ;;  %vm17314_vm11 = vmmov %vm17313_vm1 }
 0x7a3   : > { %11019 = vmatpush1.bf16.msra.mxu1 %v14731_v41  ;;  %v14756_v41 = vld [vmem:[#allocation21 + $0x864] ss:$8 sps:$4 sm:$0xff]  }
 0x7a4   : > { %11298 = vmatprep.subr.bf16.mxu1 %v14736_v44  ;;  %v11120_v44 = vrot.slane %v16916_v36, 3  ;;  %v14770_v36 = vld [vmem:[#allocation21 + $0x8a4] ss:$8 sps:$4 sm:$0xff]  }
 0x7a6   : > { %11021 = vmatmul.mubr.bf16.vlgmr.msra.gmra.mrb[24].mxu1 %v10766_v10  ;;  %v11121_v33 = vsel %vm17313_vm1, %v11119_v39, %v11120_v44  ;;  %v14768_v10 = vld [vmem:[#allocation21 + $0x8a0] ss:$8 sps:$4 sm:$0xff]   ;;  %vm11609_vm1 = vcmask 0  }
 0x7a7   : > { %11030 = vmatprep.mubr.bf16.mxu1 %v10801_v48  ;;  %11299 = vmatpush1.bf16.msra.mxu1 %v14734_v34  ;;  %v14767_v34 = vld [vmem:[#allocation21 + $0x894] ss:$8 sps:$4 sm:$0xff]   ;;  %v14776_v48 = vld [vmem:[#allocation21 + $0x8c4] ss:$8 sps:$4 sm:$0xff]  }
 0x7a8   : > { %11300 = vmatprep.subr.bf16.mxu1 %v14739_v31  ;;  %v14765_v31 = vld [vmem:[#allocation21 + $0x890] ss:$8 sps:$4 sm:$0xff]  }
 0x7ab   : > { %11301 = vmatpush1.bf16.msra.mxu1 %v14737_v47  ;;  %v14777_v47 = vld [vmem:[#allocation21 + $0x8d0] ss:$8 sps:$4 sm:$0xff]  }
 0x7ac   : > { %11302 = vmatprep.subr.bf16.mxu1 %v14742_v1  ;;  %v14782_v1 = vld [vmem:[#allocation21 + $0x8e4] ss:$8 sps:$4 sm:$0xff]  }
 0x7ae   : > { %11031 = vmatmul.mubr.bf16.gmra.mrb[28].mxu1 %v10792_v29  ;;  %v11116_v29 = vrot.slane %v12602_v16, 3 }
 0x7af   : > { %11040 = vmatprep.mubr.bf16.mxu1 %v10819_v46  ;;  %11303 = vmatpush1.bf16.msra.mxu1 %v14740_v19  ;;  %v11117_v19 = vrot.slane %v16920_v2, 3  ;;  %v11122_v46 = vrot.slane %v16932_v12, 3  ;;  %v11126_v2 = vrot.slane %v17092_v61, 3 }
 0x7b0   : > { %11304 = vmatprep.subr.bf16.mxu1 %v14746_v9  ;;  %v11124_v9 = vrot.slane %v16928_v56, 3 }
 0x7b1   : > { %v11118_v37 = vsel %vm17314_vm11, %v11116_v29, %v11117_v19  ;;  %v11127_v56 = vsel %vm17318_vm12, %v11122_v46, %v11126_v2 }
 0x7b2   : > { %v11125_v18 = vsel %vm17315_vm9, %v11120_v44, %v11124_v9 }
 0x7b3   : > { %11305 = vmatpush1.bf16.msra.mxu1 %v14744_v38  ;;  %v11128_v38 = vrot.slane %v17084_v63, 3 }
 0x7b4   : > { %11306 = vmatprep.subr.bf16.mxu1 %v14750_v40  ;;  %v11123_v40 = vsel %vm17316_vm4, %v11117_v19, %v11122_v46 }
 0x7b6   : > { %11041 = vmatmul.mubr.bf16.gmra.mrb[32].mxu1 %v10810_v45  ;;  %v17115_v45 = vpop.permute.xlu1 %11465 }
 0x7b7   : > { %11050 = vmatprep.mubr.bf16.mxu1 %v10818_v27  ;;  %11307 = vmatpush1.bf16.msra.mxu1 %v14748_v0  ;;  %v14783_v27 = vld [vmem:[#allocation21 + $0x8f0] ss:$8 sps:$4 sm:$0xff]   ;;  %v17113_v0 = vpop.permute.xlu0 %11460 }
 0x7b8   : > { %11308 = vmatprep.subr.bf16.mxu1 %v14753_v7  ;;  %v8399_v7 = vld [vmem:[#allocation23] sm:$0x3] }
 0x7b9   : > { %v17119_v12 = vrot.slane %v8399_v7, %v8142_v22 }
 0x7ba   : > { %v11441_v22 = vpop.permute.xlu1 %11440 }
 0x7bb   : > { %11309 = vmatpush1.bf16.msra.mxu1 %v14751_v26  ;;  %v17123_v26 = vrot.slane %v8399_v7, %v8146_v5 }
 0x7bc   : > { %11310 = vmatprep.subr.bf16.mxu1 %v14756_v41  ;;  %v17126_v41 = vpop.permute.xlu0 %11470 }
 0x7be   : > { %11051 = vmatmul.mubr.bf16.gmra.mrb[36].mxu1 %v10809_v13  ;;  %v11129_v13 = vsel %vm17317_vm8, %v11124_v9, %v11128_v38 }
 0x7bf   : > { %11311 = vmatpush1.bf16.msra.mxu1 %v14754_v25  ;;  %11330 = vmatprep.mubr.bf16.mxu1 %v11121_v33 }
 0x7c0   : > { %11312 = vmatprep.subr.bf16.mxu1 %v14761_v52 }
 0x7c3   : > { %11313 = vmatpush1.bf16.msra.mxu1 %v14759_v51 }
 0x7c4   : > { %11314 = vmatprep.subr.bf16.mxu1 %v14764_v20 }
 0x7c7   : > { %11315 = vmatpush1.bf16.msra.mxu1 %v14762_v4  ;;  %v11446_v4 = vpop.permute.xlu0 %11445 }
 0x7c8   : > { %11316 = vmatprep.subr.bf16.mxu1 %v14767_v34 }
 0x7cb   : > { %11317 = vmatpush1.bf16.msra.mxu1 %v14765_v31 }
 0x7cc   : > { %11318 = vmatprep.subr.bf16.mxu1 %v14770_v36 }
 0x7cf   : > { %11319 = vmatpush1.bf16.msra.mxu1 %v14768_v10 }
 0x7d0   : > { %11320 = vmatprep.subr.bf16.mxu1 %v14773_v42 }
 0x7d3   : > { %11321 = vmatpush1.bf16.msra.mxu1 %v14771_v24 }
 0x7d4   : > { %11322 = vmatprep.subr.bf16.mxu1 %v14776_v48 }
 0x7d7   : > { %11323 = vmatpush1.bf16.msra.mxu1 %v14774_v23 }
 0x7d8   : > { %11324 = vmatprep.subr.bf16.mxu1 %v14779_v3 }
 0x7db   : > { %11325 = vmatpush1.bf16.msra.mxu1 %v14777_v47 }
 0x7dc   : > { %11326 = vmatprep.subr.bf16.mxu1 %v14782_v1 }
 0x7df   : > { %11327 = vmatpush1.bf16.msra.mxu1 %v14780_v30 }
 0x7e0   : > { %11328 = vmatprep.subr.bf16.mxu1 %v14785_v14 }
 0x7e3   : > { %11329 = vmatpush1.bf16.msra.mxu1 %v14783_v27  ;;  %v11451_v27 = vpop.permute.xlu0 %11450 }
 0x7e6   : > { %11331 = vmatmul.mubr.bf16.vlgmr.msra.gmra.mrb[24].mxu1 %v11118_v37 }
 0x7e7   : > { %11340 = vmatprep.mubr.bf16.mxu1 %v11125_v18 }
 0x7ee   : > { %11341 = vmatmul.mubr.bf16.gmra.mrb[28].mxu1 %v11123_v40 }
 0x7ef   : > { %11350 = vmatprep.mubr.bf16.mxu1 %v11129_v13 }
 0x7f6   : > { %11351 = vmatmul.mubr.bf16.gmra.mrb[32].mxu1 %v11127_v56 }
 0x7f7   : > { %11360 = vmatprep.mubr.bf16.mxu1 %v11128_v38 }
 0x7fe   : > { %11361 = vmatmul.mubr.bf16.gmra.mrb[36].mxu1 %v11126_v2 }
 0x8b9   : > { %v11332_v63 = vpop.f32.mrb[24].mxu1 }
 0x8ba   : > { %v13405_v61 = vadd.f32 %v11332_v63, %v17045_v32  ;;  %v11334_v55 = vpop.f32.mrb[25].mxu1 }
 0x8bb   : > { %v13406_v43 = vadd.f32 %v11334_v55, %v17047_v54  ;;  %v11336_v28 = vpop.f32.mrb[26].mxu1 }
 0x8bc   : > { %v11398_v44 = vadd.f32 %v13405_v61, %v17119_v12  ;;  %v13407_v25 = vadd.f32 %v11336_v28, %v17049_v58  ;;  %v11338_v39 = vpop.f32.mrb[27].mxu1 }
 0x8bd   : > { %v11399_v52 = vadd.f32 %v13406_v43, %v17123_v26  ;;  %v13408_v17 = vadd.f32 %v11338_v39, %v17051_v50  ;;  %v17142_v50 = vpop.permute.xlu1 %11475 }
 0x8be   : > { %v11414_v5 = vmax.f32 %v11398_v44, 0.0  ;;  %v11400_v33 = vadd.f32 %v13407_v25, %v17119_v12 }
 0x8bf   : > { %v11415_v32 = vmax.f32 %v11399_v52, 0.0  ;;  %v11401_v51 = vadd.f32 %v13408_v17, %v17123_v26 }
 0x8c0   : > { %v17135_v20 = vmul.f32 %v11441_v22, %v11414_v5  ;;  %v11416_v54 = vmax.f32 %v11400_v33, 0.0 }
 0x8c1   : > { %v17137_v34 = vmul.f32 %v11441_v22, %v11415_v32  ;;  %v11417_v31 = vmax.f32 %v11401_v51, 0.0  ;;  %v11342_v58 = vpop.f32.mrb[28].mxu1  ;;  %v11456_v37 = vpop.permute.xlu1 %11455 }
 0x8c2   : > { %v17139_v36 = vmul.f32 %v11446_v4, %v11416_v54  ;;  %v13409_v10 = vadd.f32 %v11342_v58, %v17053_v21  ;;  %v11344_v42 = vpop.f32.mrb[29].mxu1 }
 0x8c3   : > { %v17144_v24 = vmul.f32 %v11446_v4, %v11417_v31  ;;  %v13410_v48 = vadd.f32 %v11344_v42, %v17055_v53  ;;  %v11346_v23 = vpop.f32.mrb[30].mxu1 }
 0x8c4   : > { %v11402_v3 = vadd.f32 %v13409_v10, %v17119_v12  ;;  %v13411_v47 = vadd.f32 %v11346_v23, %v17057_v6  ;;  %v11348_v1 = vpop.f32.mrb[31].mxu1 }
 0x8c5   : > { %v11403_v30 = vadd.f32 %v13410_v48, %v17123_v26  ;;  %v13412_v14 = vadd.f32 %v11348_v1, %v17059_v57 }
 0x8c6   : > { %v11418_v16 = vmax.f32 %v11402_v3, 0.0  ;;  %v11404_v21 = vadd.f32 %v13411_v47, %v17119_v12 }
 0x8c7   : > { %v11419_v19 = vmax.f32 %v11403_v30, 0.0  ;;  %v11405_v9 = vadd.f32 %v13412_v14, %v17123_v26 }
 0x8c8   : > { %v17153_v29 = vmul.f32 %v11451_v27, %v11418_v16  ;;  %v11420_v53 = vmax.f32 %v11404_v21, 0.0 }
 0x8c9   : > { %v17155_v18 = vmul.f32 %v11451_v27, %v11419_v19  ;;  %v11421_v46 = vmax.f32 %v11405_v9, 0.0  ;;  %v11352_v6 = vpop.f32.mrb[32].mxu1 }
 0x8ca   : > { %v17157_v38 = vmul.f32 %v11456_v37, %v11420_v53  ;;  %v13413_v40 = vadd.f32 %v11352_v6, %v17061_v62  ;;  %v11354_v57 = vpop.f32.mrb[33].mxu1 }
 0x8cb   : > { %v17160_v13 = vmul.f32 %v11456_v37, %v11421_v46  ;;  %v13414_v2 = vadd.f32 %v11354_v57, %v17063_v59  ;;  %v11356_v56 = vpop.f32.mrb[34].mxu1 }
 0x8cc   : > { %v11406_v7 = vadd.f32 %v13413_v40, %v17119_v12  ;;  %v13415_v63 = vadd.f32 %v11356_v56, %v17065_v49  ;;  %v11358_v61 = vpop.f32.mrb[35].mxu1 }
 0x8cd   : > { %v11407_v55 = vadd.f32 %v13414_v2, %v17123_v26  ;;  %v13416_v43 = vadd.f32 %v11358_v61, %v17067_v11  ;;  %v14796_v61 = vld [vmem:[#allocation9 + $0x80] sm:$0xff] }
 0x8ce   : > { %v11422_v28 = vmax.f32 %v11406_v7, 0.0  ;;  %v11408_v44 = vadd.f32 %v13415_v63, %v17119_v12 }
 0x8cf   : > { %v11423_v25 = vmax.f32 %v11407_v55, 0.0  ;;  %v11409_v62 = vadd.f32 %v13416_v43, %v17123_v26  ;;  %v11554_v55 = vrot.slane %v14796_v61, 4 }
 0x8d0   : > { %v11486_v39 = vmul.f32 %v17113_v0, %v11422_v28  ;;  %v11424_v22 = vmax.f32 %v11408_v44, 0.0 }
 0x8d1   : > { %v11487_v59 = vmul.f32 %v17113_v0, %v11423_v25  ;;  %v11425_v52 = vmax.f32 %v11409_v62, 0.0  ;;  %v11362_v17 = vpop.f32.mrb[36].mxu1 }
 0x8d2   : > { %11502 = vst [vmem:[#allocation9 + $0x40] sm:$0xff] %v11486_v39  ;;  %v11488_v49 = vmul.f32 %v17115_v45, %v11424_v22  ;;  %v13417_v5 = vadd.f32 %v11362_v17, %v17069_v35  ;;  %v11364_v33 = vpop.f32.mrb[37].mxu1 }
 0x8d3   : > { %11503 = vst [vmem:[#allocation9 + $0x48] sm:$0xff] %v11487_v59  ;;  %v11489_v11 = vmul.f32 %v17115_v45, %v11425_v52  ;;  %v13418_v32 = vadd.f32 %v11364_v33, %v17071_v8  ;;  %v11366_v51 = vpop.f32.mrb[38].mxu1 }
 0x8d4   : > { %v11410_v54 = vadd.f32 %v13417_v5, %v17119_v12  ;;  %v13419_v4 = vadd.f32 %v11366_v51, %v17073_v15  ;;  %v11368_v31 = vpop.f32.mrb[39].mxu1  ;;  %v11541_v14 = vrot.slane %v11488_v49, 4 }
 0x8d5   : > { %v11411_v0 = vadd.f32 %v13418_v32, %v17123_v26  ;;  %v13420_v58 = vadd.f32 %v11368_v31, %v17077_v60 }
 0x8d6   : > { %v11426_v10 = vmax.f32 %v11410_v54, 0.0  ;;  %v11412_v42 = vadd.f32 %v13419_v4, %v17119_v12  ;;  %v11544_v12 = vrot.slane %v11489_v11, 4 }
 0x8d7   : > { %v11427_v35 = vmax.f32 %v11411_v0, 0.0  ;;  %v11413_v48 = vadd.f32 %v13420_v58, %v17123_v26 }
 0x8d8   : > { %v11490_v45 = vmul.f32 %v17126_v41, %v11426_v10  ;;  %v11428_v23 = vmax.f32 %v11412_v42, 0.0 }
 0x8d9   : > { %v11491_v8 = vmul.f32 %v17126_v41, %v11427_v35  ;;  %v11429_v3 = vmax.f32 %v11413_v48, 0.0  ;;  %v11520_v47 = vld [vmem:[#allocation9 + $0x40] sm:$0xf0] }
 0x8da   : > { %v11492_v15 = vmul.f32 %v17142_v50, %v11428_v23  ;;  %v11521_v1 = vld [vmem:[#allocation9 + $0x48] sm:$0xf0]  ;;  %v11540_v30 = vrot.slane %v11520_v47, 4  ;;  %v11546_v16 = vrot.slane %v11490_v45, 4  ;;  %v11519_v59 = vld [vmem:[#allocation9 + $0x48] sm:$0xf] }
 0x8db   : > { %v11493_v60 = vmul.f32 %v17142_v50, %v11429_v3  ;;  %v11543_v21 = vrot.slane %v11521_v1, 4  ;;  %v11548_v27 = vrot.slane %v11491_v8, 4  ;;  %v11577_v32 = vsub.f32 %v11519_v59, %v11554_v55 }
 0x8dc   : > { %11508 = vst [vmem:[#allocation9 + $0x70] sm:$0x3] %v11492_v15  ;;  %v11542_v26 = vsel %vm17319_vm2, %v11540_v30, %v11541_v14  ;;  %v11547_v19 = vsel %vm17320_vm10, %v11541_v14, %v11546_v16 }
 0x8dd   : > { %11509 = vst [vmem:[#allocation9 + $0x78] sm:$0x3] %v11493_v60  ;;  %v11545_v41 = vsel %vm17321_vm5, %v11543_v21, %v11544_v12  ;;  %v11549_v9 = vsel %vm17322_vm0, %v11544_v12, %v11548_v27  ;;  %v11568_v53 = vsub.f32 %v17135_v20, %v11542_v26  ;;  %v11570_v37 = vsub.f32 %v17139_v36, %v11547_v19 }
 0x8de   : > { %v11569_v46 = vsub.f32 %v17137_v34, %v11545_v41  ;;  %v11571_v50 = vsub.f32 %v17144_v24, %v11549_v9  ;;  %v11518_v34 = vld [vmem:[#allocation9 + $0x40] sm:$0xf] }
 0x8df   : > { %v11578_v6 = vmul.f32 %v11568_v53, %v11568_v53  ;;  %v11580_v57 = vmul.f32 %v11570_v37, %v11570_v37  ;;  %v11576_v49 = vsub.f32 %v11518_v34, %v11554_v55 }
 0x8e0   : > { %v11579_v40 = vmul.f32 %v11569_v46, %v11569_v46  ;;  %v11581_v43 = vmul.f32 %v11571_v50, %v11571_v50 }
 0x8e1   : > { %v11586_v4 = vmul.f32 %v11576_v49, %v11576_v49 }
 0x8e2   : > { %v11588_v2 = vadd.f32 %v11579_v40, %v11578_v6 }
 0x8e3   : > { %v11526_v56 = vld [vmem:[#allocation9 + $0x70] sm:$0xff] }
 0x8e4   : > { %v11527_v7 = vld [vmem:[#allocation9 + $0x78] sm:$0xff]  ;;  %v11550_v63 = vrot.slane %v11526_v56, 4  ;;  %v11589_v28 = vadd.f32 %v11588_v2, %v11580_v57 }
 0x8e5   : > { %v11552_v44 = vrot.slane %v11527_v7, 4 }
 0x8e6   : > { %v11551_v20 = vsel %vm17323_vm3, %v11546_v16, %v11550_v63  ;;  %v11555_v36 = vsel %vm17324_vm15, %v11550_v63, %v11554_v55  ;;  %v11590_v25 = vadd.f32 %v11589_v28, %v11581_v43 }
 0x8e7   : > { %v11553_v24 = vsel %vm17325_vm7, %v11548_v27, %v11552_v44  ;;  %v11572_v62 = vsub.f32 %v17153_v29, %v11551_v20  ;;  %v11557_v39 = vsel %vm17326_vm14, %v11552_v44, %v11554_v55  ;;  %v11574_v52 = vsub.f32 %v17157_v38, %v11555_v36 }
 0x8e8   : > { %v11573_v22 = vsub.f32 %v17155_v18, %v11553_v24  ;;  %v11575_v33 = vsub.f32 %v17160_v13, %v11557_v39  ;;  %v11587_v29 = vmul.f32 %v11577_v32, %v11577_v32  ;;  %v11595_v18 = vsel %vm17327_vm6, %v11586_v4, 0.0 }
 0x8e9   : > { %v11582_v17 = vmul.f32 %v11572_v62, %v11572_v62  ;;  %v11584_v51 = vmul.f32 %v11574_v52, %v11574_v52 }
 0x8ea   : > { %v11583_v5 = vmul.f32 %v11573_v22, %v11573_v22  ;;  %v11585_v31 = vmul.f32 %v11575_v33, %v11575_v33  ;;  %v11597_v38 = vsel %vm17328_vm13, %v11587_v29, 0.0 }
 0x8eb   : > { %v11591_v11 = vadd.f32 %v11590_v25, %v11582_v17 }
 0x8ed   : > { %v11592_v54 = vadd.f32 %v11591_v11, %v11583_v5 }
 0x8ef   : > { %v11593_v0 = vadd.f32 %v11592_v54, %v11584_v51 }
 0x8f1   : > { %v11594_v58 = vadd.f32 %v11593_v0, %v11585_v31 }
 0x8f3   : > { %v11596_v10 = vadd.f32 %v11595_v18, %v11594_v58 }
 0x8f5   : > { %v11598_v42 = vadd.f32 %v11597_v38, %v11596_v10 }
 0x8f7   : > { %11599 = vadd.xlane.f32.xlu0 %v11598_v42 }
 0x984   : > { %v11600_v35 = vpop.xlane.xlu0 %11599 }
 0x985   : > { %v11601_v48 = vrot.slane %v11600_v35, 4 }
 0x987   : > { %v11602_v13 = vadd.f32 %v11601_v48, %v11600_v35 }
 0x989   : > { %v11603_v45 = vrot.slane %v11602_v13, 2 }
 0x98b   : > { %v11604_v23 = vadd.f32 %v11603_v45, %v11602_v13 }
 0x98d   : > { %v11605_v8 = vrot.slane %v11604_v23, 1 }
 0x98f   : > { %v11606_v3 = vadd.f32 %v11605_v8, %v11604_v23 }
 0x991   : > { %13822 = vpush %v11606_v3 }
 0x9c2   : > { %s13823_s12 = spop %13822 }
 0x9c3   : > { %v11608_v47 = vstv %s13823_s12 }
 0x9c4   : > { %11610 = vst.msk [vmem:[%s478_s24] sm:$0x1] %vm11609_vm1, %v11608_v47 }
 0x9c5 PF: > { %s25_s13 = sadd.s32 1, %s15075_s13  }
 0x9c6   : > { %p22_p9 = scmp.ge.s32.totalorder %s25_s13, 4  }
 0x9c8   :  { %24 = sbr.rel (!%p22_p9) target bundleno = 5 (0x5), region = 341 }
 0x9cf   :  { %11628 = vsyncpa [#allocation11], 1 }
 0x9d0   :  { %11630 = vsyncpa [#allocation11 + $0x1], 1 }
 0x9d1   :  { %11631 = vsyncpa [#allocation13], 1 }
 0x9d2   :  { %11632 = vsyncpa [#allocation16], 1 }
 0x9d3   :  { %11633 = vsyncpa [#allocation19], 1 }
 0x9d4   :  { %11634 = vsyncpa [#allocation22], 1 }

</bundles_post_ra>
